<compile_context>
chip_gen: v7x
topology: tpu7x:2x2x1
jax: 0.10.0
libtpu: 0.0.40
codegen_flags: <defaults>
</compile_context>

<pallas_src>
import jax
import jax.numpy as jnp
from jax.experimental import pallas as pl
from jax.experimental.pallas import tpu as pltpu

BN_EPS = 1e-5  # PyTorch BatchNorm2d default


# ----------------------------------------------------------------------------
# small helpers
# ----------------------------------------------------------------------------
def _round_up(x, m):
    return ((x + m - 1) // m) * m


def _pick_divisor_tile(total, target, quantum):
    """Largest multiple of `quantum` that divides `total` and is <= target.
    Falls back to the full extent (always legal as a block dim)."""
    best = None
    d = quantum
    while d <= min(total, target):
        if total % d == 0:
            best = d
        d += quantum
    return best if best is not None else total


# ----------------------------------------------------------------------------
# Pallas kernels
# ----------------------------------------------------------------------------
def _matmul_kernel_factory(add_bias):
    """Tiled conv-as-matmul: bf16 operands, f32 accumulator, optional bias."""

    def kernel(*refs):
        if add_bias:
            x_ref, w_ref, b_ref, o_ref, acc_ref = refs
        else:
            x_ref, w_ref, o_ref, acc_ref = refs
        k = pl.program_id(2)

        @pl.when(k == 0)
        def _():
            acc_ref[...] = jnp.zeros_like(acc_ref)

        acc_ref[...] += jnp.dot(x_ref[...], w_ref[...],
                                preferred_element_type=jnp.float32)

        @pl.when(k == pl.num_programs(2) - 1)
        def _():
            y = acc_ref[...]
            if add_bias:
                y = y + b_ref[...]
            o_ref[...] = y.astype(o_ref.dtype)

    return kernel


def _colsum_kernel(y_ref, o_ref, acc_ref):
    """Per-channel sum over all rows (M axis is the last, 'arbitrary' grid axis)."""
    i = pl.program_id(1)

    @pl.when(i == 0)
    def _():
        acc_ref[...] = jnp.zeros_like(acc_ref)

    acc_ref[...] += jnp.sum(y_ref[...], axis=0, keepdims=True)

    @pl.when(i == pl.num_programs(1) - 1)
    def _():
        o_ref[...] = acc_ref[...]


def _colvar_kernel(y_ref, mean_ref, o_ref, acc_ref):
    """Per-channel centered sum of squares (second BN pass, cancellation-safe)."""
    i = pl.program_id(1)

    @pl.when(i == 0)
    def _():
        acc_ref[...] = jnp.zeros_like(acc_ref)

    d = y_ref[...] - mean_ref[...]
    acc_ref[...] += jnp.sum(d * d, axis=0, keepdims=True)

    @pl.when(i == pl.num_programs(1) - 1)
    def _():
        o_ref[...] = acc_ref[...]


def _bn_apply_kernel_factory(has_res, relu):
    """Fused BN normalize + affine (+ residual add) (+ ReLU), all in f32."""

    def kernel(*refs):
        if has_res:
            y_ref, mean_ref, var_ref, g_ref, b_ref, res_ref, o_ref = refs
        else:
            y_ref, mean_ref, var_ref, g_ref, b_ref, o_ref = refs
        y = (y_ref[...] - mean_ref[...]) * jax.lax.rsqrt(var_ref[...] + BN_EPS)
        y = y * g_ref[...] + b_ref[...]
        if has_res:
            y = y + res_ref[...]
        if relu:
            y = jnp.maximum(y, 0.0)
        o_ref[...] = y.astype(o_ref.dtype)

    return kernel


# ----------------------------------------------------------------------------
# Pallas wrappers
# ----------------------------------------------------------------------------
def conv_matmul(patches, w2, bias=None):
    """patches:(M,Kp) bf16, w2:(Kp,Cp) bf16 -> (M,Cp) f32 conv output."""
    M, Kp = patches.shape
    Kp2, Cp = w2.shape
    assert Kp == Kp2

    tm = _pick_divisor_tile(M, 512, 16)    # keep working set v7x-friendly
    tk = _pick_divisor_tile(Kp, 512, 128)  # MXU-aligned K tile
    tn = _pick_divisor_tile(Cp, 256, 128)  # lane-dense, MXU-aligned N tile
    grid = (M // tm, Cp // tn, Kp // tk)

    add_bias = bias is not None
    in_specs = [
        pl.BlockSpec((tm, tk), lambda i, j, k: (i, k)),
        pl.BlockSpec((tk, tn), lambda i, j, k: (k, j)),
    ]
    args = [patches, w2]
    if add_bias:
        in_specs.append(pl.BlockSpec((1, tn), lambda i, j, k: (0, j)))
        args.append(bias)

    flops = 2 * M * Kp * Cp
    bytes_accessed = int(patches.size * patches.dtype.itemsize
                         + w2.size * w2.dtype.itemsize * (M // tm)
                         + M * Cp * 4)
    # double-buffered bf16 inputs + double-buffered f32 output + f32 accumulator
    vmem_need = 2 * (tm * tk + tk * tn) * 2 + 2 * tm * tn * 4 + tm * tn * 4
    vmem_limit = int(min(max(2 * vmem_need, 16 * 1024 * 1024), 32 * 1024 * 1024))

    return pl.pallas_call(
        _matmul_kernel_factory(add_bias),
        out_shape=jax.ShapeDtypeStruct((M, Cp), jnp.float32),
        grid_spec=pltpu.PrefetchScalarGridSpec(
            num_scalar_prefetch=0,
            grid=grid,
            in_specs=in_specs,
            out_specs=pl.BlockSpec((tm, tn), lambda i, j, k: (i, j)),
            scratch_shapes=[pltpu.VMEM((tm, tn), jnp.float32)],
        ),
        compiler_params=pltpu.CompilerParams(
            dimension_semantics=("parallel", "parallel", "arbitrary"),
            vmem_limit_bytes=vmem_limit),
        cost_estimate=pl.CostEstimate(flops=flops, transcendentals=0,
                                      bytes_accessed=bytes_accessed),
    )(*args)


def _column_reduce(y, mean=None):
    """Tiled per-channel reduction over rows of y:(M,Cp) f32 -> (1,Cp) f32.
    mean=None -> column sums; mean given -> centered sum of squares."""
    M, Cp = y.shape
    tm = _pick_divisor_tile(M, 1024, 8)
    tn = _pick_divisor_tile(Cp, 256, 128)
    grid = (Cp // tn, M // tm)  # reduction (M) axis last

    in_specs = [pl.BlockSpec((tm, tn), lambda j, i: (i, j))]
    args = [y]
    kernel = _colsum_kernel
    if mean is not None:
        in_specs.append(pl.BlockSpec((1, tn), lambda j, i: (0, j)))
        args.append(mean)
        kernel = _colvar_kernel

    return pl.pallas_call(
        kernel,
        out_shape=jax.ShapeDtypeStruct((1, Cp), jnp.float32),
        grid_spec=pltpu.PrefetchScalarGridSpec(
            num_scalar_prefetch=0,
            grid=grid,
            in_specs=in_specs,
            out_specs=pl.BlockSpec((1, tn), lambda j, i: (0, j)),
            scratch_shapes=[pltpu.VMEM((1, tn), jnp.float32)],
        ),
        compiler_params=pltpu.CompilerParams(
            dimension_semantics=("parallel", "arbitrary")),
    )(*args)


def bn_apply(y, mean, var, gamma, beta, residual=None, relu=True):
    """Fused normalize + affine (+residual) (+ReLU) over tiles of y:(M,Cp)."""
    M, Cp = y.shape
    tm = _pick_divisor_tile(M, 512, 8)
    tn = _pick_divisor_tile(Cp, 256, 128)
    grid = (M // tm, Cp // tn)

    tile_spec = pl.BlockSpec((tm, tn), lambda i, j: (i, j))
    row_spec = pl.BlockSpec((1, tn), lambda i, j: (0, j))
    in_specs = [tile_spec, row_spec, row_spec, row_spec, row_spec]
    args = [y, mean, var, gamma, beta]
    if residual is not None:
        in_specs.append(tile_spec)
        args.append(residual)

    return pl.pallas_call(
        _bn_apply_kernel_factory(residual is not None, relu),
        out_shape=jax.ShapeDtypeStruct((M, Cp), jnp.float32),
        grid_spec=pltpu.PrefetchScalarGridSpec(
            num_scalar_prefetch=0,
            grid=grid,
            in_specs=in_specs,
            out_specs=tile_spec,
        ),
        compiler_params=pltpu.CompilerParams(
            dimension_semantics=("parallel", "parallel")),
    )(*args)


# ----------------------------------------------------------------------------
# JAX glue: padding, im2col, bilinear upsample, conv block
# ----------------------------------------------------------------------------
def _im2col(xp, k, stride, h_out, w_out):
    """xp: padded NHWC input -> (N*h_out*w_out, k*k*C), (kh,kw)-major, C-minor."""
    n, _, _, c = xp.shape
    cols = []
    for kh in range(k):
        for kw in range(k):
            cols.append(xp[:, kh:kh + stride * h_out:stride,
                           kw:kw + stride * w_out:stride, :])
    p = jnp.stack(cols, axis=3)  # (N, Ho, Wo, k*k, C)
    return p.reshape(n * h_out * w_out, k * k * c)


def conv2d_block(x_nhwc, layer, *, k, stride, padding, pad_mode,
                 use_bn, relu, residual=None):
    """One Conv2d(+train-mode BN)(+residual)(+ReLU) block, all hot paths in Pallas."""
    n, h, wd, c = x_nhwc.shape
    w2 = layer["w2"]                       # (Kp, Cp) bf16, pre-packed at init
    Kp, Cp = w2.shape
    K = k * k * c

    h_out = (h + 2 * padding - k) // stride + 1
    w_out = (wd + 2 * padding - k) // stride + 1
    M = n * h_out * w_out

    xb = x_nhwc.astype(jnp.bfloat16)       # bf16 MXU operands, halves im2col traffic
    if padding > 0:
        cfg = ((0, 0), (padding, padding), (padding, padding), (0, 0))
        xb = jnp.pad(xb, cfg, mode="reflect" if pad_mode == "reflect" else "constant")

    patches = _im2col(xb, k, stride, h_out, w_out)        # (M, K) bf16
    if Kp > K:                                            # pad K to MXU-aligned width
        patches = jnp.pad(patches, ((0, 0), (0, Kp - K)))

    bias = None if use_bn else layer["bias"]              # bias only for the no-BN conv
    y = conv_matmul(patches, w2, bias=bias)               # (M, Cp) f32

    if use_bn:
        # two-pass train-mode BN: mean, then centered (biased) variance
        col_sum = _column_reduce(y)
        mean = col_sum / jnp.float32(M)
        col_sq = _column_reduce(y, mean=mean)
        var = col_sq / jnp.float32(M)
        res2 = residual.reshape(M, Cp) if residual is not None else None
        y = bn_apply(y, mean, var, layer["gamma"], layer["beta"],
                     residual=res2, relu=relu)

    return y.reshape(n, h_out, w_out, Cp)


def _interp_matrix(n_in):
    """Linear interpolation matrix for x2 upsample, align_corners=True."""
    n_out = 2 * n_in
    if n_in == 1:
        return jnp.ones((n_out, 1), jnp.float32)
    pos = jnp.arange(n_out, dtype=jnp.float32) * (n_in - 1) / (n_out - 1)
    lo = jnp.minimum(jnp.floor(pos).astype(jnp.int32), n_in - 2)
    frac = pos - lo.astype(jnp.float32)
    rows = jnp.arange(n_out)
    mat = jnp.zeros((n_out, n_in), jnp.float32)
    mat = mat.at[rows, lo].add(1.0 - frac)
    mat = mat.at[rows, lo + 1].add(frac)
    return mat


def upsample_bilinear_x2(x_nhwc):
    # pure data movement; C stays in the last (lane) dim throughout.
    n, h, w, c = x_nhwc.shape
    ah = _interp_matrix(h)
    aw = _interp_matrix(w)
    y = jnp.einsum("ph,nhwc->npwc", ah, x_nhwc)
    y = jnp.einsum("qw,npwc->npqc", aw, y)
    return y


# ----------------------------------------------------------------------------
# parameters (pre-packed matmul-layout weights, channel-padded to 128)
# ----------------------------------------------------------------------------
def _init_conv_layer(key, cin, cout, k, use_bn, cin_pad):
    cout_pad = _round_up(cout, 128)
    K = k * k * cin_pad
    Kp = _round_up(K, 128)
    k1, k2, k3, k4 = jax.random.split(key, 4)
    fan_in = cin * k * k
    std = 1.0 / (fan_in ** 0.5)

    w = jax.random.uniform(k1, (cout, cin, k, k), jnp.float32, -std, std)
    # pack to (kh, kw, cin_pad, cout) matmul layout, zero-pad K and Cout
    w_full = jnp.zeros((cout, cin_pad, k, k), jnp.float32).at[:, :cin].set(w)
    w2 = jnp.transpose(w_full, (2, 3, 1, 0)).reshape(K, cout)
    w2 = jnp.zeros((Kp, cout_pad), jnp.float32).at[:K, :cout].set(w2)

    layer = {"w2": w2.astype(jnp.bfloat16)}
    if use_bn:
        # conv bias omitted: exactly cancelled by train-mode BN mean subtraction
        gamma = 1.0 + 0.1 * jax.random.normal(k3, (cout,), jnp.float32)
        beta = 0.1 * jax.random.normal(k4, (cout,), jnp.float32)
        layer["gamma"] = jnp.ones((1, cout_pad), jnp.float32).at[0, :cout].set(gamma)
        layer["beta"] = jnp.zeros((1, cout_pad), jnp.float32).at[0, :cout].set(beta)
    else:
        b = jax.random.uniform(k2, (cout,), jnp.float32, -std, std)
        layer["bias"] = jnp.zeros((1, cout_pad), jnp.float32).at[0, :cout].set(b)
    return layer


def init_generator_params(key, input_c=3, features=64, number_res=6):
    keys = iter(jax.random.split(key, 64))
    P = lambda c: _round_up(c, 128)  # padded channel count carried between layers
    params = {}
    params["initial"] = _init_conv_layer(next(keys), input_c, features, 7, True,
                                         cin_pad=input_c)

    down = []
    for i in range(3):
        cin, cout = (2 ** i) * features, (2 ** (i + 1)) * features
        down.append(_init_conv_layer(next(keys), cin, cout, 3, True, cin_pad=P(cin)))
    for _ in range(3):
        down.append(_init_conv_layer(next(keys), 8 * features, 8 * features, 3, True,
                                     cin_pad=P(8 * features)))
    params["down"] = down

    params["res"] = [
        {"c1": _init_conv_layer(next(keys), 8 * features, 8 * features, 3, True,
                                cin_pad=P(8 * features)),
         "c2": _init_conv_layer(next(keys), 8 * features, 8 * features, 3, True,
                                cin_pad=P(8 * features))}
        for _ in range(number_res)
    ]

    up = []
    for i in range(3):  # constructed order; reversed below like the module
        cin, cout = (2 ** (i + 1)) * features, (2 ** i) * features
        up.append(_init_conv_layer(next(keys), cin, cout, 3, True, cin_pad=P(cin)))
    for _ in range(3):
        up.append(_init_conv_layer(next(keys), 8 * features, 8 * features, 3, True,
                                   cin_pad=P(8 * features)))
    params["up"] = up[::-1]

    params["last"] = _init_conv_layer(next(keys), features, input_c, 7, False,
                                      cin_pad=P(features))
    return params


# ----------------------------------------------------------------------------
# Generator forward
# ----------------------------------------------------------------------------
def generator_forward(params, x_nchw):
    input_c = x_nchw.shape[1]
    # layout: input/output NCHW (like PyTorch); internal compute NHWC (padded C).
    x = jnp.transpose(x_nchw, (0, 2, 3, 1)).astype(jnp.float32)

    # initial: Conv2d(input_c, f, 7, pad=3 zeros) + BN + ReLU
    x = conv2d_block(x, params["initial"], k=7, stride=1, padding=3,
                     pad_mode="zeros", use_bn=True, relu=True)

    # down blocks (Conv_Block -> reflect padding): strides 2,2,2,1,1,1
    for p, s in zip(params["down"], (2, 2, 2, 1, 1, 1)):
        x = conv2d_block(x, p, k=3, stride=s, padding=1, pad_mode="reflect",
                         use_bn=True, relu=True)

    # residual blocks: ReLU(x + BN(conv(BN-ReLU(conv(x)))))
    for rp in params["res"]:
        h = conv2d_block(x, rp["c1"], k=3, stride=1, padding=1, pad_mode="reflect",
                         use_bn=True, relu=True)
        x = conv2d_block(h, rp["c2"], k=3, stride=1, padding=1, pad_mode="reflect",
                         use_bn=True, relu=True, residual=x)

    # up blocks (already reversed): UpsamplingBilinear2d(x2) then Conv (zeros pad)
    for p, s in zip(params["up"], (1, 1, 1, 2, 2, 2)):
        x = upsample_bilinear_x2(x)
        x = conv2d_block(x, p, k=3, stride=s, padding=1, pad_mode="zeros",
                         use_bn=True, relu=True)

    # last block: Conv2d(f, input_c, 7, pad=3 zeros), no BN, no activation
    x = conv2d_block(x, params["last"], k=7, stride=1, padding=3, pad_mode="zeros",
                     use_bn=False, relu=False)

    x = x[..., :input_c]                      # drop channel padding
    return jnp.transpose(x, (0, 3, 1, 2))


if __name__ == "__main__":
    key = jax.random.PRNGKey(0)
    kp, kx = jax.random.split(key)

    # small, structure-preserving configuration
    input_c, features, number_res = 3, 8, 2
    batch, height, width = 2, 16, 16

    params = init_generator_params(kp, input_c=input_c, features=features,
                                   number_res=number_res)
    x = jax.random.normal(kx, (batch, input_c, height, width), jnp.float32)

    fwd = jax.jit(generator_forward)
    y = jax.block_until_ready(fwd(params, x))

    assert y.shape == (batch, input_c, height, width), y.shape
    assert bool(jnp.all(jnp.isfinite(y)))
    print("KERNEL_OK")
</pallas_src>

<mosaic_0001>
module attributes {stable_mosaic.version = 11 : i64} {
  func.func private @main(%arg0: i32) attributes {dimension_semantics = [#tpu.dimension_semantics<core_parallel>], iteration_bounds = array<i64: 2>, tpu.core_type = #tpu.core_type<sc_scalar_subcore>, window_params = []} {
    return
  }
}

module attributes {stable_mosaic.version = 11 : i64} {
  func.func private @main(%arg0: i32) attributes {dimension_semantics = [#tpu.dimension_semantics<core_parallel>], iteration_bounds = array<i64: 2>, tpu.core_type = #tpu.core_type<sc_scalar_subcore>, window_params = []} {
    return
  }
}

module attributes {stable_mosaic.version = 11 : i64} {
  func.func @kernel(%arg0: i32, %arg1: i32, %arg2: i32, %arg3: memref<512x256xbf16, #tpu.memory_space<vmem>>, %arg4: memref<256x128xbf16, #tpu.memory_space<vmem>>, %arg5: memref<512x128xf32, #tpu.memory_space<vmem>>, %arg6: memref<512x128xf32, #tpu.memory_space<vmem>>) attributes {dimension_semantics = [#tpu.dimension_semantics<parallel>, #tpu.dimension_semantics<parallel>, #tpu.dimension_semantics<arbitrary>], iteration_bounds = array<i64: 1, 1, 1>, scalar_prefetch = 0 : i64, scratch_operands = 1 : i64, tpu.core_type = #tpu.core_type<tc>, window_params = [{transform_indices = @transform_0, window_bounds = array<i64: 512, 256>}, {transform_indices = @transform_1, window_bounds = array<i64: 256, 128>}, {transform_indices = @transform_2, window_bounds = array<i64: 512, 128>}]} {
    %c0_i32 = arith.constant 0 : i32
    %0 = arith.cmpi eq, %arg2, %c0_i32 : i32
    %1 = arith.extui %0 : i1 to i32
    %c0_i32_0 = arith.constant 0 : i32
    %2 = arith.cmpi ne, %1, %c0_i32_0 : i32
    scf.if %2 {
      %cst_10 = arith.constant 0.000000e+00 : f32
      %12 = vector.broadcast %cst_10 : f32 to vector<512x128xf32>
      %c0_11 = arith.constant 0 : index
      %c0_12 = arith.constant 0 : index
      %13 = vector.load %arg6[%c0_11, %c0_12] : memref<512x128xf32, #tpu.memory_space<vmem>>, vector<512x128xf32>
      tpu.vector_store %arg6[%c0_11, %c0_12], %12 {strides = array<i32>} : memref<512x128xf32, #tpu.memory_space<vmem>>, vector<512x128xf32>,
    } else {
    }
    %c0 = arith.constant 0 : index
    %c0_1 = arith.constant 0 : index
    %3 = vector.load %arg6[%c0, %c0_1] : memref<512x128xf32, #tpu.memory_space<vmem>>, vector<512x128xf32>
    %c0_2 = arith.constant 0 : index
    %c0_3 = arith.constant 0 : index
    %4 = vector.load %arg3[%c0_2, %c0_3] : memref<512x256xbf16, #tpu.memory_space<vmem>>, vector<512x256xbf16>
    %c0_4 = arith.constant 0 : index
    %c0_5 = arith.constant 0 : index
    %5 = vector.load %arg4[%c0_4, %c0_5] : memref<256x128xbf16, #tpu.memory_space<vmem>>, vector<256x128xbf16>
    %cst = arith.constant dense<0.000000e+00> : vector<512x128xf32>
    %6 = tpu.matmul %4, %5, %cst {dimension_numbers = #tpu.dot_dimension_numbers<[1], [0], [0], [1], [0, 0, 1, 1], [], []>} : vector<512x256xbf16>, vector<256x128xbf16>, vector<512x128xf32> -> vector<512x128xf32>
    %7 = arith.addf %3, %6 : vector<512x128xf32>
    %c0_6 = arith.constant 0 : index
    %c0_7 = arith.constant 0 : index
    %8 = vector.load %arg6[%c0_6, %c0_7] : memref<512x128xf32, #tpu.memory_space<vmem>>, vector<512x128xf32>
    tpu.vector_store %arg6[%c0_6, %c0_7], %7 {strides = array<i32>} : memref<512x128xf32, #tpu.memory_space<vmem>>, vector<512x128xf32>,
    %c0_i32_8 = arith.constant 0 : i32
    %9 = arith.cmpi eq, %arg2, %c0_i32_8 : i32
    %10 = arith.extui %9 : i1 to i32
    %c0_i32_9 = arith.constant 0 : i32
    %11 = arith.cmpi ne, %10, %c0_i32_9 : i32
    scf.if %11 {
      %c0_10 = arith.constant 0 : index
      %c0_11 = arith.constant 0 : index
      %12 = vector.load %arg6[%c0_10, %c0_11] : memref<512x128xf32, #tpu.memory_space<vmem>>, vector<512x128xf32>
      %c0_12 = arith.constant 0 : index
      %c0_13 = arith.constant 0 : index
      %13 = vector.load %arg5[%c0_12, %c0_13] : memref<512x128xf32, #tpu.memory_space<vmem>>, vector<512x128xf32>
      tpu.vector_store %arg5[%c0_12, %c0_13], %12 {strides = array<i32>} : memref<512x128xf32, #tpu.memory_space<vmem>>, vector<512x128xf32>,
    } else {
    }
    return
  }
  func.func @transform_0(%arg0: i32, %arg1: i32, %arg2: i32) -> (i32, i32) {
    %c0_i32 = arith.constant 0 : i32
    return %arg0, %arg2 : i32, i32
  }
  func.func @transform_1(%arg0: i32, %arg1: i32, %arg2: i32) -> (i32, i32) {
    %c0_i32 = arith.constant 0 : i32
    return %arg2, %arg1 : i32, i32
  }
  func.func @transform_2(%arg0: i32, %arg1: i32, %arg2: i32) -> (i32, i32) {
    %c0_i32 = arith.constant 0 : i32
    return %arg0, %arg1 : i32, i32
  }
}

module attributes {stable_mosaic.version = 11 : i64} {
  func.func @_colsum_kernel(%arg0: i32, %arg1: i32, %arg2: memref<512x128xf32, #tpu.memory_space<vmem>>, %arg3: memref<1x128xf32, #tpu.memory_space<vmem>>, %arg4: memref<1x128xf32, #tpu.memory_space<vmem>>) attributes {dimension_semantics = [#tpu.dimension_semantics<parallel>, #tpu.dimension_semantics<arbitrary>], iteration_bounds = array<i64: 1, 1>, scalar_prefetch = 0 : i64, scratch_operands = 1 : i64, tpu.core_type = #tpu.core_type<tc>, window_params = [{transform_indices = @transform_0, window_bounds = array<i64: 512, 128>}, {transform_indices = @transform_1, window_bounds = array<i64: 1, 128>}]} {
    %c0_i32 = arith.constant 0 : i32
    %0 = arith.cmpi eq, %arg1, %c0_i32 : i32
    %1 = arith.extui %0 : i1 to i32
    %c0_i32_0 = arith.constant 0 : i32
    %2 = arith.cmpi ne, %1, %c0_i32_0 : i32
    scf.if %2 {
      %cst_8 = arith.constant 0.000000e+00 : f32
      %12 = vector.broadcast %cst_8 : f32 to vector<1x128xf32>
      %c0_9 = arith.constant 0 : index
      %c0_10 = arith.constant 0 : index
      %13 = vector.load %arg4[%c0_9, %c0_10] : memref<1x128xf32, #tpu.memory_space<vmem>>, vector<1x128xf32>
      tpu.vector_store %arg4[%c0_9, %c0_10], %12 {strides = array<i32>} : memref<1x128xf32, #tpu.memory_space<vmem>>, vector<1x128xf32>,
    } else {
    }
    %c0 = arith.constant 0 : index
    %c0_1 = arith.constant 0 : index
    %3 = vector.load %arg4[%c0, %c0_1] : memref<1x128xf32, #tpu.memory_space<vmem>>, vector<1x128xf32>
    %c0_2 = arith.constant 0 : index
    %c0_3 = arith.constant 0 : index
    %4 = vector.load %arg2[%c0_2, %c0_3] : memref<512x128xf32, #tpu.memory_space<vmem>>, vector<512x128xf32>
    %cst = arith.constant dense<0.000000e+00> : vector<128xf32>
    %5 = vector.multi_reduction <add>, %4, %cst [0] : vector<512x128xf32> to vector<128xf32>
    %6 = vector.shape_cast %5 : vector<128xf32> to vector<1x128xf32>
    %7 = arith.addf %3, %6 : vector<1x128xf32>
    %c0_4 = arith.constant 0 : index
    %c0_5 = arith.constant 0 : index
    %8 = vector.load %arg4[%c0_4, %c0_5] : memref<1x128xf32, #tpu.memory_space<vmem>>, vector<1x128xf32>
    tpu.vector_store %arg4[%c0_4, %c0_5], %7 {strides = array<i32>} : memref<1x128xf32, #tpu.memory_space<vmem>>, vector<1x128xf32>,
    %c0_i32_6 = arith.constant 0 : i32
    %9 = arith.cmpi eq, %arg1, %c0_i32_6 : i32
    %10 = arith.extui %9 : i1 to i32
    %c0_i32_7 = arith.constant 0 : i32
    %11 = arith.cmpi ne, %10, %c0_i32_7 : i32
    scf.if %11 {
      %c0_8 = arith.constant 0 : index
      %c0_9 = arith.constant 0 : index
      %12 = vector.load %arg4[%c0_8, %c0_9] : memref<1x128xf32, #tpu.memory_space<vmem>>, vector<1x128xf32>
      %c0_10 = arith.constant 0 : index
      %c0_11 = arith.constant 0 : index
      %13 = vector.load %arg3[%c0_10, %c0_11] : memref<1x128xf32, #tpu.memory_space<vmem>>, vector<1x128xf32>
      tpu.vector_store %arg3[%c0_10, %c0_11], %12 {strides = array<i32>} : memref<1x128xf32, #tpu.memory_space<vmem>>, vector<1x128xf32>,
    } else {
    }
    return
  }
  func.func @transform_0(%arg0: i32, %arg1: i32) -> (i32, i32) {
    %c0_i32 = arith.constant 0 : i32
    return %arg1, %arg0 : i32, i32
  }
  func.func @transform_1(%arg0: i32, %arg1: i32) -> (i32, i32) {
    %c0_i32 = arith.constant 0 : i32
    %c0_i32_0 = arith.constant 0 : i32
    return %c0_i32, %arg0 : i32, i32
  }
}

module attributes {stable_mosaic.version = 11 : i64} {
  func.func @_colvar_kernel(%arg0: i32, %arg1: i32, %arg2: memref<512x128xf32, #tpu.memory_space<vmem>>, %arg3: memref<1x128xf32, #tpu.memory_space<vmem>>, %arg4: memref<1x128xf32, #tpu.memory_space<vmem>>, %arg5: memref<1x128xf32, #tpu.memory_space<vmem>>) attributes {dimension_semantics = [#tpu.dimension_semantics<parallel>, #tpu.dimension_semantics<arbitrary>], iteration_bounds = array<i64: 1, 1>, scalar_prefetch = 0 : i64, scratch_operands = 1 : i64, tpu.core_type = #tpu.core_type<tc>, window_params = [{transform_indices = @transform_0, window_bounds = array<i64: 512, 128>}, {transform_indices = @transform_1, window_bounds = array<i64: 1, 128>}, {transform_indices = @transform_2, window_bounds = array<i64: 1, 128>}]} {
    %c0_i32 = arith.constant 0 : i32
    %0 = arith.cmpi eq, %arg1, %c0_i32 : i32
    %1 = arith.extui %0 : i1 to i32
    %c0_i32_0 = arith.constant 0 : i32
    %2 = arith.cmpi ne, %1, %c0_i32_0 : i32
    scf.if %2 {
      %cst_10 = arith.constant 0.000000e+00 : f32
      %16 = vector.broadcast %cst_10 : f32 to vector<1x128xf32>
      %c0_11 = arith.constant 0 : index
      %c0_12 = arith.constant 0 : index
      %17 = vector.load %arg5[%c0_11, %c0_12] : memref<1x128xf32, #tpu.memory_space<vmem>>, vector<1x128xf32>
      tpu.vector_store %arg5[%c0_11, %c0_12], %16 {strides = array<i32>} : memref<1x128xf32, #tpu.memory_space<vmem>>, vector<1x128xf32>,
    } else {
    }
    %c0 = arith.constant 0 : index
    %c0_1 = arith.constant 0 : index
    %3 = vector.load %arg2[%c0, %c0_1] : memref<512x128xf32, #tpu.memory_space<vmem>>, vector<512x128xf32>
    %c0_2 = arith.constant 0 : index
    %c0_3 = arith.constant 0 : index
    %4 = vector.load %arg3[%c0_2, %c0_3] : memref<1x128xf32, #tpu.memory_space<vmem>>, vector<1x128xf32>
    %5 = vector.broadcast %4 : vector<1x128xf32> to vector<512x128xf32>
    %6 = arith.subf %3, %5 : vector<512x128xf32>
    %c0_4 = arith.constant 0 : index
    %c0_5 = arith.constant 0 : index
    %7 = vector.load %arg5[%c0_4, %c0_5] : memref<1x128xf32, #tpu.memory_space<vmem>>, vector<1x128xf32>
    %8 = arith.mulf %6, %6 : vector<512x128xf32>
    %cst = arith.constant dense<0.000000e+00> : vector<128xf32>
    %9 = vector.multi_reduction <add>, %8, %cst [0] : vector<512x128xf32> to vector<128xf32>
    %10 = vector.shape_cast %9 : vector<128xf32> to vector<1x128xf32>
    %11 = arith.addf %7, %10 : vector<1x128xf32>
    %c0_6 = arith.constant 0 : index
    %c0_7 = arith.constant 0 : index
    %12 = vector.load %arg5[%c0_6, %c0_7] : memref<1x128xf32, #tpu.memory_space<vmem>>, vector<1x128xf32>
    tpu.vector_store %arg5[%c0_6, %c0_7], %11 {strides = array<i32>} : memref<1x128xf32, #tpu.memory_space<vmem>>, vector<1x128xf32>,
    %c0_i32_8 = arith.constant 0 : i32
    %13 = arith.cmpi eq, %arg1, %c0_i32_8 : i32
    %14 = arith.extui %13 : i1 to i32
    %c0_i32_9 = arith.constant 0 : i32
    %15 = arith.cmpi ne, %14, %c0_i32_9 : i32
    scf.if %15 {
      %c0_10 = arith.constant 0 : index
      %c0_11 = arith.constant 0 : index
      %16 = vector.load %arg5[%c0_10, %c0_11] : memref<1x128xf32, #tpu.memory_space<vmem>>, vector<1x128xf32>
      %c0_12 = arith.constant 0 : index
      %c0_13 = arith.constant 0 : index
      %17 = vector.load %arg4[%c0_12, %c0_13] : memref<1x128xf32, #tpu.memory_space<vmem>>, vector<1x128xf32>
      tpu.vector_store %arg4[%c0_12, %c0_13], %16 {strides = array<i32>} : memref<1x128xf32, #tpu.memory_space<vmem>>, vector<1x128xf32>,
    } else {
    }
    return
  }
  func.func @transform_0(%arg0: i32, %arg1: i32) -> (i32, i32) {
    %c0_i32 = arith.constant 0 : i32
    return %arg1, %arg0 : i32, i32
  }
  func.func @transform_1(%arg0: i32, %arg1: i32) -> (i32, i32) {
    %c0_i32 = arith.constant 0 : i32
    %c0_i32_0 = arith.constant 0 : i32
    return %c0_i32, %arg0 : i32, i32
  }
  func.func @transform_2(%arg0: i32, %arg1: i32) -> (i32, i32) {
    %c0_i32 = arith.constant 0 : i32
    %c0_i32_0 = arith.constant 0 : i32
    return %c0_i32, %arg0 : i32, i32
  }
}

module attributes {stable_mosaic.version = 11 : i64} {
  func.func @kernel(%arg0: i32, %arg1: i32, %arg2: memref<512x128xf32, #tpu.memory_space<vmem>>, %arg3: memref<1x128xf32, #tpu.memory_space<vmem>>, %arg4: memref<1x128xf32, #tpu.memory_space<vmem>>, %arg5: memref<1x128xf32, #tpu.memory_space<vmem>>, %arg6: memref<1x128xf32, #tpu.memory_space<vmem>>, %arg7: memref<512x128xf32, #tpu.memory_space<vmem>>) attributes {dimension_semantics = [#tpu.dimension_semantics<parallel>, #tpu.dimension_semantics<parallel>], iteration_bounds = array<i64: 1, 1>, scalar_prefetch = 0 : i64, scratch_operands = 0 : i64, tpu.core_type = #tpu.core_type<tc>, window_params = [{transform_indices = @transform_0, window_bounds = array<i64: 512, 128>}, {transform_indices = @transform_1, window_bounds = array<i64: 1, 128>}, {transform_indices = @transform_2, window_bounds = array<i64: 1, 128>}, {transform_indices = @transform_3, window_bounds = array<i64: 1, 128>}, {transform_indices = @transform_4, window_bounds = array<i64: 1, 128>}, {transform_indices = @transform_5, window_bounds = array<i64: 512, 128>}]} {
    %c0 = arith.constant 0 : index
    %c0_0 = arith.constant 0 : index
    %0 = vector.load %arg2[%c0, %c0_0] : memref<512x128xf32, #tpu.memory_space<vmem>>, vector<512x128xf32>
    %c0_1 = arith.constant 0 : index
    %c0_2 = arith.constant 0 : index
    %1 = vector.load %arg3[%c0_1, %c0_2] : memref<1x128xf32, #tpu.memory_space<vmem>>, vector<1x128xf32>
    %2 = vector.broadcast %1 : vector<1x128xf32> to vector<512x128xf32>
    %3 = arith.subf %0, %2 : vector<512x128xf32>
    %c0_3 = arith.constant 0 : index
    %c0_4 = arith.constant 0 : index
    %4 = vector.load %arg4[%c0_3, %c0_4] : memref<1x128xf32, #tpu.memory_space<vmem>>, vector<1x128xf32>
    %cst = arith.constant 9.99999974E-6 : f32
    %5 = vector.broadcast %cst : f32 to vector<1x128xf32>
    %6 = arith.addf %4, %5 : vector<1x128xf32>
    %7 = math.rsqrt %6 : vector<1x128xf32>
    %8 = vector.broadcast %7 : vector<1x128xf32> to vector<512x128xf32>
    %9 = arith.mulf %3, %8 : vector<512x128xf32>
    %c0_5 = arith.constant 0 : index
    %c0_6 = arith.constant 0 : index
    %10 = vector.load %arg5[%c0_5, %c0_6] : memref<1x128xf32, #tpu.memory_space<vmem>>, vector<1x128xf32>
    %11 = vector.broadcast %10 : vector<1x128xf32> to vector<512x128xf32>
    %12 = arith.mulf %9, %11 : vector<512x128xf32>
    %c0_7 = arith.constant 0 : index
    %c0_8 = arith.constant 0 : index
    %13 = vector.load %arg6[%c0_7, %c0_8] : memref<1x128xf32, #tpu.memory_space<vmem>>, vector<1x128xf32>
    %14 = vector.broadcast %13 : vector<1x128xf32> to vector<512x128xf32>
    %15 = arith.addf %12, %14 : vector<512x128xf32>
    %cst_9 = arith.constant 0.000000e+00 : f32
    %16 = vector.broadcast %cst_9 : f32 to vector<512x128xf32>
    %17 = arith.maximumf %15, %16 : vector<512x128xf32>
    %c0_10 = arith.constant 0 : index
    %c0_11 = arith.constant 0 : index
    %18 = vector.load %arg7[%c0_10, %c0_11] : memref<512x128xf32, #tpu.memory_space<vmem>>, vector<512x128xf32>
    tpu.vector_store %arg7[%c0_10, %c0_11], %17 {strides = array<i32>} : memref<512x128xf32, #tpu.memory_space<vmem>>, vector<512x128xf32>,
    return
  }
  func.func @transform_0(%arg0: i32, %arg1: i32) -> (i32, i32) {
    %c0_i32 = arith.constant 0 : i32
    return %arg0, %arg1 : i32, i32
  }
  func.func @transform_1(%arg0: i32, %arg1: i32) -> (i32, i32) {
    %c0_i32 = arith.constant 0 : i32
    %c0_i32_0 = arith.constant 0 : i32
    return %c0_i32, %arg1 : i32, i32
  }
  func.func @transform_2(%arg0: i32, %arg1: i32) -> (i32, i32) {
    %c0_i32 = arith.constant 0 : i32
    %c0_i32_0 = arith.constant 0 : i32
    return %c0_i32, %arg1 : i32, i32
  }
  func.func @transform_3(%arg0: i32, %arg1: i32) -> (i32, i32) {
    %c0_i32 = arith.constant 0 : i32
    %c0_i32_0 = arith.constant 0 : i32
    return %c0_i32, %arg1 : i32, i32
  }
  func.func @transform_4(%arg0: i32, %arg1: i32) -> (i32, i32) {
    %c0_i32 = arith.constant 0 : i32
    %c0_i32_0 = arith.constant 0 : i32
    return %c0_i32, %arg1 : i32, i32
  }
  func.func @transform_5(%arg0: i32, %arg1: i32) -> (i32, i32) {
    %c0_i32 = arith.constant 0 : i32
    return %arg0, %arg1 : i32, i32
  }
}

module attributes {stable_mosaic.version = 11 : i64} {
  func.func @_colsum_kernel(%arg0: i32, %arg1: i32, %arg2: memref<128x128xf32, #tpu.memory_space<vmem>>, %arg3: memref<1x128xf32, #tpu.memory_space<vmem>>, %arg4: memref<1x128xf32, #tpu.memory_space<vmem>>) attributes {dimension_semantics = [#tpu.dimension_semantics<parallel>, #tpu.dimension_semantics<arbitrary>], iteration_bounds = array<i64: 1, 1>, scalar_prefetch = 0 : i64, scratch_operands = 1 : i64, tpu.core_type = #tpu.core_type<tc>, window_params = [{transform_indices = @transform_0, window_bounds = array<i64: 128, 128>}, {transform_indices = @transform_1, window_bounds = array<i64: 1, 128>}]} {
    %c0_i32 = arith.constant 0 : i32
    %0 = arith.cmpi eq, %arg1, %c0_i32 : i32
    %1 = arith.extui %0 : i1 to i32
    %c0_i32_0 = arith.constant 0 : i32
    %2 = arith.cmpi ne, %1, %c0_i32_0 : i32
    scf.if %2 {
      %cst_8 = arith.constant 0.000000e+00 : f32
      %12 = vector.broadcast %cst_8 : f32 to vector<1x128xf32>
      %c0_9 = arith.constant 0 : index
      %c0_10 = arith.constant 0 : index
      %13 = vector.load %arg4[%c0_9, %c0_10] : memref<1x128xf32, #tpu.memory_space<vmem>>, vector<1x128xf32>
      tpu.vector_store %arg4[%c0_9, %c0_10], %12 {strides = array<i32>} : memref<1x128xf32, #tpu.memory_space<vmem>>, vector<1x128xf32>,
    } else {
    }
    %c0 = arith.constant 0 : index
    %c0_1 = arith.constant 0 : index
    %3 = vector.load %arg4[%c0, %c0_1] : memref<1x128xf32, #tpu.memory_space<vmem>>, vector<1x128xf32>
    %c0_2 = arith.constant 0 : index
    %c0_3 = arith.constant 0 : index
    %4 = vector.load %arg2[%c0_2, %c0_3] : memref<128x128xf32, #tpu.memory_space<vmem>>, vector<128x128xf32>
    %cst = arith.constant dense<0.000000e+00> : vector<128xf32>
    %5 = vector.multi_reduction <add>, %4, %cst [0] : vector<128x128xf32> to vector<128xf32>
    %6 = vector.shape_cast %5 : vector<128xf32> to vector<1x128xf32>
    %7 = arith.addf %3, %6 : vector<1x128xf32>
    %c0_4 = arith.constant 0 : index
    %c0_5 = arith.constant 0 : index
    %8 = vector.load %arg4[%c0_4, %c0_5] : memref<1x128xf32, #tpu.memory_space<vmem>>, vector<1x128xf32>
    tpu.vector_store %arg4[%c0_4, %c0_5], %7 {strides = array<i32>} : memref<1x128xf32, #tpu.memory_space<vmem>>, vector<1x128xf32>,
    %c0_i32_6 = arith.constant 0 : i32
    %9 = arith.cmpi eq, %arg1, %c0_i32_6 : i32
    %10 = arith.extui %9 : i1 to i32
    %c0_i32_7 = arith.constant 0 : i32
    %11 = arith.cmpi ne, %10, %c0_i32_7 : i32
    scf.if %11 {
      %c0_8 = arith.constant 0 : index
      %c0_9 = arith.constant 0 : index
      %12 = vector.load %arg4[%c0_8, %c0_9] : memref<1x128xf32, #tpu.memory_space<vmem>>, vector<1x128xf32>
      %c0_10 = arith.constant 0 : index
      %c0_11 = arith.constant 0 : index
      %13 = vector.load %arg3[%c0_10, %c0_11] : memref<1x128xf32, #tpu.memory_space<vmem>>, vector<1x128xf32>
      tpu.vector_store %arg3[%c0_10, %c0_11], %12 {strides = array<i32>} : memref<1x128xf32, #tpu.memory_space<vmem>>, vector<1x128xf32>,
    } else {
    }
    return
  }
  func.func @transform_0(%arg0: i32, %arg1: i32) -> (i32, i32) {
    %c0_i32 = arith.constant 0 : i32
    return %arg1, %arg0 : i32, i32
  }
  func.func @transform_1(%arg0: i32, %arg1: i32) -> (i32, i32) {
    %c0_i32 = arith.constant 0 : i32
    %c0_i32_0 = arith.constant 0 : i32
    return %c0_i32, %arg0 : i32, i32
  }
}

module attributes {stable_mosaic.version = 11 : i64} {
  func.func @_colvar_kernel(%arg0: i32, %arg1: i32, %arg2: memref<128x128xf32, #tpu.memory_space<vmem>>, %arg3: memref<1x128xf32, #tpu.memory_space<vmem>>, %arg4: memref<1x128xf32, #tpu.memory_space<vmem>>, %arg5: memref<1x128xf32, #tpu.memory_space<vmem>>) attributes {dimension_semantics = [#tpu.dimension_semantics<parallel>, #tpu.dimension_semantics<arbitrary>], iteration_bounds = array<i64: 1, 1>, scalar_prefetch = 0 : i64, scratch_operands = 1 : i64, tpu.core_type = #tpu.core_type<tc>, window_params = [{transform_indices = @transform_0, window_bounds = array<i64: 128, 128>}, {transform_indices = @transform_1, window_bounds = array<i64: 1, 128>}, {transform_indices = @transform_2, window_bounds = array<i64: 1, 128>}]} {
    %c0_i32 = arith.constant 0 : i32
    %0 = arith.cmpi eq, %arg1, %c0_i32 : i32
    %1 = arith.extui %0 : i1 to i32
    %c0_i32_0 = arith.constant 0 : i32
    %2 = arith.cmpi ne, %1, %c0_i32_0 : i32
    scf.if %2 {
      %cst_10 = arith.constant 0.000000e+00 : f32
      %16 = vector.broadcast %cst_10 : f32 to vector<1x128xf32>
      %c0_11 = arith.constant 0 : index
      %c0_12 = arith.constant 0 : index
      %17 = vector.load %arg5[%c0_11, %c0_12] : memref<1x128xf32, #tpu.memory_space<vmem>>, vector<1x128xf32>
      tpu.vector_store %arg5[%c0_11, %c0_12], %16 {strides = array<i32>} : memref<1x128xf32, #tpu.memory_space<vmem>>, vector<1x128xf32>,
    } else {
    }
    %c0 = arith.constant 0 : index
    %c0_1 = arith.constant 0 : index
    %3 = vector.load %arg2[%c0, %c0_1] : memref<128x128xf32, #tpu.memory_space<vmem>>, vector<128x128xf32>
    %c0_2 = arith.constant 0 : index
    %c0_3 = arith.constant 0 : index
    %4 = vector.load %arg3[%c0_2, %c0_3] : memref<1x128xf32, #tpu.memory_space<vmem>>, vector<1x128xf32>
    %5 = vector.broadcast %4 : vector<1x128xf32> to vector<128x128xf32>
    %6 = arith.subf %3, %5 : vector<128x128xf32>
    %c0_4 = arith.constant 0 : index
    %c0_5 = arith.constant 0 : index
    %7 = vector.load %arg5[%c0_4, %c0_5] : memref<1x128xf32, #tpu.memory_space<vmem>>, vector<1x128xf32>
    %8 = arith.mulf %6, %6 : vector<128x128xf32>
    %cst = arith.constant dense<0.000000e+00> : vector<128xf32>
    %9 = vector.multi_reduction <add>, %8, %cst [0] : vector<128x128xf32> to vector<128xf32>
    %10 = vector.shape_cast %9 : vector<128xf32> to vector<1x128xf32>
    %11 = arith.addf %7, %10 : vector<1x128xf32>
    %c0_6 = arith.constant 0 : index
    %c0_7 = arith.constant 0 : index
    %12 = vector.load %arg5[%c0_6, %c0_7] : memref<1x128xf32, #tpu.memory_space<vmem>>, vector<1x128xf32>
    tpu.vector_store %arg5[%c0_6, %c0_7], %11 {strides = array<i32>} : memref<1x128xf32, #tpu.memory_space<vmem>>, vector<1x128xf32>,
    %c0_i32_8 = arith.constant 0 : i32
    %13 = arith.cmpi eq, %arg1, %c0_i32_8 : i32
    %14 = arith.extui %13 : i1 to i32
    %c0_i32_9 = arith.constant 0 : i32
    %15 = arith.cmpi ne, %14, %c0_i32_9 : i32
    scf.if %15 {
      %c0_10 = arith.constant 0 : index
      %c0_11 = arith.constant 0 : index
      %16 = vector.load %arg5[%c0_10, %c0_11] : memref<1x128xf32, #tpu.memory_space<vmem>>, vector<1x128xf32>
      %c0_12 = arith.constant 0 : index
      %c0_13 = arith.constant 0 : index
      %17 = vector.load %arg4[%c0_12, %c0_13] : memref<1x128xf32, #tpu.memory_space<vmem>>, vector<1x128xf32>
      tpu.vector_store %arg4[%c0_12, %c0_13], %16 {strides = array<i32>} : memref<1x128xf32, #tpu.memory_space<vmem>>, vector<1x128xf32>,
    } else {
    }
    return
  }
  func.func @transform_0(%arg0: i32, %arg1: i32) -> (i32, i32) {
    %c0_i32 = arith.constant 0 : i32
    return %arg1, %arg0 : i32, i32
  }
  func.func @transform_1(%arg0: i32, %arg1: i32) -> (i32, i32) {
    %c0_i32 = arith.constant 0 : i32
    %c0_i32_0 = arith.constant 0 : i32
    return %c0_i32, %arg0 : i32, i32
  }
  func.func @transform_2(%arg0: i32, %arg1: i32) -> (i32, i32) {
    %c0_i32 = arith.constant 0 : i32
    %c0_i32_0 = arith.constant 0 : i32
    return %c0_i32, %arg0 : i32, i32
  }
}

module attributes {stable_mosaic.version = 11 : i64} {
  func.func @kernel(%arg0: i32, %arg1: i32, %arg2: i32, %arg3: memref<128x384xbf16, #tpu.memory_space<vmem>>, %arg4: memref<384x128xbf16, #tpu.memory_space<vmem>>, %arg5: memref<128x128xf32, #tpu.memory_space<vmem>>, %arg6: memref<128x128xf32, #tpu.memory_space<vmem>>) attributes {dimension_semantics = [#tpu.dimension_semantics<parallel>, #tpu.dimension_semantics<parallel>, #tpu.dimension_semantics<arbitrary>], iteration_bounds = array<i64: 1, 1, 3>, scalar_prefetch = 0 : i64, scratch_operands = 1 : i64, tpu.core_type = #tpu.core_type<tc>, window_params = [{transform_indices = @transform_0, window_bounds = array<i64: 128, 384>}, {transform_indices = @transform_1, window_bounds = array<i64: 384, 128>}, {transform_indices = @transform_2, window_bounds = array<i64: 128, 128>}]} {
    %c0_i32 = arith.constant 0 : i32
    %0 = arith.cmpi eq, %arg2, %c0_i32 : i32
    %1 = arith.extui %0 : i1 to i32
    %c0_i32_0 = arith.constant 0 : i32
    %2 = arith.cmpi ne, %1, %c0_i32_0 : i32
    scf.if %2 {
      %cst_9 = arith.constant 0.000000e+00 : f32
      %12 = vector.broadcast %cst_9 : f32 to vector<128x128xf32>
      %c0_10 = arith.constant 0 : index
      %c0_11 = arith.constant 0 : index
      %13 = vector.load %arg6[%c0_10, %c0_11] : memref<128x128xf32, #tpu.memory_space<vmem>>, vector<128x128xf32>
      tpu.vector_store %arg6[%c0_10, %c0_11], %12 {strides = array<i32>} : memref<128x128xf32, #tpu.memory_space<vmem>>, vector<128x128xf32>,
    } else {
    }
    %c0 = arith.constant 0 : index
    %c0_1 = arith.constant 0 : index
    %3 = vector.load %arg6[%c0, %c0_1] : memref<128x128xf32, #tpu.memory_space<vmem>>, vector<128x128xf32>
    %c0_2 = arith.constant 0 : index
    %c0_3 = arith.constant 0 : index
    %4 = vector.load %arg3[%c0_2, %c0_3] : memref<128x384xbf16, #tpu.memory_space<vmem>>, vector<128x384xbf16>
    %c0_4 = arith.constant 0 : index
    %c0_5 = arith.constant 0 : index
    %5 = vector.load %arg4[%c0_4, %c0_5] : memref<384x128xbf16, #tpu.memory_space<vmem>>, vector<384x128xbf16>
    %cst = arith.constant dense<0.000000e+00> : vector<128x128xf32>
    %6 = tpu.matmul %4, %5, %cst {dimension_numbers = #tpu.dot_dimension_numbers<[1], [0], [0], [1], [0, 0, 1, 1], [], []>} : vector<128x384xbf16>, vector<384x128xbf16>, vector<128x128xf32> -> vector<128x128xf32>
    %7 = arith.addf %3, %6 : vector<128x128xf32>
    %c0_6 = arith.constant 0 : index
    %c0_7 = arith.constant 0 : index
    %8 = vector.load %arg6[%c0_6, %c0_7] : memref<128x128xf32, #tpu.memory_space<vmem>>, vector<128x128xf32>
    tpu.vector_store %arg6[%c0_6, %c0_7], %7 {strides = array<i32>} : memref<128x128xf32, #tpu.memory_space<vmem>>, vector<128x128xf32>,
    %c2_i32 = arith.constant 2 : i32
    %9 = arith.cmpi eq, %arg2, %c2_i32 : i32
    %10 = arith.extui %9 : i1 to i32
    %c0_i32_8 = arith.constant 0 : i32
    %11 = arith.cmpi ne, %10, %c0_i32_8 : i32
    scf.if %11 {
      %c0_9 = arith.constant 0 : index
      %c0_10 = arith.constant 0 : index
      %12 = vector.load %arg6[%c0_9, %c0_10] : memref<128x128xf32, #tpu.memory_space<vmem>>, vector<128x128xf32>
      %c0_11 = arith.constant 0 : index
      %c0_12 = arith.constant 0 : index
      %13 = vector.load %arg5[%c0_11, %c0_12] : memref<128x128xf32, #tpu.memory_space<vmem>>, vector<128x128xf32>
      tpu.vector_store %arg5[%c0_11, %c0_12], %12 {strides = array<i32>} : memref<128x128xf32, #tpu.memory_space<vmem>>, vector<128x128xf32>,
    } else {
    }
    return
  }
  func.func @transform_0(%arg0: i32, %arg1: i32, %arg2: i32) -> (i32, i32) {
    %c0_i32 = arith.constant 0 : i32
    return %arg0, %arg2 : i32, i32
  }
  func.func @transform_1(%arg0: i32, %arg1: i32, %arg2: i32) -> (i32, i32) {
    %c0_i32 = arith.constant 0 : i32
    return %arg2, %arg1 : i32, i32
  }
  func.func @transform_2(%arg0: i32, %arg1: i32, %arg2: i32) -> (i32, i32) {
    %c0_i32 = arith.constant 0 : i32
    return %arg0, %arg1 : i32, i32
  }
}

module attributes {stable_mosaic.version = 11 : i64} {
  func.func @kernel(%arg0: i32, %arg1: i32, %arg2: memref<128x128xf32, #tpu.memory_space<vmem>>, %arg3: memref<1x128xf32, #tpu.memory_space<vmem>>, %arg4: memref<1x128xf32, #tpu.memory_space<vmem>>, %arg5: memref<1x128xf32, #tpu.memory_space<vmem>>, %arg6: memref<1x128xf32, #tpu.memory_space<vmem>>, %arg7: memref<128x128xf32, #tpu.memory_space<vmem>>) attributes {dimension_semantics = [#tpu.dimension_semantics<parallel>, #tpu.dimension_semantics<parallel>], iteration_bounds = array<i64: 1, 1>, scalar_prefetch = 0 : i64, scratch_operands = 0 : i64, tpu.core_type = #tpu.core_type<tc>, window_params = [{transform_indices = @transform_0, window_bounds = array<i64: 128, 128>}, {transform_indices = @transform_1, window_bounds = array<i64: 1, 128>}, {transform_indices = @transform_2, window_bounds = array<i64: 1, 128>}, {transform_indices = @transform_3, window_bounds = array<i64: 1, 128>}, {transform_indices = @transform_4, window_bounds = array<i64: 1, 128>}, {transform_indices = @transform_5, window_bounds = array<i64: 128, 128>}]} {
    %c0 = arith.constant 0 : index
    %c0_0 = arith.constant 0 : index
    %0 = vector.load %arg2[%c0, %c0_0] : memref<128x128xf32, #tpu.memory_space<vmem>>, vector<128x128xf32>
    %c0_1 = arith.constant 0 : index
    %c0_2 = arith.constant 0 : index
    %1 = vector.load %arg3[%c0_1, %c0_2] : memref<1x128xf32, #tpu.memory_space<vmem>>, vector<1x128xf32>
    %2 = vector.broadcast %1 : vector<1x128xf32> to vector<128x128xf32>
    %3 = arith.subf %0, %2 : vector<128x128xf32>
    %c0_3 = arith.constant 0 : index
    %c0_4 = arith.constant 0 : index
    %4 = vector.load %arg4[%c0_3, %c0_4] : memref<1x128xf32, #tpu.memory_space<vmem>>, vector<1x128xf32>
    %cst = arith.constant 9.99999974E-6 : f32
    %5 = vector.broadcast %cst : f32 to vector<1x128xf32>
    %6 = arith.addf %4, %5 : vector<1x128xf32>
    %7 = math.rsqrt %6 : vector<1x128xf32>
    %8 = vector.broadcast %7 : vector<1x128xf32> to vector<128x128xf32>
    %9 = arith.mulf %3, %8 : vector<128x128xf32>
    %c0_5 = arith.constant 0 : index
    %c0_6 = arith.constant 0 : index
    %10 = vector.load %arg5[%c0_5, %c0_6] : memref<1x128xf32, #tpu.memory_space<vmem>>, vector<1x128xf32>
    %11 = vector.broadcast %10 : vector<1x128xf32> to vector<128x128xf32>
    %12 = arith.mulf %9, %11 : vector<128x128xf32>
    %c0_7 = arith.constant 0 : index
    %c0_8 = arith.constant 0 : index
    %13 = vector.load %arg6[%c0_7, %c0_8] : memref<1x128xf32, #tpu.memory_space<vmem>>, vector<1x128xf32>
    %14 = vector.broadcast %13 : vector<1x128xf32> to vector<128x128xf32>
    %15 = arith.addf %12, %14 : vector<128x128xf32>
    %cst_9 = arith.constant 0.000000e+00 : f32
    %16 = vector.broadcast %cst_9 : f32 to vector<128x128xf32>
    %17 = arith.maximumf %15, %16 : vector<128x128xf32>
    %c0_10 = arith.constant 0 : index
    %c0_11 = arith.constant 0 : index
    %18 = vector.load %arg7[%c0_10, %c0_11] : memref<128x128xf32, #tpu.memory_space<vmem>>, vector<128x128xf32>
    tpu.vector_store %arg7[%c0_10, %c0_11], %17 {strides = array<i32>} : memref<128x128xf32, #tpu.memory_space<vmem>>, vector<128x128xf32>,
    return
  }
  func.func @transform_0(%arg0: i32, %arg1: i32) -> (i32, i32) {
    %c0_i32 = arith.constant 0 : i32
    return %arg0, %arg1 : i32, i32
  }
  func.func @transform_1(%arg0: i32, %arg1: i32) -> (i32, i32) {
    %c0_i32 = arith.constant 0 : i32
    %c0_i32_0 = arith.constant 0 : i32
    return %c0_i32, %arg1 : i32, i32
  }
  func.func @transform_2(%arg0: i32, %arg1: i32) -> (i32, i32) {
    %c0_i32 = arith.constant 0 : i32
    %c0_i32_0 = arith.constant 0 : i32
    return %c0_i32, %arg1 : i32, i32
  }
  func.func @transform_3(%arg0: i32, %arg1: i32) -> (i32, i32) {
    %c0_i32 = arith.constant 0 : i32
    %c0_i32_0 = arith.constant 0 : i32
    return %c0_i32, %arg1 : i32, i32
  }
  func.func @transform_4(%arg0: i32, %arg1: i32) -> (i32, i32) {
    %c0_i32 = arith.constant 0 : i32
    %c0_i32_0 = arith.constant 0 : i32
    return %c0_i32, %arg1 : i32, i32
  }
  func.func @transform_5(%arg0: i32, %arg1: i32) -> (i32, i32) {
    %c0_i32 = arith.constant 0 : i32
    return %arg0, %arg1 : i32, i32
  }
}

module attributes {stable_mosaic.version = 11 : i64} {
  func.func @kernel(%arg0: i32, %arg1: i32, %arg2: i32, %arg3: memref<32x384xbf16, #tpu.memory_space<vmem>>, %arg4: memref<384x128xbf16, #tpu.memory_space<vmem>>, %arg5: memref<32x128xf32, #tpu.memory_space<vmem>>, %arg6: memref<32x128xf32, #tpu.memory_space<vmem>>) attributes {dimension_semantics = [#tpu.dimension_semantics<parallel>, #tpu.dimension_semantics<parallel>, #tpu.dimension_semantics<arbitrary>], iteration_bounds = array<i64: 1, 1, 3>, scalar_prefetch = 0 : i64, scratch_operands = 1 : i64, tpu.core_type = #tpu.core_type<tc>, window_params = [{transform_indices = @transform_0, window_bounds = array<i64: 32, 384>}, {transform_indices = @transform_1, window_bounds = array<i64: 384, 128>}, {transform_indices = @transform_2, window_bounds = array<i64: 32, 128>}]} {
    %c0_i32 = arith.constant 0 : i32
    %0 = arith.cmpi eq, %arg2, %c0_i32 : i32
    %1 = arith.extui %0 : i1 to i32
    %c0_i32_0 = arith.constant 0 : i32
    %2 = arith.cmpi ne, %1, %c0_i32_0 : i32
    scf.if %2 {
      %cst_9 = arith.constant 0.000000e+00 : f32
      %12 = vector.broadcast %cst_9 : f32 to vector<32x128xf32>
      %c0_10 = arith.constant 0 : index
      %c0_11 = arith.constant 0 : index
      %13 = vector.load %arg6[%c0_10, %c0_11] : memref<32x128xf32, #tpu.memory_space<vmem>>, vector<32x128xf32>
      tpu.vector_store %arg6[%c0_10, %c0_11], %12 {strides = array<i32>} : memref<32x128xf32, #tpu.memory_space<vmem>>, vector<32x128xf32>,
    } else {
    }
    %c0 = arith.constant 0 : index
    %c0_1 = arith.constant 0 : index
    %3 = vector.load %arg6[%c0, %c0_1] : memref<32x128xf32, #tpu.memory_space<vmem>>, vector<32x128xf32>
    %c0_2 = arith.constant 0 : index
    %c0_3 = arith.constant 0 : index
    %4 = vector.load %arg3[%c0_2, %c0_3] : memref<32x384xbf16, #tpu.memory_space<vmem>>, vector<32x384xbf16>
    %c0_4 = arith.constant 0 : index
    %c0_5 = arith.constant 0 : index
    %5 = vector.load %arg4[%c0_4, %c0_5] : memref<384x128xbf16, #tpu.memory_space<vmem>>, vector<384x128xbf16>
    %cst = arith.constant dense<0.000000e+00> : vector<32x128xf32>
    %6 = tpu.matmul %4, %5, %cst {dimension_numbers = #tpu.dot_dimension_numbers<[1], [0], [0], [1], [0, 0, 1, 1], [], []>} : vector<32x384xbf16>, vector<384x128xbf16>, vector<32x128xf32> -> vector<32x128xf32>
    %7 = arith.addf %3, %6 : vector<32x128xf32>
    %c0_6 = arith.constant 0 : index
    %c0_7 = arith.constant 0 : index
    %8 = vector.load %arg6[%c0_6, %c0_7] : memref<32x128xf32, #tpu.memory_space<vmem>>, vector<32x128xf32>
    tpu.vector_store %arg6[%c0_6, %c0_7], %7 {strides = array<i32>} : memref<32x128xf32, #tpu.memory_space<vmem>>, vector<32x128xf32>,
    %c2_i32 = arith.constant 2 : i32
    %9 = arith.cmpi eq, %arg2, %c2_i32 : i32
    %10 = arith.extui %9 : i1 to i32
    %c0_i32_8 = arith.constant 0 : i32
    %11 = arith.cmpi ne, %10, %c0_i32_8 : i32
    scf.if %11 {
      %c0_9 = arith.constant 0 : index
      %c0_10 = arith.constant 0 : index
      %12 = vector.load %arg6[%c0_9, %c0_10] : memref<32x128xf32, #tpu.memory_space<vmem>>, vector<32x128xf32>
      %c0_11 = arith.constant 0 : index
      %c0_12 = arith.constant 0 : index
      %13 = vector.load %arg5[%c0_11, %c0_12] : memref<32x128xf32, #tpu.memory_space<vmem>>, vector<32x128xf32>
      tpu.vector_store %arg5[%c0_11, %c0_12], %12 {strides = array<i32>} : memref<32x128xf32, #tpu.memory_space<vmem>>, vector<32x128xf32>,
    } else {
    }
    return
  }
  func.func @transform_0(%arg0: i32, %arg1: i32, %arg2: i32) -> (i32, i32) {
    %c0_i32 = arith.constant 0 : i32
    return %arg0, %arg2 : i32, i32
  }
  func.func @transform_1(%arg0: i32, %arg1: i32, %arg2: i32) -> (i32, i32) {
    %c0_i32 = arith.constant 0 : i32
    return %arg2, %arg1 : i32, i32
  }
  func.func @transform_2(%arg0: i32, %arg1: i32, %arg2: i32) -> (i32, i32) {
    %c0_i32 = arith.constant 0 : i32
    return %arg0, %arg1 : i32, i32
  }
}

module attributes {stable_mosaic.version = 11 : i64} {
  func.func @_colsum_kernel(%arg0: i32, %arg1: i32, %arg2: memref<32x128xf32, #tpu.memory_space<vmem>>, %arg3: memref<1x128xf32, #tpu.memory_space<vmem>>, %arg4: memref<1x128xf32, #tpu.memory_space<vmem>>) attributes {dimension_semantics = [#tpu.dimension_semantics<parallel>, #tpu.dimension_semantics<arbitrary>], iteration_bounds = array<i64: 1, 1>, scalar_prefetch = 0 : i64, scratch_operands = 1 : i64, tpu.core_type = #tpu.core_type<tc>, window_params = [{transform_indices = @transform_0, window_bounds = array<i64: 32, 128>}, {transform_indices = @transform_1, window_bounds = array<i64: 1, 128>}]} {
    %c0_i32 = arith.constant 0 : i32
    %0 = arith.cmpi eq, %arg1, %c0_i32 : i32
    %1 = arith.extui %0 : i1 to i32
    %c0_i32_0 = arith.constant 0 : i32
    %2 = arith.cmpi ne, %1, %c0_i32_0 : i32
    scf.if %2 {
      %cst_8 = arith.constant 0.000000e+00 : f32
      %12 = vector.broadcast %cst_8 : f32 to vector<1x128xf32>
      %c0_9 = arith.constant 0 : index
      %c0_10 = arith.constant 0 : index
      %13 = vector.load %arg4[%c0_9, %c0_10] : memref<1x128xf32, #tpu.memory_space<vmem>>, vector<1x128xf32>
      tpu.vector_store %arg4[%c0_9, %c0_10], %12 {strides = array<i32>} : memref<1x128xf32, #tpu.memory_space<vmem>>, vector<1x128xf32>,
    } else {
    }
    %c0 = arith.constant 0 : index
    %c0_1 = arith.constant 0 : index
    %3 = vector.load %arg4[%c0, %c0_1] : memref<1x128xf32, #tpu.memory_space<vmem>>, vector<1x128xf32>
    %c0_2 = arith.constant 0 : index
    %c0_3 = arith.constant 0 : index
    %4 = vector.load %arg2[%c0_2, %c0_3] : memref<32x128xf32, #tpu.memory_space<vmem>>, vector<32x128xf32>
    %cst = arith.constant dense<0.000000e+00> : vector<128xf32>
    %5 = vector.multi_reduction <add>, %4, %cst [0] : vector<32x128xf32> to vector<128xf32>
    %6 = vector.shape_cast %5 : vector<128xf32> to vector<1x128xf32>
    %7 = arith.addf %3, %6 : vector<1x128xf32>
    %c0_4 = arith.constant 0 : index
    %c0_5 = arith.constant 0 : index
    %8 = vector.load %arg4[%c0_4, %c0_5] : memref<1x128xf32, #tpu.memory_space<vmem>>, vector<1x128xf32>
    tpu.vector_store %arg4[%c0_4, %c0_5], %7 {strides = array<i32>} : memref<1x128xf32, #tpu.memory_space<vmem>>, vector<1x128xf32>,
    %c0_i32_6 = arith.constant 0 : i32
    %9 = arith.cmpi eq, %arg1, %c0_i32_6 : i32
    %10 = arith.extui %9 : i1 to i32
    %c0_i32_7 = arith.constant 0 : i32
    %11 = arith.cmpi ne, %10, %c0_i32_7 : i32
    scf.if %11 {
      %c0_8 = arith.constant 0 : index
      %c0_9 = arith.constant 0 : index
      %12 = vector.load %arg4[%c0_8, %c0_9] : memref<1x128xf32, #tpu.memory_space<vmem>>, vector<1x128xf32>
      %c0_10 = arith.constant 0 : index
      %c0_11 = arith.constant 0 : index
      %13 = vector.load %arg3[%c0_10, %c0_11] : memref<1x128xf32, #tpu.memory_space<vmem>>, vector<1x128xf32>
      tpu.vector_store %arg3[%c0_10, %c0_11], %12 {strides = array<i32>} : memref<1x128xf32, #tpu.memory_space<vmem>>, vector<1x128xf32>,
    } else {
    }
    return
  }
  func.func @transform_0(%arg0: i32, %arg1: i32) -> (i32, i32) {
    %c0_i32 = arith.constant 0 : i32
    return %arg1, %arg0 : i32, i32
  }
  func.func @transform_1(%arg0: i32, %arg1: i32) -> (i32, i32) {
    %c0_i32 = arith.constant 0 : i32
    %c0_i32_0 = arith.constant 0 : i32
    return %c0_i32, %arg0 : i32, i32
  }
}

module attributes {stable_mosaic.version = 11 : i64} {
  func.func @_colvar_kernel(%arg0: i32, %arg1: i32, %arg2: memref<32x128xf32, #tpu.memory_space<vmem>>, %arg3: memref<1x128xf32, #tpu.memory_space<vmem>>, %arg4: memref<1x128xf32, #tpu.memory_space<vmem>>, %arg5: memref<1x128xf32, #tpu.memory_space<vmem>>) attributes {dimension_semantics = [#tpu.dimension_semantics<parallel>, #tpu.dimension_semantics<arbitrary>], iteration_bounds = array<i64: 1, 1>, scalar_prefetch = 0 : i64, scratch_operands = 1 : i64, tpu.core_type = #tpu.core_type<tc>, window_params = [{transform_indices = @transform_0, window_bounds = array<i64: 32, 128>}, {transform_indices = @transform_1, window_bounds = array<i64: 1, 128>}, {transform_indices = @transform_2, window_bounds = array<i64: 1, 128>}]} {
    %c0_i32 = arith.constant 0 : i32
    %0 = arith.cmpi eq, %arg1, %c0_i32 : i32
    %1 = arith.extui %0 : i1 to i32
    %c0_i32_0 = arith.constant 0 : i32
    %2 = arith.cmpi ne, %1, %c0_i32_0 : i32
    scf.if %2 {
      %cst_10 = arith.constant 0.000000e+00 : f32
      %16 = vector.broadcast %cst_10 : f32 to vector<1x128xf32>
      %c0_11 = arith.constant 0 : index
      %c0_12 = arith.constant 0 : index
      %17 = vector.load %arg5[%c0_11, %c0_12] : memref<1x128xf32, #tpu.memory_space<vmem>>, vector<1x128xf32>
      tpu.vector_store %arg5[%c0_11, %c0_12], %16 {strides = array<i32>} : memref<1x128xf32, #tpu.memory_space<vmem>>, vector<1x128xf32>,
    } else {
    }
    %c0 = arith.constant 0 : index
    %c0_1 = arith.constant 0 : index
    %3 = vector.load %arg2[%c0, %c0_1] : memref<32x128xf32, #tpu.memory_space<vmem>>, vector<32x128xf32>
    %c0_2 = arith.constant 0 : index
    %c0_3 = arith.constant 0 : index
    %4 = vector.load %arg3[%c0_2, %c0_3] : memref<1x128xf32, #tpu.memory_space<vmem>>, vector<1x128xf32>
    %5 = vector.broadcast %4 : vector<1x128xf32> to vector<32x128xf32>
    %6 = arith.subf %3, %5 : vector<32x128xf32>
    %c0_4 = arith.constant 0 : index
    %c0_5 = arith.constant 0 : index
    %7 = vector.load %arg5[%c0_4, %c0_5] : memref<1x128xf32, #tpu.memory_space<vmem>>, vector<1x128xf32>
    %8 = arith.mulf %6, %6 : vector<32x128xf32>
    %cst = arith.constant dense<0.000000e+00> : vector<128xf32>
    %9 = vector.multi_reduction <add>, %8, %cst [0] : vector<32x128xf32> to vector<128xf32>
    %10 = vector.shape_cast %9 : vector<128xf32> to vector<1x128xf32>
    %11 = arith.addf %7, %10 : vector<1x128xf32>
    %c0_6 = arith.constant 0 : index
    %c0_7 = arith.constant 0 : index
    %12 = vector.load %arg5[%c0_6, %c0_7] : memref<1x128xf32, #tpu.memory_space<vmem>>, vector<1x128xf32>
    tpu.vector_store %arg5[%c0_6, %c0_7], %11 {strides = array<i32>} : memref<1x128xf32, #tpu.memory_space<vmem>>, vector<1x128xf32>,
    %c0_i32_8 = arith.constant 0 : i32
    %13 = arith.cmpi eq, %arg1, %c0_i32_8 : i32
    %14 = arith.extui %13 : i1 to i32
    %c0_i32_9 = arith.constant 0 : i32
    %15 = arith.cmpi ne, %14, %c0_i32_9 : i32
    scf.if %15 {
      %c0_10 = arith.constant 0 : index
      %c0_11 = arith.constant 0 : index
      %16 = vector.load %arg5[%c0_10, %c0_11] : memref<1x128xf32, #tpu.memory_space<vmem>>, vector<1x128xf32>
      %c0_12 = arith.constant 0 : index
      %c0_13 = arith.constant 0 : index
      %17 = vector.load %arg4[%c0_12, %c0_13] : memref<1x128xf32, #tpu.memory_space<vmem>>, vector<1x128xf32>
      tpu.vector_store %arg4[%c0_12, %c0_13], %16 {strides = array<i32>} : memref<1x128xf32, #tpu.memory_space<vmem>>, vector<1x128xf32>,
    } else {
    }
    return
  }
  func.func @transform_0(%arg0: i32, %arg1: i32) -> (i32, i32) {
    %c0_i32 = arith.constant 0 : i32
    return %arg1, %arg0 : i32, i32
  }
  func.func @transform_1(%arg0: i32, %arg1: i32) -> (i32, i32) {
    %c0_i32 = arith.constant 0 : i32
    %c0_i32_0 = arith.constant 0 : i32
    return %c0_i32, %arg0 : i32, i32
  }
  func.func @transform_2(%arg0: i32, %arg1: i32) -> (i32, i32) {
    %c0_i32 = arith.constant 0 : i32
    %c0_i32_0 = arith.constant 0 : i32
    return %c0_i32, %arg0 : i32, i32
  }
}

module attributes {stable_mosaic.version = 11 : i64} {
  func.func @kernel(%arg0: i32, %arg1: i32, %arg2: memref<32x128xf32, #tpu.memory_space<vmem>>, %arg3: memref<1x128xf32, #tpu.memory_space<vmem>>, %arg4: memref<1x128xf32, #tpu.memory_space<vmem>>, %arg5: memref<1x128xf32, #tpu.memory_space<vmem>>, %arg6: memref<1x128xf32, #tpu.memory_space<vmem>>, %arg7: memref<32x128xf32, #tpu.memory_space<vmem>>) attributes {dimension_semantics = [#tpu.dimension_semantics<parallel>, #tpu.dimension_semantics<parallel>], iteration_bounds = array<i64: 1, 1>, scalar_prefetch = 0 : i64, scratch_operands = 0 : i64, tpu.core_type = #tpu.core_type<tc>, window_params = [{transform_indices = @transform_0, window_bounds = array<i64: 32, 128>}, {transform_indices = @transform_1, window_bounds = array<i64: 1, 128>}, {transform_indices = @transform_2, window_bounds = array<i64: 1, 128>}, {transform_indices = @transform_3, window_bounds = array<i64: 1, 128>}, {transform_indices = @transform_4, window_bounds = array<i64: 1, 128>}, {transform_indices = @transform_5, window_bounds = array<i64: 32, 128>}]} {
    %c0 = arith.constant 0 : index
    %c0_0 = arith.constant 0 : index
    %0 = vector.load %arg2[%c0, %c0_0] : memref<32x128xf32, #tpu.memory_space<vmem>>, vector<32x128xf32>
    %c0_1 = arith.constant 0 : index
    %c0_2 = arith.constant 0 : index
    %1 = vector.load %arg3[%c0_1, %c0_2] : memref<1x128xf32, #tpu.memory_space<vmem>>, vector<1x128xf32>
    %2 = vector.broadcast %1 : vector<1x128xf32> to vector<32x128xf32>
    %3 = arith.subf %0, %2 : vector<32x128xf32>
    %c0_3 = arith.constant 0 : index
    %c0_4 = arith.constant 0 : index
    %4 = vector.load %arg4[%c0_3, %c0_4] : memref<1x128xf32, #tpu.memory_space<vmem>>, vector<1x128xf32>
    %cst = arith.constant 9.99999974E-6 : f32
    %5 = vector.broadcast %cst : f32 to vector<1x128xf32>
    %6 = arith.addf %4, %5 : vector<1x128xf32>
    %7 = math.rsqrt %6 : vector<1x128xf32>
    %8 = vector.broadcast %7 : vector<1x128xf32> to vector<32x128xf32>
    %9 = arith.mulf %3, %8 : vector<32x128xf32>
    %c0_5 = arith.constant 0 : index
    %c0_6 = arith.constant 0 : index
    %10 = vector.load %arg5[%c0_5, %c0_6] : memref<1x128xf32, #tpu.memory_space<vmem>>, vector<1x128xf32>
    %11 = vector.broadcast %10 : vector<1x128xf32> to vector<32x128xf32>
    %12 = arith.mulf %9, %11 : vector<32x128xf32>
    %c0_7 = arith.constant 0 : index
    %c0_8 = arith.constant 0 : index
    %13 = vector.load %arg6[%c0_7, %c0_8] : memref<1x128xf32, #tpu.memory_space<vmem>>, vector<1x128xf32>
    %14 = vector.broadcast %13 : vector<1x128xf32> to vector<32x128xf32>
    %15 = arith.addf %12, %14 : vector<32x128xf32>
    %cst_9 = arith.constant 0.000000e+00 : f32
    %16 = vector.broadcast %cst_9 : f32 to vector<32x128xf32>
    %17 = arith.maximumf %15, %16 : vector<32x128xf32>
    %c0_10 = arith.constant 0 : index
    %c0_11 = arith.constant 0 : index
    %18 = vector.load %arg7[%c0_10, %c0_11] : memref<32x128xf32, #tpu.memory_space<vmem>>, vector<32x128xf32>
    tpu.vector_store %arg7[%c0_10, %c0_11], %17 {strides = array<i32>} : memref<32x128xf32, #tpu.memory_space<vmem>>, vector<32x128xf32>,
    return
  }
  func.func @transform_0(%arg0: i32, %arg1: i32) -> (i32, i32) {
    %c0_i32 = arith.constant 0 : i32
    return %arg0, %arg1 : i32, i32
  }
  func.func @transform_1(%arg0: i32, %arg1: i32) -> (i32, i32) {
    %c0_i32 = arith.constant 0 : i32
    %c0_i32_0 = arith.constant 0 : i32
    return %c0_i32, %arg1 : i32, i32
  }
  func.func @transform_2(%arg0: i32, %arg1: i32) -> (i32, i32) {
    %c0_i32 = arith.constant 0 : i32
    %c0_i32_0 = arith.constant 0 : i32
    return %c0_i32, %arg1 : i32, i32
  }
  func.func @transform_3(%arg0: i32, %arg1: i32) -> (i32, i32) {
    %c0_i32 = arith.constant 0 : i32
    %c0_i32_0 = arith.constant 0 : i32
    return %c0_i32, %arg1 : i32, i32
  }
  func.func @transform_4(%arg0: i32, %arg1: i32) -> (i32, i32) {
    %c0_i32 = arith.constant 0 : i32
    %c0_i32_0 = arith.constant 0 : i32
    return %c0_i32, %arg1 : i32, i32
  }
  func.func @transform_5(%arg0: i32, %arg1: i32) -> (i32, i32) {
    %c0_i32 = arith.constant 0 : i32
    return %arg0, %arg1 : i32, i32
  }
}

module attributes {stable_mosaic.version = 11 : i64} {
  func.func @_colsum_kernel(%arg0: i32, %arg1: i32, %arg2: memref<8x128xf32, #tpu.memory_space<vmem>>, %arg3: memref<1x128xf32, #tpu.memory_space<vmem>>, %arg4: memref<1x128xf32, #tpu.memory_space<vmem>>) attributes {dimension_semantics = [#tpu.dimension_semantics<parallel>, #tpu.dimension_semantics<arbitrary>], iteration_bounds = array<i64: 1, 1>, scalar_prefetch = 0 : i64, scratch_operands = 1 : i64, tpu.core_type = #tpu.core_type<tc>, window_params = [{transform_indices = @transform_0, window_bounds = array<i64: 8, 128>}, {transform_indices = @transform_1, window_bounds = array<i64: 1, 128>}]} {
    %c0_i32 = arith.constant 0 : i32
    %0 = arith.cmpi eq, %arg1, %c0_i32 : i32
    %1 = arith.extui %0 : i1 to i32
    %c0_i32_0 = arith.constant 0 : i32
    %2 = arith.cmpi ne, %1, %c0_i32_0 : i32
    scf.if %2 {
      %cst_8 = arith.constant 0.000000e+00 : f32
      %12 = vector.broadcast %cst_8 : f32 to vector<1x128xf32>
      %c0_9 = arith.constant 0 : index
      %c0_10 = arith.constant 0 : index
      %13 = vector.load %arg4[%c0_9, %c0_10] : memref<1x128xf32, #tpu.memory_space<vmem>>, vector<1x128xf32>
      tpu.vector_store %arg4[%c0_9, %c0_10], %12 {strides = array<i32>} : memref<1x128xf32, #tpu.memory_space<vmem>>, vector<1x128xf32>,
    } else {
    }
    %c0 = arith.constant 0 : index
    %c0_1 = arith.constant 0 : index
    %3 = vector.load %arg4[%c0, %c0_1] : memref<1x128xf32, #tpu.memory_space<vmem>>, vector<1x128xf32>
    %c0_2 = arith.constant 0 : index
    %c0_3 = arith.constant 0 : index
    %4 = vector.load %arg2[%c0_2, %c0_3] : memref<8x128xf32, #tpu.memory_space<vmem>>, vector<8x128xf32>
    %cst = arith.constant dense<0.000000e+00> : vector<128xf32>
    %5 = vector.multi_reduction <add>, %4, %cst [0] : vector<8x128xf32> to vector<128xf32>
    %6 = vector.shape_cast %5 : vector<128xf32> to vector<1x128xf32>
    %7 = arith.addf %3, %6 : vector<1x128xf32>
    %c0_4 = arith.constant 0 : index
    %c0_5 = arith.constant 0 : index
    %8 = vector.load %arg4[%c0_4, %c0_5] : memref<1x128xf32, #tpu.memory_space<vmem>>, vector<1x128xf32>
    tpu.vector_store %arg4[%c0_4, %c0_5], %7 {strides = array<i32>} : memref<1x128xf32, #tpu.memory_space<vmem>>, vector<1x128xf32>,
    %c0_i32_6 = arith.constant 0 : i32
    %9 = arith.cmpi eq, %arg1, %c0_i32_6 : i32
    %10 = arith.extui %9 : i1 to i32
    %c0_i32_7 = arith.constant 0 : i32
    %11 = arith.cmpi ne, %10, %c0_i32_7 : i32
    scf.if %11 {
      %c0_8 = arith.constant 0 : index
      %c0_9 = arith.constant 0 : index
      %12 = vector.load %arg4[%c0_8, %c0_9] : memref<1x128xf32, #tpu.memory_space<vmem>>, vector<1x128xf32>
      %c0_10 = arith.constant 0 : index
      %c0_11 = arith.constant 0 : index
      %13 = vector.load %arg3[%c0_10, %c0_11] : memref<1x128xf32, #tpu.memory_space<vmem>>, vector<1x128xf32>
      tpu.vector_store %arg3[%c0_10, %c0_11], %12 {strides = array<i32>} : memref<1x128xf32, #tpu.memory_space<vmem>>, vector<1x128xf32>,
    } else {
    }
    return
  }
  func.func @transform_0(%arg0: i32, %arg1: i32) -> (i32, i32) {
    %c0_i32 = arith.constant 0 : i32
    return %arg1, %arg0 : i32, i32
  }
  func.func @transform_1(%arg0: i32, %arg1: i32) -> (i32, i32) {
    %c0_i32 = arith.constant 0 : i32
    %c0_i32_0 = arith.constant 0 : i32
    return %c0_i32, %arg0 : i32, i32
  }
}

module attributes {stable_mosaic.version = 11 : i64} {
  func.func @kernel(%arg0: i32, %arg1: i32, %arg2: i32, %arg3: memref<8x384xbf16, #tpu.memory_space<vmem>>, %arg4: memref<384x128xbf16, #tpu.memory_space<vmem>>, %arg5: memref<8x128xf32, #tpu.memory_space<vmem>>, %arg6: memref<8x128xf32, #tpu.memory_space<vmem>>) attributes {dimension_semantics = [#tpu.dimension_semantics<parallel>, #tpu.dimension_semantics<parallel>, #tpu.dimension_semantics<arbitrary>], iteration_bounds = array<i64: 1, 1, 3>, scalar_prefetch = 0 : i64, scratch_operands = 1 : i64, tpu.core_type = #tpu.core_type<tc>, window_params = [{transform_indices = @transform_0, window_bounds = array<i64: 8, 384>}, {transform_indices = @transform_1, window_bounds = array<i64: 384, 128>}, {transform_indices = @transform_2, window_bounds = array<i64: 8, 128>}]} {
    %c0_i32 = arith.constant 0 : i32
    %0 = arith.cmpi eq, %arg2, %c0_i32 : i32
    %1 = arith.extui %0 : i1 to i32
    %c0_i32_0 = arith.constant 0 : i32
    %2 = arith.cmpi ne, %1, %c0_i32_0 : i32
    scf.if %2 {
      %cst_9 = arith.constant 0.000000e+00 : f32
      %12 = vector.broadcast %cst_9 : f32 to vector<8x128xf32>
      %c0_10 = arith.constant 0 : index
      %c0_11 = arith.constant 0 : index
      %13 = vector.load %arg6[%c0_10, %c0_11] : memref<8x128xf32, #tpu.memory_space<vmem>>, vector<8x128xf32>
      tpu.vector_store %arg6[%c0_10, %c0_11], %12 {strides = array<i32>} : memref<8x128xf32, #tpu.memory_space<vmem>>, vector<8x128xf32>,
    } else {
    }
    %c0 = arith.constant 0 : index
    %c0_1 = arith.constant 0 : index
    %3 = vector.load %arg6[%c0, %c0_1] : memref<8x128xf32, #tpu.memory_space<vmem>>, vector<8x128xf32>
    %c0_2 = arith.constant 0 : index
    %c0_3 = arith.constant 0 : index
    %4 = vector.load %arg3[%c0_2, %c0_3] : memref<8x384xbf16, #tpu.memory_space<vmem>>, vector<8x384xbf16>
    %c0_4 = arith.constant 0 : index
    %c0_5 = arith.constant 0 : index
    %5 = vector.load %arg4[%c0_4, %c0_5] : memref<384x128xbf16, #tpu.memory_space<vmem>>, vector<384x128xbf16>
    %cst = arith.constant dense<0.000000e+00> : vector<8x128xf32>
    %6 = tpu.matmul %4, %5, %cst {dimension_numbers = #tpu.dot_dimension_numbers<[1], [0], [0], [1], [0, 0, 1, 1], [], []>} : vector<8x384xbf16>, vector<384x128xbf16>, vector<8x128xf32> -> vector<8x128xf32>
    %7 = arith.addf %3, %6 : vector<8x128xf32>
    %c0_6 = arith.constant 0 : index
    %c0_7 = arith.constant 0 : index
    %8 = vector.load %arg6[%c0_6, %c0_7] : memref<8x128xf32, #tpu.memory_space<vmem>>, vector<8x128xf32>
    tpu.vector_store %arg6[%c0_6, %c0_7], %7 {strides = array<i32>} : memref<8x128xf32, #tpu.memory_space<vmem>>, vector<8x128xf32>,
    %c2_i32 = arith.constant 2 : i32
    %9 = arith.cmpi eq, %arg2, %c2_i32 : i32
    %10 = arith.extui %9 : i1 to i32
    %c0_i32_8 = arith.constant 0 : i32
    %11 = arith.cmpi ne, %10, %c0_i32_8 : i32
    scf.if %11 {
      %c0_9 = arith.constant 0 : index
      %c0_10 = arith.constant 0 : index
      %12 = vector.load %arg6[%c0_9, %c0_10] : memref<8x128xf32, #tpu.memory_space<vmem>>, vector<8x128xf32>
      %c0_11 = arith.constant 0 : index
      %c0_12 = arith.constant 0 : index
      %13 = vector.load %arg5[%c0_11, %c0_12] : memref<8x128xf32, #tpu.memory_space<vmem>>, vector<8x128xf32>
      tpu.vector_store %arg5[%c0_11, %c0_12], %12 {strides = array<i32>} : memref<8x128xf32, #tpu.memory_space<vmem>>, vector<8x128xf32>,
    } else {
    }
    return
  }
  func.func @transform_0(%arg0: i32, %arg1: i32, %arg2: i32) -> (i32, i32) {
    %c0_i32 = arith.constant 0 : i32
    return %arg0, %arg2 : i32, i32
  }
  func.func @transform_1(%arg0: i32, %arg1: i32, %arg2: i32) -> (i32, i32) {
    %c0_i32 = arith.constant 0 : i32
    return %arg2, %arg1 : i32, i32
  }
  func.func @transform_2(%arg0: i32, %arg1: i32, %arg2: i32) -> (i32, i32) {
    %c0_i32 = arith.constant 0 : i32
    return %arg0, %arg1 : i32, i32
  }
}

module attributes {stable_mosaic.version = 11 : i64} {
  func.func @_colvar_kernel(%arg0: i32, %arg1: i32, %arg2: memref<8x128xf32, #tpu.memory_space<vmem>>, %arg3: memref<1x128xf32, #tpu.memory_space<vmem>>, %arg4: memref<1x128xf32, #tpu.memory_space<vmem>>, %arg5: memref<1x128xf32, #tpu.memory_space<vmem>>) attributes {dimension_semantics = [#tpu.dimension_semantics<parallel>, #tpu.dimension_semantics<arbitrary>], iteration_bounds = array<i64: 1, 1>, scalar_prefetch = 0 : i64, scratch_operands = 1 : i64, tpu.core_type = #tpu.core_type<tc>, window_params = [{transform_indices = @transform_0, window_bounds = array<i64: 8, 128>}, {transform_indices = @transform_1, window_bounds = array<i64: 1, 128>}, {transform_indices = @transform_2, window_bounds = array<i64: 1, 128>}]} {
    %c0_i32 = arith.constant 0 : i32
    %0 = arith.cmpi eq, %arg1, %c0_i32 : i32
    %1 = arith.extui %0 : i1 to i32
    %c0_i32_0 = arith.constant 0 : i32
    %2 = arith.cmpi ne, %1, %c0_i32_0 : i32
    scf.if %2 {
      %cst_10 = arith.constant 0.000000e+00 : f32
      %16 = vector.broadcast %cst_10 : f32 to vector<1x128xf32>
      %c0_11 = arith.constant 0 : index
      %c0_12 = arith.constant 0 : index
      %17 = vector.load %arg5[%c0_11, %c0_12] : memref<1x128xf32, #tpu.memory_space<vmem>>, vector<1x128xf32>
      tpu.vector_store %arg5[%c0_11, %c0_12], %16 {strides = array<i32>} : memref<1x128xf32, #tpu.memory_space<vmem>>, vector<1x128xf32>,
    } else {
    }
    %c0 = arith.constant 0 : index
    %c0_1 = arith.constant 0 : index
    %3 = vector.load %arg2[%c0, %c0_1] : memref<8x128xf32, #tpu.memory_space<vmem>>, vector<8x128xf32>
    %c0_2 = arith.constant 0 : index
    %c0_3 = arith.constant 0 : index
    %4 = vector.load %arg3[%c0_2, %c0_3] : memref<1x128xf32, #tpu.memory_space<vmem>>, vector<1x128xf32>
    %5 = vector.broadcast %4 : vector<1x128xf32> to vector<8x128xf32>
    %6 = arith.subf %3, %5 : vector<8x128xf32>
    %c0_4 = arith.constant 0 : index
    %c0_5 = arith.constant 0 : index
    %7 = vector.load %arg5[%c0_4, %c0_5] : memref<1x128xf32, #tpu.memory_space<vmem>>, vector<1x128xf32>
    %8 = arith.mulf %6, %6 : vector<8x128xf32>
    %cst = arith.constant dense<0.000000e+00> : vector<128xf32>
    %9 = vector.multi_reduction <add>, %8, %cst [0] : vector<8x128xf32> to vector<128xf32>
    %10 = vector.shape_cast %9 : vector<128xf32> to vector<1x128xf32>
    %11 = arith.addf %7, %10 : vector<1x128xf32>
    %c0_6 = arith.constant 0 : index
    %c0_7 = arith.constant 0 : index
    %12 = vector.load %arg5[%c0_6, %c0_7] : memref<1x128xf32, #tpu.memory_space<vmem>>, vector<1x128xf32>
    tpu.vector_store %arg5[%c0_6, %c0_7], %11 {strides = array<i32>} : memref<1x128xf32, #tpu.memory_space<vmem>>, vector<1x128xf32>,
    %c0_i32_8 = arith.constant 0 : i32
    %13 = arith.cmpi eq, %arg1, %c0_i32_8 : i32
    %14 = arith.extui %13 : i1 to i32
    %c0_i32_9 = arith.constant 0 : i32
    %15 = arith.cmpi ne, %14, %c0_i32_9 : i32
    scf.if %15 {
      %c0_10 = arith.constant 0 : index
      %c0_11 = arith.constant 0 : index
      %16 = vector.load %arg5[%c0_10, %c0_11] : memref<1x128xf32, #tpu.memory_space<vmem>>, vector<1x128xf32>
      %c0_12 = arith.constant 0 : index
      %c0_13 = arith.constant 0 : index
      %17 = vector.load %arg4[%c0_12, %c0_13] : memref<1x128xf32, #tpu.memory_space<vmem>>, vector<1x128xf32>
      tpu.vector_store %arg4[%c0_12, %c0_13], %16 {strides = array<i32>} : memref<1x128xf32, #tpu.memory_space<vmem>>, vector<1x128xf32>,
    } else {
    }
    return
  }
  func.func @transform_0(%arg0: i32, %arg1: i32) -> (i32, i32) {
    %c0_i32 = arith.constant 0 : i32
    return %arg1, %arg0 : i32, i32
  }
  func.func @transform_1(%arg0: i32, %arg1: i32) -> (i32, i32) {
    %c0_i32 = arith.constant 0 : i32
    %c0_i32_0 = arith.constant 0 : i32
    return %c0_i32, %arg0 : i32, i32
  }
  func.func @transform_2(%arg0: i32, %arg1: i32) -> (i32, i32) {
    %c0_i32 = arith.constant 0 : i32
    %c0_i32_0 = arith.constant 0 : i32
    return %c0_i32, %arg0 : i32, i32
  }
}

module attributes {stable_mosaic.version = 11 : i64} {
  func.func @kernel(%arg0: i32, %arg1: i32, %arg2: memref<8x128xf32, #tpu.memory_space<vmem>>, %arg3: memref<1x128xf32, #tpu.memory_space<vmem>>, %arg4: memref<1x128xf32, #tpu.memory_space<vmem>>, %arg5: memref<1x128xf32, #tpu.memory_space<vmem>>, %arg6: memref<1x128xf32, #tpu.memory_space<vmem>>, %arg7: memref<8x128xf32, #tpu.memory_space<vmem>>) attributes {dimension_semantics = [#tpu.dimension_semantics<parallel>, #tpu.dimension_semantics<parallel>], iteration_bounds = array<i64: 1, 1>, scalar_prefetch = 0 : i64, scratch_operands = 0 : i64, tpu.core_type = #tpu.core_type<tc>, window_params = [{transform_indices = @transform_0, window_bounds = array<i64: 8, 128>}, {transform_indices = @transform_1, window_bounds = array<i64: 1, 128>}, {transform_indices = @transform_2, window_bounds = array<i64: 1, 128>}, {transform_indices = @transform_3, window_bounds = array<i64: 1, 128>}, {transform_indices = @transform_4, window_bounds = array<i64: 1, 128>}, {transform_indices = @transform_5, window_bounds = array<i64: 8, 128>}]} {
    %c0 = arith.constant 0 : index
    %c0_0 = arith.constant 0 : index
    %0 = vector.load %arg2[%c0, %c0_0] : memref<8x128xf32, #tpu.memory_space<vmem>>, vector<8x128xf32>
    %c0_1 = arith.constant 0 : index
    %c0_2 = arith.constant 0 : index
    %1 = vector.load %arg3[%c0_1, %c0_2] : memref<1x128xf32, #tpu.memory_space<vmem>>, vector<1x128xf32>
    %2 = vector.broadcast %1 : vector<1x128xf32> to vector<8x128xf32>
    %3 = arith.subf %0, %2 : vector<8x128xf32>
    %c0_3 = arith.constant 0 : index
    %c0_4 = arith.constant 0 : index
    %4 = vector.load %arg4[%c0_3, %c0_4] : memref<1x128xf32, #tpu.memory_space<vmem>>, vector<1x128xf32>
    %cst = arith.constant 9.99999974E-6 : f32
    %5 = vector.broadcast %cst : f32 to vector<1x128xf32>
    %6 = arith.addf %4, %5 : vector<1x128xf32>
    %7 = math.rsqrt %6 : vector<1x128xf32>
    %8 = vector.broadcast %7 : vector<1x128xf32> to vector<8x128xf32>
    %9 = arith.mulf %3, %8 : vector<8x128xf32>
    %c0_5 = arith.constant 0 : index
    %c0_6 = arith.constant 0 : index
    %10 = vector.load %arg5[%c0_5, %c0_6] : memref<1x128xf32, #tpu.memory_space<vmem>>, vector<1x128xf32>
    %11 = vector.broadcast %10 : vector<1x128xf32> to vector<8x128xf32>
    %12 = arith.mulf %9, %11 : vector<8x128xf32>
    %c0_7 = arith.constant 0 : index
    %c0_8 = arith.constant 0 : index
    %13 = vector.load %arg6[%c0_7, %c0_8] : memref<1x128xf32, #tpu.memory_space<vmem>>, vector<1x128xf32>
    %14 = vector.broadcast %13 : vector<1x128xf32> to vector<8x128xf32>
    %15 = arith.addf %12, %14 : vector<8x128xf32>
    %cst_9 = arith.constant 0.000000e+00 : f32
    %16 = vector.broadcast %cst_9 : f32 to vector<8x128xf32>
    %17 = arith.maximumf %15, %16 : vector<8x128xf32>
    %c0_10 = arith.constant 0 : index
    %c0_11 = arith.constant 0 : index
    %18 = vector.load %arg7[%c0_10, %c0_11] : memref<8x128xf32, #tpu.memory_space<vmem>>, vector<8x128xf32>
    tpu.vector_store %arg7[%c0_10, %c0_11], %17 {strides = array<i32>} : memref<8x128xf32, #tpu.memory_space<vmem>>, vector<8x128xf32>,
    return
  }
  func.func @transform_0(%arg0: i32, %arg1: i32) -> (i32, i32) {
    %c0_i32 = arith.constant 0 : i32
    return %arg0, %arg1 : i32, i32
  }
  func.func @transform_1(%arg0: i32, %arg1: i32) -> (i32, i32) {
    %c0_i32 = arith.constant 0 : i32
    %c0_i32_0 = arith.constant 0 : i32
    return %c0_i32, %arg1 : i32, i32
  }
  func.func @transform_2(%arg0: i32, %arg1: i32) -> (i32, i32) {
    %c0_i32 = arith.constant 0 : i32
    %c0_i32_0 = arith.constant 0 : i32
    return %c0_i32, %arg1 : i32, i32
  }
  func.func @transform_3(%arg0: i32, %arg1: i32) -> (i32, i32) {
    %c0_i32 = arith.constant 0 : i32
    %c0_i32_0 = arith.constant 0 : i32
    return %c0_i32, %arg1 : i32, i32
  }
  func.func @transform_4(%arg0: i32, %arg1: i32) -> (i32, i32) {
    %c0_i32 = arith.constant 0 : i32
    %c0_i32_0 = arith.constant 0 : i32
    return %c0_i32, %arg1 : i32, i32
  }
  func.func @transform_5(%arg0: i32, %arg1: i32) -> (i32, i32) {
    %c0_i32 = arith.constant 0 : i32
    return %arg0, %arg1 : i32, i32
  }
}

module attributes {stable_mosaic.version = 11 : i64} {
  func.func @kernel(%arg0: i32, %arg1: i32, %arg2: memref<8x128xf32, #tpu.memory_space<vmem>>, %arg3: memref<1x128xf32, #tpu.memory_space<vmem>>, %arg4: memref<1x128xf32, #tpu.memory_space<vmem>>, %arg5: memref<1x128xf32, #tpu.memory_space<vmem>>, %arg6: memref<1x128xf32, #tpu.memory_space<vmem>>, %arg7: memref<8x128xf32, #tpu.memory_space<vmem>>, %arg8: memref<8x128xf32, #tpu.memory_space<vmem>>) attributes {dimension_semantics = [#tpu.dimension_semantics<parallel>, #tpu.dimension_semantics<parallel>], iteration_bounds = array<i64: 1, 1>, scalar_prefetch = 0 : i64, scratch_operands = 0 : i64, tpu.core_type = #tpu.core_type<tc>, window_params = [{transform_indices = @transform_0, window_bounds = array<i64: 8, 128>}, {transform_indices = @transform_1, window_bounds = array<i64: 1, 128>}, {transform_indices = @transform_2, window_bounds = array<i64: 1, 128>}, {transform_indices = @transform_3, window_bounds = array<i64: 1, 128>}, {transform_indices = @transform_4, window_bounds = array<i64: 1, 128>}, {transform_indices = @transform_5, window_bounds = array<i64: 8, 128>}, {transform_indices = @transform_6, window_bounds = array<i64: 8, 128>}]} {
    %c0 = arith.constant 0 : index
    %c0_0 = arith.constant 0 : index
    %0 = vector.load %arg2[%c0, %c0_0] : memref<8x128xf32, #tpu.memory_space<vmem>>, vector<8x128xf32>
    %c0_1 = arith.constant 0 : index
    %c0_2 = arith.constant 0 : index
    %1 = vector.load %arg3[%c0_1, %c0_2] : memref<1x128xf32, #tpu.memory_space<vmem>>, vector<1x128xf32>
    %2 = vector.broadcast %1 : vector<1x128xf32> to vector<8x128xf32>
    %3 = arith.subf %0, %2 : vector<8x128xf32>
    %c0_3 = arith.constant 0 : index
    %c0_4 = arith.constant 0 : index
    %4 = vector.load %arg4[%c0_3, %c0_4] : memref<1x128xf32, #tpu.memory_space<vmem>>, vector<1x128xf32>
    %cst = arith.constant 9.99999974E-6 : f32
    %5 = vector.broadcast %cst : f32 to vector<1x128xf32>
    %6 = arith.addf %4, %5 : vector<1x128xf32>
    %7 = math.rsqrt %6 : vector<1x128xf32>
    %8 = vector.broadcast %7 : vector<1x128xf32> to vector<8x128xf32>
    %9 = arith.mulf %3, %8 : vector<8x128xf32>
    %c0_5 = arith.constant 0 : index
    %c0_6 = arith.constant 0 : index
    %10 = vector.load %arg5[%c0_5, %c0_6] : memref<1x128xf32, #tpu.memory_space<vmem>>, vector<1x128xf32>
    %11 = vector.broadcast %10 : vector<1x128xf32> to vector<8x128xf32>
    %12 = arith.mulf %9, %11 : vector<8x128xf32>
    %c0_7 = arith.constant 0 : index
    %c0_8 = arith.constant 0 : index
    %13 = vector.load %arg6[%c0_7, %c0_8] : memref<1x128xf32, #tpu.memory_space<vmem>>, vector<1x128xf32>
    %14 = vector.broadcast %13 : vector<1x128xf32> to vector<8x128xf32>
    %15 = arith.addf %12, %14 : vector<8x128xf32>
    %c0_9 = arith.constant 0 : index
    %c0_10 = arith.constant 0 : index
    %16 = vector.load %arg7[%c0_9, %c0_10] : memref<8x128xf32, #tpu.memory_space<vmem>>, vector<8x128xf32>
    %17 = arith.addf %15, %16 : vector<8x128xf32>
    %cst_11 = arith.constant 0.000000e+00 : f32
    %18 = vector.broadcast %cst_11 : f32 to vector<8x128xf32>
    %19 = arith.maximumf %17, %18 : vector<8x128xf32>
    %c0_12 = arith.constant 0 : index
    %c0_13 = arith.constant 0 : index
    %20 = vector.load %arg8[%c0_12, %c0_13] : memref<8x128xf32, #tpu.memory_space<vmem>>, vector<8x128xf32>
    tpu.vector_store %arg8[%c0_12, %c0_13], %19 {strides = array<i32>} : memref<8x128xf32, #tpu.memory_space<vmem>>, vector<8x128xf32>,
    return
  }
  func.func @transform_0(%arg0: i32, %arg1: i32) -> (i32, i32) {
    %c0_i32 = arith.constant 0 : i32
    return %arg0, %arg1 : i32, i32
  }
  func.func @transform_1(%arg0: i32, %arg1: i32) -> (i32, i32) {
    %c0_i32 = arith.constant 0 : i32
    %c0_i32_0 = arith.constant 0 : i32
    return %c0_i32, %arg1 : i32, i32
  }
  func.func @transform_2(%arg0: i32, %arg1: i32) -> (i32, i32) {
    %c0_i32 = arith.constant 0 : i32
    %c0_i32_0 = arith.constant 0 : i32
    return %c0_i32, %arg1 : i32, i32
  }
  func.func @transform_3(%arg0: i32, %arg1: i32) -> (i32, i32) {
    %c0_i32 = arith.constant 0 : i32
    %c0_i32_0 = arith.constant 0 : i32
    return %c0_i32, %arg1 : i32, i32
  }
  func.func @transform_4(%arg0: i32, %arg1: i32) -> (i32, i32) {
    %c0_i32 = arith.constant 0 : i32
    %c0_i32_0 = arith.constant 0 : i32
    return %c0_i32, %arg1 : i32, i32
  }
  func.func @transform_5(%arg0: i32, %arg1: i32) -> (i32, i32) {
    %c0_i32 = arith.constant 0 : i32
    return %arg0, %arg1 : i32, i32
  }
  func.func @transform_6(%arg0: i32, %arg1: i32) -> (i32, i32) {
    %c0_i32 = arith.constant 0 : i32
    return %arg0, %arg1 : i32, i32
  }
}

module attributes {stable_mosaic.version = 11 : i64} {
  func.func @kernel(%arg0: i32, %arg1: i32, %arg2: i32, %arg3: memref<512x384xbf16, #tpu.memory_space<vmem>>, %arg4: memref<384x128xbf16, #tpu.memory_space<vmem>>, %arg5: memref<512x128xf32, #tpu.memory_space<vmem>>, %arg6: memref<512x128xf32, #tpu.memory_space<vmem>>) attributes {dimension_semantics = [#tpu.dimension_semantics<parallel>, #tpu.dimension_semantics<parallel>, #tpu.dimension_semantics<arbitrary>], iteration_bounds = array<i64: 1, 1, 3>, scalar_prefetch = 0 : i64, scratch_operands = 1 : i64, tpu.core_type = #tpu.core_type<tc>, window_params = [{transform_indices = @transform_0, window_bounds = array<i64: 512, 384>}, {transform_indices = @transform_1, window_bounds = array<i64: 384, 128>}, {transform_indices = @transform_2, window_bounds = array<i64: 512, 128>}]} {
    %c0_i32 = arith.constant 0 : i32
    %0 = arith.cmpi eq, %arg2, %c0_i32 : i32
    %1 = arith.extui %0 : i1 to i32
    %c0_i32_0 = arith.constant 0 : i32
    %2 = arith.cmpi ne, %1, %c0_i32_0 : i32
    scf.if %2 {
      %cst_9 = arith.constant 0.000000e+00 : f32
      %12 = vector.broadcast %cst_9 : f32 to vector<512x128xf32>
      %c0_10 = arith.constant 0 : index
      %c0_11 = arith.constant 0 : index
      %13 = vector.load %arg6[%c0_10, %c0_11] : memref<512x128xf32, #tpu.memory_space<vmem>>, vector<512x128xf32>
      tpu.vector_store %arg6[%c0_10, %c0_11], %12 {strides = array<i32>} : memref<512x128xf32, #tpu.memory_space<vmem>>, vector<512x128xf32>,
    } else {
    }
    %c0 = arith.constant 0 : index
    %c0_1 = arith.constant 0 : index
    %3 = vector.load %arg6[%c0, %c0_1] : memref<512x128xf32, #tpu.memory_space<vmem>>, vector<512x128xf32>
    %c0_2 = arith.constant 0 : index
    %c0_3 = arith.constant 0 : index
    %4 = vector.load %arg3[%c0_2, %c0_3] : memref<512x384xbf16, #tpu.memory_space<vmem>>, vector<512x384xbf16>
    %c0_4 = arith.constant 0 : index
    %c0_5 = arith.constant 0 : index
    %5 = vector.load %arg4[%c0_4, %c0_5] : memref<384x128xbf16, #tpu.memory_space<vmem>>, vector<384x128xbf16>
    %cst = arith.constant dense<0.000000e+00> : vector<512x128xf32>
    %6 = tpu.matmul %4, %5, %cst {dimension_numbers = #tpu.dot_dimension_numbers<[1], [0], [0], [1], [0, 0, 1, 1], [], []>} : vector<512x384xbf16>, vector<384x128xbf16>, vector<512x128xf32> -> vector<512x128xf32>
    %7 = arith.addf %3, %6 : vector<512x128xf32>
    %c0_6 = arith.constant 0 : index
    %c0_7 = arith.constant 0 : index
    %8 = vector.load %arg6[%c0_6, %c0_7] : memref<512x128xf32, #tpu.memory_space<vmem>>, vector<512x128xf32>
    tpu.vector_store %arg6[%c0_6, %c0_7], %7 {strides = array<i32>} : memref<512x128xf32, #tpu.memory_space<vmem>>, vector<512x128xf32>,
    %c2_i32 = arith.constant 2 : i32
    %9 = arith.cmpi eq, %arg2, %c2_i32 : i32
    %10 = arith.extui %9 : i1 to i32
    %c0_i32_8 = arith.constant 0 : i32
    %11 = arith.cmpi ne, %10, %c0_i32_8 : i32
    scf.if %11 {
      %c0_9 = arith.constant 0 : index
      %c0_10 = arith.constant 0 : index
      %12 = vector.load %arg6[%c0_9, %c0_10] : memref<512x128xf32, #tpu.memory_space<vmem>>, vector<512x128xf32>
      %c0_11 = arith.constant 0 : index
      %c0_12 = arith.constant 0 : index
      %13 = vector.load %arg5[%c0_11, %c0_12] : memref<512x128xf32, #tpu.memory_space<vmem>>, vector<512x128xf32>
      tpu.vector_store %arg5[%c0_11, %c0_12], %12 {strides = array<i32>} : memref<512x128xf32, #tpu.memory_space<vmem>>, vector<512x128xf32>,
    } else {
    }
    return
  }
  func.func @transform_0(%arg0: i32, %arg1: i32, %arg2: i32) -> (i32, i32) {
    %c0_i32 = arith.constant 0 : i32
    return %arg0, %arg2 : i32, i32
  }
  func.func @transform_1(%arg0: i32, %arg1: i32, %arg2: i32) -> (i32, i32) {
    %c0_i32 = arith.constant 0 : i32
    return %arg2, %arg1 : i32, i32
  }
  func.func @transform_2(%arg0: i32, %arg1: i32, %arg2: i32) -> (i32, i32) {
    %c0_i32 = arith.constant 0 : i32
    return %arg0, %arg1 : i32, i32
  }
}

module attributes {stable_mosaic.version = 11 : i64} {
  func.func @kernel(%arg0: i32, %arg1: i32, %arg2: i32, %arg3: memref<512x128xbf16, #tpu.memory_space<vmem>>, %arg4: memref<128x128xbf16, #tpu.memory_space<vmem>>, %arg5: memref<1x128xf32, #tpu.memory_space<vmem>>, %arg6: memref<512x128xf32, #tpu.memory_space<vmem>>, %arg7: memref<512x128xf32, #tpu.memory_space<vmem>>) attributes {dimension_semantics = [#tpu.dimension_semantics<parallel>, #tpu.dimension_semantics<parallel>, #tpu.dimension_semantics<arbitrary>], iteration_bounds = array<i64: 1, 1, 49>, scalar_prefetch = 0 : i64, scratch_operands = 1 : i64, tpu.core_type = #tpu.core_type<tc>, window_params = [{transform_indices = @transform_0, window_bounds = array<i64: 512, 128>}, {transform_indices = @transform_1, window_bounds = array<i64: 128, 128>}, {transform_indices = @transform_2, window_bounds = array<i64: 1, 128>}, {transform_indices = @transform_3, window_bounds = array<i64: 512, 128>}]} {
    %c0_i32 = arith.constant 0 : i32
    %0 = arith.cmpi eq, %arg2, %c0_i32 : i32
    %1 = arith.extui %0 : i1 to i32
    %c0_i32_0 = arith.constant 0 : i32
    %2 = arith.cmpi ne, %1, %c0_i32_0 : i32
    scf.if %2 {
      %cst_9 = arith.constant 0.000000e+00 : f32
      %12 = vector.broadcast %cst_9 : f32 to vector<512x128xf32>
      %c0_10 = arith.constant 0 : index
      %c0_11 = arith.constant 0 : index
      %13 = vector.load %arg7[%c0_10, %c0_11] : memref<512x128xf32, #tpu.memory_space<vmem>>, vector<512x128xf32>
      tpu.vector_store %arg7[%c0_10, %c0_11], %12 {strides = array<i32>} : memref<512x128xf32, #tpu.memory_space<vmem>>, vector<512x128xf32>,
    } else {
    }
    %c0 = arith.constant 0 : index
    %c0_1 = arith.constant 0 : index
    %3 = vector.load %arg7[%c0, %c0_1] : memref<512x128xf32, #tpu.memory_space<vmem>>, vector<512x128xf32>
    %c0_2 = arith.constant 0 : index
    %c0_3 = arith.constant 0 : index
    %4 = vector.load %arg3[%c0_2, %c0_3] : memref<512x128xbf16, #tpu.memory_space<vmem>>, vector<512x128xbf16>
    %c0_4 = arith.constant 0 : index
    %c0_5 = arith.constant 0 : index
    %5 = vector.load %arg4[%c0_4, %c0_5] : memref<128x128xbf16, #tpu.memory_space<vmem>>, vector<128x128xbf16>
    %cst = arith.constant dense<0.000000e+00> : vector<512x128xf32>
    %6 = tpu.matmul %4, %5, %cst {dimension_numbers = #tpu.dot_dimension_numbers<[1], [0], [0], [1], [0, 0, 1, 1], [], []>} : vector<512x128xbf16>, vector<128x128xbf16>, vector<512x128xf32> -> vector<512x128xf32>
    %7 = arith.addf %3, %6 : vector<512x128xf32>
    %c0_6 = arith.constant 0 : index
    %c0_7 = arith.constant 0 : index
    %8 = vector.load %arg7[%c0_6, %c0_7] : memref<512x128xf32, #tpu.memory_space<vmem>>, vector<512x128xf32>
    tpu.vector_store %arg7[%c0_6, %c0_7], %7 {strides = array<i32>} : memref<512x128xf32, #tpu.memory_space<vmem>>, vector<512x128xf32>,
    %c48_i32 = arith.constant 48 : i32
    %9 = arith.cmpi eq, %arg2, %c48_i32 : i32
    %10 = arith.extui %9 : i1 to i32
    %c0_i32_8 = arith.constant 0 : i32
    %11 = arith.cmpi ne, %10, %c0_i32_8 : i32
    scf.if %11 {
      %c0_9 = arith.constant 0 : index
      %c0_10 = arith.constant 0 : index
      %12 = vector.load %arg7[%c0_9, %c0_10] : memref<512x128xf32, #tpu.memory_space<vmem>>, vector<512x128xf32>
      %c0_11 = arith.constant 0 : index
      %c0_12 = arith.constant 0 : index
      %13 = vector.load %arg5[%c0_11, %c0_12] : memref<1x128xf32, #tpu.memory_space<vmem>>, vector<1x128xf32>
      %14 = vector.broadcast %13 : vector<1x128xf32> to vector<512x128xf32>
      %15 = arith.addf %12, %14 : vector<512x128xf32>
      %c0_13 = arith.constant 0 : index
      %c0_14 = arith.constant 0 : index
      %16 = vector.load %arg6[%c0_13, %c0_14] : memref<512x128xf32, #tpu.memory_space<vmem>>, vector<512x128xf32>
      tpu.vector_store %arg6[%c0_13, %c0_14], %15 {strides = array<i32>} : memref<512x128xf32, #tpu.memory_space<vmem>>, vector<512x128xf32>,
    } else {
    }
    return
  }
  func.func @transform_0(%arg0: i32, %arg1: i32, %arg2: i32) -> (i32, i32) {
    %c0_i32 = arith.constant 0 : i32
    return %arg0, %arg2 : i32, i32
  }
  func.func @transform_1(%arg0: i32, %arg1: i32, %arg2: i32) -> (i32, i32) {
    %c0_i32 = arith.constant 0 : i32
    return %arg2, %arg1 : i32, i32
  }
  func.func @transform_2(%arg0: i32, %arg1: i32, %arg2: i32) -> (i32, i32) {
    %c0_i32 = arith.constant 0 : i32
    %c0_i32_0 = arith.constant 0 : i32
    return %c0_i32, %arg1 : i32, i32
  }
  func.func @transform_3(%arg0: i32, %arg1: i32, %arg2: i32) -> (i32, i32) {
    %c0_i32 = arith.constant 0 : i32
    return %arg0, %arg1 : i32, i32
  }
}

</mosaic_0001>

<bundles_post_ra>
// kernel: generator_forward.70
= control target key start
LH: loop header
LB: loop body
LE: loop exit
PB: predicated region body
PF: predicated region fallthrough
CT: control target
= control target key end

     0   :  { %v159_v0 = vmov 0.0   ;;  %s365_s0 = inlined_call_operand.vmem [shape: f32[512,128], index: 0, kind: input, shape index: {}]   ;;  %s366_s1 = inlined_call_operand.vmem [shape: f32[1,128], index: 1, kind: output, shape index: {}]  }
   0x1   :  { %12 = vst [vmem:[#allocation2] sm:$0x1] %v159_v0  ;;  %v14_v1 = vld [vmem:[%s365_s0] sm:$0xff]  ;;  %v15_v2 = vld [vmem:[%s365_s0 + $0x8] sm:$0xff]  ;;  %v16_v3 = vld [vmem:[%s365_s0 + $0x10] sm:$0xff] }
   0x2   :  { %v78_v4 = vadd.f32 %v15_v2, %v14_v1  ;;  %v17_v5 = vld [vmem:[%s365_s0 + $0x18] sm:$0xff]  ;;  %v18_v7 = vld [vmem:[%s365_s0 + $0x20] sm:$0xff]  ;;  %v19_v9 = vld [vmem:[%s365_s0 + $0x28] sm:$0xff] }
   0x3   :  { %v20_v11 = vld [vmem:[%s365_s0 + $0x30] sm:$0xff]  ;;  %v21_v13 = vld [vmem:[%s365_s0 + $0x38] sm:$0xff]  ;;  %v22_v15 = vld [vmem:[%s365_s0 + $0x40] sm:$0xff] }
   0x4   :  { %v79_v6 = vadd.f32 %v78_v4, %v16_v3  ;;  %v23_v17 = vld [vmem:[%s365_s0 + $0x48] sm:$0xff]  ;;  %v24_v19 = vld [vmem:[%s365_s0 + $0x50] sm:$0xff]  ;;  %v25_v21 = vld [vmem:[%s365_s0 + $0x58] sm:$0xff] }
   0x5   :  { %v26_v23 = vld [vmem:[%s365_s0 + $0x60] sm:$0xff]  ;;  %v27_v25 = vld [vmem:[%s365_s0 + $0x68] sm:$0xff]  ;;  %v28_v27 = vld [vmem:[%s365_s0 + $0x70] sm:$0xff] }
   0x6   :  { %v80_v8 = vadd.f32 %v79_v6, %v17_v5  ;;  %v29_v29 = vld [vmem:[%s365_s0 + $0x78] sm:$0xff]  ;;  %v30_v31 = vld [vmem:[%s365_s0 + $0x80] sm:$0xff]  ;;  %v31_v33 = vld [vmem:[%s365_s0 + $0x88] sm:$0xff] }
   0x7   :  { %v32_v35 = vld [vmem:[%s365_s0 + $0x90] sm:$0xff]  ;;  %v33_v37 = vld [vmem:[%s365_s0 + $0x98] sm:$0xff]  ;;  %v34_v39 = vld [vmem:[%s365_s0 + $0xa0] sm:$0xff] }
   0x8   :  { %v81_v10 = vadd.f32 %v80_v8, %v18_v7  ;;  %v35_v41 = vld [vmem:[%s365_s0 + $0xa8] sm:$0xff]  ;;  %v36_v43 = vld [vmem:[%s365_s0 + $0xb0] sm:$0xff]  ;;  %v37_v45 = vld [vmem:[%s365_s0 + $0xb8] sm:$0xff] }
   0x9   :  { %v38_v47 = vld [vmem:[%s365_s0 + $0xc0] sm:$0xff]  ;;  %v39_v49 = vld [vmem:[%s365_s0 + $0xc8] sm:$0xff]  ;;  %v40_v51 = vld [vmem:[%s365_s0 + $0xd0] sm:$0xff] }
   0xa   :  { %v82_v12 = vadd.f32 %v81_v10, %v19_v9  ;;  %v41_v53 = vld [vmem:[%s365_s0 + $0xd8] sm:$0xff]  ;;  %v42_v55 = vld [vmem:[%s365_s0 + $0xe0] sm:$0xff]  ;;  %v43_v57 = vld [vmem:[%s365_s0 + $0xe8] sm:$0xff] }
   0xb   :  { %v44_v59 = vld [vmem:[%s365_s0 + $0xf0] sm:$0xff]  ;;  %v45_v61 = vld [vmem:[%s365_s0 + $0xf8] sm:$0xff]  ;;  %v46_v63 = vld [vmem:[%s365_s0 + $0x100] sm:$0xff] }
   0xc   :  { %v83_v14 = vadd.f32 %v82_v12, %v20_v11  ;;  %v47_v1 = vld [vmem:[%s365_s0 + $0x108] sm:$0xff]  ;;  %v48_v3 = vld [vmem:[%s365_s0 + $0x110] sm:$0xff]  ;;  %v49_v5 = vld [vmem:[%s365_s0 + $0x118] sm:$0xff] }
   0xd   :  { %v50_v7 = vld [vmem:[%s365_s0 + $0x120] sm:$0xff]  ;;  %v51_v9 = vld [vmem:[%s365_s0 + $0x128] sm:$0xff]  ;;  %v52_v11 = vld [vmem:[%s365_s0 + $0x130] sm:$0xff] }
   0xe   :  { %v84_v16 = vadd.f32 %v83_v14, %v21_v13  ;;  %v53_v13 = vld [vmem:[%s365_s0 + $0x138] sm:$0xff] }
  0x10   :  { %v85_v18 = vadd.f32 %v84_v16, %v22_v15  ;;  %v54_v15 = vld [vmem:[%s365_s0 + $0x140] sm:$0xff] }
  0x12   :  { %v86_v20 = vadd.f32 %v85_v18, %v23_v17  ;;  %v55_v17 = vld [vmem:[%s365_s0 + $0x148] sm:$0xff] }
  0x14   :  { %v87_v22 = vadd.f32 %v86_v20, %v24_v19  ;;  %v56_v19 = vld [vmem:[%s365_s0 + $0x150] sm:$0xff] }
  0x16   :  { %v88_v24 = vadd.f32 %v87_v22, %v25_v21  ;;  %v57_v21 = vld [vmem:[%s365_s0 + $0x158] sm:$0xff] }
  0x18   :  { %v89_v26 = vadd.f32 %v88_v24, %v26_v23  ;;  %v58_v23 = vld [vmem:[%s365_s0 + $0x160] sm:$0xff] }
  0x1a   :  { %v90_v28 = vadd.f32 %v89_v26, %v27_v25  ;;  %v59_v25 = vld [vmem:[%s365_s0 + $0x168] sm:$0xff] }
  0x1c   :  { %v91_v30 = vadd.f32 %v90_v28, %v28_v27  ;;  %v60_v27 = vld [vmem:[%s365_s0 + $0x170] sm:$0xff] }
  0x1e   :  { %v92_v32 = vadd.f32 %v91_v30, %v29_v29  ;;  %v61_v29 = vld [vmem:[%s365_s0 + $0x178] sm:$0xff] }
  0x20   :  { %v93_v34 = vadd.f32 %v92_v32, %v30_v31  ;;  %v62_v31 = vld [vmem:[%s365_s0 + $0x180] sm:$0xff] }
  0x22   :  { %v94_v36 = vadd.f32 %v93_v34, %v31_v33  ;;  %v63_v33 = vld [vmem:[%s365_s0 + $0x188] sm:$0xff] }
  0x24   :  { %v95_v38 = vadd.f32 %v94_v36, %v32_v35  ;;  %v64_v35 = vld [vmem:[%s365_s0 + $0x190] sm:$0xff] }
  0x26   :  { %v96_v40 = vadd.f32 %v95_v38, %v33_v37  ;;  %v65_v37 = vld [vmem:[%s365_s0 + $0x198] sm:$0xff] }
  0x28   :  { %v97_v42 = vadd.f32 %v96_v40, %v34_v39  ;;  %v66_v39 = vld [vmem:[%s365_s0 + $0x1a0] sm:$0xff] }
  0x2a   :  { %v98_v44 = vadd.f32 %v97_v42, %v35_v41  ;;  %v67_v41 = vld [vmem:[%s365_s0 + $0x1a8] sm:$0xff] }
  0x2c   :  { %v99_v46 = vadd.f32 %v98_v44, %v36_v43  ;;  %v68_v43 = vld [vmem:[%s365_s0 + $0x1b0] sm:$0xff] }
  0x2e   :  { %v100_v48 = vadd.f32 %v99_v46, %v37_v45  ;;  %v69_v45 = vld [vmem:[%s365_s0 + $0x1b8] sm:$0xff] }
  0x30   :  { %v101_v50 = vadd.f32 %v100_v48, %v38_v47  ;;  %v70_v47 = vld [vmem:[%s365_s0 + $0x1c0] sm:$0xff] }
  0x32   :  { %v102_v52 = vadd.f32 %v101_v50, %v39_v49  ;;  %v71_v49 = vld [vmem:[%s365_s0 + $0x1c8] sm:$0xff] }
  0x34   :  { %v103_v54 = vadd.f32 %v102_v52, %v40_v51  ;;  %v72_v51 = vld [vmem:[%s365_s0 + $0x1d0] sm:$0xff] }
  0x36   :  { %v104_v56 = vadd.f32 %v103_v54, %v41_v53  ;;  %v73_v53 = vld [vmem:[%s365_s0 + $0x1d8] sm:$0xff] }
  0x38   :  { %v105_v58 = vadd.f32 %v104_v56, %v42_v55  ;;  %v74_v55 = vld [vmem:[%s365_s0 + $0x1e0] sm:$0xff] }
  0x3a   :  { %v106_v60 = vadd.f32 %v105_v58, %v43_v57  ;;  %v75_v57 = vld [vmem:[%s365_s0 + $0x1e8] sm:$0xff] }
  0x3c   :  { %v107_v62 = vadd.f32 %v106_v60, %v44_v59  ;;  %v76_v59 = vld [vmem:[%s365_s0 + $0x1f0] sm:$0xff] }
  0x3e   :  { %v108_v0 = vadd.f32 %v107_v62, %v45_v61  ;;  %v77_v61 = vld [vmem:[%s365_s0 + $0x1f8] sm:$0xff] }
  0x40   :  { %v109_v2 = vadd.f32 %v108_v0, %v46_v63 }
  0x42   :  { %v110_v4 = vadd.f32 %v109_v2, %v47_v1 }
  0x44   :  { %v111_v6 = vadd.f32 %v110_v4, %v48_v3 }
  0x46   :  { %v112_v8 = vadd.f32 %v111_v6, %v49_v5  ;;  %v13_v5 = vld [vmem:[#allocation2] sm:$0x1] }
  0x48   :  { %v113_v10 = vadd.f32 %v112_v8, %v50_v7 }
  0x4a   :  { %v114_v12 = vadd.f32 %v113_v10, %v51_v9 }
  0x4c   :  { %v115_v14 = vadd.f32 %v114_v12, %v52_v11 }
  0x4e   :  { %v116_v16 = vadd.f32 %v115_v14, %v53_v13 }
  0x50   :  { %v117_v18 = vadd.f32 %v116_v16, %v54_v15 }
  0x52   :  { %v118_v20 = vadd.f32 %v117_v18, %v55_v17 }
  0x54   :  { %v119_v22 = vadd.f32 %v118_v20, %v56_v19 }
  0x56   :  { %v120_v24 = vadd.f32 %v119_v22, %v57_v21 }
  0x58   :  { %v121_v26 = vadd.f32 %v120_v24, %v58_v23 }
  0x5a   :  { %v122_v28 = vadd.f32 %v121_v26, %v59_v25 }
  0x5c   :  { %v123_v30 = vadd.f32 %v122_v28, %v60_v27 }
  0x5e   :  { %v124_v32 = vadd.f32 %v123_v30, %v61_v29 }
  0x60   :  { %v125_v34 = vadd.f32 %v124_v32, %v62_v31 }
  0x62   :  { %v126_v36 = vadd.f32 %v125_v34, %v63_v33 }
  0x64   :  { %v127_v38 = vadd.f32 %v126_v36, %v64_v35 }
  0x66   :  { %v128_v40 = vadd.f32 %v127_v38, %v65_v37 }
  0x68   :  { %v129_v42 = vadd.f32 %v128_v40, %v66_v39 }
  0x6a   :  { %v130_v44 = vadd.f32 %v129_v42, %v67_v41 }
  0x6c   :  { %v131_v46 = vadd.f32 %v130_v44, %v68_v43 }
  0x6e   :  { %v132_v48 = vadd.f32 %v131_v46, %v69_v45 }
  0x70   :  { %v133_v50 = vadd.f32 %v132_v48, %v70_v47 }
  0x72   :  { %v134_v52 = vadd.f32 %v133_v50, %v71_v49 }
  0x74   :  { %v135_v54 = vadd.f32 %v134_v52, %v72_v51 }
  0x76   :  { %v136_v56 = vadd.f32 %v135_v54, %v73_v53 }
  0x78   :  { %v137_v58 = vadd.f32 %v136_v56, %v74_v55 }
  0x7a   :  { %v138_v60 = vadd.f32 %v137_v58, %v75_v57 }
  0x7c   :  { %v139_v62 = vadd.f32 %v138_v60, %v76_v59 }
  0x7e   :  { %v140_v63 = vadd.f32 %v139_v62, %v77_v61 }
  0x80   :  { %v141_v0 = vrot.slane %v140_v63, 4 }
  0x82   :  { %v142_v1 = vadd.f32 %v141_v0, %v140_v63 }
  0x84   :  { %v143_v2 = vrot.slane %v142_v1, 2 }
  0x86   :  { %v144_v3 = vadd.f32 %v143_v2, %v142_v1 }
  0x88   :  { %v145_v4 = vrot.slane %v144_v3, 1 }
  0x8a   :  { %v146_v6 = vadd.f32 %v145_v4, %v144_v3 }
  0x8c   :  { %v147_v7 = vadd.f32 %v146_v6, %v13_v5 }
  0x8e   :  { %148 = vst [vmem:[#allocation2] sm:$0x1] %v147_v7 }
  0x95   :  { %v152_v8 = vld [vmem:[#allocation2] sm:$0x1] }
  0x96   :  { %153 = vst [vmem:[%s366_s1] sm:$0x1] %v152_v8 }

// kernel: generator_forward.69
= control target key start
LH: loop header
LB: loop body
LE: loop exit
PB: predicated region body
PF: predicated region fallthrough
CT: control target
= control target key end

     0   :  { %v1433_v0 = vmov 0   ;;  %s1913_s1 = inlined_call_operand.vmem [shape: bf16[256,128], index: 1, kind: input, shape index: {}]   ;;  %s1914_s0 = inlined_call_operand.vmem [shape: bf16[512,256], index: 0, kind: input, shape index: {}]   ;;  %s1915_s2 = inlined_call_operand.vmem [shape: f32[512,128], index: 2, kind: output, shape index: {}]  }
   0x1   :  { %656 = vmatprep.subr.bf16.mxu0 %v1433_v0  ;;  %1288 = vmatprep.subr.bf16.mxu1 %v1433_v0  ;;  %v1321_v1 = vld [vmem:[%s1913_s1] sm:$0xff]   ;;  %v1322_v2 = vld [vmem:[%s1913_s1 + $0x8] sm:$0xff]   ;;  %v1323_v3 = vld [vmem:[%s1913_s1 + $0x10] sm:$0xff]  }
   0x2   :  { %657 = vmatpush1.bf16.msra.mxu0 %v1321_v1  ;;  %1304 = vmatpush1.bf16.msra.mxu1 %v1321_v1  ;;  %v1324_v4 = vld [vmem:[%s1913_s1 + $0x18] sm:$0xff]   ;;  %v1325_v5 = vld [vmem:[%s1913_s1 + $0x20] sm:$0xff]   ;;  %v1326_v7 = vld [vmem:[%s1913_s1 + $0x28] sm:$0xff]  }
   0x3   :  { %658 = vmatprep.subr.bf16.mxu0 %v1433_v0  ;;  %1289 = vmatprep.subr.bf16.mxu1 %v1433_v0  ;;  %v1339_v6 = vld [vmem:[%s1914_s0 + $0x4] ss:$8 sps:$4 sm:$0xff]   ;;  %v1327_v9 = vld [vmem:[%s1913_s1 + $0x30] sm:$0xff]   ;;  %v1328_v10 = vld [vmem:[%s1913_s1 + $0x38] sm:$0xff]  }
   0x4   :  { %v1342_v8 = vld [vmem:[%s1914_s0 + $0x104] ss:$8 sps:$4 sm:$0xff]   ;;  %688 = vmatprep.mubr.bf16.mxu0 %v1339_v6  ;;  %v1331_v13 = vld [vmem:[%s1913_s1 + $0x50] sm:$0xff]   ;;  %v1332_v14 = vld [vmem:[%s1913_s1 + $0x58] sm:$0xff]  }
   0x5   :  { %816 = vmatprep.mubr.bf16.mxu1 %v1342_v8  ;;  %v1329_v11 = vld [vmem:[%s1913_s1 + $0x40] sm:$0xff]   ;;  %v1330_v12 = vld [vmem:[%s1913_s1 + $0x48] sm:$0xff]   ;;  %v1335_v17 = vld [vmem:[%s1913_s1 + $0x70] sm:$0xff]  }
   0x6   :  { %659 = vmatpush1.bf16.msra.mxu0 %v1322_v2  ;;  %1305 = vmatpush1.bf16.msra.mxu1 %v1322_v2  ;;  %v1333_v15 = vld [vmem:[%s1913_s1 + $0x60] sm:$0xff]   ;;  %v1334_v16 = vld [vmem:[%s1913_s1 + $0x68] sm:$0xff]   ;;  %v1336_v18 = vld [vmem:[%s1913_s1 + $0x78] sm:$0xff]  }
   0x7   :  { %660 = vmatprep.subr.bf16.mxu0 %v1433_v0  ;;  %1290 = vmatprep.subr.bf16.mxu1 %v1433_v0  ;;  %v1337_v19 = vld [vmem:[%s1914_s0] ss:$8 sps:$4 sm:$0xff]   ;;  %v1343_v21 = vld [vmem:[%s1914_s0 + $0x14] ss:$8 sps:$4 sm:$0xff]   ;;  %v1347_v23 = vld [vmem:[%s1914_s0 + $0x10] ss:$8 sps:$4 sm:$0xff]  }
   0x8   :  { %v1340_v20 = vld [vmem:[%s1914_s0 + $0x100] ss:$8 sps:$4 sm:$0xff]   ;;  %v1345_v22 = vld [vmem:[%s1914_s0 + $0x114] ss:$8 sps:$4 sm:$0xff]   ;;  %v1348_v24 = vld [vmem:[%s1914_s0 + $0x110] ss:$8 sps:$4 sm:$0xff]  }
   0x9   :  { %v1349_v25 = vld [vmem:[%s1914_s0 + $0x24] ss:$8 sps:$4 sm:$0xff]   ;;  %v1353_v27 = vld [vmem:[%s1914_s0 + $0x20] ss:$8 sps:$4 sm:$0xff]   ;;  %v1355_v29 = vld [vmem:[%s1914_s0 + $0x34] ss:$8 sps:$4 sm:$0xff]  }
   0xa   :  { %661 = vmatpush1.bf16.msra.mxu0 %v1323_v3  ;;  %1306 = vmatpush1.bf16.msra.mxu1 %v1323_v3  ;;  %v1351_v26 = vld [vmem:[%s1914_s0 + $0x124] ss:$8 sps:$4 sm:$0xff]   ;;  %v1354_v28 = vld [vmem:[%s1914_s0 + $0x120] ss:$8 sps:$4 sm:$0xff]   ;;  %v1357_v30 = vld [vmem:[%s1914_s0 + $0x134] ss:$8 sps:$4 sm:$0xff]  }
   0xb   :  { %662 = vmatprep.subr.bf16.mxu0 %v1433_v0  ;;  %1291 = vmatprep.subr.bf16.mxu1 %v1433_v0  ;;  %v1359_v31 = vld [vmem:[%s1914_s0 + $0x30] ss:$8 sps:$4 sm:$0xff]   ;;  %v1361_v33 = vld [vmem:[%s1914_s0 + $0x44] ss:$8 sps:$4 sm:$0xff]   ;;  %v1365_v35 = vld [vmem:[%s1914_s0 + $0x40] ss:$8 sps:$4 sm:$0xff]  }
   0xc   :  { %v1360_v32 = vld [vmem:[%s1914_s0 + $0x130] ss:$8 sps:$4 sm:$0xff]   ;;  %v1363_v34 = vld [vmem:[%s1914_s0 + $0x144] ss:$8 sps:$4 sm:$0xff]   ;;  %v1366_v36 = vld [vmem:[%s1914_s0 + $0x140] ss:$8 sps:$4 sm:$0xff]  }
   0xd   :  { %v1367_v37 = vld [vmem:[%s1914_s0 + $0x54] ss:$8 sps:$4 sm:$0xff]   ;;  %v1371_v39 = vld [vmem:[%s1914_s0 + $0x50] ss:$8 sps:$4 sm:$0xff]   ;;  %v1373_v41 = vld [vmem:[%s1914_s0 + $0x64] ss:$8 sps:$4 sm:$0xff]  }
   0xe   :  { %663 = vmatpush1.bf16.msra.mxu0 %v1324_v4  ;;  %1307 = vmatpush1.bf16.msra.mxu1 %v1324_v4  ;;  %v1369_v38 = vld [vmem:[%s1914_s0 + $0x154] ss:$8 sps:$4 sm:$0xff]   ;;  %v1372_v40 = vld [vmem:[%s1914_s0 + $0x150] ss:$8 sps:$4 sm:$0xff]   ;;  %v1375_v42 = vld [vmem:[%s1914_s0 + $0x164] ss:$8 sps:$4 sm:$0xff]  }
   0xf   :  { %664 = vmatprep.subr.bf16.mxu0 %v1433_v0  ;;  %1292 = vmatprep.subr.bf16.mxu1 %v1433_v0  ;;  %v1377_v43 = vld [vmem:[%s1914_s0 + $0x60] ss:$8 sps:$4 sm:$0xff]   ;;  %v1379_v45 = vld [vmem:[%s1914_s0 + $0x74] ss:$8 sps:$4 sm:$0xff]   ;;  %v1383_v47 = vld [vmem:[%s1914_s0 + $0x70] ss:$8 sps:$4 sm:$0xff]  }
  0x10   :  { %v1378_v44 = vld [vmem:[%s1914_s0 + $0x160] ss:$8 sps:$4 sm:$0xff]   ;;  %v1381_v46 = vld [vmem:[%s1914_s0 + $0x174] ss:$8 sps:$4 sm:$0xff]   ;;  %v1384_v48 = vld [vmem:[%s1914_s0 + $0x170] ss:$8 sps:$4 sm:$0xff]  }
  0x11   :  { %v1385_v49 = vld [vmem:[%s1914_s0 + $0x84] ss:$8 sps:$4 sm:$0xff]   ;;  %v1389_v51 = vld [vmem:[%s1914_s0 + $0x80] ss:$8 sps:$4 sm:$0xff]   ;;  %v1391_v53 = vld [vmem:[%s1914_s0 + $0x94] ss:$8 sps:$4 sm:$0xff]  }
  0x12   :  { %665 = vmatpush1.bf16.msra.mxu0 %v1325_v5  ;;  %1308 = vmatpush1.bf16.msra.mxu1 %v1325_v5  ;;  %v1387_v50 = vld [vmem:[%s1914_s0 + $0x184] ss:$8 sps:$4 sm:$0xff]   ;;  %v1390_v52 = vld [vmem:[%s1914_s0 + $0x180] ss:$8 sps:$4 sm:$0xff]   ;;  %v1393_v54 = vld [vmem:[%s1914_s0 + $0x194] ss:$8 sps:$4 sm:$0xff]  }
  0x13   :  { %666 = vmatprep.subr.bf16.mxu0 %v1433_v0  ;;  %1293 = vmatprep.subr.bf16.mxu1 %v1433_v0  ;;  %v1395_v55 = vld [vmem:[%s1914_s0 + $0x90] ss:$8 sps:$4 sm:$0xff]   ;;  %v1397_v57 = vld [vmem:[%s1914_s0 + $0xa4] ss:$8 sps:$4 sm:$0xff]   ;;  %v1401_v59 = vld [vmem:[%s1914_s0 + $0xa0] ss:$8 sps:$4 sm:$0xff]  }
  0x14   :  { %v1396_v56 = vld [vmem:[%s1914_s0 + $0x190] ss:$8 sps:$4 sm:$0xff]   ;;  %v1399_v58 = vld [vmem:[%s1914_s0 + $0x1a4] ss:$8 sps:$4 sm:$0xff]   ;;  %v1402_v60 = vld [vmem:[%s1914_s0 + $0x1a0] ss:$8 sps:$4 sm:$0xff]  }
  0x15   :  { %v1403_v61 = vld [vmem:[%s1914_s0 + $0xb4] ss:$8 sps:$4 sm:$0xff]   ;;  %v1407_v63 = vld [vmem:[%s1914_s0 + $0xb0] ss:$8 sps:$4 sm:$0xff]   ;;  %v1409_v1 = vld [vmem:[%s1914_s0 + $0xc4] ss:$8 sps:$4 sm:$0xff]  }
  0x16   :  { %667 = vmatpush1.bf16.msra.mxu0 %v1326_v7  ;;  %1309 = vmatpush1.bf16.msra.mxu1 %v1326_v7  ;;  %v1405_v62 = vld [vmem:[%s1914_s0 + $0x1b4] ss:$8 sps:$4 sm:$0xff]   ;;  %v1411_v2 = vld [vmem:[%s1914_s0 + $0x1c4] ss:$8 sps:$4 sm:$0xff]   ;;  %v1413_v3 = vld [vmem:[%s1914_s0 + $0xc0] ss:$8 sps:$4 sm:$0xff]  }
  0x17   :  { %668 = vmatprep.subr.bf16.mxu0 %v1433_v0  ;;  %1294 = vmatprep.subr.bf16.mxu1 %v1433_v0  ;;  %v1414_v4 = vld [vmem:[%s1914_s0 + $0x1c0] ss:$8 sps:$4 sm:$0xff]   ;;  %v1415_v5 = vld [vmem:[%s1914_s0 + $0xd4] ss:$8 sps:$4 sm:$0xff]   ;;  %v1419_v7 = vld [vmem:[%s1914_s0 + $0xd0] ss:$8 sps:$4 sm:$0xff]  }
  0x18   :  { %v1417_v6 = vld [vmem:[%s1914_s0 + $0x1d4] ss:$8 sps:$4 sm:$0xff]   ;;  %v1420_v8 = vld [vmem:[%s1914_s0 + $0x1d0] ss:$8 sps:$4 sm:$0xff]  }
  0x1a   :  { %669 = vmatpush1.bf16.msra.mxu0 %v1327_v9  ;;  %1310 = vmatpush1.bf16.msra.mxu1 %v1327_v9  ;;  %v1421_v9 = vld [vmem:[%s1914_s0 + $0xe4] ss:$8 sps:$4 sm:$0xff]  }
  0x1b   :  { %670 = vmatprep.subr.bf16.mxu0 %v1433_v0  ;;  %1295 = vmatprep.subr.bf16.mxu1 %v1433_v0 }
  0x1e   :  { %671 = vmatpush1.bf16.msra.mxu0 %v1328_v10  ;;  %1311 = vmatpush1.bf16.msra.mxu1 %v1328_v10  ;;  %v1423_v10 = vld [vmem:[%s1914_s0 + $0x1e4] ss:$8 sps:$4 sm:$0xff]  }
  0x1f   :  { %672 = vmatprep.subr.bf16.mxu0 %v1433_v0  ;;  %1296 = vmatprep.subr.bf16.mxu1 %v1433_v0 }
  0x22   :  { %673 = vmatpush1.bf16.msra.mxu0 %v1329_v11  ;;  %1312 = vmatpush1.bf16.msra.mxu1 %v1329_v11  ;;  %v1425_v11 = vld [vmem:[%s1914_s0 + $0xe0] ss:$8 sps:$4 sm:$0xff]  }
  0x23   :  { %674 = vmatprep.subr.bf16.mxu0 %v1433_v0  ;;  %1297 = vmatprep.subr.bf16.mxu1 %v1433_v0 }
  0x26   :  { %675 = vmatpush1.bf16.msra.mxu0 %v1330_v12  ;;  %1313 = vmatpush1.bf16.msra.mxu1 %v1330_v12  ;;  %v1426_v12 = vld [vmem:[%s1914_s0 + $0x1e0] ss:$8 sps:$4 sm:$0xff]  }
  0x27   :  { %676 = vmatprep.subr.bf16.mxu0 %v1433_v0  ;;  %1298 = vmatprep.subr.bf16.mxu1 %v1433_v0 }
  0x2a   :  { %677 = vmatpush1.bf16.msra.mxu0 %v1331_v13  ;;  %1314 = vmatpush1.bf16.msra.mxu1 %v1331_v13  ;;  %v1427_v13 = vld [vmem:[%s1914_s0 + $0xf4] ss:$8 sps:$4 sm:$0xff]  }
  0x2b   :  { %678 = vmatprep.subr.bf16.mxu0 %v1433_v0  ;;  %1299 = vmatprep.subr.bf16.mxu1 %v1433_v0 }
  0x2e   :  { %679 = vmatpush1.bf16.msra.mxu0 %v1332_v14  ;;  %1315 = vmatpush1.bf16.msra.mxu1 %v1332_v14  ;;  %v1429_v14 = vld [vmem:[%s1914_s0 + $0x1f4] ss:$8 sps:$4 sm:$0xff]  }
  0x2f   :  { %680 = vmatprep.subr.bf16.mxu0 %v1433_v0  ;;  %1300 = vmatprep.subr.bf16.mxu1 %v1433_v0 }
  0x32   :  { %681 = vmatpush1.bf16.msra.mxu0 %v1333_v15  ;;  %1316 = vmatpush1.bf16.msra.mxu1 %v1333_v15  ;;  %v1431_v15 = vld [vmem:[%s1914_s0 + $0xf0] ss:$8 sps:$4 sm:$0xff]  }
  0x33   :  { %682 = vmatprep.subr.bf16.mxu0 %v1433_v0  ;;  %1301 = vmatprep.subr.bf16.mxu1 %v1433_v0 }
  0x36   :  { %683 = vmatpush1.bf16.msra.mxu0 %v1334_v16  ;;  %1317 = vmatpush1.bf16.msra.mxu1 %v1334_v16  ;;  %v1432_v16 = vld [vmem:[%s1914_s0 + $0x1f0] ss:$8 sps:$4 sm:$0xff]  }
  0x37   :  { %684 = vmatprep.subr.bf16.mxu0 %v1433_v0  ;;  %1302 = vmatprep.subr.bf16.mxu1 %v1433_v0 }
  0x3a   :  { %685 = vmatpush1.bf16.msra.mxu0 %v1335_v17  ;;  %1318 = vmatpush1.bf16.msra.mxu1 %v1335_v17 }
  0x3b   :  { %686 = vmatprep.subr.bf16.mxu0 %v1433_v0  ;;  %1303 = vmatprep.subr.bf16.mxu1 %v1433_v0  ;;  %v1408_v0 = vld [vmem:[%s1914_s0 + $0x1b0] ss:$8 sps:$4 sm:$0xff]  }
  0x3e   :  { %687 = vmatpush1.bf16.msra.mxu0 %v1336_v18  ;;  %1319 = vmatpush1.bf16.msra.mxu1 %v1336_v18 }
  0x41   :  { %689 = vmatmul.mubr.bf16.vlgmr.msra.gmra.mrb[0].mxu0 %v1337_v19  ;;  %817 = vmatmul.mubr.bf16.vlgmr.msra.gmra.mrb[0].mxu1 %v1340_v20 }
  0x42   :  { %696 = vmatprep.mubr.bf16.mxu0 %v1343_v21  ;;  %824 = vmatprep.mubr.bf16.mxu1 %v1345_v22 }
  0x49   :  { %697 = vmatmul.mubr.bf16.gmra.mrb[4].mxu0 %v1347_v23  ;;  %825 = vmatmul.mubr.bf16.gmra.mrb[4].mxu1 %v1348_v24 }
  0x4a   :  { %704 = vmatprep.mubr.bf16.mxu0 %v1349_v25  ;;  %832 = vmatprep.mubr.bf16.mxu1 %v1351_v26 }
  0x51   :  { %705 = vmatmul.mubr.bf16.gmra.mrb[8].mxu0 %v1353_v27  ;;  %833 = vmatmul.mubr.bf16.gmra.mrb[8].mxu1 %v1354_v28 }
  0x52   :  { %712 = vmatprep.mubr.bf16.mxu0 %v1355_v29  ;;  %840 = vmatprep.mubr.bf16.mxu1 %v1357_v30 }
  0x59   :  { %713 = vmatmul.mubr.bf16.gmra.mrb[12].mxu0 %v1359_v31  ;;  %841 = vmatmul.mubr.bf16.gmra.mrb[12].mxu1 %v1360_v32 }
  0x5a   :  { %720 = vmatprep.mubr.bf16.mxu0 %v1361_v33  ;;  %848 = vmatprep.mubr.bf16.mxu1 %v1363_v34 }
  0x61   :  { %721 = vmatmul.mubr.bf16.gmra.mrb[16].mxu0 %v1365_v35  ;;  %849 = vmatmul.mubr.bf16.gmra.mrb[16].mxu1 %v1366_v36 }
  0x62   :  { %728 = vmatprep.mubr.bf16.mxu0 %v1367_v37  ;;  %856 = vmatprep.mubr.bf16.mxu1 %v1369_v38 }
  0x69   :  { %729 = vmatmul.mubr.bf16.gmra.mrb[20].mxu0 %v1371_v39  ;;  %857 = vmatmul.mubr.bf16.gmra.mrb[20].mxu1 %v1372_v40 }
  0x6a   :  { %736 = vmatprep.mubr.bf16.mxu0 %v1373_v41  ;;  %864 = vmatprep.mubr.bf16.mxu1 %v1375_v42 }
  0x71   :  { %737 = vmatmul.mubr.bf16.gmra.mrb[24].mxu0 %v1377_v43  ;;  %865 = vmatmul.mubr.bf16.gmra.mrb[24].mxu1 %v1378_v44 }
  0x72   :  { %744 = vmatprep.mubr.bf16.mxu0 %v1379_v45  ;;  %872 = vmatprep.mubr.bf16.mxu1 %v1381_v46 }
  0x79   :  { %745 = vmatmul.mubr.bf16.gmra.mrb[28].mxu0 %v1383_v47  ;;  %873 = vmatmul.mubr.bf16.gmra.mrb[28].mxu1 %v1384_v48 }
  0x7a   :  { %752 = vmatprep.mubr.bf16.mxu0 %v1385_v49  ;;  %880 = vmatprep.mubr.bf16.mxu1 %v1387_v50 }
  0x81   :  { %753 = vmatmul.mubr.bf16.gmra.mrb[32].mxu0 %v1389_v51  ;;  %881 = vmatmul.mubr.bf16.gmra.mrb[32].mxu1 %v1390_v52 }
  0x82   :  { %760 = vmatprep.mubr.bf16.mxu0 %v1391_v53  ;;  %888 = vmatprep.mubr.bf16.mxu1 %v1393_v54 }
  0x89   :  { %761 = vmatmul.mubr.bf16.gmra.mrb[36].mxu0 %v1395_v55  ;;  %889 = vmatmul.mubr.bf16.gmra.mrb[36].mxu1 %v1396_v56 }
  0x8a   :  { %768 = vmatprep.mubr.bf16.mxu0 %v1397_v57  ;;  %896 = vmatprep.mubr.bf16.mxu1 %v1399_v58 }
  0x91   :  { %769 = vmatmul.mubr.bf16.gmra.mrb[40].mxu0 %v1401_v59  ;;  %897 = vmatmul.mubr.bf16.gmra.mrb[40].mxu1 %v1402_v60 }
  0x92   :  { %776 = vmatprep.mubr.bf16.mxu0 %v1403_v61  ;;  %904 = vmatprep.mubr.bf16.mxu1 %v1405_v62 }
  0x99   :  { %777 = vmatmul.mubr.bf16.gmra.mrb[44].mxu0 %v1407_v63  ;;  %905 = vmatmul.mubr.bf16.gmra.mrb[44].mxu1 %v1408_v0 }
  0x9a   :  { %784 = vmatprep.mubr.bf16.mxu0 %v1409_v1  ;;  %912 = vmatprep.mubr.bf16.mxu1 %v1411_v2 }
  0xa1   :  { %785 = vmatmul.mubr.bf16.gmra.mrb[48].mxu0 %v1413_v3  ;;  %913 = vmatmul.mubr.bf16.gmra.mrb[48].mxu1 %v1414_v4 }
  0xa2   :  { %792 = vmatprep.mubr.bf16.mxu0 %v1415_v5  ;;  %920 = vmatprep.mubr.bf16.mxu1 %v1417_v6 }
  0xa9   :  { %793 = vmatmul.mubr.bf16.gmra.mrb[52].mxu0 %v1419_v7  ;;  %921 = vmatmul.mubr.bf16.gmra.mrb[52].mxu1 %v1420_v8 }
  0xaa   :  { %800 = vmatprep.mubr.bf16.mxu0 %v1421_v9  ;;  %928 = vmatprep.mubr.bf16.mxu1 %v1423_v10 }
  0xb1   :  { %801 = vmatmul.mubr.bf16.gmra.mrb[56].mxu0 %v1425_v11  ;;  %929 = vmatmul.mubr.bf16.gmra.mrb[56].mxu1 %v1426_v12 }
  0xb2   :  { %808 = vmatprep.mubr.bf16.mxu0 %v1427_v13  ;;  %936 = vmatprep.mubr.bf16.mxu1 %v1429_v14 }
  0xb9   :  { %809 = vmatmul.mubr.bf16.gmra.mrb[60].mxu0 %v1431_v15  ;;  %937 = vmatmul.mubr.bf16.gmra.mrb[60].mxu1 %v1432_v16 }
 0x114   :  { %v690_v17 = vpop.f32.mrb[0].mxu0  ;;  %v818_v18 = vpop.f32.mrb[0].mxu1 }
 0x115   :  { %1140 = vst [vmem:[%s1915_s2] sm:$0xff] %v690_v17  ;;  %1172 = vst [vmem:[%s1915_s2 + $0x100] sm:$0xff] %v818_v18  ;;  %v692_v19 = vpop.f32.mrb[1].mxu0  ;;  %v820_v20 = vpop.f32.mrb[1].mxu1 }
 0x116   :  { %v693_v21 = vpop.f32.mrb[2].mxu0  ;;  %v821_v22 = vpop.f32.mrb[2].mxu1 }
 0x117   :  { %1141 = vst [vmem:[%s1915_s2 + $0x8] sm:$0xff] %v693_v21  ;;  %1173 = vst [vmem:[%s1915_s2 + $0x108] sm:$0xff] %v821_v22  ;;  %v695_v23 = vpop.f32.mrb[3].mxu0  ;;  %v823_v24 = vpop.f32.mrb[3].mxu1 }
 0x11c   :  { %v698_v25 = vpop.f32.mrb[4].mxu0  ;;  %v826_v26 = vpop.f32.mrb[4].mxu1 }
 0x11d   :  { %1142 = vst [vmem:[%s1915_s2 + $0x10] sm:$0xff] %v698_v25  ;;  %1174 = vst [vmem:[%s1915_s2 + $0x110] sm:$0xff] %v826_v26  ;;  %v700_v27 = vpop.f32.mrb[5].mxu0  ;;  %v828_v28 = vpop.f32.mrb[5].mxu1 }
 0x11e   :  { %v701_v29 = vpop.f32.mrb[6].mxu0  ;;  %v829_v30 = vpop.f32.mrb[6].mxu1 }
 0x11f   :  { %1143 = vst [vmem:[%s1915_s2 + $0x18] sm:$0xff] %v701_v29  ;;  %1175 = vst [vmem:[%s1915_s2 + $0x118] sm:$0xff] %v829_v30  ;;  %v703_v31 = vpop.f32.mrb[7].mxu0  ;;  %v831_v32 = vpop.f32.mrb[7].mxu1 }
 0x124   :  { %v706_v33 = vpop.f32.mrb[8].mxu0  ;;  %v834_v34 = vpop.f32.mrb[8].mxu1 }
 0x125   :  { %1144 = vst [vmem:[%s1915_s2 + $0x20] sm:$0xff] %v706_v33  ;;  %1176 = vst [vmem:[%s1915_s2 + $0x120] sm:$0xff] %v834_v34  ;;  %v708_v35 = vpop.f32.mrb[9].mxu0  ;;  %v836_v36 = vpop.f32.mrb[9].mxu1 }
 0x126   :  { %v709_v37 = vpop.f32.mrb[10].mxu0  ;;  %v837_v38 = vpop.f32.mrb[10].mxu1 }
 0x127   :  { %1145 = vst [vmem:[%s1915_s2 + $0x28] sm:$0xff] %v709_v37  ;;  %1177 = vst [vmem:[%s1915_s2 + $0x128] sm:$0xff] %v837_v38  ;;  %v711_v39 = vpop.f32.mrb[11].mxu0  ;;  %v839_v40 = vpop.f32.mrb[11].mxu1 }
 0x12c   :  { %v714_v41 = vpop.f32.mrb[12].mxu0  ;;  %v842_v42 = vpop.f32.mrb[12].mxu1 }
 0x12d   :  { %1146 = vst [vmem:[%s1915_s2 + $0x30] sm:$0xff] %v714_v41  ;;  %1178 = vst [vmem:[%s1915_s2 + $0x130] sm:$0xff] %v842_v42  ;;  %v716_v43 = vpop.f32.mrb[13].mxu0  ;;  %v844_v44 = vpop.f32.mrb[13].mxu1 }
 0x12e   :  { %v717_v45 = vpop.f32.mrb[14].mxu0  ;;  %v845_v46 = vpop.f32.mrb[14].mxu1 }
 0x12f   :  { %1147 = vst [vmem:[%s1915_s2 + $0x38] sm:$0xff] %v717_v45  ;;  %1179 = vst [vmem:[%s1915_s2 + $0x138] sm:$0xff] %v845_v46  ;;  %v719_v47 = vpop.f32.mrb[15].mxu0  ;;  %v847_v48 = vpop.f32.mrb[15].mxu1 }
 0x134   :  { %v722_v49 = vpop.f32.mrb[16].mxu0  ;;  %v850_v50 = vpop.f32.mrb[16].mxu1 }
 0x135   :  { %1148 = vst [vmem:[%s1915_s2 + $0x40] sm:$0xff] %v722_v49  ;;  %1180 = vst [vmem:[%s1915_s2 + $0x140] sm:$0xff] %v850_v50  ;;  %v724_v51 = vpop.f32.mrb[17].mxu0  ;;  %v852_v52 = vpop.f32.mrb[17].mxu1 }
 0x136   :  { %v725_v53 = vpop.f32.mrb[18].mxu0  ;;  %v853_v54 = vpop.f32.mrb[18].mxu1 }
 0x137   :  { %1149 = vst [vmem:[%s1915_s2 + $0x48] sm:$0xff] %v725_v53  ;;  %1181 = vst [vmem:[%s1915_s2 + $0x148] sm:$0xff] %v853_v54  ;;  %v727_v55 = vpop.f32.mrb[19].mxu0  ;;  %v855_v56 = vpop.f32.mrb[19].mxu1 }
 0x13c   :  { %v730_v57 = vpop.f32.mrb[20].mxu0  ;;  %v858_v58 = vpop.f32.mrb[20].mxu1 }
 0x13d   :  { %1150 = vst [vmem:[%s1915_s2 + $0x50] sm:$0xff] %v730_v57  ;;  %1182 = vst [vmem:[%s1915_s2 + $0x150] sm:$0xff] %v858_v58  ;;  %v732_v59 = vpop.f32.mrb[21].mxu0  ;;  %v860_v60 = vpop.f32.mrb[21].mxu1 }
 0x13e   :  { %v733_v61 = vpop.f32.mrb[22].mxu0  ;;  %v861_v62 = vpop.f32.mrb[22].mxu1 }
 0x13f   :  { %1151 = vst [vmem:[%s1915_s2 + $0x58] sm:$0xff] %v733_v61  ;;  %1183 = vst [vmem:[%s1915_s2 + $0x158] sm:$0xff] %v861_v62  ;;  %v735_v63 = vpop.f32.mrb[23].mxu0  ;;  %v863_v0 = vpop.f32.mrb[23].mxu1 }
 0x144   :  { %v738_v1 = vpop.f32.mrb[24].mxu0  ;;  %v866_v2 = vpop.f32.mrb[24].mxu1 }
 0x145   :  { %1152 = vst [vmem:[%s1915_s2 + $0x60] sm:$0xff] %v738_v1  ;;  %1184 = vst [vmem:[%s1915_s2 + $0x160] sm:$0xff] %v866_v2  ;;  %v740_v3 = vpop.f32.mrb[25].mxu0  ;;  %v868_v4 = vpop.f32.mrb[25].mxu1 }
 0x146   :  { %v741_v5 = vpop.f32.mrb[26].mxu0  ;;  %v869_v6 = vpop.f32.mrb[26].mxu1 }
 0x147   :  { %1153 = vst [vmem:[%s1915_s2 + $0x68] sm:$0xff] %v741_v5  ;;  %1185 = vst [vmem:[%s1915_s2 + $0x168] sm:$0xff] %v869_v6  ;;  %v743_v7 = vpop.f32.mrb[27].mxu0  ;;  %v871_v8 = vpop.f32.mrb[27].mxu1 }
 0x14c   :  { %v746_v9 = vpop.f32.mrb[28].mxu0  ;;  %v874_v10 = vpop.f32.mrb[28].mxu1 }
 0x14d   :  { %1154 = vst [vmem:[%s1915_s2 + $0x70] sm:$0xff] %v746_v9  ;;  %1186 = vst [vmem:[%s1915_s2 + $0x170] sm:$0xff] %v874_v10  ;;  %v748_v11 = vpop.f32.mrb[29].mxu0  ;;  %v876_v12 = vpop.f32.mrb[29].mxu1 }
 0x14e   :  { %v749_v13 = vpop.f32.mrb[30].mxu0  ;;  %v877_v14 = vpop.f32.mrb[30].mxu1 }
 0x14f   :  { %1155 = vst [vmem:[%s1915_s2 + $0x78] sm:$0xff] %v749_v13  ;;  %1187 = vst [vmem:[%s1915_s2 + $0x178] sm:$0xff] %v877_v14  ;;  %v751_v15 = vpop.f32.mrb[31].mxu0  ;;  %v879_v16 = vpop.f32.mrb[31].mxu1 }
 0x154   :  { %v754_v17 = vpop.f32.mrb[32].mxu0  ;;  %v882_v18 = vpop.f32.mrb[32].mxu1 }
 0x155   :  { %1156 = vst [vmem:[%s1915_s2 + $0x80] sm:$0xff] %v754_v17  ;;  %1188 = vst [vmem:[%s1915_s2 + $0x180] sm:$0xff] %v882_v18  ;;  %v756_v19 = vpop.f32.mrb[33].mxu0  ;;  %v884_v20 = vpop.f32.mrb[33].mxu1 }
 0x156   :  { %v757_v21 = vpop.f32.mrb[34].mxu0  ;;  %v885_v22 = vpop.f32.mrb[34].mxu1 }
 0x157   :  { %1157 = vst [vmem:[%s1915_s2 + $0x88] sm:$0xff] %v757_v21  ;;  %1189 = vst [vmem:[%s1915_s2 + $0x188] sm:$0xff] %v885_v22  ;;  %v759_v23 = vpop.f32.mrb[35].mxu0  ;;  %v887_v24 = vpop.f32.mrb[35].mxu1 }
 0x15c   :  { %v762_v25 = vpop.f32.mrb[36].mxu0  ;;  %v890_v26 = vpop.f32.mrb[36].mxu1 }
 0x15d   :  { %1158 = vst [vmem:[%s1915_s2 + $0x90] sm:$0xff] %v762_v25  ;;  %1190 = vst [vmem:[%s1915_s2 + $0x190] sm:$0xff] %v890_v26  ;;  %v764_v27 = vpop.f32.mrb[37].mxu0  ;;  %v892_v28 = vpop.f32.mrb[37].mxu1 }
 0x15e   :  { %v765_v29 = vpop.f32.mrb[38].mxu0  ;;  %v893_v30 = vpop.f32.mrb[38].mxu1 }
 0x15f   :  { %1159 = vst [vmem:[%s1915_s2 + $0x98] sm:$0xff] %v765_v29  ;;  %1191 = vst [vmem:[%s1915_s2 + $0x198] sm:$0xff] %v893_v30  ;;  %v767_v31 = vpop.f32.mrb[39].mxu0  ;;  %v895_v32 = vpop.f32.mrb[39].mxu1 }
 0x164   :  { %v770_v33 = vpop.f32.mrb[40].mxu0  ;;  %v898_v34 = vpop.f32.mrb[40].mxu1 }
 0x165   :  { %1160 = vst [vmem:[%s1915_s2 + $0xa0] sm:$0xff] %v770_v33  ;;  %1192 = vst [vmem:[%s1915_s2 + $0x1a0] sm:$0xff] %v898_v34  ;;  %v772_v35 = vpop.f32.mrb[41].mxu0  ;;  %v900_v36 = vpop.f32.mrb[41].mxu1 }
 0x166   :  { %v773_v37 = vpop.f32.mrb[42].mxu0  ;;  %v901_v38 = vpop.f32.mrb[42].mxu1 }
 0x167   :  { %1161 = vst [vmem:[%s1915_s2 + $0xa8] sm:$0xff] %v773_v37  ;;  %1193 = vst [vmem:[%s1915_s2 + $0x1a8] sm:$0xff] %v901_v38  ;;  %v775_v39 = vpop.f32.mrb[43].mxu0  ;;  %v903_v40 = vpop.f32.mrb[43].mxu1 }
 0x16c   :  { %v778_v41 = vpop.f32.mrb[44].mxu0  ;;  %v906_v42 = vpop.f32.mrb[44].mxu1 }
 0x16d   :  { %1162 = vst [vmem:[%s1915_s2 + $0xb0] sm:$0xff] %v778_v41  ;;  %1194 = vst [vmem:[%s1915_s2 + $0x1b0] sm:$0xff] %v906_v42  ;;  %v780_v43 = vpop.f32.mrb[45].mxu0  ;;  %v908_v44 = vpop.f32.mrb[45].mxu1 }
 0x16e   :  { %v781_v45 = vpop.f32.mrb[46].mxu0  ;;  %v909_v46 = vpop.f32.mrb[46].mxu1 }
 0x16f   :  { %1163 = vst [vmem:[%s1915_s2 + $0xb8] sm:$0xff] %v781_v45  ;;  %1195 = vst [vmem:[%s1915_s2 + $0x1b8] sm:$0xff] %v909_v46  ;;  %v783_v47 = vpop.f32.mrb[47].mxu0  ;;  %v911_v48 = vpop.f32.mrb[47].mxu1 }
 0x174   :  { %v786_v49 = vpop.f32.mrb[48].mxu0  ;;  %v914_v50 = vpop.f32.mrb[48].mxu1 }
 0x175   :  { %1164 = vst [vmem:[%s1915_s2 + $0xc0] sm:$0xff] %v786_v49  ;;  %1196 = vst [vmem:[%s1915_s2 + $0x1c0] sm:$0xff] %v914_v50  ;;  %v788_v51 = vpop.f32.mrb[49].mxu0  ;;  %v916_v52 = vpop.f32.mrb[49].mxu1 }
 0x176   :  { %v789_v53 = vpop.f32.mrb[50].mxu0  ;;  %v917_v54 = vpop.f32.mrb[50].mxu1 }
 0x177   :  { %1165 = vst [vmem:[%s1915_s2 + $0xc8] sm:$0xff] %v789_v53  ;;  %1197 = vst [vmem:[%s1915_s2 + $0x1c8] sm:$0xff] %v917_v54  ;;  %v791_v55 = vpop.f32.mrb[51].mxu0  ;;  %v919_v56 = vpop.f32.mrb[51].mxu1 }
 0x17c   :  { %v794_v57 = vpop.f32.mrb[52].mxu0  ;;  %v922_v58 = vpop.f32.mrb[52].mxu1 }
 0x17d   :  { %1166 = vst [vmem:[%s1915_s2 + $0xd0] sm:$0xff] %v794_v57  ;;  %1198 = vst [vmem:[%s1915_s2 + $0x1d0] sm:$0xff] %v922_v58  ;;  %v796_v59 = vpop.f32.mrb[53].mxu0  ;;  %v924_v60 = vpop.f32.mrb[53].mxu1 }
 0x17e   :  { %v797_v61 = vpop.f32.mrb[54].mxu0  ;;  %v925_v62 = vpop.f32.mrb[54].mxu1 }
 0x17f   :  { %1167 = vst [vmem:[%s1915_s2 + $0xd8] sm:$0xff] %v797_v61  ;;  %1199 = vst [vmem:[%s1915_s2 + $0x1d8] sm:$0xff] %v925_v62  ;;  %v799_v63 = vpop.f32.mrb[55].mxu0  ;;  %v927_v0 = vpop.f32.mrb[55].mxu1 }
 0x184   :  { %v802_v1 = vpop.f32.mrb[56].mxu0  ;;  %v930_v2 = vpop.f32.mrb[56].mxu1 }
 0x185   :  { %1168 = vst [vmem:[%s1915_s2 + $0xe0] sm:$0xff] %v802_v1  ;;  %1200 = vst [vmem:[%s1915_s2 + $0x1e0] sm:$0xff] %v930_v2  ;;  %v804_v3 = vpop.f32.mrb[57].mxu0  ;;  %v932_v4 = vpop.f32.mrb[57].mxu1 }
 0x186   :  { %v805_v5 = vpop.f32.mrb[58].mxu0  ;;  %v933_v6 = vpop.f32.mrb[58].mxu1 }
 0x187   :  { %1169 = vst [vmem:[%s1915_s2 + $0xe8] sm:$0xff] %v805_v5  ;;  %1201 = vst [vmem:[%s1915_s2 + $0x1e8] sm:$0xff] %v933_v6  ;;  %v807_v7 = vpop.f32.mrb[59].mxu0  ;;  %v935_v8 = vpop.f32.mrb[59].mxu1 }
 0x18c   :  { %v810_v9 = vpop.f32.mrb[60].mxu0  ;;  %v938_v10 = vpop.f32.mrb[60].mxu1 }
 0x18d   :  { %1170 = vst [vmem:[%s1915_s2 + $0xf0] sm:$0xff] %v810_v9  ;;  %1202 = vst [vmem:[%s1915_s2 + $0x1f0] sm:$0xff] %v938_v10  ;;  %v812_v11 = vpop.f32.mrb[61].mxu0  ;;  %v940_v12 = vpop.f32.mrb[61].mxu1 }
 0x18e   :  { %v813_v13 = vpop.f32.mrb[62].mxu0  ;;  %v941_v14 = vpop.f32.mrb[62].mxu1 }
 0x18f   :  { %1171 = vst [vmem:[%s1915_s2 + $0xf8] sm:$0xff] %v813_v13  ;;  %1203 = vst [vmem:[%s1915_s2 + $0x1f8] sm:$0xff] %v941_v14  ;;  %v815_v15 = vpop.f32.mrb[63].mxu0  ;;  %v943_v16 = vpop.f32.mrb[63].mxu1 }

// kernel: generator_forward.71
= control target key start
LH: loop header
LB: loop body
LE: loop exit
PB: predicated region body
PF: predicated region fallthrough
CT: control target
= control target key end

     0   :  { %v298_v0 = vmov 0.0   ;;  %s702_s0 = inlined_call_operand.vmem [shape: f32[512,128], index: 0, kind: input, shape index: {}]   ;;  %s703_s1 = inlined_call_operand.vmem [shape: f32[1,128], index: 1, kind: input, shape index: {}]   ;;  %s704_s2 = inlined_call_operand.vmem [shape: f32[1,128], index: 2, kind: output, shape index: {}]  }
   0x1   :  { %15 = vst [vmem:[#allocation2] sm:$0x1] %v298_v0  ;;  %v49_v1 = vld [vmem:[%s702_s0 + $0x108] sm:$0xff]  ;;  %v50_v2 = vld [vmem:[%s702_s0 + $0x110] sm:$0xff]  ;;  %v51_v3 = vld [vmem:[%s702_s0 + $0x118] sm:$0xff] }
   0x2   :  { %v52_v4 = vld [vmem:[%s702_s0 + $0x120] sm:$0xff]  ;;  %v53_v5 = vld [vmem:[%s702_s0 + $0x128] sm:$0xff]  ;;  %v54_v6 = vld [vmem:[%s702_s0 + $0x130] sm:$0xff] }
   0x3   :  { %v55_v7 = vld [vmem:[%s702_s0 + $0x138] sm:$0xff]  ;;  %v56_v8 = vld [vmem:[%s702_s0 + $0x140] sm:$0xff]  ;;  %v57_v9 = vld [vmem:[%s702_s0 + $0x148] sm:$0xff] }
   0x4   :  { %v58_v10 = vld [vmem:[%s702_s0 + $0x150] sm:$0xff]  ;;  %v59_v11 = vld [vmem:[%s702_s0 + $0x158] sm:$0xff]  ;;  %v60_v12 = vld [vmem:[%s702_s0 + $0x160] sm:$0xff] }
   0x5   :  { %v61_v13 = vld [vmem:[%s702_s0 + $0x168] sm:$0xff]  ;;  %v62_v14 = vld [vmem:[%s702_s0 + $0x170] sm:$0xff]  ;;  %v63_v15 = vld [vmem:[%s702_s0 + $0x178] sm:$0xff] }
   0x6   :  { %v64_v16 = vld [vmem:[%s702_s0 + $0x180] sm:$0xff]  ;;  %v65_v18 = vld [vmem:[%s702_s0 + $0x188] sm:$0xff]  ;;  %v66_v19 = vld [vmem:[%s702_s0 + $0x190] sm:$0xff] }
   0x7   :  { %v365_v17 = vld [vmem:[%s703_s1] ss:$0 sm:$0xff]  ;;  %v67_v20 = vld [vmem:[%s702_s0 + $0x198] sm:$0xff]  ;;  %v69_v25 = vld [vmem:[%s702_s0 + $0x1a8] sm:$0xff] }
   0x8   :  { %v377_v21 = vsub.f32 %v49_v1, %v365_v17  ;;  %v380_v22 = vsub.f32 %v50_v2, %v365_v17  ;;  %v383_v23 = vsub.f32 %v51_v3, %v365_v17  ;;  %v68_v24 = vld [vmem:[%s702_s0 + $0x1a0] sm:$0xff]  ;;  %v70_v26 = vld [vmem:[%s702_s0 + $0x1b0] sm:$0xff]  ;;  %v395_v27 = vsub.f32 %v52_v4, %v365_v17  ;;  %v71_v31 = vld [vmem:[%s702_s0 + $0x1b8] sm:$0xff] }
   0x9   :  { %v398_v28 = vsub.f32 %v53_v5, %v365_v17  ;;  %v401_v29 = vsub.f32 %v54_v6, %v365_v17  ;;  %v404_v30 = vsub.f32 %v55_v7, %v365_v17  ;;  %v72_v32 = vld [vmem:[%s702_s0 + $0x1c0] sm:$0xff]  ;;  %v73_v33 = vld [vmem:[%s702_s0 + $0x1c8] sm:$0xff]  ;;  %v416_v34 = vsub.f32 %v56_v8, %v365_v17  ;;  %v74_v38 = vld [vmem:[%s702_s0 + $0x1d0] sm:$0xff] }
   0xa   :  { %v419_v35 = vsub.f32 %v57_v9, %v365_v17  ;;  %v422_v36 = vsub.f32 %v58_v10, %v365_v17  ;;  %v425_v37 = vsub.f32 %v59_v11, %v365_v17  ;;  %v75_v39 = vld [vmem:[%s702_s0 + $0x1d8] sm:$0xff]  ;;  %v76_v40 = vld [vmem:[%s702_s0 + $0x1e0] sm:$0xff]  ;;  %v437_v41 = vsub.f32 %v60_v12, %v365_v17  ;;  %v77_v45 = vld [vmem:[%s702_s0 + $0x1e8] sm:$0xff] }
   0xb   :  { %v440_v42 = vsub.f32 %v61_v13, %v365_v17  ;;  %v443_v43 = vsub.f32 %v62_v14, %v365_v17  ;;  %v446_v44 = vsub.f32 %v63_v15, %v365_v17  ;;  %v78_v46 = vld [vmem:[%s702_s0 + $0x1f0] sm:$0xff]  ;;  %v79_v47 = vld [vmem:[%s702_s0 + $0x1f8] sm:$0xff]  ;;  %v458_v48 = vsub.f32 %v64_v16, %v365_v17  ;;  %v16_v0 = vld [vmem:[%s702_s0] sm:$0xff] }
   0xc   :  { %v461_v49 = vsub.f32 %v65_v18, %v365_v17  ;;  %v464_v50 = vsub.f32 %v66_v19, %v365_v17  ;;  %v467_v51 = vsub.f32 %v67_v20, %v365_v17  ;;  %v470_v52 = vsub.f32 %v68_v24, %v365_v17  ;;  %v17_v1 = vld [vmem:[%s702_s0 + $0x8] sm:$0xff]  ;;  %v18_v2 = vld [vmem:[%s702_s0 + $0x10] sm:$0xff]  ;;  %v19_v5 = vld [vmem:[%s702_s0 + $0x18] sm:$0xff] }
   0xd   :  { %v473_v53 = vsub.f32 %v69_v25, %v365_v17  ;;  %v476_v54 = vsub.f32 %v70_v26, %v365_v17  ;;  %v479_v55 = vsub.f32 %v71_v31, %v365_v17  ;;  %v482_v56 = vsub.f32 %v72_v32, %v365_v17  ;;  %v20_v7 = vld [vmem:[%s702_s0 + $0x20] sm:$0xff]  ;;  %v21_v11 = vld [vmem:[%s702_s0 + $0x28] sm:$0xff]  ;;  %v22_v14 = vld [vmem:[%s702_s0 + $0x30] sm:$0xff] }
   0xe   :  { %v485_v57 = vsub.f32 %v73_v33, %v365_v17  ;;  %v488_v58 = vsub.f32 %v74_v38, %v365_v17  ;;  %v491_v59 = vsub.f32 %v75_v39, %v365_v17  ;;  %v494_v60 = vsub.f32 %v76_v40, %v365_v17  ;;  %v23_v19 = vld [vmem:[%s702_s0 + $0x38] sm:$0xff]  ;;  %v24_v26 = vld [vmem:[%s702_s0 + $0x40] sm:$0xff]  ;;  %v25_v38 = vld [vmem:[%s702_s0 + $0x48] sm:$0xff] }
   0xf   :  { %v497_v61 = vsub.f32 %v77_v45, %v365_v17  ;;  %v500_v62 = vsub.f32 %v78_v46, %v365_v17  ;;  %v503_v63 = vsub.f32 %v79_v47, %v365_v17  ;;  %v87_v3 = vsub.f32 %v16_v0, %v365_v17  ;;  %v26_v46 = vld [vmem:[%s702_s0 + $0x50] sm:$0xff] }
  0x10   :  { %v88_v4 = vsub.f32 %v17_v1, %v365_v17  ;;  %v89_v6 = vsub.f32 %v18_v2, %v365_v17  ;;  %v90_v8 = vsub.f32 %v19_v5, %v365_v17  ;;  %v91_v12 = vsub.f32 %v20_v7, %v365_v17  ;;  %v27_v2 = vld [vmem:[%s702_s0 + $0x58] sm:$0xff] }
  0x11   :  { %v152_v9 = vmul.f32 %v87_v3, %v87_v3  ;;  %v92_v15 = vsub.f32 %v21_v11, %v365_v17  ;;  %v93_v20 = vsub.f32 %v22_v14, %v365_v17  ;;  %v94_v31 = vsub.f32 %v23_v19, %v365_v17  ;;  %v30_v14 = vld [vmem:[%s702_s0 + $0x70] sm:$0xff]  ;;  %v31_v19 = vld [vmem:[%s702_s0 + $0x78] sm:$0xff] }
  0x12   :  { %v153_v10 = vmul.f32 %v88_v4, %v88_v4  ;;  %v154_v13 = vmul.f32 %v89_v6, %v89_v6  ;;  %v155_v16 = vmul.f32 %v90_v8, %v90_v8  ;;  %v156_v24 = vmul.f32 %v91_v12, %v91_v12  ;;  %v28_v6 = vld [vmem:[%s702_s0 + $0x60] sm:$0xff] }
  0x13   :  { %v157_v32 = vmul.f32 %v92_v15, %v92_v15  ;;  %v95_v39 = vsub.f32 %v24_v26, %v365_v17  ;;  %v158_v40 = vmul.f32 %v93_v20, %v93_v20  ;;  %v96_v47 = vsub.f32 %v25_v38, %v365_v17  ;;  %v32_v26 = vld [vmem:[%s702_s0 + $0x80] sm:$0xff]  ;;  %v33_v38 = vld [vmem:[%s702_s0 + $0x88] sm:$0xff] }
  0x14   :  { %v216_v18 = vadd.f32 %v153_v10, %v152_v9  ;;  %v159_v0 = vmul.f32 %v94_v31, %v94_v31  ;;  %v97_v3 = vsub.f32 %v26_v46, %v365_v17  ;;  %v98_v7 = vsub.f32 %v27_v2, %v365_v17  ;;  %v29_v10 = vld [vmem:[%s702_s0 + $0x68] sm:$0xff]  ;;  %v34_v46 = vld [vmem:[%s702_s0 + $0x90] sm:$0xff]  ;;  %v35_v2 = vld [vmem:[%s702_s0 + $0x98] sm:$0xff] }
  0x15   :  { %v160_v4 = vmul.f32 %v95_v39, %v95_v39  ;;  %v161_v8 = vmul.f32 %v96_v47, %v96_v47  ;;  %v99_v11 = vsub.f32 %v28_v6, %v365_v17  ;;  %v100_v15 = vsub.f32 %v29_v10, %v365_v17  ;;  %v36_v6 = vld [vmem:[%s702_s0 + $0xa0] sm:$0xff]  ;;  %v37_v10 = vld [vmem:[%s702_s0 + $0xa8] sm:$0xff] }
  0x16   :  { %v217_v25 = vadd.f32 %v216_v18, %v154_v13  ;;  %v162_v12 = vmul.f32 %v97_v3, %v97_v3  ;;  %v101_v20 = vsub.f32 %v30_v14, %v365_v17  ;;  %v102_v31 = vsub.f32 %v31_v19, %v365_v17  ;;  %v38_v14 = vld [vmem:[%s702_s0 + $0xb0] sm:$0xff]  ;;  %v39_v19 = vld [vmem:[%s702_s0 + $0xb8] sm:$0xff] }
  0x17   :  { %v103_v39 = vsub.f32 %v32_v26, %v365_v17  ;;  %v104_v47 = vsub.f32 %v33_v38, %v365_v17  ;;  %v105_v3 = vsub.f32 %v34_v46, %v365_v17  ;;  %v40_v26 = vld [vmem:[%s702_s0 + $0xc0] sm:$0xff]  ;;  %v41_v38 = vld [vmem:[%s702_s0 + $0xc8] sm:$0xff]  ;;  %v42_v46 = vld [vmem:[%s702_s0 + $0xd0] sm:$0xff] }
  0x18   :  { %v218_v33 = vadd.f32 %v217_v25, %v155_v16  ;;  %v163_v16 = vmul.f32 %v98_v7, %v98_v7  ;;  %v106_v7 = vsub.f32 %v35_v2, %v365_v17  ;;  %v43_v2 = vld [vmem:[%s702_s0 + $0xd8] sm:$0xff] }
  0x1a   :  { %v219_v45 = vadd.f32 %v218_v33, %v156_v24  ;;  %v164_v24 = vmul.f32 %v99_v11, %v99_v11  ;;  %v107_v11 = vsub.f32 %v36_v6, %v365_v17  ;;  %v44_v6 = vld [vmem:[%s702_s0 + $0xe0] sm:$0xff] }
  0x1c   :  { %v220_v1 = vadd.f32 %v219_v45, %v157_v32  ;;  %v165_v32 = vmul.f32 %v100_v15, %v100_v15  ;;  %v108_v15 = vsub.f32 %v37_v10, %v365_v17  ;;  %v45_v10 = vld [vmem:[%s702_s0 + $0xe8] sm:$0xff] }
  0x1e   :  { %v221_v5 = vadd.f32 %v220_v1, %v158_v40  ;;  %v166_v40 = vmul.f32 %v101_v20, %v101_v20  ;;  %v109_v20 = vsub.f32 %v38_v14, %v365_v17  ;;  %v46_v14 = vld [vmem:[%s702_s0 + $0xf0] sm:$0xff] }
  0x20   :  { %v222_v9 = vadd.f32 %v221_v5, %v159_v0  ;;  %v167_v0 = vmul.f32 %v102_v31, %v102_v31  ;;  %v110_v31 = vsub.f32 %v39_v19, %v365_v17  ;;  %v47_v19 = vld [vmem:[%s702_s0 + $0xf8] sm:$0xff] }
  0x22   :  { %v223_v13 = vadd.f32 %v222_v9, %v160_v4  ;;  %v168_v4 = vmul.f32 %v103_v39, %v103_v39  ;;  %v111_v39 = vsub.f32 %v40_v26, %v365_v17  ;;  %v48_v26 = vld [vmem:[%s702_s0 + $0x100] sm:$0xff] }
  0x24   :  { %v224_v18 = vadd.f32 %v223_v13, %v161_v8  ;;  %v169_v8 = vmul.f32 %v104_v47, %v104_v47  ;;  %v112_v47 = vsub.f32 %v41_v38, %v365_v17  ;;  %v119_v38 = vsub.f32 %v48_v26, %v365_v17 }
  0x26   :  { %v225_v25 = vadd.f32 %v224_v18, %v162_v12  ;;  %v170_v12 = vmul.f32 %v105_v3, %v105_v3  ;;  %v113_v3 = vsub.f32 %v42_v46, %v365_v17 }
  0x28   :  { %v226_v33 = vadd.f32 %v225_v25, %v163_v16  ;;  %v171_v16 = vmul.f32 %v106_v7, %v106_v7  ;;  %v114_v7 = vsub.f32 %v43_v2, %v365_v17 }
  0x2a   :  { %v227_v45 = vadd.f32 %v226_v33, %v164_v24  ;;  %v172_v24 = vmul.f32 %v107_v11, %v107_v11  ;;  %v115_v11 = vsub.f32 %v44_v6, %v365_v17 }
  0x2c   :  { %v228_v1 = vadd.f32 %v227_v45, %v165_v32  ;;  %v173_v32 = vmul.f32 %v108_v15, %v108_v15  ;;  %v116_v15 = vsub.f32 %v45_v10, %v365_v17 }
  0x2e   :  { %v229_v5 = vadd.f32 %v228_v1, %v166_v40  ;;  %v174_v40 = vmul.f32 %v109_v20, %v109_v20  ;;  %v117_v20 = vsub.f32 %v46_v14, %v365_v17 }
  0x30   :  { %v230_v9 = vadd.f32 %v229_v5, %v167_v0  ;;  %v175_v0 = vmul.f32 %v110_v31, %v110_v31  ;;  %v118_v31 = vsub.f32 %v47_v19, %v365_v17  ;;  %v188_v17 = vmul.f32 %v395_v27, %v395_v27 }
  0x31   :  { %v193_v27 = vmul.f32 %v419_v35, %v419_v35  ;;  %v198_v35 = vmul.f32 %v443_v43, %v443_v43  ;;  %v203_v43 = vmul.f32 %v467_v51, %v467_v51  ;;  %v208_v51 = vmul.f32 %v482_v56, %v482_v56 }
  0x32   :  { %v231_v13 = vadd.f32 %v230_v9, %v168_v4  ;;  %v176_v4 = vmul.f32 %v111_v39, %v111_v39  ;;  %v182_v39 = vmul.f32 %v117_v20, %v117_v20  ;;  %v213_v56 = vmul.f32 %v497_v61, %v497_v61 }
  0x34   :  { %v232_v18 = vadd.f32 %v231_v13, %v169_v8  ;;  %v177_v8 = vmul.f32 %v112_v47, %v112_v47  ;;  %v184_v47 = vmul.f32 %v119_v38, %v119_v38 }
  0x36   :  { %v233_v25 = vadd.f32 %v232_v18, %v170_v12  ;;  %v178_v12 = vmul.f32 %v113_v3, %v113_v3  ;;  %v186_v3 = vmul.f32 %v380_v22, %v380_v22  ;;  %v191_v22 = vmul.f32 %v404_v30, %v404_v30 }
  0x37   :  { %v196_v30 = vmul.f32 %v437_v41, %v437_v41  ;;  %v201_v41 = vmul.f32 %v461_v49, %v461_v49  ;;  %v206_v49 = vmul.f32 %v476_v54, %v476_v54  ;;  %v211_v54 = vmul.f32 %v491_v59, %v491_v59 }
  0x38   :  { %v234_v33 = vadd.f32 %v233_v25, %v171_v16  ;;  %v179_v16 = vmul.f32 %v114_v7, %v114_v7 }
  0x3a   :  { %v235_v45 = vadd.f32 %v234_v33, %v172_v24  ;;  %v180_v24 = vmul.f32 %v115_v11, %v115_v11 }
  0x3c   :  { %v236_v1 = vadd.f32 %v235_v45, %v173_v32  ;;  %v181_v32 = vmul.f32 %v116_v15, %v116_v15  ;;  %v183_v45 = vmul.f32 %v118_v31, %v118_v31 }
  0x3e   :  { %v237_v5 = vadd.f32 %v236_v1, %v174_v40  ;;  %v185_v1 = vmul.f32 %v377_v21, %v377_v21  ;;  %v190_v21 = vmul.f32 %v401_v29, %v401_v29  ;;  %v195_v29 = vmul.f32 %v425_v37, %v425_v37 }
  0x3f   :  { %v200_v37 = vmul.f32 %v458_v48, %v458_v48  ;;  %v205_v48 = vmul.f32 %v473_v53, %v473_v53  ;;  %v210_v53 = vmul.f32 %v488_v58, %v488_v58  ;;  %v215_v58 = vmul.f32 %v503_v63, %v503_v63 }
  0x40   :  { %v238_v9 = vadd.f32 %v237_v5, %v175_v0  ;;  %v187_v5 = vmul.f32 %v383_v23, %v383_v23  ;;  %v192_v23 = vmul.f32 %v416_v34, %v416_v34  ;;  %v197_v34 = vmul.f32 %v440_v42, %v440_v42 }
  0x41   :  { %v202_v42 = vmul.f32 %v464_v50, %v464_v50  ;;  %v207_v50 = vmul.f32 %v479_v55, %v479_v55  ;;  %v212_v55 = vmul.f32 %v494_v60, %v494_v60 }
  0x42   :  { %v239_v13 = vadd.f32 %v238_v9, %v176_v4 }
  0x44   :  { %v240_v18 = vadd.f32 %v239_v13, %v177_v8  ;;  %v189_v8 = vmul.f32 %v398_v28, %v398_v28  ;;  %v194_v28 = vmul.f32 %v422_v36, %v422_v36  ;;  %v199_v36 = vmul.f32 %v446_v44, %v446_v44 }
  0x45   :  { %v204_v44 = vmul.f32 %v470_v52, %v470_v52  ;;  %v209_v52 = vmul.f32 %v485_v57, %v485_v57  ;;  %v214_v57 = vmul.f32 %v500_v62, %v500_v62 }
  0x46   :  { %v241_v25 = vadd.f32 %v240_v18, %v178_v12 }
  0x48   :  { %v242_v33 = vadd.f32 %v241_v25, %v179_v16 }
  0x4a   :  { %v243_v40 = vadd.f32 %v242_v33, %v180_v24 }
  0x4c   :  { %v244_v46 = vadd.f32 %v243_v40, %v181_v32 }
  0x4e   :  { %v245_v0 = vadd.f32 %v244_v46, %v182_v39 }
  0x50   :  { %v246_v2 = vadd.f32 %v245_v0, %v183_v45 }
  0x52   :  { %v247_v4 = vadd.f32 %v246_v2, %v184_v47 }
  0x54   :  { %v248_v6 = vadd.f32 %v247_v4, %v185_v1 }
  0x56   :  { %v249_v7 = vadd.f32 %v248_v6, %v186_v3 }
  0x58   :  { %v250_v9 = vadd.f32 %v249_v7, %v187_v5 }
  0x5a   :  { %v251_v10 = vadd.f32 %v250_v9, %v188_v17 }
  0x5c   :  { %v252_v11 = vadd.f32 %v251_v10, %v189_v8  ;;  %v151_v8 = vld [vmem:[#allocation2] sm:$0x1] }
  0x5e   :  { %v253_v12 = vadd.f32 %v252_v11, %v190_v21 }
  0x60   :  { %v254_v13 = vadd.f32 %v253_v12, %v191_v22 }
  0x62   :  { %v255_v14 = vadd.f32 %v254_v13, %v192_v23 }
  0x64   :  { %v256_v15 = vadd.f32 %v255_v14, %v193_v27 }
  0x66   :  { %v257_v16 = vadd.f32 %v256_v15, %v194_v28 }
  0x68   :  { %v258_v18 = vadd.f32 %v257_v16, %v195_v29 }
  0x6a   :  { %v259_v19 = vadd.f32 %v258_v18, %v196_v30 }
  0x6c   :  { %v260_v20 = vadd.f32 %v259_v19, %v197_v34 }
  0x6e   :  { %v261_v24 = vadd.f32 %v260_v20, %v198_v35 }
  0x70   :  { %v262_v25 = vadd.f32 %v261_v24, %v199_v36 }
  0x72   :  { %v263_v26 = vadd.f32 %v262_v25, %v200_v37 }
  0x74   :  { %v264_v31 = vadd.f32 %v263_v26, %v201_v41 }
  0x76   :  { %v265_v32 = vadd.f32 %v264_v31, %v202_v42 }
  0x78   :  { %v266_v33 = vadd.f32 %v265_v32, %v203_v43 }
  0x7a   :  { %v267_v38 = vadd.f32 %v266_v33, %v204_v44 }
  0x7c   :  { %v268_v39 = vadd.f32 %v267_v38, %v205_v48 }
  0x7e   :  { %v269_v40 = vadd.f32 %v268_v39, %v206_v49 }
  0x80   :  { %v270_v45 = vadd.f32 %v269_v40, %v207_v50 }
  0x82   :  { %v271_v46 = vadd.f32 %v270_v45, %v208_v51 }
  0x84   :  { %v272_v47 = vadd.f32 %v271_v46, %v209_v52 }
  0x86   :  { %v273_v0 = vadd.f32 %v272_v47, %v210_v53 }
  0x88   :  { %v274_v1 = vadd.f32 %v273_v0, %v211_v54 }
  0x8a   :  { %v275_v2 = vadd.f32 %v274_v1, %v212_v55 }
  0x8c   :  { %v276_v3 = vadd.f32 %v275_v2, %v213_v56 }
  0x8e   :  { %v277_v4 = vadd.f32 %v276_v3, %v214_v57 }
  0x90   :  { %v278_v5 = vadd.f32 %v277_v4, %v215_v58 }
  0x92   :  { %v279_v59 = vrot.slane %v278_v5, 4 }
  0x94   :  { %v280_v6 = vadd.f32 %v279_v59, %v278_v5 }
  0x96   :  { %v281_v17 = vrot.slane %v280_v6, 2 }
  0x98   :  { %v282_v7 = vadd.f32 %v281_v17, %v280_v6 }
  0x9a   :  { %v283_v60 = vrot.slane %v282_v7, 1 }
  0x9c   :  { %v284_v9 = vadd.f32 %v283_v60, %v282_v7 }
  0x9e   :  { %v285_v21 = vadd.f32 %v284_v9, %v151_v8 }
  0xa0   :  { %286 = vst [vmem:[#allocation2] sm:$0x1] %v285_v21 }
  0xa7   :  { %v290_v61 = vld [vmem:[#allocation2] sm:$0x1] }
  0xa8   :  { %291 = vst [vmem:[%s704_s2] sm:$0x1] %v290_v61 }

// kernel: generator_forward.72
= control target key start
LH: loop header
LB: loop body
LE: loop exit
PB: predicated region body
PF: predicated region fallthrough
CT: control target
= control target key end

     0   :  { %v159_v0 = vlaneseq  ;;  %s1440_s0 = inlined_call_operand.vmem [shape: f32[512,128], index: 0, kind: input, shape index: {}]   ;;  %s1441_s1 = inlined_call_operand.vmem [shape: f32[1,128], index: 1, kind: input, shape index: {}]   ;;  %s1442_s2 = inlined_call_operand.vmem [shape: f32[1,128], index: 2, kind: input, shape index: {}]   ;;  %s1443_s3 = inlined_call_operand.vmem [shape: f32[1,128], index: 3, kind: input, shape index: {}]   ;;  %s1444_s4 = inlined_call_operand.vmem [shape: f32[1,128], index: 4, kind: input, shape index: {}]   ;;  %s1445_s5 = inlined_call_operand.vmem [shape: f32[512,128], index: 5, kind: output, shape index: {}]  }
   0x1   :  { %v155_v1 = vld [vmem:[%s1442_s2] sm:$0x1]  ;;  %v555_v6 = vld [vmem:[%s1440_s0 + $0x8] sm:$0xff]  ;;  %v560_v7 = vld [vmem:[%s1440_s0 + $0x10] sm:$0xff] }
   0x2   :  { %v543_v2 = vld [vmem:[%s1440_s0] sm:$0xff]  ;;  %v156_v4 = vadd.f32 1e-05, %v155_v1  ;;  %v550_v5 = vshrl.u32 %v159_v0, 7  ;;  %v565_v8 = vld [vmem:[%s1440_s0 + $0x18] sm:$0xff]  ;;  %v575_v10 = vld [vmem:[%s1440_s0 + $0x28] sm:$0xff] }
   0x3   :  { %v548_v3 = vld [vmem:[%s1441_s1] ss:$0 sm:$0xff]  ;;  %v580_v11 = vld [vmem:[%s1440_s0 + $0x30] sm:$0xff]  ;;  %v585_v12 = vld [vmem:[%s1440_s0 + $0x38] sm:$0xff] }
   0x4   :  { %505 = vrsqrt.f32 %v156_v4  ;;  %v570_v9 = vld [vmem:[%s1440_s0 + $0x20] sm:$0xff]  ;;  %v595_v14 = vld [vmem:[%s1440_s0 + $0x48] sm:$0xff]  ;;  %v91_v15 = vsub.f32 %v543_v2, %v548_v3  ;;  %v92_v16 = vsub.f32 %v555_v6, %v548_v3  ;;  %v604_v17 = vld [vmem:[%s1440_s0 + $0x50] sm:$0xff]  ;;  %v161_v20 = vsub.s32 0, %v550_v5 }
   0x5   :  { %v590_v13 = vld [vmem:[%s1440_s0 + $0x40] sm:$0xff]  ;;  %v609_v18 = vld [vmem:[%s1440_s0 + $0x58] sm:$0xff]  ;;  %v93_v21 = vsub.f32 %v560_v7, %v548_v3  ;;  %v94_v22 = vsub.f32 %v565_v8, %v548_v3  ;;  %v95_v23 = vsub.f32 %v570_v9, %v548_v3  ;;  %v626_v24 = vld [vmem:[%s1440_s0 + $0x68] sm:$0xff]  ;;  %v96_v27 = vsub.f32 %v575_v10, %v548_v3 }
   0x6   :  { %v614_v19 = vld [vmem:[%s1440_s0 + $0x60] sm:$0xff]  ;;  %v631_v25 = vld [vmem:[%s1440_s0 + $0x70] sm:$0xff]  ;;  %v636_v26 = vld [vmem:[%s1440_s0 + $0x78] sm:$0xff]  ;;  %v97_v28 = vsub.f32 %v580_v11, %v548_v3  ;;  %v98_v29 = vsub.f32 %v585_v12, %v548_v3  ;;  %v99_v30 = vsub.f32 %v590_v13, %v548_v3  ;;  %v100_v34 = vsub.f32 %v595_v14, %v548_v3 }
   0x7   :  { %v649_v31 = vld [vmem:[%s1440_s0 + $0x80] sm:$0xff]  ;;  %v654_v32 = vld [vmem:[%s1440_s0 + $0x88] sm:$0xff]  ;;  %v659_v33 = vld [vmem:[%s1440_s0 + $0x90] sm:$0xff]  ;;  %v101_v35 = vsub.f32 %v604_v17, %v548_v3  ;;  %v102_v36 = vsub.f32 %v609_v18, %v548_v3  ;;  %v103_v37 = vsub.f32 %v614_v19, %v548_v3  ;;  %v104_v41 = vsub.f32 %v626_v24, %v548_v3 }
   0x8   :  { %v672_v38 = vld [vmem:[%s1440_s0 + $0x98] sm:$0xff]  ;;  %v677_v39 = vld [vmem:[%s1440_s0 + $0xa0] sm:$0xff]  ;;  %v682_v40 = vld [vmem:[%s1440_s0 + $0xa8] sm:$0xff]  ;;  %v1446_v17 = vsub.f32 %v631_v25, %v548_v3 }
   0x9   :  { %v695_v45 = vld [vmem:[%s1440_s0 + $0xb0] sm:$0xff]  ;;  %v700_v46 = vld [vmem:[%s1440_s0 + $0xb8] sm:$0xff]  ;;  %v705_v47 = vld [vmem:[%s1440_s0 + $0xc0] sm:$0xff] }
   0xa   :  { %v718_v52 = vld [vmem:[%s1440_s0 + $0xc8] sm:$0xff]  ;;  %v723_v53 = vld [vmem:[%s1440_s0 + $0xd0] sm:$0xff]  ;;  %v728_v54 = vld [vmem:[%s1440_s0 + $0xd8] sm:$0xff] }
   0xb   :  { %v741_v59 = vld [vmem:[%s1440_s0 + $0xe0] sm:$0xff]  ;;  %v746_v60 = vld [vmem:[%s1440_s0 + $0xe8] sm:$0xff]  ;;  %v751_v61 = vld [vmem:[%s1440_s0 + $0xf0] sm:$0xff] }
   0xc   :  { %v764_v4 = vld [vmem:[%s1440_s0 + $0xf8] sm:$0xff]  ;;  %v769_v5 = vld [vmem:[%s1440_s0 + $0x100] sm:$0xff]  ;;  %v774_v63 = vld [vmem:[%s1440_s0 + $0x108] sm:$0xff] }
   0xd   :  { %v787_v56 = vld [vmem:[%s1440_s0 + $0x110] sm:$0xff]  ;;  %v792_v55 = vld [vmem:[%s1440_s0 + $0x118] sm:$0xff]  ;;  %v797_v1 = vld [vmem:[%s1440_s0 + $0x120] sm:$0xff] }
   0xe   :  { %v506_v62 = vpop.eup %505  ;;  %v810_v50 = vld [vmem:[%s1440_s0 + $0x128] sm:$0xff]  ;;  %v815_v49 = vld [vmem:[%s1440_s0 + $0x130] sm:$0xff]  ;;  %v854_v2 = vld [vmem:[%s1444_s4] ss:$0 sm:$0xff] }
   0xf   :  { %v799_v0 = vrot.slane %v506_v62, %v161_v20  ;;  %v820_v20 = vld [vmem:[%s1440_s0 + $0x138] sm:$0xff]  ;;  %v825_v62 = vld [vmem:[%s1443_s3] ss:$0 sm:$0xff] }
  0x11   :  { %v164_v44 = vmul.f32 %v799_v0, %v91_v15  ;;  %v165_v43 = vmul.f32 %v799_v0, %v92_v16  ;;  %v166_v58 = vmul.f32 %v799_v0, %v93_v21  ;;  %v167_v48 = vmul.f32 %v799_v0, %v94_v22 }
  0x12   :  { %v168_v6 = vmul.f32 %v799_v0, %v95_v23  ;;  %v169_v7 = vmul.f32 %v799_v0, %v96_v27  ;;  %v170_v8 = vmul.f32 %v799_v0, %v97_v28  ;;  %v171_v15 = vmul.f32 %v799_v0, %v98_v29 }
  0x13   :  { %v235_v16 = vmul.f32 %v825_v62, %v164_v44  ;;  %v236_v9 = vmul.f32 %v825_v62, %v165_v43  ;;  %v237_v21 = vmul.f32 %v825_v62, %v166_v58  ;;  %v238_v10 = vmul.f32 %v825_v62, %v167_v48 }
  0x14   :  { %v239_v22 = vmul.f32 %v825_v62, %v168_v6  ;;  %v240_v23 = vmul.f32 %v825_v62, %v169_v7  ;;  %v241_v11 = vmul.f32 %v825_v62, %v170_v8  ;;  %v242_v27 = vmul.f32 %v825_v62, %v171_v15 }
  0x15   :  { %v306_v12 = vadd.f32 %v854_v2, %v235_v16  ;;  %v307_v28 = vadd.f32 %v854_v2, %v236_v9  ;;  %v308_v29 = vadd.f32 %v854_v2, %v237_v21  ;;  %v309_v43 = vadd.f32 %v854_v2, %v238_v10 }
  0x16   :  { %v310_v44 = vadd.f32 %v854_v2, %v239_v22  ;;  %v311_v48 = vadd.f32 %v854_v2, %v240_v23  ;;  %v312_v58 = vadd.f32 %v854_v2, %v241_v11  ;;  %v313_v6 = vadd.f32 %v854_v2, %v242_v27 }
  0x17   :  { %v370_v7 = vmax.f32 %v306_v12, 0.0  ;;  %v371_v8 = vmax.f32 %v307_v28, 0.0  ;;  %v372_v57 = vmax.f32 %v308_v29, 0.0  ;;  %v373_v15 = vmax.f32 %v309_v43, 0.0 }
  0x18   :  { %v374_v51 = vmax.f32 %v310_v44, 0.0  ;;  %v375_v16 = vmax.f32 %v311_v48, 0.0  ;;  %v376_v42 = vmax.f32 %v312_v58, 0.0  ;;  %v377_v9 = vmax.f32 %v313_v6, 0.0 }
  0x19   :  { %434 = vst [vmem:[%s1445_s5] sm:$0xff] %v370_v7  ;;  %435 = vst [vmem:[%s1445_s5 + $0x8] sm:$0xff] %v371_v8  ;;  %v172_v21 = vmul.f32 %v799_v0, %v99_v30  ;;  %v173_v10 = vmul.f32 %v799_v0, %v100_v34  ;;  %v174_v22 = vmul.f32 %v799_v0, %v101_v35 }
  0x1a   :  { %436 = vst [vmem:[%s1445_s5 + $0x10] sm:$0xff] %v372_v57  ;;  %437 = vst [vmem:[%s1445_s5 + $0x18] sm:$0xff] %v373_v15  ;;  %v175_v57 = vmul.f32 %v799_v0, %v102_v36  ;;  %v176_v13 = vmul.f32 %v799_v0, %v103_v37  ;;  %v177_v14 = vmul.f32 %v799_v0, %v104_v41 }
  0x1b   :  { %438 = vst [vmem:[%s1445_s5 + $0x20] sm:$0xff] %v374_v51  ;;  %439 = vst [vmem:[%s1445_s5 + $0x28] sm:$0xff] %v375_v16  ;;  %v178_v18 = vmul.f32 %v799_v0, %v1446_v17  ;;  %v1447_v30 = vsub.f32 %v636_v26, %v548_v3  ;;  %v243_v35 = vmul.f32 %v825_v62, %v172_v21 }
  0x1c   :  { %440 = vst [vmem:[%s1445_s5 + $0x30] sm:$0xff] %v376_v42  ;;  %441 = vst [vmem:[%s1445_s5 + $0x38] sm:$0xff] %v377_v9  ;;  %v244_v19 = vmul.f32 %v825_v62, %v173_v10  ;;  %v245_v36 = vmul.f32 %v825_v62, %v174_v22  ;;  %v246_v24 = vmul.f32 %v825_v62, %v175_v57 }
  0x1d   :  { %v179_v34 = vmul.f32 %v799_v0, %v1447_v30  ;;  %v247_v37 = vmul.f32 %v825_v62, %v176_v13  ;;  %v248_v41 = vmul.f32 %v825_v62, %v177_v14  ;;  %v249_v25 = vmul.f32 %v825_v62, %v178_v18 }
  0x1e   :  { %v314_v26 = vadd.f32 %v854_v2, %v243_v35  ;;  %v315_v51 = vadd.f32 %v854_v2, %v244_v19  ;;  %v316_v23 = vadd.f32 %v854_v2, %v245_v36  ;;  %v317_v11 = vadd.f32 %v854_v2, %v246_v24 }
  0x1f   :  { %v250_v42 = vmul.f32 %v825_v62, %v179_v34  ;;  %v318_v27 = vadd.f32 %v854_v2, %v247_v37  ;;  %v319_v12 = vadd.f32 %v854_v2, %v248_v41  ;;  %v320_v28 = vadd.f32 %v854_v2, %v249_v25 }
  0x20   :  { %v378_v43 = vmax.f32 %v314_v26, 0.0  ;;  %v379_v44 = vmax.f32 %v315_v51, 0.0  ;;  %v380_v48 = vmax.f32 %v316_v23, 0.0  ;;  %v381_v58 = vmax.f32 %v317_v11, 0.0 }
  0x21   :  { %v321_v29 = vadd.f32 %v854_v2, %v250_v42  ;;  %v382_v6 = vmax.f32 %v318_v27, 0.0  ;;  %v383_v7 = vmax.f32 %v319_v12, 0.0  ;;  %v384_v8 = vmax.f32 %v320_v28, 0.0 }
  0x22   :  { %442 = vst [vmem:[%s1445_s5 + $0x40] sm:$0xff] %v378_v43  ;;  %443 = vst [vmem:[%s1445_s5 + $0x48] sm:$0xff] %v379_v44  ;;  %v1448_v16 = vsub.f32 %v649_v31, %v548_v3  ;;  %v1449_v21 = vsub.f32 %v654_v32, %v548_v3  ;;  %v1450_v22 = vsub.f32 %v659_v33, %v548_v3 }
  0x23   :  { %v385_v15 = vmax.f32 %v321_v29, 0.0  ;;  %444 = vst [vmem:[%s1445_s5 + $0x50] sm:$0xff] %v380_v48  ;;  %445 = vst [vmem:[%s1445_s5 + $0x58] sm:$0xff] %v381_v58  ;;  %v1451_v13 = vsub.f32 %v672_v38, %v548_v3  ;;  %v1452_v31 = vsub.f32 %v677_v39, %v548_v3  ;;  %v1453_v33 = vsub.f32 %v682_v40, %v548_v3 }
  0x24   :  { %v180_v9 = vmul.f32 %v799_v0, %v1448_v16  ;;  %v181_v10 = vmul.f32 %v799_v0, %v1449_v21  ;;  %v182_v57 = vmul.f32 %v799_v0, %v1450_v22  ;;  %446 = vst [vmem:[%s1445_s5 + $0x60] sm:$0xff] %v382_v6  ;;  %447 = vst [vmem:[%s1445_s5 + $0x68] sm:$0xff] %v383_v7 }
  0x25   :  { %v183_v14 = vmul.f32 %v799_v0, %v1451_v13  ;;  %448 = vst [vmem:[%s1445_s5 + $0x70] sm:$0xff] %v384_v8  ;;  %449 = vst [vmem:[%s1445_s5 + $0x78] sm:$0xff] %v385_v15  ;;  %v184_v32 = vmul.f32 %v799_v0, %v1452_v31  ;;  %v185_v38 = vmul.f32 %v799_v0, %v1453_v33 }
  0x26   :  { %v1454_v17 = vsub.f32 %v695_v45, %v548_v3  ;;  %v1455_v30 = vsub.f32 %v700_v46, %v548_v3  ;;  %v251_v35 = vmul.f32 %v825_v62, %v180_v9  ;;  %v252_v39 = vmul.f32 %v825_v62, %v181_v10 }
  0x27   :  { %v253_v19 = vmul.f32 %v825_v62, %v182_v57  ;;  %v254_v40 = vmul.f32 %v825_v62, %v183_v14  ;;  %v255_v36 = vmul.f32 %v825_v62, %v184_v32  ;;  %v256_v24 = vmul.f32 %v825_v62, %v185_v38 }
  0x28   :  { %v186_v18 = vmul.f32 %v799_v0, %v1454_v17  ;;  %v187_v34 = vmul.f32 %v799_v0, %v1455_v30  ;;  %v322_v46 = vadd.f32 %v854_v2, %v251_v35  ;;  %v323_v41 = vadd.f32 %v854_v2, %v252_v39 }
  0x29   :  { %v324_v25 = vadd.f32 %v854_v2, %v253_v19  ;;  %v325_v42 = vadd.f32 %v854_v2, %v254_v40  ;;  %v326_v26 = vadd.f32 %v854_v2, %v255_v36  ;;  %v327_v51 = vadd.f32 %v854_v2, %v256_v24 }
  0x2a   :  { %v257_v45 = vmul.f32 %v825_v62, %v186_v18  ;;  %v258_v37 = vmul.f32 %v825_v62, %v187_v34  ;;  %v386_v27 = vmax.f32 %v322_v46, 0.0  ;;  %v387_v12 = vmax.f32 %v323_v41, 0.0 }
  0x2b   :  { %v388_v28 = vmax.f32 %v324_v25, 0.0  ;;  %v389_v29 = vmax.f32 %v325_v42, 0.0  ;;  %v390_v43 = vmax.f32 %v326_v26, 0.0  ;;  %v391_v44 = vmax.f32 %v327_v51, 0.0 }
  0x2c   :  { %v328_v23 = vadd.f32 %v854_v2, %v257_v45  ;;  %v329_v11 = vadd.f32 %v854_v2, %v258_v37  ;;  %450 = vst [vmem:[%s1445_s5 + $0x80] sm:$0xff] %v386_v27  ;;  %451 = vst [vmem:[%s1445_s5 + $0x88] sm:$0xff] %v387_v12  ;;  %v1456_v6 = vsub.f32 %v705_v47, %v548_v3 }
  0x2d   :  { %452 = vst [vmem:[%s1445_s5 + $0x90] sm:$0xff] %v388_v28  ;;  %453 = vst [vmem:[%s1445_s5 + $0x98] sm:$0xff] %v389_v29  ;;  %v1457_v8 = vsub.f32 %v718_v52, %v548_v3  ;;  %v1458_v16 = vsub.f32 %v723_v53, %v548_v3  ;;  %v1459_v21 = vsub.f32 %v728_v54, %v548_v3 }
  0x2e   :  { %v392_v48 = vmax.f32 %v328_v23, 0.0  ;;  %v393_v58 = vmax.f32 %v329_v11, 0.0  ;;  %v188_v7 = vmul.f32 %v799_v0, %v1456_v6  ;;  %454 = vst [vmem:[%s1445_s5 + $0xa0] sm:$0xff] %v390_v43  ;;  %455 = vst [vmem:[%s1445_s5 + $0xa8] sm:$0xff] %v391_v44  ;;  %v1460_v47 = vsub.f32 %v741_v59, %v548_v3 }
  0x2f   :  { %v189_v15 = vmul.f32 %v799_v0, %v1457_v8  ;;  %v190_v9 = vmul.f32 %v799_v0, %v1458_v16  ;;  %v191_v10 = vmul.f32 %v799_v0, %v1459_v21  ;;  %v1461_v53 = vsub.f32 %v746_v60, %v548_v3 }
  0x30   :  { %456 = vst [vmem:[%s1445_s5 + $0xb0] sm:$0xff] %v392_v48  ;;  %457 = vst [vmem:[%s1445_s5 + $0xb8] sm:$0xff] %v393_v58  ;;  %v192_v52 = vmul.f32 %v799_v0, %v1460_v47  ;;  %v1462_v22 = vsub.f32 %v751_v61, %v548_v3  ;;  %v1463_v13 = vsub.f32 %v764_v4, %v548_v3  ;;  %v60_v47 = vld [vmem:[%s1440_s0 + $0x140] sm:$0xff] }
  0x31   :  { %v193_v54 = vmul.f32 %v799_v0, %v1461_v53  ;;  %v259_v31 = vmul.f32 %v825_v62, %v188_v7  ;;  %v260_v59 = vmul.f32 %v825_v62, %v189_v15  ;;  %v261_v32 = vmul.f32 %v825_v62, %v190_v9  ;;  %v62_v53 = vld [vmem:[%s1440_s0 + $0x150] sm:$0xff] }
  0x32   :  { %v194_v57 = vmul.f32 %v799_v0, %v1462_v22  ;;  %v195_v14 = vmul.f32 %v799_v0, %v1463_v13  ;;  %v262_v60 = vmul.f32 %v825_v62, %v191_v10  ;;  %v263_v33 = vmul.f32 %v825_v62, %v192_v52  ;;  %v61_v52 = vld [vmem:[%s1440_s0 + $0x148] sm:$0xff] }
  0x33   :  { %v264_v38 = vmul.f32 %v825_v62, %v193_v54  ;;  %v330_v4 = vadd.f32 %v854_v2, %v259_v31  ;;  %v331_v18 = vadd.f32 %v854_v2, %v260_v59  ;;  %v332_v30 = vadd.f32 %v854_v2, %v261_v32  ;;  %v64_v31 = vld [vmem:[%s1440_s0 + $0x160] sm:$0xff]  ;;  %v65_v59 = vld [vmem:[%s1440_s0 + $0x168] sm:$0xff] }
  0x34   :  { %v265_v61 = vmul.f32 %v825_v62, %v194_v57  ;;  %v266_v17 = vmul.f32 %v825_v62, %v195_v14  ;;  %v333_v34 = vadd.f32 %v854_v2, %v262_v60  ;;  %v334_v35 = vadd.f32 %v854_v2, %v263_v33  ;;  %v63_v14 = vld [vmem:[%s1440_s0 + $0x158] sm:$0xff] }
  0x35   :  { %v335_v39 = vadd.f32 %v854_v2, %v264_v38  ;;  %v394_v36 = vmax.f32 %v330_v4, 0.0  ;;  %v395_v24 = vmax.f32 %v331_v18, 0.0  ;;  %v396_v45 = vmax.f32 %v332_v30, 0.0 }
  0x36   :  { %v336_v19 = vadd.f32 %v854_v2, %v265_v61  ;;  %v337_v40 = vadd.f32 %v854_v2, %v266_v17  ;;  %v397_v37 = vmax.f32 %v333_v34, 0.0  ;;  %v398_v46 = vmax.f32 %v334_v35, 0.0  ;;  %v66_v61 = vld [vmem:[%s1440_s0 + $0x170] sm:$0xff]  ;;  %v67_v17 = vld [vmem:[%s1440_s0 + $0x178] sm:$0xff] }
  0x37   :  { %v399_v41 = vmax.f32 %v335_v39, 0.0  ;;  %458 = vst [vmem:[%s1445_s5 + $0xc0] sm:$0xff] %v394_v36  ;;  %459 = vst [vmem:[%s1445_s5 + $0xc8] sm:$0xff] %v395_v24  ;;  %v1464_v26 = vsub.f32 %v769_v5, %v548_v3  ;;  %v1465_v23 = vsub.f32 %v774_v63, %v548_v3  ;;  %v1466_v27 = vsub.f32 %v787_v56, %v548_v3 }
  0x38   :  { %v400_v25 = vmax.f32 %v336_v19, 0.0  ;;  %v401_v42 = vmax.f32 %v337_v40, 0.0  ;;  %460 = vst [vmem:[%s1445_s5 + $0xd0] sm:$0xff] %v396_v45  ;;  %461 = vst [vmem:[%s1445_s5 + $0xd8] sm:$0xff] %v397_v37  ;;  %v1467_v28 = vsub.f32 %v792_v55, %v548_v3  ;;  %v1468_v55 = vsub.f32 %v797_v1, %v548_v3 }
  0x39   :  { %v196_v51 = vmul.f32 %v799_v0, %v1464_v26  ;;  %v197_v11 = vmul.f32 %v799_v0, %v1465_v23  ;;  %v198_v12 = vmul.f32 %v799_v0, %v1466_v27  ;;  %462 = vst [vmem:[%s1445_s5 + $0xe0] sm:$0xff] %v398_v46  ;;  %463 = vst [vmem:[%s1445_s5 + $0xe8] sm:$0xff] %v399_v41 }
  0x3a   :  { %v199_v29 = vmul.f32 %v799_v0, %v1467_v28  ;;  %464 = vst [vmem:[%s1445_s5 + $0xf0] sm:$0xff] %v400_v25  ;;  %465 = vst [vmem:[%s1445_s5 + $0xf8] sm:$0xff] %v401_v42  ;;  %v200_v56 = vmul.f32 %v799_v0, %v1468_v55  ;;  %v1469_v63 = vsub.f32 %v810_v50, %v548_v3 }
  0x3b   :  { %v1470_v43 = vsub.f32 %v815_v49, %v548_v3  ;;  %v1471_v48 = vsub.f32 %v820_v20, %v548_v3  ;;  %v267_v6 = vmul.f32 %v825_v62, %v196_v51  ;;  %v268_v1 = vmul.f32 %v825_v62, %v197_v11 }
  0x3c   :  { %v201_v5 = vmul.f32 %v799_v0, %v1469_v63  ;;  %v269_v7 = vmul.f32 %v825_v62, %v198_v12  ;;  %v270_v50 = vmul.f32 %v825_v62, %v199_v29  ;;  %v271_v8 = vmul.f32 %v825_v62, %v200_v56 }
  0x3d   :  { %v202_v44 = vmul.f32 %v799_v0, %v1470_v43  ;;  %v203_v58 = vmul.f32 %v799_v0, %v1471_v48  ;;  %v338_v20 = vadd.f32 %v854_v2, %v267_v6  ;;  %v339_v9 = vadd.f32 %v854_v2, %v268_v1  ;;  %v68_v6 = vld [vmem:[%s1440_s0 + $0x180] sm:$0xff]  ;;  %v69_v1 = vld [vmem:[%s1440_s0 + $0x188] sm:$0xff] }
  0x3e   :  { %v272_v15 = vmul.f32 %v825_v62, %v201_v5  ;;  %v340_v21 = vadd.f32 %v854_v2, %v269_v7  ;;  %v341_v10 = vadd.f32 %v854_v2, %v270_v50  ;;  %v342_v54 = vadd.f32 %v854_v2, %v271_v8  ;;  %v70_v7 = vld [vmem:[%s1440_s0 + $0x190] sm:$0xff] }
  0x3f   :  { %v273_v49 = vmul.f32 %v825_v62, %v202_v44  ;;  %v274_v16 = vmul.f32 %v825_v62, %v203_v58  ;;  %v402_v32 = vmax.f32 %v338_v20, 0.0  ;;  %v403_v60 = vmax.f32 %v339_v9, 0.0  ;;  %v72_v20 = vld [vmem:[%s1440_s0 + $0x1a0] sm:$0xff]  ;;  %v73_v9 = vld [vmem:[%s1440_s0 + $0x1a8] sm:$0xff] }
  0x40   :  { %v343_v22 = vadd.f32 %v854_v2, %v272_v15  ;;  %v404_v33 = vmax.f32 %v340_v21, 0.0  ;;  %v405_v38 = vmax.f32 %v341_v10, 0.0  ;;  %v406_v4 = vmax.f32 %v342_v54, 0.0  ;;  %v75_v54 = vld [vmem:[%s1440_s0 + $0x1b8] sm:$0xff] }
  0x41   :  { %v344_v57 = vadd.f32 %v854_v2, %v273_v49  ;;  %v345_v13 = vadd.f32 %v854_v2, %v274_v16  ;;  %466 = vst [vmem:[%s1445_s5 + $0x100] sm:$0xff] %v402_v32  ;;  %467 = vst [vmem:[%s1445_s5 + $0x108] sm:$0xff] %v403_v60  ;;  %v131_v35 = vsub.f32 %v60_v47, %v548_v3  ;;  %v71_v16 = vld [vmem:[%s1440_s0 + $0x198] sm:$0xff] }
  0x42   :  { %v407_v18 = vmax.f32 %v343_v22, 0.0  ;;  %468 = vst [vmem:[%s1445_s5 + $0x110] sm:$0xff] %v404_v33  ;;  %469 = vst [vmem:[%s1445_s5 + $0x118] sm:$0xff] %v405_v38  ;;  %v132_v39 = vsub.f32 %v61_v52, %v548_v3  ;;  %v133_v19 = vsub.f32 %v62_v53, %v548_v3  ;;  %v134_v40 = vsub.f32 %v63_v14, %v548_v3  ;;  %v74_v53 = vld [vmem:[%s1440_s0 + $0x1b0] sm:$0xff] }
  0x43   :  { %v408_v30 = vmax.f32 %v344_v57, 0.0  ;;  %v409_v34 = vmax.f32 %v345_v13, 0.0  ;;  %470 = vst [vmem:[%s1445_s5 + $0x120] sm:$0xff] %v406_v4  ;;  %v135_v36 = vsub.f32 %v64_v31, %v548_v3  ;;  %v136_v24 = vsub.f32 %v65_v59, %v548_v3 }
  0x44   :  { %471 = vst [vmem:[%s1445_s5 + $0x128] sm:$0xff] %v407_v18  ;;  %v137_v45 = vsub.f32 %v66_v61, %v548_v3  ;;  %v138_v37 = vsub.f32 %v67_v17, %v548_v3  ;;  %v204_v46 = vmul.f32 %v799_v0, %v131_v35  ;;  %v205_v41 = vmul.f32 %v799_v0, %v132_v39 }
  0x45   :  { %472 = vst [vmem:[%s1445_s5 + $0x130] sm:$0xff] %v408_v30  ;;  %473 = vst [vmem:[%s1445_s5 + $0x138] sm:$0xff] %v409_v34  ;;  %v206_v25 = vmul.f32 %v799_v0, %v133_v19  ;;  %v207_v42 = vmul.f32 %v799_v0, %v134_v40  ;;  %v208_v26 = vmul.f32 %v799_v0, %v135_v36 }
  0x46   :  { %v209_v51 = vmul.f32 %v799_v0, %v136_v24  ;;  %v210_v23 = vmul.f32 %v799_v0, %v137_v45  ;;  %v211_v11 = vmul.f32 %v799_v0, %v138_v37  ;;  %v275_v27 = vmul.f32 %v825_v62, %v204_v46 }
  0x47   :  { %v276_v12 = vmul.f32 %v825_v62, %v205_v41  ;;  %v277_v28 = vmul.f32 %v825_v62, %v206_v25  ;;  %v278_v29 = vmul.f32 %v825_v62, %v207_v42  ;;  %v279_v55 = vmul.f32 %v825_v62, %v208_v26 }
  0x48   :  { %v280_v56 = vmul.f32 %v825_v62, %v209_v51  ;;  %v281_v63 = vmul.f32 %v825_v62, %v210_v23  ;;  %v282_v5 = vmul.f32 %v825_v62, %v211_v11  ;;  %v346_v43 = vadd.f32 %v854_v2, %v275_v27  ;;  %v76_v27 = vld [vmem:[%s1440_s0 + $0x1c0] sm:$0xff] }
  0x49   :  { %v347_v44 = vadd.f32 %v854_v2, %v276_v12  ;;  %v348_v48 = vadd.f32 %v854_v2, %v277_v28  ;;  %v349_v58 = vadd.f32 %v854_v2, %v278_v29  ;;  %v350_v50 = vadd.f32 %v854_v2, %v279_v55  ;;  %v77_v12 = vld [vmem:[%s1440_s0 + $0x1c8] sm:$0xff]  ;;  %v78_v28 = vld [vmem:[%s1440_s0 + $0x1d0] sm:$0xff] }
  0x4a   :  { %v351_v8 = vadd.f32 %v854_v2, %v280_v56  ;;  %v352_v15 = vadd.f32 %v854_v2, %v281_v63  ;;  %v353_v49 = vadd.f32 %v854_v2, %v282_v5  ;;  %v410_v21 = vmax.f32 %v346_v43, 0.0  ;;  %v79_v5 = vld [vmem:[%s1440_s0 + $0x1d8] sm:$0xff]  ;;  %v80_v43 = vld [vmem:[%s1440_s0 + $0x1e0] sm:$0xff] }
  0x4b   :  { %v411_v10 = vmax.f32 %v347_v44, 0.0  ;;  %v412_v47 = vmax.f32 %v348_v48, 0.0  ;;  %v413_v52 = vmax.f32 %v349_v58, 0.0  ;;  %v414_v22 = vmax.f32 %v350_v50, 0.0  ;;  %v81_v44 = vld [vmem:[%s1440_s0 + $0x1e8] sm:$0xff]  ;;  %v83_v50 = vld [vmem:[%s1440_s0 + $0x1f8] sm:$0xff] }
  0x4c   :  { %v415_v57 = vmax.f32 %v351_v8, 0.0  ;;  %v416_v13 = vmax.f32 %v352_v15, 0.0  ;;  %v417_v14 = vmax.f32 %v353_v49, 0.0  ;;  %474 = vst [vmem:[%s1445_s5 + $0x140] sm:$0xff] %v410_v21  ;;  %v139_v31 = vsub.f32 %v68_v6, %v548_v3 }
  0x4d   :  { %475 = vst [vmem:[%s1445_s5 + $0x148] sm:$0xff] %v411_v10  ;;  %476 = vst [vmem:[%s1445_s5 + $0x150] sm:$0xff] %v412_v47  ;;  %v140_v59 = vsub.f32 %v69_v1, %v548_v3  ;;  %v141_v32 = vsub.f32 %v70_v7, %v548_v3  ;;  %v142_v60 = vsub.f32 %v71_v16, %v548_v3  ;;  %v82_v7 = vld [vmem:[%s1440_s0 + $0x1f0] sm:$0xff] }
  0x4e   :  { %477 = vst [vmem:[%s1445_s5 + $0x158] sm:$0xff] %v413_v52  ;;  %478 = vst [vmem:[%s1445_s5 + $0x160] sm:$0xff] %v414_v22  ;;  %v143_v33 = vsub.f32 %v72_v20, %v548_v3  ;;  %v144_v38 = vsub.f32 %v73_v9, %v548_v3  ;;  %v145_v61 = vsub.f32 %v74_v53, %v548_v3 }
  0x4f   :  { %479 = vst [vmem:[%s1445_s5 + $0x168] sm:$0xff] %v415_v57  ;;  %480 = vst [vmem:[%s1445_s5 + $0x170] sm:$0xff] %v416_v13  ;;  %v146_v17 = vsub.f32 %v75_v54, %v548_v3  ;;  %v212_v4 = vmul.f32 %v799_v0, %v139_v31  ;;  %v213_v18 = vmul.f32 %v799_v0, %v140_v59 }
  0x50   :  { %481 = vst [vmem:[%s1445_s5 + $0x178] sm:$0xff] %v417_v14  ;;  %v214_v30 = vmul.f32 %v799_v0, %v141_v32  ;;  %v215_v34 = vmul.f32 %v799_v0, %v142_v60  ;;  %v216_v35 = vmul.f32 %v799_v0, %v143_v33  ;;  %v217_v39 = vmul.f32 %v799_v0, %v144_v38 }
  0x51   :  { %v218_v19 = vmul.f32 %v799_v0, %v145_v61  ;;  %v219_v40 = vmul.f32 %v799_v0, %v146_v17  ;;  %v283_v36 = vmul.f32 %v825_v62, %v212_v4  ;;  %v284_v24 = vmul.f32 %v825_v62, %v213_v18 }
  0x52   :  { %v285_v45 = vmul.f32 %v825_v62, %v214_v30  ;;  %v286_v37 = vmul.f32 %v825_v62, %v215_v34  ;;  %v287_v46 = vmul.f32 %v825_v62, %v216_v35  ;;  %v288_v41 = vmul.f32 %v825_v62, %v217_v39 }
  0x53   :  { %v289_v25 = vmul.f32 %v825_v62, %v218_v19  ;;  %v290_v42 = vmul.f32 %v825_v62, %v219_v40  ;;  %v354_v26 = vadd.f32 %v854_v2, %v283_v36  ;;  %v355_v51 = vadd.f32 %v854_v2, %v284_v24 }
  0x54   :  { %v356_v23 = vadd.f32 %v854_v2, %v285_v45  ;;  %v357_v11 = vadd.f32 %v854_v2, %v286_v37  ;;  %v358_v29 = vadd.f32 %v854_v2, %v287_v46  ;;  %v359_v55 = vadd.f32 %v854_v2, %v288_v41 }
  0x55   :  { %v360_v56 = vadd.f32 %v854_v2, %v289_v25  ;;  %v361_v63 = vadd.f32 %v854_v2, %v290_v42  ;;  %v418_v48 = vmax.f32 %v354_v26, 0.0  ;;  %v419_v58 = vmax.f32 %v355_v51, 0.0 }
  0x56   :  { %v420_v6 = vmax.f32 %v356_v23, 0.0  ;;  %v421_v1 = vmax.f32 %v357_v11, 0.0  ;;  %v422_v8 = vmax.f32 %v358_v29, 0.0  ;;  %v423_v15 = vmax.f32 %v359_v55, 0.0 }
  0x57   :  { %v424_v49 = vmax.f32 %v360_v56, 0.0  ;;  %v425_v16 = vmax.f32 %v361_v63, 0.0  ;;  %482 = vst [vmem:[%s1445_s5 + $0x180] sm:$0xff] %v418_v48  ;;  %483 = vst [vmem:[%s1445_s5 + $0x188] sm:$0xff] %v419_v58  ;;  %v147_v20 = vsub.f32 %v76_v27, %v548_v3  ;;  %v148_v9 = vsub.f32 %v77_v12, %v548_v3 }
  0x58   :  { %484 = vst [vmem:[%s1445_s5 + $0x190] sm:$0xff] %v420_v6  ;;  %485 = vst [vmem:[%s1445_s5 + $0x198] sm:$0xff] %v421_v1  ;;  %v149_v21 = vsub.f32 %v78_v28, %v548_v3  ;;  %v150_v10 = vsub.f32 %v79_v5, %v548_v3  ;;  %v151_v47 = vsub.f32 %v80_v43, %v548_v3 }
  0x59   :  { %486 = vst [vmem:[%s1445_s5 + $0x1a0] sm:$0xff] %v422_v8  ;;  %487 = vst [vmem:[%s1445_s5 + $0x1a8] sm:$0xff] %v423_v15  ;;  %v152_v52 = vsub.f32 %v81_v44, %v548_v3  ;;  %v153_v53 = vsub.f32 %v82_v7, %v548_v3  ;;  %v154_v54 = vsub.f32 %v83_v50, %v548_v3 }
  0x5a   :  { %488 = vst [vmem:[%s1445_s5 + $0x1b0] sm:$0xff] %v424_v49  ;;  %489 = vst [vmem:[%s1445_s5 + $0x1b8] sm:$0xff] %v425_v16  ;;  %v220_v22 = vmul.f32 %v799_v0, %v147_v20  ;;  %v221_v57 = vmul.f32 %v799_v0, %v148_v9  ;;  %v222_v13 = vmul.f32 %v799_v0, %v149_v21 }
  0x5b   :  { %v223_v14 = vmul.f32 %v799_v0, %v150_v10  ;;  %v224_v31 = vmul.f32 %v799_v0, %v151_v47  ;;  %v225_v59 = vmul.f32 %v799_v0, %v152_v52  ;;  %v226_v32 = vmul.f32 %v799_v0, %v153_v53 }
  0x5c   :  { %v227_v60 = vmul.f32 %v799_v0, %v154_v54  ;;  %v291_v33 = vmul.f32 %v825_v62, %v220_v22  ;;  %v292_v3 = vmul.f32 %v825_v62, %v221_v57  ;;  %v293_v38 = vmul.f32 %v825_v62, %v222_v13 }
  0x5d   :  { %v294_v61 = vmul.f32 %v825_v62, %v223_v14  ;;  %v295_v17 = vmul.f32 %v825_v62, %v224_v31  ;;  %v296_v4 = vmul.f32 %v825_v62, %v225_v59  ;;  %v297_v18 = vmul.f32 %v825_v62, %v226_v32 }
  0x5e   :  { %v298_v30 = vmul.f32 %v825_v62, %v227_v60  ;;  %v362_v34 = vadd.f32 %v854_v2, %v291_v33  ;;  %v363_v0 = vadd.f32 %v854_v2, %v292_v3  ;;  %v364_v35 = vadd.f32 %v854_v2, %v293_v38 }
  0x5f   :  { %v365_v39 = vadd.f32 %v854_v2, %v294_v61  ;;  %v366_v19 = vadd.f32 %v854_v2, %v295_v17  ;;  %v367_v40 = vadd.f32 %v854_v2, %v296_v4  ;;  %v368_v36 = vadd.f32 %v854_v2, %v297_v18 }
  0x60   :  { %v369_v24 = vadd.f32 %v854_v2, %v298_v30  ;;  %v426_v45 = vmax.f32 %v362_v34, 0.0  ;;  %v427_v37 = vmax.f32 %v363_v0, 0.0  ;;  %v428_v46 = vmax.f32 %v364_v35, 0.0 }
  0x61   :  { %v429_v62 = vmax.f32 %v365_v39, 0.0  ;;  %v430_v41 = vmax.f32 %v366_v19, 0.0  ;;  %v431_v25 = vmax.f32 %v367_v40, 0.0  ;;  %v432_v42 = vmax.f32 %v368_v36, 0.0 }
  0x62   :  { %v433_v26 = vmax.f32 %v369_v24, 0.0  ;;  %490 = vst [vmem:[%s1445_s5 + $0x1c0] sm:$0xff] %v426_v45  ;;  %491 = vst [vmem:[%s1445_s5 + $0x1c8] sm:$0xff] %v427_v37 }
  0x63   :  { %492 = vst [vmem:[%s1445_s5 + $0x1d0] sm:$0xff] %v428_v46  ;;  %493 = vst [vmem:[%s1445_s5 + $0x1d8] sm:$0xff] %v429_v62 }
  0x64   :  { %494 = vst [vmem:[%s1445_s5 + $0x1e0] sm:$0xff] %v430_v41  ;;  %495 = vst [vmem:[%s1445_s5 + $0x1e8] sm:$0xff] %v431_v25 }
  0x65   :  { %496 = vst [vmem:[%s1445_s5 + $0x1f0] sm:$0xff] %v432_v42  ;;  %497 = vst [vmem:[%s1445_s5 + $0x1f8] sm:$0xff] %v433_v26 }

// kernel: generator_forward.74
= control target key start
LH: loop header
LB: loop body
LE: loop exit
PB: predicated region body
PF: predicated region fallthrough
CT: control target
= control target key end

     0   :  { %v63_v0 = vmov 0.0   ;;  %s125_s0 = inlined_call_operand.vmem [shape: f32[128,128], index: 0, kind: input, shape index: {}]   ;;  %s126_s1 = inlined_call_operand.vmem [shape: f32[1,128], index: 1, kind: output, shape index: {}]  }
   0x1   :  { %12 = vst [vmem:[#allocation2] sm:$0x1] %v63_v0  ;;  %v14_v1 = vld [vmem:[%s125_s0] sm:$0xff]  ;;  %v15_v2 = vld [vmem:[%s125_s0 + $0x8] sm:$0xff]  ;;  %v16_v3 = vld [vmem:[%s125_s0 + $0x10] sm:$0xff] }
   0x2   :  { %v30_v4 = vadd.f32 %v15_v2, %v14_v1  ;;  %v17_v5 = vld [vmem:[%s125_s0 + $0x18] sm:$0xff]  ;;  %v18_v7 = vld [vmem:[%s125_s0 + $0x20] sm:$0xff]  ;;  %v19_v9 = vld [vmem:[%s125_s0 + $0x28] sm:$0xff] }
   0x3   :  { %v20_v11 = vld [vmem:[%s125_s0 + $0x30] sm:$0xff]  ;;  %v21_v13 = vld [vmem:[%s125_s0 + $0x38] sm:$0xff]  ;;  %v22_v15 = vld [vmem:[%s125_s0 + $0x40] sm:$0xff] }
   0x4   :  { %v31_v6 = vadd.f32 %v30_v4, %v16_v3  ;;  %v23_v17 = vld [vmem:[%s125_s0 + $0x48] sm:$0xff]  ;;  %v24_v19 = vld [vmem:[%s125_s0 + $0x50] sm:$0xff]  ;;  %v25_v21 = vld [vmem:[%s125_s0 + $0x58] sm:$0xff] }
   0x5   :  { %v26_v23 = vld [vmem:[%s125_s0 + $0x60] sm:$0xff]  ;;  %v27_v25 = vld [vmem:[%s125_s0 + $0x68] sm:$0xff]  ;;  %v28_v27 = vld [vmem:[%s125_s0 + $0x70] sm:$0xff] }
   0x6   :  { %v32_v8 = vadd.f32 %v31_v6, %v17_v5  ;;  %v29_v29 = vld [vmem:[%s125_s0 + $0x78] sm:$0xff] }
   0x8   :  { %v33_v10 = vadd.f32 %v32_v8, %v18_v7  ;;  %v13_v37 = vld [vmem:[#allocation2] sm:$0x1] }
   0xa   :  { %v34_v12 = vadd.f32 %v33_v10, %v19_v9 }
   0xc   :  { %v35_v14 = vadd.f32 %v34_v12, %v20_v11 }
   0xe   :  { %v36_v16 = vadd.f32 %v35_v14, %v21_v13 }
  0x10   :  { %v37_v18 = vadd.f32 %v36_v16, %v22_v15 }
  0x12   :  { %v38_v20 = vadd.f32 %v37_v18, %v23_v17 }
  0x14   :  { %v39_v22 = vadd.f32 %v38_v20, %v24_v19 }
  0x16   :  { %v40_v24 = vadd.f32 %v39_v22, %v25_v21 }
  0x18   :  { %v41_v26 = vadd.f32 %v40_v24, %v26_v23 }
  0x1a   :  { %v42_v28 = vadd.f32 %v41_v26, %v27_v25 }
  0x1c   :  { %v43_v30 = vadd.f32 %v42_v28, %v28_v27 }
  0x1e   :  { %v44_v31 = vadd.f32 %v43_v30, %v29_v29 }
  0x20   :  { %v45_v32 = vrot.slane %v44_v31, 4 }
  0x22   :  { %v46_v33 = vadd.f32 %v45_v32, %v44_v31 }
  0x24   :  { %v47_v34 = vrot.slane %v46_v33, 2 }
  0x26   :  { %v48_v35 = vadd.f32 %v47_v34, %v46_v33 }
  0x28   :  { %v49_v36 = vrot.slane %v48_v35, 1 }
  0x2a   :  { %v50_v38 = vadd.f32 %v49_v36, %v48_v35 }
  0x2c   :  { %v51_v39 = vadd.f32 %v50_v38, %v13_v37 }
  0x2e   :  { %52 = vst [vmem:[#allocation2] sm:$0x1] %v51_v39 }
  0x35   :  { %v56_v40 = vld [vmem:[#allocation2] sm:$0x1] }
  0x36   :  { %57 = vst [vmem:[%s126_s1] sm:$0x1] %v56_v40 }

// kernel: generator_forward.75
= control target key start
LH: loop header
LB: loop body
LE: loop exit
PB: predicated region body
PF: predicated region fallthrough
CT: control target
= control target key end

     0   :  { %v106_v0 = vmov 0.0   ;;  %s176_s0 = inlined_call_operand.vmem [shape: f32[128,128], index: 0, kind: input, shape index: {}]   ;;  %s177_s1 = inlined_call_operand.vmem [shape: f32[1,128], index: 1, kind: input, shape index: {}]   ;;  %s178_s2 = inlined_call_operand.vmem [shape: f32[1,128], index: 2, kind: output, shape index: {}]  }
   0x1   :  { %15 = vst [vmem:[#allocation2] sm:$0x1] %v106_v0  ;;  %v16_v1 = vld [vmem:[%s176_s0] sm:$0xff]  ;;  %v17_v2 = vld [vmem:[%s176_s0 + $0x8] sm:$0xff]  ;;  %v18_v3 = vld [vmem:[%s176_s0 + $0x10] sm:$0xff] }
   0x2   :  { %v104_v4 = vld [vmem:[%s177_s1] ss:$0 sm:$0xff]  ;;  %v19_v7 = vld [vmem:[%s176_s0 + $0x18] sm:$0xff]  ;;  %v21_v13 = vld [vmem:[%s176_s0 + $0x28] sm:$0xff] }
   0x3   :  { %v39_v5 = vsub.f32 %v16_v1, %v104_v4  ;;  %v40_v6 = vsub.f32 %v17_v2, %v104_v4  ;;  %v41_v8 = vsub.f32 %v18_v3, %v104_v4  ;;  %v20_v9 = vld [vmem:[%s176_s0 + $0x20] sm:$0xff]  ;;  %v42_v10 = vsub.f32 %v19_v7, %v104_v4  ;;  %v22_v16 = vld [vmem:[%s176_s0 + $0x30] sm:$0xff]  ;;  %v23_v20 = vld [vmem:[%s176_s0 + $0x38] sm:$0xff] }
   0x4   :  { %v43_v14 = vsub.f32 %v20_v9, %v104_v4  ;;  %v44_v17 = vsub.f32 %v21_v13, %v104_v4  ;;  %v45_v21 = vsub.f32 %v22_v16, %v104_v4  ;;  %v24_v24 = vld [vmem:[%s176_s0 + $0x40] sm:$0xff]  ;;  %v46_v25 = vsub.f32 %v23_v20, %v104_v4  ;;  %v25_v28 = vld [vmem:[%s176_s0 + $0x48] sm:$0xff]  ;;  %v26_v32 = vld [vmem:[%s176_s0 + $0x50] sm:$0xff] }
   0x5   :  { %v56_v11 = vmul.f32 %v39_v5, %v39_v5  ;;  %v57_v12 = vmul.f32 %v40_v6, %v40_v6  ;;  %v58_v15 = vmul.f32 %v41_v8, %v41_v8  ;;  %v59_v18 = vmul.f32 %v42_v10, %v42_v10  ;;  %v27_v36 = vld [vmem:[%s176_s0 + $0x58] sm:$0xff]  ;;  %v28_v40 = vld [vmem:[%s176_s0 + $0x60] sm:$0xff]  ;;  %v29_v44 = vld [vmem:[%s176_s0 + $0x68] sm:$0xff] }
   0x6   :  { %v60_v22 = vmul.f32 %v43_v14, %v43_v14  ;;  %v61_v26 = vmul.f32 %v44_v17, %v44_v17  ;;  %v47_v29 = vsub.f32 %v24_v24, %v104_v4  ;;  %v62_v30 = vmul.f32 %v45_v21, %v45_v21  ;;  %v30_v48 = vld [vmem:[%s176_s0 + $0x70] sm:$0xff]  ;;  %v31_v52 = vld [vmem:[%s176_s0 + $0x78] sm:$0xff] }
   0x7   :  { %v72_v19 = vadd.f32 %v57_v12, %v56_v11  ;;  %v48_v33 = vsub.f32 %v25_v28, %v104_v4  ;;  %v63_v34 = vmul.f32 %v46_v25, %v46_v25  ;;  %v49_v37 = vsub.f32 %v26_v32, %v104_v4 }
   0x8   :  { %v64_v38 = vmul.f32 %v47_v29, %v47_v29  ;;  %v50_v41 = vsub.f32 %v27_v36, %v104_v4  ;;  %v51_v45 = vsub.f32 %v28_v40, %v104_v4  ;;  %v52_v49 = vsub.f32 %v29_v44, %v104_v4  ;;  %v55_v7 = vld [vmem:[#allocation2] sm:$0x1] }
   0x9   :  { %v73_v23 = vadd.f32 %v72_v19, %v58_v15  ;;  %v65_v42 = vmul.f32 %v48_v33, %v48_v33  ;;  %v66_v46 = vmul.f32 %v49_v37, %v49_v37  ;;  %v53_v53 = vsub.f32 %v30_v48, %v104_v4 }
   0xa   :  { %v67_v50 = vmul.f32 %v50_v41, %v50_v41  ;;  %v68_v54 = vmul.f32 %v51_v45, %v51_v45  ;;  %v54_v56 = vsub.f32 %v31_v52, %v104_v4  ;;  %v69_v57 = vmul.f32 %v52_v49, %v52_v49 }
   0xb   :  { %v74_v27 = vadd.f32 %v73_v23, %v59_v18  ;;  %v70_v59 = vmul.f32 %v53_v53, %v53_v53 }
   0xc   :  { %v71_v61 = vmul.f32 %v54_v56, %v54_v56 }
   0xd   :  { %v75_v31 = vadd.f32 %v74_v27, %v60_v22 }
   0xf   :  { %v76_v35 = vadd.f32 %v75_v31, %v61_v26 }
  0x11   :  { %v77_v39 = vadd.f32 %v76_v35, %v62_v30 }
  0x13   :  { %v78_v43 = vadd.f32 %v77_v39, %v63_v34 }
  0x15   :  { %v79_v47 = vadd.f32 %v78_v43, %v64_v38 }
  0x17   :  { %v80_v51 = vadd.f32 %v79_v47, %v65_v42 }
  0x19   :  { %v81_v55 = vadd.f32 %v80_v51, %v66_v46 }
  0x1b   :  { %v82_v58 = vadd.f32 %v81_v55, %v67_v50 }
  0x1d   :  { %v83_v60 = vadd.f32 %v82_v58, %v68_v54 }
  0x1f   :  { %v84_v62 = vadd.f32 %v83_v60, %v69_v57 }
  0x21   :  { %v85_v63 = vadd.f32 %v84_v62, %v70_v59 }
  0x23   :  { %v86_v0 = vadd.f32 %v85_v63, %v71_v61 }
  0x25   :  { %v87_v1 = vrot.slane %v86_v0, 4 }
  0x27   :  { %v88_v2 = vadd.f32 %v87_v1, %v86_v0 }
  0x29   :  { %v89_v3 = vrot.slane %v88_v2, 2 }
  0x2b   :  { %v90_v5 = vadd.f32 %v89_v3, %v88_v2 }
  0x2d   :  { %v91_v6 = vrot.slane %v90_v5, 1 }
  0x2f   :  { %v92_v8 = vadd.f32 %v91_v6, %v90_v5 }
  0x31   :  { %v93_v9 = vadd.f32 %v92_v8, %v55_v7 }
  0x33   :  { %94 = vst [vmem:[#allocation2] sm:$0x1] %v93_v9 }
  0x3a   :  { %v98_v10 = vld [vmem:[#allocation2] sm:$0x1] }
  0x3b   :  { %99 = vst [vmem:[%s178_s2] sm:$0x1] %v98_v10 }

// kernel: generator_forward.73
= control target key start
LH: loop header
LB: loop body
LE: loop exit
PB: predicated region body
PF: predicated region fallthrough
CT: control target
= control target key end

     0   :  { %s1417_s9 = smov 0   ;;  %s1419_s10 = smov 0   ;;  %s1652_s0 = inlined_call_operand.vmem [shape: bf16[128,1152], index: 0, kind: input, shape index: {}]   ;;  %s1653_s1 = inlined_call_operand.vmem [shape: bf16[1152,128], index: 1, kind: input, shape index: {}]   ;;  %s1654_s2 = inlined_call_operand.vmem [shape: f32[128,128], index: 2, kind: output, shape index: {}]  }
   0x1   :  { %s1421_s11 = smov 0   ;;  %s1423_s12 = smov 0  }
   0x2   :  { %s1425_s13 = smov 0  }
   0x3 LB: > { %s24_s14 = sadd.s32 1, %s1395_s12  ;;  %p47_p1 = scmp.ne.s32.totalorder %s1387_s10, %s1383_s9  ;;  %s1399_s13 = sphi %s1425_s13, %s12_s13   ;;  %s1395_s12 = sphi %s1423_s12, %s1658_s12   ;;  %s1391_s11 = sphi %s1421_s11, %s1657_s11   ;;  %s1387_s10 = sphi %s1419_s10, %s1656_s10   ;;  %s1383_s9 = sphi %s1417_s9, %s1655_s9  }
   0x4   : > { %p25_p0 = scmp.ge.s32.totalorder %s24_s14, 3  ;;  %p48_p2 = scmp.eq.s32.totalorder %s1399_s13, 0 }
   0x5   : > { %s40_s16 = sadd.s32 1, %s1387_s10  ;;  %p1059_p5 = scmp.ge.s32.totalorder %s1399_s13, 3 }
   0x6   : > { %s1660_s14 = smov (%p25_p0, %s24_s14), 0  ;;  %p49_p3 = por %p48_p2, %p47_p1 }
   0x7   : > { %s36_s15 = ssub.s32 %s1395_s12, %s1660_s14  ;;  %129 = sbr.rel (%p1059_p5) target bundleno = 37 (0x25), region = 16 }
   0x8   : > { %p38_p4 = scmp.eq.s32.totalorder %s36_s15, 0 }
   0xa   : > { %s1452_s17 = scalar_select %p38_p4, %s1387_s10, %s40_s16  }
   0xe   : > { %132 = sbr.rel (!%p49_p3) target bundleno = 37 (0x25), region = 20  ;;  %s134_s18 = sand.u32 (%p49_p3), 1, %s1387_s10  }
   0xf   : > { %s1149_s19 = smul.u32 (%p49_p3), 12, %s1395_s12 }
  0x10   : > { %s1262_s20 = smul.u32 (%p49_p3), 192, %s134_s18 }
  0x11   : > { %s1460_s23 = scalar_lea.vmem (%p49_p3), %s1652_s0, %s1149_s19 }
  0x12   : > { %v157_v0 = vld [vmem:[%s1460_s23] sm:$0xff] (%p49_p3)  ;;  %v161_v2 = vld [vmem:[%s1460_s23 + $0x48] sm:$0xff] (%p49_p3)  ;;  %s1465_s24 = scalar_lea.vmem (%p49_p3), [#allocation3], %s1262_s20  ;;  %v165_v4 = vld [vmem:[%s1460_s23 + $0x90] sm:$0xff] (%p49_p3) }
  0x13   : > { %v159_v1 = vld [vmem:[%s1460_s23 + $0x24] sm:$0xff] (%p49_p3)  ;;  %158 = vst [vmem:[%s1465_s24] sm:$0xff] (%p49_p3), %v157_v0  ;;  %162 = vst [vmem:[%s1465_s24 + $0x18] sm:$0xff] (%p49_p3), %v161_v2  ;;  %v163_v3 = vld [vmem:[%s1460_s23 + $0x6c] sm:$0xff] (%p49_p3) }
  0x14   : > { %160 = vst [vmem:[%s1465_s24 + $0xc] sm:$0xff] (%p49_p3), %v159_v1  ;;  %v167_v5 = vld [vmem:[%s1460_s23 + $0xb4] sm:$0xff] (%p49_p3)  ;;  %164 = vst [vmem:[%s1465_s24 + $0x24] sm:$0xff] (%p49_p3), %v163_v3  ;;  %v171_v7 = vld [vmem:[%s1460_s23 + $0xfc] sm:$0xff] (%p49_p3) }
  0x15   : > { %166 = vst [vmem:[%s1465_s24 + $0x30] sm:$0xff] %v165_v4  ;;  %168 = vst [vmem:[%s1465_s24 + $0x3c] sm:$0xff] %v167_v5  ;;  %v169_v6 = vld [vmem:[%s1460_s23 + $0xd8] sm:$0xff]  ;;  %v173_v8 = vld [vmem:[%s1460_s23 + $0x120] sm:$0xff] }
  0x16   : > { %170 = vst [vmem:[%s1465_s24 + $0x48] sm:$0xff] %v169_v6  ;;  %172 = vst [vmem:[%s1465_s24 + $0x54] sm:$0xff] %v171_v7  ;;  %v175_v9 = vld [vmem:[%s1460_s23 + $0x144] sm:$0xff]  ;;  %v179_v11 = vld [vmem:[%s1460_s23 + $0x18c] sm:$0xff] }
  0x17   : > { %174 = vst [vmem:[%s1465_s24 + $0x60] sm:$0xff] %v173_v8  ;;  %v177_v10 = vld [vmem:[%s1460_s23 + $0x168] sm:$0xff]  ;;  %176 = vst [vmem:[%s1465_s24 + $0x6c] sm:$0xff] %v175_v9  ;;  %v181_v12 = vld [vmem:[%s1460_s23 + $0x1b0] sm:$0xff] }
  0x18   : > { %178 = vst [vmem:[%s1465_s24 + $0x78] sm:$0xff] %v177_v10  ;;  %180 = vst [vmem:[%s1465_s24 + $0x84] sm:$0xff] %v179_v11  ;;  %v183_v13 = vld [vmem:[%s1460_s23 + $0x1d4] sm:$0xff]  ;;  %v187_v15 = vld [vmem:[%s1460_s23 + $0x21c] sm:$0xff] }
  0x19   : > { %v185_v14 = vld [vmem:[%s1460_s23 + $0x1f8] sm:$0xff]  ;;  %182 = vst [vmem:[%s1465_s24 + $0x90] sm:$0xff] %v181_v12  ;;  %184 = vst [vmem:[%s1465_s24 + $0x9c] sm:$0xff] %v183_v13  ;;  %v1061_v16 = vld [vmem:[%s1460_s23 + $0x8] sm:$0xf] }
  0x1a   : > { %186 = vst [vmem:[%s1465_s24 + $0xa8] sm:$0xff] %v185_v14  ;;  %v1063_v17 = vld [vmem:[%s1460_s23 + $0x2c] sm:$0xf]  ;;  %188 = vst [vmem:[%s1465_s24 + $0xb4] sm:$0xff] %v187_v15  ;;  %v1065_v18 = vld [vmem:[%s1460_s23 + $0x50] sm:$0xf] }
  0x1b   : > { %1062 = vst [vmem:[%s1465_s24 + $0x8] sm:$0xf] %v1061_v16  ;;  %1064 = vst [vmem:[%s1465_s24 + $0x14] sm:$0xf] %v1063_v17  ;;  %v1067_v19 = vld [vmem:[%s1460_s23 + $0x74] sm:$0xf] }
  0x1c   : > { %v1069_v20 = vld [vmem:[%s1460_s23 + $0x98] sm:$0xf]  ;;  %1066 = vst [vmem:[%s1465_s24 + $0x20] sm:$0xf] %v1065_v18  ;;  %1068 = vst [vmem:[%s1465_s24 + $0x2c] sm:$0xf] %v1067_v19 }
  0x1d   : > { %1070 = vst [vmem:[%s1465_s24 + $0x38] sm:$0xf] %v1069_v20  ;;  %v1071_v21 = vld [vmem:[%s1460_s23 + $0xbc] sm:$0xf]  ;;  %v1073_v22 = vld [vmem:[%s1460_s23 + $0xe0] sm:$0xf] }
  0x1e   : > { %v1075_v23 = vld [vmem:[%s1460_s23 + $0x104] sm:$0xf]  ;;  %1072 = vst [vmem:[%s1465_s24 + $0x44] sm:$0xf] %v1071_v21  ;;  %1074 = vst [vmem:[%s1465_s24 + $0x50] sm:$0xf] %v1073_v22 }
  0x1f   : > { %1076 = vst [vmem:[%s1465_s24 + $0x5c] sm:$0xf] %v1075_v23  ;;  %v1077_v24 = vld [vmem:[%s1460_s23 + $0x128] sm:$0xf]  ;;  %v1079_v25 = vld [vmem:[%s1460_s23 + $0x14c] sm:$0xf] }
  0x20   : > { %v1081_v26 = vld [vmem:[%s1460_s23 + $0x170] sm:$0xf]  ;;  %1078 = vst [vmem:[%s1465_s24 + $0x68] sm:$0xf] %v1077_v24  ;;  %1080 = vst [vmem:[%s1465_s24 + $0x74] sm:$0xf] %v1079_v25 }
  0x21   : > { %1082 = vst [vmem:[%s1465_s24 + $0x80] sm:$0xf] %v1081_v26  ;;  %v1083_v27 = vld [vmem:[%s1460_s23 + $0x194] sm:$0xf]  ;;  %v1085_v28 = vld [vmem:[%s1460_s23 + $0x1b8] sm:$0xf] }
  0x22   : > { %v1087_v29 = vld [vmem:[%s1460_s23 + $0x1dc] sm:$0xf]  ;;  %1084 = vst [vmem:[%s1465_s24 + $0x8c] sm:$0xf] %v1083_v27  ;;  %1086 = vst [vmem:[%s1465_s24 + $0x98] sm:$0xf] %v1085_v28 }
  0x23   : > { %1088 = vst [vmem:[%s1465_s24 + $0xa4] sm:$0xf] %v1087_v29  ;;  %v1089_v30 = vld [vmem:[%s1460_s23 + $0x200] sm:$0xf]  ;;  %v1091_v31 = vld [vmem:[%s1460_s23 + $0x224] sm:$0xf] }
  0x24   : > { %1090 = vst [vmem:[%s1465_s24 + $0xb0] sm:$0xf] %v1089_v30  ;;  %1092 = vst [vmem:[%s1465_s24 + $0xbc] sm:$0xf] %v1091_v31 }
  0x25 PF: > { %p1093_p6 = scmp.ge.s32.totalorder %s1399_s13, 1  ;;  %p244_p7 = scmp.lt.s32.totalorder %s1399_s13, 4 }
  0x27   : > { %p245_p8 = pnand %p1093_p6, %p244_p7 }
  0x28   : > { %s251_s25 = sand.u32 (!%p245_p8), 1, %s1383_s9   ;;  %s285_s26 = smul.u32 (!%p245_p8), 48, %s1391_s11 }
  0x29   : > { %248 = sbr.rel (%p245_p8) target bundleno = 377 (0x179), region = 50  ;;  %p1095_p10 = scmp.ne.s32.totalorder (!%p245_p8), %s1391_s11, 0 }
  0x2a   : > { %s1263_s27 = smul.u32 (!%p245_p8), 192, %s251_s25  ;;  %p286_p9 = scmp.lt.s32.totalorder (!%p245_p8), %s285_s26, 143 }
  0x2c   : > { %s1537_s4 = scalar_lea.vmem (!%p245_p8), [#allocation3], %s1263_s27 }
  0x30   : > { %s1662_s26 = smov (!%p286_p9, %s285_s26), 143  ;;  %307 = sbr.rel (%p1095_p10) target bundleno = 58 (0x3a), region = 58 }
  0x31   : > { %s1094_s28 = sshll.u32 %s1662_s26, 2  ;;  %v1401_v32 = vmov (!%p1095_p10), 0.0  }
  0x32   : > { %s1535_s3 = scalar_lea.vmem %s1653_s1, %s1094_s28  ;;  %308 = vst [vmem:[#allocation2] sm:$0xff] (!%p1095_p10), %v1401_v32  ;;  %309 = vst [vmem:[#allocation2 + $0x8] sm:$0xff] (!%p1095_p10), %v1401_v32 }
  0x33   : > { %310 = vst [vmem:[#allocation2 + $0x10] sm:$0xff] (!%p1095_p10), %v1401_v32  ;;  %311 = vst [vmem:[#allocation2 + $0x18] sm:$0xff] (!%p1095_p10), %v1401_v32 }
  0x34   : > { %312 = vst [vmem:[#allocation2 + $0x20] sm:$0xff] (!%p1095_p10), %v1401_v32  ;;  %313 = vst [vmem:[#allocation2 + $0x28] sm:$0xff] (!%p1095_p10), %v1401_v32 }
  0x35   : > { %314 = vst [vmem:[#allocation2 + $0x30] sm:$0xff] (!%p1095_p10), %v1401_v32  ;;  %315 = vst [vmem:[#allocation2 + $0x38] sm:$0xff] (!%p1095_p10), %v1401_v32 }
  0x36   : > { %316 = vst [vmem:[#allocation2 + $0x40] sm:$0xff] (!%p1095_p10), %v1401_v32  ;;  %317 = vst [vmem:[#allocation2 + $0x48] sm:$0xff] (!%p1095_p10), %v1401_v32 }
  0x37   : > { %318 = vst [vmem:[#allocation2 + $0x50] sm:$0xff] %v1401_v32  ;;  %319 = vst [vmem:[#allocation2 + $0x58] sm:$0xff] %v1401_v32 }
  0x38   : > { %320 = vst [vmem:[#allocation2 + $0x60] sm:$0xff] %v1401_v32  ;;  %321 = vst [vmem:[#allocation2 + $0x68] sm:$0xff] %v1401_v32 }
  0x39   : > { %322 = vst [vmem:[#allocation2 + $0x70] sm:$0xff] %v1401_v32  ;;  %323 = vst [vmem:[#allocation2 + $0x78] sm:$0xff] %v1401_v32 }
  0x3a PF: > { %v1305_v33 = vld [vmem:[%s1535_s3 + $0x40] sm:$0xff]   ;;  %v1308_v36 = vld [vmem:[%s1535_s3 + $0x48] sm:$0xff]   ;;  %v1311_v39 = vld [vmem:[%s1535_s3 + $0x50] sm:$0xff]   ;;  %p1144_p11 = scmp.ne.s32.totalorder %s1391_s11, 2 }
  0x3b   : > { %v1306_v34 = vld [vmem:[%s1535_s3] sm:$0xff]   ;;  %1150 = vmatprep.subr.bf16.mxu0 %v1305_v33  ;;  %v1309_v37 = vld [vmem:[%s1535_s3 + $0x8] sm:$0xff]   ;;  %v1312_v40 = vld [vmem:[%s1535_s3 + $0x10] sm:$0xff]  }
  0x3c   : > { %v1307_v35 = vld [vmem:[%s1535_s3 + $0x80] sm:$0xff]   ;;  %1151 = vmatpush3.bf16.msra.mxu0 %v1306_v34  ;;  %v1310_v38 = vld [vmem:[%s1535_s3 + $0x88] sm:$0xff]   ;;  %v1313_v41 = vld [vmem:[%s1535_s3 + $0x90] sm:$0xff]  }
  0x3d   : > { %1230 = vmatprep.subr.bf16.mxu1 %v1307_v35  ;;  %1152 = vmatprep.subr.bf16.mxu0 %v1308_v36  ;;  %v1314_v42 = vld [vmem:[%s1535_s3 + $0x58] sm:$0xff]   ;;  %v1317_v45 = vld [vmem:[%s1535_s3 + $0x60] sm:$0xff]   ;;  %v1320_v48 = vld [vmem:[%s1535_s3 + $0x68] sm:$0xff]  }
  0x3e   : > { %1231 = vmatpush3.bf16.msra.mxu1 %v1307_v35  ;;  %v1315_v43 = vld [vmem:[%s1535_s3 + $0x18] sm:$0xff]   ;;  %v1319_v46 = vld [vmem:[%s1535_s3 + $0xa0] sm:$0xff]   ;;  %v1322_v49 = vld [vmem:[%s1535_s3 + $0xa8] sm:$0xff]  }
  0x3f   : > { %1232 = vmatprep.subr.bf16.mxu1 %v1310_v38  ;;  %v1316_v44 = vld [vmem:[%s1535_s3 + $0x98] sm:$0xff]   ;;  %v1318_v47 = vld [vmem:[%s1535_s3 + $0x20] sm:$0xff]   ;;  %v1321_v50 = vld [vmem:[%s1535_s3 + $0x28] sm:$0xff]  }
  0x40   : > { %1153 = vmatpush3.bf16.msra.mxu0 %v1309_v37  ;;  %v1323_v51 = vld [vmem:[%s1535_s3 + $0x70] sm:$0xff]   ;;  %v1326_v54 = vld [vmem:[%s1535_s3 + $0x78] sm:$0xff]   ;;  %v1329_v59 = vld [vmem:[%s1537_s4] ss:$12 sps:$4 sm:$0xff]  }
  0x41   : > { %1154 = vmatprep.subr.bf16.mxu0 %v1311_v39  ;;  %v1324_v52 = vld [vmem:[%s1535_s3 + $0x30] sm:$0xff]   ;;  %v1328_v55 = vld [vmem:[%s1535_s3 + $0xb8] sm:$0xff]   ;;  %v1333_v61 = vld [vmem:[%s1537_s4 + $0x20] ss:$12 sps:$4 sm:$0xff]  }
  0x42   : > { %1233 = vmatpush3.bf16.msra.mxu1 %v1310_v38  ;;  %v1325_v53 = vld [vmem:[%s1535_s3 + $0xb0] sm:$0xff]   ;;  %v1327_v58 = vld [vmem:[%s1535_s3 + $0x38] sm:$0xff]   ;;  %v1349_v5 = vld [vmem:[%s1537_s4 + $0x80] ss:$12 sps:$4 sm:$0xff]  }
  0x43   : > { %1234 = vmatprep.subr.bf16.mxu1 %v1313_v41  ;;  %v1331_v56 = vld [vmem:[%s1537_s4 + $0x4] ss:$12 sps:$4 sm:$0xff]   ;;  %v1332_v57 = vld [vmem:[%s1537_s4 + $0x8] ss:$12 sps:$4 sm:$0xff]   ;;  %v1342_v4 = vld [vmem:[%s1537_s4 + $0x4c] ss:$12 sps:$4 sm:$0xff]  }
  0x44   : > { %1155 = vmatpush3.bf16.msra.mxu0 %v1312_v40  ;;  %724 = vmatprep.mubr.bf16.mxu0 %v1331_v56  ;;  %v1334_v60 = vld [vmem:[%s1537_s4 + $0x1c] ss:$12 sps:$4 sm:$0xff]   ;;  %v1340_v62 = vld [vmem:[%s1537_s4 + $0x38] ss:$12 sps:$4 sm:$0xff]   ;;  %v1337_v0 = vld [vmem:[%s1537_s4 + $0x34] ss:$12 sps:$4 sm:$0xff]  }
  0x45   : > { %1156 = vmatprep.subr.bf16.mxu0 %v1314_v42  ;;  %1246 = vmatprep.mubr.bf16.mxu1 %v1332_v57  ;;  %v1336_v63 = vld [vmem:[%s1537_s4 + $0x18] ss:$12 sps:$4 sm:$0xff]   ;;  %v1341_v1 = vld [vmem:[%s1537_s4 + $0x50] ss:$12 sps:$4 sm:$0xff]   ;;  %v1348_v2 = vld [vmem:[%s1537_s4 + $0x68] ss:$12 sps:$4 sm:$0xff]  }
  0x46   : > { %1235 = vmatpush3.bf16.msra.mxu1 %v1313_v41  ;;  %v1339_v3 = vld [vmem:[%s1537_s4 + $0x30] ss:$12 sps:$4 sm:$0xff]   ;;  %v1356_v6 = vld [vmem:[%s1537_s4 + $0x98] ss:$12 sps:$4 sm:$0xff]   ;;  %v1344_v7 = vld [vmem:[%s1537_s4 + $0x48] ss:$12 sps:$4 sm:$0xff]  }
  0x47   : > { %1236 = vmatprep.subr.bf16.mxu1 %v1316_v44  ;;  %v1345_v8 = vld [vmem:[%s1537_s4 + $0x64] ss:$12 sps:$4 sm:$0xff]   ;;  %v1347_v10 = vld [vmem:[%s1537_s4 + $0x60] ss:$12 sps:$4 sm:$0xff]   ;;  %v1350_v11 = vld [vmem:[%s1537_s4 + $0x7c] ss:$12 sps:$4 sm:$0xff]  }
  0x48   : > { %1157 = vmatpush3.bf16.msra.mxu0 %v1315_v43  ;;  %v1357_v9 = vld [vmem:[%s1537_s4 + $0xb0] ss:$12 sps:$4 sm:$0xff]   ;;  %v1352_v12 = vld [vmem:[%s1537_s4 + $0x78] ss:$12 sps:$4 sm:$0xff]   ;;  %v1353_v13 = vld [vmem:[%s1537_s4 + $0x94] ss:$12 sps:$4 sm:$0xff]  }
  0x49   : > { %1158 = vmatprep.subr.bf16.mxu0 %v1317_v45  ;;  %v1355_v14 = vld [vmem:[%s1537_s4 + $0x90] ss:$12 sps:$4 sm:$0xff]   ;;  %v1358_v15 = vld [vmem:[%s1537_s4 + $0xac] ss:$12 sps:$4 sm:$0xff]   ;;  %v1360_v16 = vld [vmem:[%s1537_s4 + $0xa8] ss:$12 sps:$4 sm:$0xff]  }
  0x4a   : > { %1237 = vmatpush3.bf16.msra.mxu1 %v1316_v44  ;;  %v324_v23 = vld [vmem:[#allocation2] sm:$0xff]  ;;  %v325_v28 = vld [vmem:[#allocation2 + $0x8] sm:$0xff]  ;;  %v326_v38 = vld [vmem:[#allocation2 + $0x10] sm:$0xff] }
  0x4b   : > { %1238 = vmatprep.subr.bf16.mxu1 %v1319_v46  ;;  %v327_v44 = vld [vmem:[#allocation2 + $0x18] sm:$0xff] }
  0x4c   : > { %1159 = vmatpush3.bf16.msra.mxu0 %v1318_v47 }
  0x4d   : > { %1160 = vmatprep.subr.bf16.mxu0 %v1320_v48 }
  0x4e   : > { %1239 = vmatpush3.bf16.msra.mxu1 %v1319_v46 }
  0x4f   : > { %1240 = vmatprep.subr.bf16.mxu1 %v1322_v49 }
  0x50   : > { %1161 = vmatpush3.bf16.msra.mxu0 %v1321_v50 }
  0x51   : > { %1162 = vmatprep.subr.bf16.mxu0 %v1323_v51 }
  0x52   : > { %1241 = vmatpush3.bf16.msra.mxu1 %v1322_v49 }
  0x53   : > { %1242 = vmatprep.subr.bf16.mxu1 %v1325_v53 }
  0x54   : > { %1163 = vmatpush3.bf16.msra.mxu0 %v1324_v52 }
  0x55   : > { %1164 = vmatprep.subr.bf16.mxu0 %v1326_v54 }
  0x56   : > { %1243 = vmatpush3.bf16.msra.mxu1 %v1325_v53 }
  0x57   : > { %1244 = vmatprep.subr.bf16.mxu1 %v1328_v55 }
  0x58   : > { %1165 = vmatpush3.bf16.msra.mxu0 %v1327_v58 }
  0x5a   : > { %1245 = vmatpush3.bf16.msra.mxu1 %v1328_v55  ;;  %v328_v55 = vld [vmem:[#allocation2 + $0x20] sm:$0xff] }
  0x5b   : > { %725 = vmatmul.mubr.bf16.vlgmr.msra.gmra.mrb[0].mxu0 %v1329_v59 }
  0x5c   : > { %732 = vmatprep.mubr.bf16.mxu0 %v1334_v60  ;;  %v329_v60 = vld [vmem:[#allocation2 + $0x28] sm:$0xff] }
  0x5d   : > { %1247 = vmatmul.mubr.bf16.vlgmr.msra.gmra.mrb[0].mxu1 %v1333_v61 }
  0x5e   : > { %1250 = vmatprep.mubr.bf16.mxu1 %v1340_v62 }
  0x63   : > { %733 = vmatmul.mubr.bf16.gmra.mrb[4].mxu0 %v1336_v63 }
  0x64   : > { %740 = vmatprep.mubr.bf16.mxu0 %v1337_v0 }
  0x65   : > { %1251 = vmatmul.mubr.bf16.gmra.mrb[4].mxu1 %v1341_v1 }
  0x66   : > { %1254 = vmatprep.mubr.bf16.mxu1 %v1348_v2 }
  0x6b   : > { %741 = vmatmul.mubr.bf16.gmra.mrb[8].mxu0 %v1339_v3 }
  0x6c   : > { %748 = vmatprep.mubr.bf16.mxu0 %v1342_v4 }
  0x6d   : > { %1255 = vmatmul.mubr.bf16.gmra.mrb[8].mxu1 %v1349_v5 }
  0x6e   : > { %1258 = vmatprep.mubr.bf16.mxu1 %v1356_v6  ;;  %v330_v6 = vld [vmem:[#allocation2 + $0x30] sm:$0xff] }
  0x73   : > { %749 = vmatmul.mubr.bf16.gmra.mrb[12].mxu0 %v1344_v7 }
  0x74   : > { %756 = vmatprep.mubr.bf16.mxu0 %v1345_v8 }
  0x75   : > { %1259 = vmatmul.mubr.bf16.gmra.mrb[12].mxu1 %v1357_v9 }
  0x7b   : > { %757 = vmatmul.mubr.bf16.gmra.mrb[16].mxu0 %v1347_v10 }
  0x7c   : > { %764 = vmatprep.mubr.bf16.mxu0 %v1350_v11 }
  0x83   : > { %765 = vmatmul.mubr.bf16.gmra.mrb[20].mxu0 %v1352_v12  ;;  %v331_v12 = vld [vmem:[#allocation2 + $0x38] sm:$0xff] }
  0x84   : > { %772 = vmatprep.mubr.bf16.mxu0 %v1353_v13 }
  0x8b   : > { %773 = vmatmul.mubr.bf16.gmra.mrb[24].mxu0 %v1355_v14 }
  0x8c   : > { %780 = vmatprep.mubr.bf16.mxu0 %v1358_v15 }
  0x93   : > { %781 = vmatmul.mubr.bf16.gmra.mrb[28].mxu0 %v1360_v16 }
 0x12e   : > { %v1166_v17 = vpop.f32.mrb[0].mxu0 }
 0x12f   : > { %v1167_v18 = vpop.f32.mrb[1].mxu0 }
 0x130   : > { %v1168_v19 = vadd.f32 %v1167_v18, %v1166_v17  ;;  %v1169_v20 = vpop.f32.mrb[2].mxu0  ;;  %v1248_v21 = vpop.f32.mrb[0].mxu1 }
 0x131   : > { %v1170_v22 = vpop.f32.mrb[3].mxu0  ;;  %v823_v24 = vpop.f32.mrb[1].mxu1 }
 0x132   : > { %v1171_v25 = vadd.f32 %v1170_v22, %v1169_v20  ;;  %v824_v26 = vadd.f32 %v1168_v19, %v823_v24  ;;  %v1249_v27 = vpop.f32.mrb[2].mxu1  ;;  %v332_v22 = vld [vmem:[#allocation2 + $0x40] sm:$0xff] }
 0x133   : > { %v826_v29 = vpop.f32.mrb[3].mxu1 }
 0x134   : > { %v886_v30 = vadd.f32 %v824_v26, %v324_v23  ;;  %v827_v31 = vadd.f32 %v1171_v25, %v826_v29  ;;  %v333_v25 = vld [vmem:[#allocation2 + $0x48] sm:$0xff] }
 0x136   : > { %902 = vst [vmem:[#allocation2] sm:$0xff] %v886_v30  ;;  %v887_v32 = vadd.f32 %v827_v31, %v325_v28  ;;  %v1172_v33 = vpop.f32.mrb[4].mxu0 }
 0x137   : > { %v1173_v34 = vpop.f32.mrb[5].mxu0 }
 0x138   : > { %903 = vst [vmem:[#allocation2 + $0x8] sm:$0xff] %v887_v32  ;;  %v1174_v35 = vadd.f32 %v1173_v34, %v1172_v33  ;;  %v1175_v36 = vpop.f32.mrb[6].mxu0  ;;  %v1252_v37 = vpop.f32.mrb[4].mxu1  ;;  %v334_v33 = vld [vmem:[#allocation2 + $0x50] sm:$0xff] }
 0x139   : > { %v1176_v39 = vpop.f32.mrb[7].mxu0  ;;  %v839_v40 = vpop.f32.mrb[5].mxu1 }
 0x13a   : > { %v832_v41 = vadd.f32 %v1248_v21, %v1174_v35  ;;  %v1177_v42 = vadd.f32 %v1176_v39, %v1175_v36  ;;  %v1253_v43 = vpop.f32.mrb[6].mxu1 }
 0x13b   : > { %v842_v45 = vpop.f32.mrb[7].mxu1 }
 0x13c   : > { %v888_v46 = vadd.f32 %v832_v41, %v326_v38  ;;  %v835_v47 = vadd.f32 %v1249_v27, %v1177_v42 }
 0x13e   : > { %904 = vst [vmem:[#allocation2 + $0x10] sm:$0xff] %v888_v46  ;;  %v889_v48 = vadd.f32 %v835_v47, %v327_v44  ;;  %v1178_v49 = vpop.f32.mrb[8].mxu0  ;;  %v336_v46 = vld [vmem:[#allocation2 + $0x60] sm:$0xff] }
 0x13f   : > { %v1179_v50 = vpop.f32.mrb[9].mxu0 }
 0x140   : > { %905 = vst [vmem:[#allocation2 + $0x18] sm:$0xff] %v889_v48  ;;  %v1180_v51 = vadd.f32 %v1179_v50, %v1178_v49  ;;  %v1181_v52 = vpop.f32.mrb[10].mxu0  ;;  %v1256_v53 = vpop.f32.mrb[8].mxu1  ;;  %v337_v49 = vld [vmem:[#allocation2 + $0x68] sm:$0xff] }
 0x141   : > { %v1182_v54 = vpop.f32.mrb[11].mxu0  ;;  %v855_v56 = vpop.f32.mrb[9].mxu1 }
 0x142   : > { %v1183_v57 = vadd.f32 %v1182_v54, %v1181_v52  ;;  %v840_v58 = vadd.f32 %v1180_v51, %v839_v40  ;;  %v1257_v59 = vpop.f32.mrb[10].mxu1 }
 0x143   : > { %v858_v61 = vpop.f32.mrb[11].mxu1 }
 0x144   : > { %v890_v62 = vadd.f32 %v840_v58, %v328_v55  ;;  %v843_v63 = vadd.f32 %v1183_v57, %v842_v45  ;;  %v338_v57 = vld [vmem:[#allocation2 + $0x70] sm:$0xff] }
 0x146   : > { %906 = vst [vmem:[#allocation2 + $0x20] sm:$0xff] %v890_v62  ;;  %v891_v0 = vadd.f32 %v843_v63, %v329_v60  ;;  %v1184_v1 = vpop.f32.mrb[12].mxu0 }
 0x147   : > { %v1185_v2 = vpop.f32.mrb[13].mxu0 }
 0x148   : > { %907 = vst [vmem:[#allocation2 + $0x28] sm:$0xff] %v891_v0  ;;  %v1186_v3 = vadd.f32 %v1185_v2, %v1184_v1  ;;  %v1187_v4 = vpop.f32.mrb[14].mxu0  ;;  %v1260_v5 = vpop.f32.mrb[12].mxu1  ;;  %v922_v1 = vld [vmem:[#allocation2] sm:$0xff] (!%p1144_p11)  ;;  %v923_v2 = vld [vmem:[#allocation2 + $0x8] sm:$0xff] (!%p1144_p11) }
 0x149   : > { %v1188_v7 = vpop.f32.mrb[15].mxu0  ;;  %v871_v8 = vpop.f32.mrb[13].mxu1  ;;  %938 = vst [vmem:[%s1654_s2] sm:$0xff] (!%p1144_p11), %v922_v1  ;;  %939 = vst [vmem:[%s1654_s2 + $0x8] sm:$0xff] (!%p1144_p11), %v923_v2 }
 0x14a   : > { %v848_v9 = vadd.f32 %v1252_v37, %v1186_v3  ;;  %v1189_v10 = vadd.f32 %v1188_v7, %v1187_v4  ;;  %v1261_v11 = vpop.f32.mrb[14].mxu1  ;;  %v335_v37 = vld [vmem:[#allocation2 + $0x58] sm:$0xff]  ;;  %v924_v3 = vld [vmem:[#allocation2 + $0x10] sm:$0xff] (!%p1144_p11) }
 0x14b   : > { %v874_v13 = vpop.f32.mrb[15].mxu1  ;;  %940 = vst [vmem:[%s1654_s2 + $0x10] sm:$0xff] (!%p1144_p11), %v924_v3  ;;  %v925_v4 = vld [vmem:[#allocation2 + $0x18] sm:$0xff] (!%p1144_p11) }
 0x14c   : > { %v892_v14 = vadd.f32 %v848_v9, %v330_v6  ;;  %v851_v15 = vadd.f32 %v1253_v43, %v1189_v10  ;;  %941 = vst [vmem:[%s1654_s2 + $0x18] sm:$0xff] (!%p1144_p11), %v925_v4 }
 0x14e   : > { %908 = vst [vmem:[#allocation2 + $0x30] sm:$0xff] %v892_v14  ;;  %v893_v16 = vadd.f32 %v851_v15, %v331_v12  ;;  %v1190_v17 = vpop.f32.mrb[16].mxu0 }
 0x14f   : > { %v1191_v18 = vpop.f32.mrb[17].mxu0  ;;  %v927_v6 = vld [vmem:[#allocation2 + $0x28] sm:$0xff] (!%p1144_p11) }
 0x150   : > { %909 = vst [vmem:[#allocation2 + $0x38] sm:$0xff] %v893_v16  ;;  %v1192_v19 = vadd.f32 %v1191_v18, %v1190_v17  ;;  %v1193_v20 = vpop.f32.mrb[18].mxu0  ;;  %943 = vst [vmem:[%s1654_s2 + $0x28] sm:$0xff] (!%p1144_p11), %v927_v6 }
 0x151   : > { %v1194_v21 = vpop.f32.mrb[19].mxu0 }
 0x152   : > { %v1195_v23 = vadd.f32 %v1194_v21, %v1193_v20  ;;  %v856_v24 = vadd.f32 %v1192_v19, %v855_v56 }
 0x154   : > { %v894_v26 = vadd.f32 %v856_v24, %v332_v22  ;;  %v859_v27 = vadd.f32 %v1195_v23, %v858_v61  ;;  %v339_v61 = vld [vmem:[#allocation2 + $0x78] sm:$0xff] }
 0x155   : > { %v928_v7 = vld [vmem:[#allocation2 + $0x30] sm:$0xff] (!%p1144_p11) }
 0x156   : > { %910 = vst [vmem:[#allocation2 + $0x40] sm:$0xff] %v894_v26  ;;  %v895_v28 = vadd.f32 %v859_v27, %v333_v25  ;;  %v1196_v29 = vpop.f32.mrb[20].mxu0  ;;  %944 = vst [vmem:[%s1654_s2 + $0x30] sm:$0xff] (!%p1144_p11), %v928_v7 }
 0x157   : > { %v1197_v30 = vpop.f32.mrb[21].mxu0 }
 0x158   : > { %911 = vst [vmem:[#allocation2 + $0x48] sm:$0xff] %v895_v28  ;;  %v1198_v31 = vadd.f32 %v1197_v30, %v1196_v29  ;;  %v1199_v32 = vpop.f32.mrb[22].mxu0 }
 0x159   : > { %v1200_v34 = vpop.f32.mrb[23].mxu0 }
 0x15a   : > { %v864_v35 = vadd.f32 %v1256_v53, %v1198_v31  ;;  %v1201_v36 = vadd.f32 %v1200_v34, %v1199_v32 }
 0x15c   : > { %v896_v38 = vadd.f32 %v864_v35, %v334_v33  ;;  %v867_v39 = vadd.f32 %v1257_v59, %v1201_v36 }
 0x15d   : > { %v930_v9 = vld [vmem:[#allocation2 + $0x40] sm:$0xff] (!%p1144_p11) }
 0x15e   : > { %912 = vst [vmem:[#allocation2 + $0x50] sm:$0xff] %v896_v38  ;;  %v897_v40 = vadd.f32 %v867_v39, %v335_v37  ;;  %v1202_v41 = vpop.f32.mrb[24].mxu0  ;;  %946 = vst [vmem:[%s1654_s2 + $0x40] sm:$0xff] (!%p1144_p11), %v930_v9 }
 0x15f   : > { %v1203_v42 = vpop.f32.mrb[25].mxu0  ;;  %v931_v10 = vld [vmem:[#allocation2 + $0x48] sm:$0xff] (!%p1144_p11) }
 0x160   : > { %913 = vst [vmem:[#allocation2 + $0x58] sm:$0xff] %v897_v40  ;;  %v1204_v43 = vadd.f32 %v1203_v42, %v1202_v41  ;;  %v1205_v44 = vpop.f32.mrb[26].mxu0  ;;  %947 = vst [vmem:[%s1654_s2 + $0x48] sm:$0xff] (!%p1144_p11), %v931_v10 }
 0x161   : > { %v1206_v45 = vpop.f32.mrb[27].mxu0 }
 0x162   : > { %v1207_v47 = vadd.f32 %v1206_v45, %v1205_v44  ;;  %v872_v48 = vadd.f32 %v1204_v43, %v871_v8  ;;  %v929_v8 = vld [vmem:[#allocation2 + $0x38] sm:$0xff] (!%p1144_p11) }
 0x163   : > { %945 = vst [vmem:[%s1654_s2 + $0x38] sm:$0xff] (!%p1144_p11), %v929_v8 }
 0x164   : > { %v898_v50 = vadd.f32 %v872_v48, %v336_v46  ;;  %v875_v51 = vadd.f32 %v1207_v47, %v874_v13 }
 0x166   : > { %914 = vst [vmem:[#allocation2 + $0x60] sm:$0xff] %v898_v50  ;;  %v899_v52 = vadd.f32 %v875_v51, %v337_v49  ;;  %v1208_v53 = vpop.f32.mrb[28].mxu0 }
 0x167   : > { %v1209_v54 = vpop.f32.mrb[29].mxu0  ;;  %v933_v12 = vld [vmem:[#allocation2 + $0x58] sm:$0xff] (!%p1144_p11) }
 0x168   : > { %915 = vst [vmem:[#allocation2 + $0x68] sm:$0xff] %v899_v52  ;;  %v1210_v55 = vadd.f32 %v1209_v54, %v1208_v53  ;;  %v1211_v56 = vpop.f32.mrb[30].mxu0  ;;  %949 = vst [vmem:[%s1654_s2 + $0x58] sm:$0xff] (!%p1144_p11), %v933_v12 }
 0x169   : > { %v1212_v58 = vpop.f32.mrb[31].mxu0 }
 0x16a   : > { %v880_v59 = vadd.f32 %v1260_v5, %v1210_v55  ;;  %v1213_v60 = vadd.f32 %v1212_v58, %v1211_v56  ;;  %921 = sbr.rel (%p1144_p11) target bundleno = 377 (0x179), region = 62  ;;  %v926_v5 = vld [vmem:[#allocation2 + $0x20] sm:$0xff] (!%p1144_p11) }
 0x16b   : > { %942 = vst [vmem:[%s1654_s2 + $0x20] sm:$0xff] (!%p1144_p11), %v926_v5 }
 0x16c   : > { %v900_v62 = vadd.f32 %v880_v59, %v338_v57  ;;  %v883_v63 = vadd.f32 %v1261_v11, %v1213_v60  ;;  %v932_v11 = vld [vmem:[#allocation2 + $0x50] sm:$0xff] (!%p1144_p11) }
 0x16d   : > { %948 = vst [vmem:[%s1654_s2 + $0x50] sm:$0xff] (!%p1144_p11), %v932_v11  ;;  %v934_v13 = vld [vmem:[#allocation2 + $0x60] sm:$0xff] (!%p1144_p11) }
 0x16e   : > { %916 = vst [vmem:[#allocation2 + $0x70] sm:$0xff] %v900_v62  ;;  %v901_v0 = vadd.f32 %v883_v63, %v339_v61  ;;  %950 = vst [vmem:[%s1654_s2 + $0x60] sm:$0xff] (!%p1144_p11), %v934_v13 }
 0x16f   : > { %v935_v14 = vld [vmem:[#allocation2 + $0x68] sm:$0xff] (!%p1144_p11) }
 0x170   : > { %917 = vst [vmem:[#allocation2 + $0x78] sm:$0xff] %v901_v0  ;;  %951 = vst [vmem:[%s1654_s2 + $0x68] sm:$0xff] (!%p1144_p11), %v935_v14 }
 0x175   : > { %v936_v15 = vld [vmem:[#allocation2 + $0x70] sm:$0xff] }
 0x176   : > { %952 = vst [vmem:[%s1654_s2 + $0x70] sm:$0xff] %v936_v15 }
 0x177   : > { %v937_v16 = vld [vmem:[#allocation2 + $0x78] sm:$0xff] }
 0x178   : > { %953 = vst [vmem:[%s1654_s2 + $0x78] sm:$0xff] %v937_v16 }
 0x179 PF: > { %s12_s13 = sadd.s32 1, %s1399_s13   ;;  %s1655_s9 = smov %s1387_s10 }
 0x17a   : > { %p9_p12 = scmp.ge.s32.totalorder %s12_s13, 5   ;;  %s1656_s10 = smov %s1452_s17 }
 0x17b   : > { %s1657_s11 = smov %s1395_s12  ;;  %s1658_s12 = smov %s1660_s14 }
 0x17c   :  { %11 = sbr.rel (!%p9_p12) target bundleno = 3 (0x3), region = 106 }

// kernel: generator_forward.76
= control target key start
LH: loop header
LB: loop body
LE: loop exit
PB: predicated region body
PF: predicated region fallthrough
CT: control target
= control target key end

     0   :  { %v63_v2 = vlaneseq  ;;  %s351_s2 = inlined_call_operand.vmem [shape: f32[1,128], index: 2, kind: input, shape index: {}]   ;;  %s352_s0 = inlined_call_operand.vmem [shape: f32[128,128], index: 0, kind: input, shape index: {}]   ;;  %s353_s1 = inlined_call_operand.vmem [shape: f32[1,128], index: 1, kind: input, shape index: {}]   ;;  %s354_s3 = inlined_call_operand.vmem [shape: f32[1,128], index: 3, kind: input, shape index: {}]   ;;  %s355_s4 = inlined_call_operand.vmem [shape: f32[1,128], index: 4, kind: input, shape index: {}]   ;;  %s356_s5 = inlined_call_operand.vmem [shape: f32[128,128], index: 5, kind: output, shape index: {}]  }
   0x1   :  { %v59_v0 = vld [vmem:[%s351_s2] sm:$0x1]  ;;  %v21_v6 = vld [vmem:[%s352_s0 + $0x8] sm:$0xff]  ;;  %v22_v7 = vld [vmem:[%s352_s0 + $0x10] sm:$0xff] }
   0x2   :  { %v60_v1 = vadd.f32 1e-05, %v59_v0  ;;  %v64_v3 = vshrl.u32 %v63_v2, 7  ;;  %v20_v4 = vld [vmem:[%s352_s0] sm:$0xff]  ;;  %v23_v8 = vld [vmem:[%s352_s0 + $0x18] sm:$0xff]  ;;  %v25_v10 = vld [vmem:[%s352_s0 + $0x28] sm:$0xff] }
   0x3   :  { %v210_v5 = vld [vmem:[%s353_s1] ss:$0 sm:$0xff]  ;;  %v26_v11 = vld [vmem:[%s352_s0 + $0x30] sm:$0xff]  ;;  %v27_v13 = vld [vmem:[%s352_s0 + $0x38] sm:$0xff] }
   0x4   :  { %169 = vrsqrt.f32 %v60_v1  ;;  %v24_v9 = vld [vmem:[%s352_s0 + $0x20] sm:$0xff]  ;;  %v65_v12 = vsub.s32 0, %v64_v3  ;;  %v241_v15 = vld [vmem:[%s352_s0 + $0x48] sm:$0xff]  ;;  %v43_v16 = vsub.f32 %v20_v4, %v210_v5  ;;  %v247_v17 = vld [vmem:[%s352_s0 + $0x50] sm:$0xff]  ;;  %v44_v20 = vsub.f32 %v21_v6, %v210_v5 }
   0x5   :  { %v236_v14 = vld [vmem:[%s352_s0 + $0x40] sm:$0xff]  ;;  %v252_v18 = vld [vmem:[%s352_s0 + $0x58] sm:$0xff]  ;;  %v45_v21 = vsub.f32 %v22_v7, %v210_v5  ;;  %v46_v22 = vsub.f32 %v23_v8, %v210_v5  ;;  %v47_v23 = vsub.f32 %v24_v9, %v210_v5  ;;  %v266_v24 = vld [vmem:[%s352_s0 + $0x68] sm:$0xff]  ;;  %v48_v28 = vsub.f32 %v25_v10, %v210_v5 }
   0x6   :  { %v257_v19 = vld [vmem:[%s352_s0 + $0x60] sm:$0xff]  ;;  %v271_v25 = vld [vmem:[%s352_s0 + $0x70] sm:$0xff]  ;;  %v276_v26 = vld [vmem:[%s352_s0 + $0x78] sm:$0xff]  ;;  %v49_v29 = vsub.f32 %v26_v11, %v210_v5  ;;  %v50_v30 = vsub.f32 %v27_v13, %v210_v5  ;;  %v51_v31 = vsub.f32 %v236_v14, %v210_v5  ;;  %v52_v33 = vsub.f32 %v241_v15, %v210_v5 }
   0x7   :  { %v53_v34 = vsub.f32 %v247_v17, %v210_v5  ;;  %v54_v35 = vsub.f32 %v252_v18, %v210_v5  ;;  %v167_v36 = vld [vmem:[%s354_s3] ss:$0 sm:$0xff]  ;;  %v55_v37 = vsub.f32 %v257_v19, %v210_v5  ;;  %v56_v38 = vsub.f32 %v266_v24, %v210_v5 }
   0x8   :  { %v57_v39 = vsub.f32 %v271_v25, %v210_v5  ;;  %v58_v40 = vsub.f32 %v276_v26, %v210_v5  ;;  %v168_v45 = vld [vmem:[%s355_s4] ss:$0 sm:$0xff] }
   0xe   :  { %v170_v27 = vpop.eup %169 }
   0xf   :  { %v66_v32 = vrot.slane %v170_v27, %v65_v12 }
  0x11   :  { %v68_v41 = vmul.f32 %v66_v32, %v43_v16  ;;  %v69_v42 = vmul.f32 %v66_v32, %v44_v20  ;;  %v70_v43 = vmul.f32 %v66_v32, %v45_v21  ;;  %v71_v44 = vmul.f32 %v66_v32, %v46_v22 }
  0x12   :  { %v72_v46 = vmul.f32 %v66_v32, %v47_v23  ;;  %v73_v47 = vmul.f32 %v66_v32, %v48_v28  ;;  %v74_v48 = vmul.f32 %v66_v32, %v49_v29  ;;  %v75_v49 = vmul.f32 %v66_v32, %v50_v30 }
  0x13   :  { %v91_v50 = vmul.f32 %v167_v36, %v68_v41  ;;  %v92_v51 = vmul.f32 %v167_v36, %v69_v42  ;;  %v93_v52 = vmul.f32 %v167_v36, %v70_v43  ;;  %v94_v53 = vmul.f32 %v167_v36, %v71_v44 }
  0x14   :  { %v95_v54 = vmul.f32 %v167_v36, %v72_v46  ;;  %v96_v55 = vmul.f32 %v167_v36, %v73_v47  ;;  %v97_v56 = vmul.f32 %v167_v36, %v74_v48  ;;  %v98_v57 = vmul.f32 %v167_v36, %v75_v49 }
  0x15   :  { %v114_v58 = vadd.f32 %v168_v45, %v91_v50  ;;  %v115_v59 = vadd.f32 %v168_v45, %v92_v51  ;;  %v116_v60 = vadd.f32 %v168_v45, %v93_v52  ;;  %v117_v61 = vadd.f32 %v168_v45, %v94_v53 }
  0x16   :  { %v118_v62 = vadd.f32 %v168_v45, %v95_v54  ;;  %v119_v63 = vadd.f32 %v168_v45, %v96_v55  ;;  %v120_v0 = vadd.f32 %v168_v45, %v97_v56  ;;  %v121_v1 = vadd.f32 %v168_v45, %v98_v57 }
  0x17   :  { %v130_v2 = vmax.f32 %v114_v58, 0.0  ;;  %v131_v3 = vmax.f32 %v115_v59, 0.0  ;;  %v132_v4 = vmax.f32 %v116_v60, 0.0  ;;  %v133_v5 = vmax.f32 %v117_v61, 0.0 }
  0x18   :  { %v134_v6 = vmax.f32 %v118_v62, 0.0  ;;  %v135_v7 = vmax.f32 %v119_v63, 0.0  ;;  %v136_v8 = vmax.f32 %v120_v0, 0.0  ;;  %v137_v9 = vmax.f32 %v121_v1, 0.0 }
  0x19   :  { %146 = vst [vmem:[%s356_s5] sm:$0xff] %v130_v2  ;;  %147 = vst [vmem:[%s356_s5 + $0x8] sm:$0xff] %v131_v3  ;;  %v76_v10 = vmul.f32 %v66_v32, %v51_v31  ;;  %v77_v11 = vmul.f32 %v66_v32, %v52_v33  ;;  %v78_v12 = vmul.f32 %v66_v32, %v53_v34 }
  0x1a   :  { %148 = vst [vmem:[%s356_s5 + $0x10] sm:$0xff] %v132_v4  ;;  %149 = vst [vmem:[%s356_s5 + $0x18] sm:$0xff] %v133_v5  ;;  %v79_v13 = vmul.f32 %v66_v32, %v54_v35  ;;  %v80_v14 = vmul.f32 %v66_v32, %v55_v37  ;;  %v81_v15 = vmul.f32 %v66_v32, %v56_v38 }
  0x1b   :  { %150 = vst [vmem:[%s356_s5 + $0x20] sm:$0xff] %v134_v6  ;;  %151 = vst [vmem:[%s356_s5 + $0x28] sm:$0xff] %v135_v7  ;;  %v82_v16 = vmul.f32 %v66_v32, %v57_v39  ;;  %v83_v17 = vmul.f32 %v66_v32, %v58_v40  ;;  %v99_v18 = vmul.f32 %v167_v36, %v76_v10 }
  0x1c   :  { %152 = vst [vmem:[%s356_s5 + $0x30] sm:$0xff] %v136_v8  ;;  %153 = vst [vmem:[%s356_s5 + $0x38] sm:$0xff] %v137_v9  ;;  %v100_v19 = vmul.f32 %v167_v36, %v77_v11  ;;  %v101_v20 = vmul.f32 %v167_v36, %v78_v12  ;;  %v102_v21 = vmul.f32 %v167_v36, %v79_v13 }
  0x1d   :  { %v103_v22 = vmul.f32 %v167_v36, %v80_v14  ;;  %v104_v23 = vmul.f32 %v167_v36, %v81_v15  ;;  %v105_v24 = vmul.f32 %v167_v36, %v82_v16  ;;  %v106_v25 = vmul.f32 %v167_v36, %v83_v17 }
  0x1e   :  { %v122_v26 = vadd.f32 %v168_v45, %v99_v18  ;;  %v123_v27 = vadd.f32 %v168_v45, %v100_v19  ;;  %v124_v28 = vadd.f32 %v168_v45, %v101_v20  ;;  %v125_v29 = vadd.f32 %v168_v45, %v102_v21 }
  0x1f   :  { %v126_v30 = vadd.f32 %v168_v45, %v103_v22  ;;  %v127_v31 = vadd.f32 %v168_v45, %v104_v23  ;;  %v128_v33 = vadd.f32 %v168_v45, %v105_v24  ;;  %v129_v34 = vadd.f32 %v168_v45, %v106_v25 }
  0x20   :  { %v138_v35 = vmax.f32 %v122_v26, 0.0  ;;  %v139_v37 = vmax.f32 %v123_v27, 0.0  ;;  %v140_v38 = vmax.f32 %v124_v28, 0.0  ;;  %v141_v32 = vmax.f32 %v125_v29, 0.0 }
  0x21   :  { %v142_v39 = vmax.f32 %v126_v30, 0.0  ;;  %v143_v40 = vmax.f32 %v127_v31, 0.0  ;;  %v144_v41 = vmax.f32 %v128_v33, 0.0  ;;  %v145_v42 = vmax.f32 %v129_v34, 0.0 }
  0x22   :  { %154 = vst [vmem:[%s356_s5 + $0x40] sm:$0xff] %v138_v35  ;;  %155 = vst [vmem:[%s356_s5 + $0x48] sm:$0xff] %v139_v37 }
  0x23   :  { %156 = vst [vmem:[%s356_s5 + $0x50] sm:$0xff] %v140_v38  ;;  %157 = vst [vmem:[%s356_s5 + $0x58] sm:$0xff] %v141_v32 }
  0x24   :  { %158 = vst [vmem:[%s356_s5 + $0x60] sm:$0xff] %v142_v39  ;;  %159 = vst [vmem:[%s356_s5 + $0x68] sm:$0xff] %v143_v40 }
  0x25   :  { %160 = vst [vmem:[%s356_s5 + $0x70] sm:$0xff] %v144_v41  ;;  %161 = vst [vmem:[%s356_s5 + $0x78] sm:$0xff] %v145_v42 }

// kernel: generator_forward.78
= control target key start
LH: loop header
LB: loop body
LE: loop exit
PB: predicated region body
PF: predicated region fallthrough
CT: control target
= control target key end

     0   :  { %v39_v0 = vmov 0.0   ;;  %s65_s0 = inlined_call_operand.vmem [shape: f32[32,128], index: 0, kind: input, shape index: {}]   ;;  %s66_s1 = inlined_call_operand.vmem [shape: f32[1,128], index: 1, kind: output, shape index: {}]  }
   0x1   :  { %12 = vst [vmem:[#allocation2] sm:$0x1] %v39_v0  ;;  %v14_v1 = vld [vmem:[%s65_s0] sm:$0xff]  ;;  %v15_v2 = vld [vmem:[%s65_s0 + $0x8] sm:$0xff]  ;;  %v16_v3 = vld [vmem:[%s65_s0 + $0x10] sm:$0xff] }
   0x2   :  { %v18_v4 = vadd.f32 %v15_v2, %v14_v1  ;;  %v17_v5 = vld [vmem:[%s65_s0 + $0x18] sm:$0xff] }
   0x4   :  { %v19_v6 = vadd.f32 %v18_v4, %v16_v3 }
   0x6   :  { %v20_v7 = vadd.f32 %v19_v6, %v17_v5 }
   0x8   :  { %v21_v8 = vrot.slane %v20_v7, 4  ;;  %v13_v13 = vld [vmem:[#allocation2] sm:$0x1] }
   0xa   :  { %v22_v9 = vadd.f32 %v21_v8, %v20_v7 }
   0xc   :  { %v23_v10 = vrot.slane %v22_v9, 2 }
   0xe   :  { %v24_v11 = vadd.f32 %v23_v10, %v22_v9 }
  0x10   :  { %v25_v12 = vrot.slane %v24_v11, 1 }
  0x12   :  { %v26_v14 = vadd.f32 %v25_v12, %v24_v11 }
  0x14   :  { %v27_v15 = vadd.f32 %v26_v14, %v13_v13 }
  0x16   :  { %28 = vst [vmem:[#allocation2] sm:$0x1] %v27_v15 }
  0x1d   :  { %v32_v16 = vld [vmem:[#allocation2] sm:$0x1] }
  0x1e   :  { %33 = vst [vmem:[%s66_s1] sm:$0x1] %v32_v16 }

// kernel: generator_forward.77
= control target key start
LH: loop header
LB: loop body
LE: loop exit
PB: predicated region body
PF: predicated region fallthrough
CT: control target
= control target key end

     0   :  { %s961_s9 = smov 0   ;;  %s963_s10 = smov 0   ;;  %s1074_s0 = inlined_call_operand.vmem [shape: bf16[32,1152], index: 0, kind: input, shape index: {}]   ;;  %s1075_s1 = inlined_call_operand.vmem [shape: bf16[1152,128], index: 1, kind: input, shape index: {}]   ;;  %s1076_s2 = inlined_call_operand.vmem [shape: f32[32,128], index: 2, kind: output, shape index: {}]  }
   0x1   :  { %s965_s11 = smov 0   ;;  %s967_s12 = smov 0  }
   0x2   :  { %s969_s13 = smov 0  }
   0x3 LB: > { %s24_s14 = sadd.s32 1, %s939_s12  ;;  %p47_p1 = scmp.ne.s32.totalorder %s931_s10, %s927_s9  ;;  %s943_s13 = sphi %s969_s13, %s12_s13   ;;  %s939_s12 = sphi %s967_s12, %s1080_s12   ;;  %s935_s11 = sphi %s965_s11, %s1079_s11   ;;  %s931_s10 = sphi %s963_s10, %s1078_s10   ;;  %s927_s9 = sphi %s961_s9, %s1077_s9  }
   0x4   : > { %p25_p0 = scmp.ge.s32.totalorder %s24_s14, 3  ;;  %p48_p2 = scmp.eq.s32.totalorder %s943_s13, 0 }
   0x5   : > { %s40_s16 = sadd.s32 1, %s931_s10  ;;  %p723_p5 = scmp.ge.s32.totalorder %s943_s13, 3 }
   0x6   : > { %s1082_s14 = smov (%p25_p0, %s24_s14), 0  ;;  %p49_p3 = por %p48_p2, %p47_p1 }
   0x7   : > { %s36_s15 = ssub.s32 %s939_s12, %s1082_s14  ;;  %129 = sbr.rel (%p723_p5) target bundleno = 23 (0x17), region = 16 }
   0x8   : > { %p38_p4 = scmp.eq.s32.totalorder %s36_s15, 0 }
   0xa   : > { %s996_s17 = scalar_select %p38_p4, %s931_s10, %s40_s16  }
   0xe   : > { %132 = sbr.rel (!%p49_p3) target bundleno = 23 (0x17), region = 20  ;;  %s134_s18 = sand.u32 (%p49_p3), 1, %s931_s10  }
   0xf   : > { %s771_s19 = smul.u32 (%p49_p3), 12, %s939_s12 }
  0x10   : > { %s830_s20 = smul.u32 (%p49_p3), 48, %s134_s18 }
  0x11   : > { %s142_s23 = scalar_lea.vmem (%p49_p3), %s1074_s0, %s771_s19 }
  0x12   : > { %v157_v0 = vld [vmem:[%s142_s23] sm:$0xff] (%p49_p3)  ;;  %v161_v2 = vld [vmem:[%s142_s23 + $0x48] sm:$0xff] (%p49_p3)  ;;  %s136_s24 = scalar_lea.vmem (%p49_p3), [#allocation3], %s830_s20  ;;  %v729_v6 = vld [vmem:[%s142_s23 + $0x50] sm:$0xf] (%p49_p3) }
  0x13   : > { %v159_v1 = vld [vmem:[%s142_s23 + $0x24] sm:$0xff] (%p49_p3)  ;;  %158 = vst [vmem:[%s136_s24] sm:$0xff] (%p49_p3), %v157_v0  ;;  %162 = vst [vmem:[%s136_s24 + $0x18] sm:$0xff] (%p49_p3), %v161_v2  ;;  %v163_v3 = vld [vmem:[%s142_s23 + $0x6c] sm:$0xff] (%p49_p3) }
  0x14   : > { %160 = vst [vmem:[%s136_s24 + $0xc] sm:$0xff] (%p49_p3), %v159_v1  ;;  %v725_v4 = vld [vmem:[%s142_s23 + $0x8] sm:$0xf] (%p49_p3)  ;;  %v727_v5 = vld [vmem:[%s142_s23 + $0x2c] sm:$0xf] (%p49_p3)  ;;  %164 = vst [vmem:[%s136_s24 + $0x24] sm:$0xff] (%p49_p3), %v163_v3 }
  0x15   : > { %726 = vst [vmem:[%s136_s24 + $0x8] sm:$0xf] %v725_v4  ;;  %728 = vst [vmem:[%s136_s24 + $0x14] sm:$0xf] %v727_v5  ;;  %v731_v7 = vld [vmem:[%s142_s23 + $0x74] sm:$0xf] }
  0x16   : > { %730 = vst [vmem:[%s136_s24 + $0x20] sm:$0xf] %v729_v6  ;;  %732 = vst [vmem:[%s136_s24 + $0x2c] sm:$0xf] %v731_v7 }
  0x17 PF: > { %p733_p6 = scmp.ge.s32.totalorder %s943_s13, 1  ;;  %p196_p7 = scmp.lt.s32.totalorder %s943_s13, 4 }
  0x19   : > { %p197_p8 = pnand %p733_p6, %p196_p7 }
  0x1a   : > { %s203_s25 = sand.u32 (!%p197_p8), 1, %s927_s9   ;;  %s237_s26 = smul.u32 (!%p197_p8), 48, %s935_s11 }
  0x1b   : > { %200 = sbr.rel (%p197_p8) target bundleno = 312 (0x138), region = 50  ;;  %p735_p10 = scmp.ne.s32.totalorder (!%p197_p8), %s935_s11, 0 }
  0x1c   : > { %s831_s27 = smul.u32 (!%p197_p8), 48, %s203_s25  ;;  %p238_p9 = scmp.lt.s32.totalorder (!%p197_p8), %s237_s26, 143 }
  0x1e   : > { %s1013_s4 = scalar_lea.vmem (!%p197_p8), [#allocation3], %s831_s27 }
  0x22   : > { %s1084_s26 = smov (!%p238_p9, %s237_s26), 143  ;;  %259 = sbr.rel (%p735_p10) target bundleno = 41 (0x29), region = 58 }
  0x23   : > { %s734_s28 = sshll.u32 %s1084_s26, 2  ;;  %v945_v8 = vmov (!%p735_p10), 0.0  }
  0x24   : > { %s1011_s3 = scalar_lea.vmem %s1075_s1, %s734_s28  ;;  %260 = vst [vmem:[#allocation2] sm:$0xff] (!%p735_p10), %v945_v8  ;;  %261 = vst [vmem:[#allocation2 + $0x8] sm:$0xff] (!%p735_p10), %v945_v8 }
  0x25   : > { %262 = vst [vmem:[#allocation2 + $0x10] sm:$0xff] (!%p735_p10), %v945_v8  ;;  %263 = vst [vmem:[#allocation2 + $0x18] sm:$0xff] (!%p735_p10), %v945_v8 }
  0x29 PF: > { %v873_v9 = vld [vmem:[%s1011_s3 + $0x40] sm:$0xff]   ;;  %v876_v12 = vld [vmem:[%s1011_s3 + $0x48] sm:$0xff]   ;;  %v879_v15 = vld [vmem:[%s1011_s3 + $0x50] sm:$0xff]   ;;  %p766_p11 = scmp.ne.s32.totalorder %s935_s11, 2 }
  0x2a   : > { %v874_v10 = vld [vmem:[%s1011_s3] sm:$0xff]   ;;  %772 = vmatprep.subr.bf16.mxu0 %v873_v9  ;;  %v877_v13 = vld [vmem:[%s1011_s3 + $0x8] sm:$0xff]   ;;  %v880_v16 = vld [vmem:[%s1011_s3 + $0x10] sm:$0xff]  }
  0x2b   : > { %v875_v11 = vld [vmem:[%s1011_s3 + $0x80] sm:$0xff]   ;;  %773 = vmatpush3.bf16.msra.mxu0 %v874_v10  ;;  %v878_v14 = vld [vmem:[%s1011_s3 + $0x88] sm:$0xff]   ;;  %v881_v17 = vld [vmem:[%s1011_s3 + $0x90] sm:$0xff]  }
  0x2c   : > { %810 = vmatprep.subr.bf16.mxu1 %v875_v11  ;;  %774 = vmatprep.subr.bf16.mxu0 %v876_v12  ;;  %v882_v18 = vld [vmem:[%s1011_s3 + $0x58] sm:$0xff]   ;;  %v885_v21 = vld [vmem:[%s1011_s3 + $0x60] sm:$0xff]   ;;  %v888_v24 = vld [vmem:[%s1011_s3 + $0x68] sm:$0xff]  }
  0x2d   : > { %811 = vmatpush3.bf16.msra.mxu1 %v875_v11  ;;  %v883_v19 = vld [vmem:[%s1011_s3 + $0x18] sm:$0xff]   ;;  %v887_v22 = vld [vmem:[%s1011_s3 + $0xa0] sm:$0xff]   ;;  %v890_v25 = vld [vmem:[%s1011_s3 + $0xa8] sm:$0xff]  }
  0x2e   : > { %812 = vmatprep.subr.bf16.mxu1 %v878_v14  ;;  %v884_v20 = vld [vmem:[%s1011_s3 + $0x98] sm:$0xff]   ;;  %v886_v23 = vld [vmem:[%s1011_s3 + $0x20] sm:$0xff]   ;;  %v889_v26 = vld [vmem:[%s1011_s3 + $0x28] sm:$0xff]  }
  0x2f   : > { %775 = vmatpush3.bf16.msra.mxu0 %v877_v13  ;;  %v891_v27 = vld [vmem:[%s1011_s3 + $0x70] sm:$0xff]   ;;  %v894_v30 = vld [vmem:[%s1011_s3 + $0x78] sm:$0xff]   ;;  %v264_v45 = vld [vmem:[#allocation2] sm:$0xff] }
  0x30   : > { %776 = vmatprep.subr.bf16.mxu0 %v879_v15  ;;  %v892_v28 = vld [vmem:[%s1011_s3 + $0x30] sm:$0xff]   ;;  %v896_v31 = vld [vmem:[%s1011_s3 + $0xb8] sm:$0xff]   ;;  %v265_v50 = vld [vmem:[#allocation2 + $0x8] sm:$0xff] }
  0x31   : > { %813 = vmatpush3.bf16.msra.mxu1 %v878_v14  ;;  %v893_v29 = vld [vmem:[%s1011_s3 + $0xb0] sm:$0xff]   ;;  %v895_v34 = vld [vmem:[%s1011_s3 + $0x38] sm:$0xff]  }
  0x32   : > { %814 = vmatprep.subr.bf16.mxu1 %v881_v17  ;;  %v899_v32 = vld [vmem:[%s1013_s4 + $0x4] ss:$12 sps:$4 sm:$0xff]   ;;  %v900_v33 = vld [vmem:[%s1013_s4 + $0x8] ss:$12 sps:$4 sm:$0xff]   ;;  %v897_v35 = vld [vmem:[%s1013_s4] ss:$12 sps:$4 sm:$0xff]  }
  0x33   : > { %777 = vmatpush3.bf16.msra.mxu0 %v880_v16  ;;  %532 = vmatprep.mubr.bf16.mxu0 %v899_v32  ;;  %v902_v36 = vld [vmem:[%s1013_s4 + $0x1c] ss:$12 sps:$4 sm:$0xff]   ;;  %v901_v37 = vld [vmem:[%s1013_s4 + $0x20] ss:$12 sps:$4 sm:$0xff]   ;;  %v904_v38 = vld [vmem:[%s1013_s4 + $0x18] ss:$12 sps:$4 sm:$0xff]  }
  0x34   : > { %778 = vmatprep.subr.bf16.mxu0 %v882_v18  ;;  %826 = vmatprep.mubr.bf16.mxu1 %v900_v33  ;;  %v266_v59 = vld [vmem:[#allocation2 + $0x10] sm:$0xff]  ;;  %v267_v63 = vld [vmem:[#allocation2 + $0x18] sm:$0xff] }
  0x35   : > { %815 = vmatpush3.bf16.msra.mxu1 %v881_v17 }
  0x36   : > { %816 = vmatprep.subr.bf16.mxu1 %v884_v20 }
  0x37   : > { %779 = vmatpush3.bf16.msra.mxu0 %v883_v19 }
  0x38   : > { %780 = vmatprep.subr.bf16.mxu0 %v885_v21 }
  0x39   : > { %817 = vmatpush3.bf16.msra.mxu1 %v884_v20 }
  0x3a   : > { %818 = vmatprep.subr.bf16.mxu1 %v887_v22 }
  0x3b   : > { %781 = vmatpush3.bf16.msra.mxu0 %v886_v23 }
  0x3c   : > { %782 = vmatprep.subr.bf16.mxu0 %v888_v24 }
  0x3d   : > { %819 = vmatpush3.bf16.msra.mxu1 %v887_v22 }
  0x3e   : > { %820 = vmatprep.subr.bf16.mxu1 %v890_v25 }
  0x3f   : > { %783 = vmatpush3.bf16.msra.mxu0 %v889_v26 }
  0x40   : > { %784 = vmatprep.subr.bf16.mxu0 %v891_v27 }
  0x41   : > { %821 = vmatpush3.bf16.msra.mxu1 %v890_v25 }
  0x42   : > { %822 = vmatprep.subr.bf16.mxu1 %v893_v29 }
  0x43   : > { %785 = vmatpush3.bf16.msra.mxu0 %v892_v28 }
  0x44   : > { %786 = vmatprep.subr.bf16.mxu0 %v894_v30 }
  0x45   : > { %823 = vmatpush3.bf16.msra.mxu1 %v893_v29 }
  0x46   : > { %824 = vmatprep.subr.bf16.mxu1 %v896_v31 }
  0x47   : > { %787 = vmatpush3.bf16.msra.mxu0 %v895_v34 }
  0x49   : > { %825 = vmatpush3.bf16.msra.mxu1 %v896_v31 }
  0x4a   : > { %533 = vmatmul.mubr.bf16.vlgmr.msra.gmra.mrb[0].mxu0 %v897_v35 }
  0x4b   : > { %540 = vmatprep.mubr.bf16.mxu0 %v902_v36 }
  0x4c   : > { %827 = vmatmul.mubr.bf16.vlgmr.msra.gmra.mrb[0].mxu1 %v901_v37 }
  0x52   : > { %541 = vmatmul.mubr.bf16.gmra.mrb[4].mxu0 %v904_v38 }
 0x11d   : > { %v788_v39 = vpop.f32.mrb[0].mxu0 }
 0x11e   : > { %v789_v40 = vpop.f32.mrb[1].mxu0 }
 0x11f   : > { %v790_v41 = vadd.f32 %v789_v40, %v788_v39  ;;  %v791_v42 = vpop.f32.mrb[2].mxu0  ;;  %v828_v43 = vpop.f32.mrb[0].mxu1 }
 0x120   : > { %v792_v44 = vpop.f32.mrb[3].mxu0  ;;  %v583_v46 = vpop.f32.mrb[1].mxu1 }
 0x121   : > { %v793_v47 = vadd.f32 %v792_v44, %v791_v42  ;;  %v584_v48 = vadd.f32 %v790_v41, %v583_v46  ;;  %v829_v49 = vpop.f32.mrb[2].mxu1 }
 0x122   : > { %v586_v51 = vpop.f32.mrb[3].mxu1 }
 0x123   : > { %v598_v52 = vadd.f32 %v584_v48, %v264_v45  ;;  %v587_v53 = vadd.f32 %v793_v47, %v586_v51 }
 0x125   : > { %602 = vst [vmem:[#allocation2] sm:$0xff] %v598_v52  ;;  %v599_v54 = vadd.f32 %v587_v53, %v265_v50  ;;  %v794_v55 = vpop.f32.mrb[4].mxu0 }
 0x126   : > { %v795_v56 = vpop.f32.mrb[5].mxu0 }
 0x127   : > { %603 = vst [vmem:[#allocation2 + $0x8] sm:$0xff] %v599_v54  ;;  %v796_v57 = vadd.f32 %v795_v56, %v794_v55  ;;  %v797_v58 = vpop.f32.mrb[6].mxu0 }
 0x128   : > { %v798_v60 = vpop.f32.mrb[7].mxu0 }
 0x129   : > { %v592_v61 = vadd.f32 %v828_v43, %v796_v57  ;;  %v799_v62 = vadd.f32 %v798_v60, %v797_v58  ;;  %609 = sbr.rel (%p766_p11) target bundleno = 312 (0x138), region = 62 }
 0x12b   : > { %v600_v0 = vadd.f32 %v592_v61, %v266_v59  ;;  %v595_v1 = vadd.f32 %v829_v49, %v799_v62 }
 0x12c   : > { %v610_v3 = vld [vmem:[#allocation2] sm:$0xff] (!%p766_p11) }
 0x12d   : > { %604 = vst [vmem:[#allocation2 + $0x10] sm:$0xff] %v600_v0  ;;  %v601_v2 = vadd.f32 %v595_v1, %v267_v63  ;;  %614 = vst [vmem:[%s1076_s2] sm:$0xff] (!%p766_p11), %v610_v3 }
 0x12e   : > { %v611_v4 = vld [vmem:[#allocation2 + $0x8] sm:$0xff] (!%p766_p11) }
 0x12f   : > { %605 = vst [vmem:[#allocation2 + $0x18] sm:$0xff] %v601_v2  ;;  %615 = vst [vmem:[%s1076_s2 + $0x8] sm:$0xff] (!%p766_p11), %v611_v4 }
 0x134   : > { %v612_v5 = vld [vmem:[#allocation2 + $0x10] sm:$0xff] }
 0x135   : > { %616 = vst [vmem:[%s1076_s2 + $0x10] sm:$0xff] %v612_v5 }
 0x136   : > { %v613_v6 = vld [vmem:[#allocation2 + $0x18] sm:$0xff] }
 0x137   : > { %617 = vst [vmem:[%s1076_s2 + $0x18] sm:$0xff] %v613_v6 }
 0x138 PF: > { %s12_s13 = sadd.s32 1, %s943_s13   ;;  %s1077_s9 = smov %s931_s10 }
 0x139   : > { %p9_p12 = scmp.ge.s32.totalorder %s12_s13, 5   ;;  %s1078_s10 = smov %s996_s17 }
 0x13a   : > { %s1079_s11 = smov %s939_s12  ;;  %s1080_s12 = smov %s1082_s14 }
 0x13b   :  { %11 = sbr.rel (!%p9_p12) target bundleno = 3 (0x3), region = 106 }

// kernel: generator_forward.79
= control target key start
LH: loop header
LB: loop body
LE: loop exit
PB: predicated region body
PF: predicated region fallthrough
CT: control target
= control target key end

     0   :  { %v58_v0 = vmov 0.0   ;;  %s92_s0 = inlined_call_operand.vmem [shape: f32[32,128], index: 0, kind: input, shape index: {}]   ;;  %s93_s1 = inlined_call_operand.vmem [shape: f32[1,128], index: 1, kind: input, shape index: {}]   ;;  %s94_s2 = inlined_call_operand.vmem [shape: f32[1,128], index: 2, kind: output, shape index: {}]  }
   0x1   :  { %15 = vst [vmem:[#allocation2] sm:$0x1] %v58_v0  ;;  %v16_v1 = vld [vmem:[%s92_s0] sm:$0xff]  ;;  %v17_v2 = vld [vmem:[%s92_s0 + $0x8] sm:$0xff]  ;;  %v18_v3 = vld [vmem:[%s92_s0 + $0x10] sm:$0xff] }
   0x2   :  { %v19_v4 = vld [vmem:[%s92_s0 + $0x18] sm:$0xff]  ;;  %v56_v5 = vld [vmem:[%s93_s1] ss:$0 sm:$0xff] }
   0x3   :  { %v27_v6 = vsub.f32 %v16_v1, %v56_v5  ;;  %v28_v7 = vsub.f32 %v17_v2, %v56_v5  ;;  %v29_v8 = vsub.f32 %v18_v3, %v56_v5  ;;  %v30_v9 = vsub.f32 %v19_v4, %v56_v5 }
   0x5   :  { %v32_v10 = vmul.f32 %v27_v6, %v27_v6  ;;  %v33_v11 = vmul.f32 %v28_v7, %v28_v7  ;;  %v34_v12 = vmul.f32 %v29_v8, %v29_v8  ;;  %v35_v13 = vmul.f32 %v30_v9, %v30_v9 }
   0x7   :  { %v36_v14 = vadd.f32 %v33_v11, %v32_v10 }
   0x8   :  { %v31_v22 = vld [vmem:[#allocation2] sm:$0x1] }
   0x9   :  { %v37_v15 = vadd.f32 %v36_v14, %v34_v12 }
   0xb   :  { %v38_v16 = vadd.f32 %v37_v15, %v35_v13 }
   0xd   :  { %v39_v17 = vrot.slane %v38_v16, 4 }
   0xf   :  { %v40_v18 = vadd.f32 %v39_v17, %v38_v16 }
  0x11   :  { %v41_v19 = vrot.slane %v40_v18, 2 }
  0x13   :  { %v42_v20 = vadd.f32 %v41_v19, %v40_v18 }
  0x15   :  { %v43_v21 = vrot.slane %v42_v20, 1 }
  0x17   :  { %v44_v23 = vadd.f32 %v43_v21, %v42_v20 }
  0x19   :  { %v45_v24 = vadd.f32 %v44_v23, %v31_v22 }
  0x1b   :  { %46 = vst [vmem:[#allocation2] sm:$0x1] %v45_v24 }
  0x22   :  { %v50_v25 = vld [vmem:[#allocation2] sm:$0x1] }
  0x23   :  { %51 = vst [vmem:[%s94_s2] sm:$0x1] %v50_v25 }

// kernel: generator_forward.80
= control target key start
LH: loop header
LB: loop body
LE: loop exit
PB: predicated region body
PF: predicated region fallthrough
CT: control target
= control target key end

     0   :  { %v39_v2 = vlaneseq  ;;  %s153_s2 = inlined_call_operand.vmem [shape: f32[1,128], index: 2, kind: input, shape index: {}]   ;;  %s154_s0 = inlined_call_operand.vmem [shape: f32[32,128], index: 0, kind: input, shape index: {}]   ;;  %s155_s1 = inlined_call_operand.vmem [shape: f32[1,128], index: 1, kind: input, shape index: {}]   ;;  %s156_s3 = inlined_call_operand.vmem [shape: f32[1,128], index: 3, kind: input, shape index: {}]   ;;  %s157_s4 = inlined_call_operand.vmem [shape: f32[1,128], index: 4, kind: input, shape index: {}]   ;;  %s158_s5 = inlined_call_operand.vmem [shape: f32[32,128], index: 5, kind: output, shape index: {}]  }
   0x1   :  { %v35_v0 = vld [vmem:[%s153_s2] sm:$0x1]  ;;  %v21_v6 = vld [vmem:[%s154_s0 + $0x8] sm:$0xff]  ;;  %v22_v7 = vld [vmem:[%s154_s0 + $0x10] sm:$0xff] }
   0x2   :  { %v36_v1 = vadd.f32 1e-05, %v35_v0  ;;  %v40_v3 = vshrl.u32 %v39_v2, 7  ;;  %v20_v4 = vld [vmem:[%s154_s0] sm:$0xff]  ;;  %v23_v8 = vld [vmem:[%s154_s0 + $0x18] sm:$0xff] }
   0x3   :  { %v82_v5 = vld [vmem:[%s155_s1] ss:$0 sm:$0xff] }
   0x4   :  { %85 = vrsqrt.f32 %v36_v1  ;;  %v41_v9 = vsub.s32 0, %v40_v3  ;;  %v31_v10 = vsub.f32 %v20_v4, %v82_v5  ;;  %v32_v11 = vsub.f32 %v21_v6, %v82_v5  ;;  %v83_v16 = vld [vmem:[%s156_s3] ss:$0 sm:$0xff] }
   0x5   :  { %v33_v12 = vsub.f32 %v22_v7, %v82_v5  ;;  %v34_v13 = vsub.f32 %v23_v8, %v82_v5  ;;  %v84_v21 = vld [vmem:[%s157_s4] ss:$0 sm:$0xff] }
   0xe   :  { %v86_v14 = vpop.eup %85 }
   0xf   :  { %v42_v15 = vrot.slane %v86_v14, %v41_v9 }
  0x11   :  { %v44_v17 = vmul.f32 %v42_v15, %v31_v10  ;;  %v45_v18 = vmul.f32 %v42_v15, %v32_v11  ;;  %v46_v19 = vmul.f32 %v42_v15, %v33_v12  ;;  %v47_v20 = vmul.f32 %v42_v15, %v34_v13 }
  0x13   :  { %v55_v22 = vmul.f32 %v83_v16, %v44_v17  ;;  %v56_v23 = vmul.f32 %v83_v16, %v45_v18  ;;  %v57_v24 = vmul.f32 %v83_v16, %v46_v19  ;;  %v58_v25 = vmul.f32 %v83_v16, %v47_v20 }
  0x15   :  { %v66_v26 = vadd.f32 %v84_v21, %v55_v22  ;;  %v67_v27 = vadd.f32 %v84_v21, %v56_v23  ;;  %v68_v28 = vadd.f32 %v84_v21, %v57_v24  ;;  %v69_v29 = vadd.f32 %v84_v21, %v58_v25 }
  0x17   :  { %v70_v30 = vmax.f32 %v66_v26, 0.0  ;;  %v71_v31 = vmax.f32 %v67_v27, 0.0  ;;  %v72_v32 = vmax.f32 %v68_v28, 0.0  ;;  %v73_v33 = vmax.f32 %v69_v29, 0.0 }
  0x19   :  { %74 = vst [vmem:[%s158_s5] sm:$0xff] %v70_v30  ;;  %75 = vst [vmem:[%s158_s5 + $0x8] sm:$0xff] %v71_v31 }
  0x1a   :  { %76 = vst [vmem:[%s158_s5 + $0x10] sm:$0xff] %v72_v32  ;;  %77 = vst [vmem:[%s158_s5 + $0x18] sm:$0xff] %v73_v33 }

// kernel: generator_forward.82
= control target key start
LH: loop header
LB: loop body
LE: loop exit
PB: predicated region body
PF: predicated region fallthrough
CT: control target
= control target key end

     0   :  { %v33_v0 = vmov 0.0   ;;  %s50_s0 = inlined_call_operand.vmem [shape: f32[8,128], index: 0, kind: input, shape index: {}]   ;;  %s51_s1 = inlined_call_operand.vmem [shape: f32[1,128], index: 1, kind: output, shape index: {}]  }
   0x1   :  { %12 = vst [vmem:[#allocation2] sm:$0x1] %v33_v0  ;;  %v14_v1 = vld [vmem:[%s50_s0] sm:$0xff] }
   0x2   :  { %v15_v2 = vrot.slane %v14_v1, 4 }
   0x4   :  { %v16_v3 = vadd.f32 %v15_v2, %v14_v1 }
   0x6   :  { %v17_v4 = vrot.slane %v16_v3, 2 }
   0x8   :  { %v18_v5 = vadd.f32 %v17_v4, %v16_v3  ;;  %v13_v7 = vld [vmem:[#allocation2] sm:$0x1] }
   0xa   :  { %v19_v6 = vrot.slane %v18_v5, 1 }
   0xc   :  { %v20_v8 = vadd.f32 %v19_v6, %v18_v5 }
   0xe   :  { %v21_v9 = vadd.f32 %v20_v8, %v13_v7 }
  0x10   :  { %22 = vst [vmem:[#allocation2] sm:$0x1] %v21_v9 }
  0x17   :  { %v26_v10 = vld [vmem:[#allocation2] sm:$0x1] }
  0x18   :  { %27 = vst [vmem:[%s51_s1] sm:$0x1] %v26_v10 }

// kernel: generator_forward.83
= control target key start
LH: loop header
LB: loop body
LE: loop exit
PB: predicated region body
PF: predicated region fallthrough
CT: control target
= control target key end

     0   :  { %v46_v0 = vmov 0.0   ;;  %s71_s0 = inlined_call_operand.vmem [shape: f32[8,128], index: 0, kind: input, shape index: {}]   ;;  %s72_s1 = inlined_call_operand.vmem [shape: f32[1,128], index: 1, kind: input, shape index: {}]   ;;  %s73_s2 = inlined_call_operand.vmem [shape: f32[1,128], index: 2, kind: output, shape index: {}]  }
   0x1   :  { %15 = vst [vmem:[#allocation2] sm:$0x1] %v46_v0  ;;  %v16_v1 = vld [vmem:[%s71_s0] sm:$0xff] }
   0x2   :  { %v44_v2 = vld [vmem:[%s72_s1] ss:$0 sm:$0xff] }
   0x3   :  { %v24_v3 = vsub.f32 %v16_v1, %v44_v2 }
   0x5   :  { %v26_v4 = vmul.f32 %v24_v3, %v24_v3 }
   0x7   :  { %v27_v5 = vrot.slane %v26_v4, 4 }
   0x8   :  { %v25_v10 = vld [vmem:[#allocation2] sm:$0x1] }
   0x9   :  { %v28_v6 = vadd.f32 %v27_v5, %v26_v4 }
   0xb   :  { %v29_v7 = vrot.slane %v28_v6, 2 }
   0xd   :  { %v30_v8 = vadd.f32 %v29_v7, %v28_v6 }
   0xf   :  { %v31_v9 = vrot.slane %v30_v8, 1 }
  0x11   :  { %v32_v11 = vadd.f32 %v31_v9, %v30_v8 }
  0x13   :  { %v33_v12 = vadd.f32 %v32_v11, %v25_v10 }
  0x15   :  { %34 = vst [vmem:[#allocation2] sm:$0x1] %v33_v12 }
  0x1c   :  { %v38_v13 = vld [vmem:[#allocation2] sm:$0x1] }
  0x1d   :  { %39 = vst [vmem:[%s73_s2] sm:$0x1] %v38_v13 }

// kernel: generator_forward.84
= control target key start
LH: loop header
LB: loop body
LE: loop exit
PB: predicated region body
PF: predicated region fallthrough
CT: control target
= control target key end

     0   :  { %v33_v2 = vlaneseq  ;;  %s114_s2 = inlined_call_operand.vmem [shape: f32[1,128], index: 2, kind: input, shape index: {}]   ;;  %s115_s0 = inlined_call_operand.vmem [shape: f32[8,128], index: 0, kind: input, shape index: {}]   ;;  %s116_s1 = inlined_call_operand.vmem [shape: f32[1,128], index: 1, kind: input, shape index: {}]   ;;  %s117_s3 = inlined_call_operand.vmem [shape: f32[1,128], index: 3, kind: input, shape index: {}]   ;;  %s118_s4 = inlined_call_operand.vmem [shape: f32[1,128], index: 4, kind: input, shape index: {}]   ;;  %s119_s5 = inlined_call_operand.vmem [shape: f32[8,128], index: 5, kind: output, shape index: {}]  }
   0x1   :  { %v29_v0 = vld [vmem:[%s114_s2] sm:$0x1] }
   0x2   :  { %v30_v1 = vadd.f32 1e-05, %v29_v0  ;;  %v34_v3 = vshrl.u32 %v33_v2, 7  ;;  %v20_v4 = vld [vmem:[%s115_s0] sm:$0xff] }
   0x3   :  { %v61_v5 = vld [vmem:[%s116_s1] ss:$0 sm:$0xff] }
   0x4   :  { %64 = vrsqrt.f32 %v30_v1  ;;  %v35_v6 = vsub.s32 0, %v34_v3  ;;  %v28_v7 = vsub.f32 %v20_v4, %v61_v5  ;;  %v62_v10 = vld [vmem:[%s117_s3] ss:$0 sm:$0xff] }
   0x5   :  { %v63_v12 = vld [vmem:[%s118_s4] ss:$0 sm:$0xff] }
   0xe   :  { %v65_v8 = vpop.eup %64 }
   0xf   :  { %v36_v9 = vrot.slane %v65_v8, %v35_v6 }
  0x11   :  { %v38_v11 = vmul.f32 %v36_v9, %v28_v7 }
  0x13   :  { %v46_v13 = vmul.f32 %v62_v10, %v38_v11 }
  0x15   :  { %v54_v14 = vadd.f32 %v63_v12, %v46_v13 }
  0x17   :  { %v55_v15 = vmax.f32 %v54_v14, 0.0 }
  0x19   :  { %56 = vst [vmem:[%s119_s5] sm:$0xff] %v55_v15 }

// kernel: generator_forward.81
= control target key start
LH: loop header
LB: loop body
LE: loop exit
PB: predicated region body
PF: predicated region fallthrough
CT: control target
= control target key end

     0   :  { %s796_s9 = smov 0   ;;  %s798_s10 = smov 0   ;;  %s868_s0 = inlined_call_operand.vmem [shape: bf16[8,1152], index: 0, kind: input, shape index: {}]   ;;  %s869_s1 = inlined_call_operand.vmem [shape: bf16[1152,128], index: 1, kind: input, shape index: {}]   ;;  %s870_s2 = inlined_call_operand.vmem [shape: f32[8,128], index: 2, kind: output, shape index: {}]  }
   0x1   :  { %s800_s11 = smov 0  }
   0x2 LB: > { %s24_s12 = sadd.s32 1, %s772_s10  ;;  %p614_p0 = scmp.ge.s32.totalorder %s776_s11, 1  ;;  %s776_s11 = sphi %s800_s11, %s12_s11   ;;  %s772_s10 = sphi %s798_s10, %s872_s10   ;;  %s768_s9 = sphi %s796_s9, %s871_s9  }
   0x3   : > { %p25_p1 = scmp.ge.s32.totalorder %s24_s12, 3  ;;  %p156_p2 = scmp.lt.s32.totalorder %s776_s11, 4 }
   0x5   : > { %s874_s12 = smov (%p25_p1, %s24_s12), 0  ;;  %p157_p3 = pnand %p614_p0, %p156_p2 }
   0x6   : > { %s192_s13 = smul.u32 (!%p157_p3), 3, %s768_s9  ;;  %p617_p6 = scmp.ne.s32.totalorder (!%p157_p3), %s768_s9, 0 }
   0x7   : > { %160 = sbr.rel (%p157_p3) target bundleno = 285 (0x11d), region = 28 }
   0x8   : > { %s202_s14 = smul.u32 (!%p157_p3), 48, %s768_s9  ;;  %p195_p4 = scmp.lt.s32.totalorder (!%p157_p3), %s192_s13, 8 }
   0xa   : > { %p203_p5 = scmp.lt.s32.totalorder (!%p157_p3), %s202_s14, 143 }
   0xe   : > { %s876_s13 = smov (!%p195_p4, %s192_s13), 8  ;;  %s878_s14 = smov (!%p203_p5, %s202_s14), 143 }
   0xf   : > { %s615_s15 = sshll.u32 %s876_s13, 2  ;;  %s616_s19 = sshll.u32 %s878_s14, 2  ;;  %v778_v0 = vmov (!%p617_p6), 0.0  }
  0x10   : > { %s821_s18 = scalar_lea.vmem %s868_s0, %s615_s15  ;;  %s826_s22 = scalar_lea.vmem %s869_s1, %s616_s19  ;;  %223 = vst [vmem:[#allocation2] sm:$0xff] (!%p617_p6), %v778_v0 }
  0x11   : > { %222 = sbr.rel (%p617_p6) target bundleno = 24 (0x18), region = 32 }
  0x18 PF: > { %v727_v1 = vld [vmem:[%s826_s22 + $0x40] sm:$0xff]   ;;  %v779_v2 = vmov 0.0   ;;  %vm780_vm0 = vmmov 0   ;;  %v730_v5 = vld [vmem:[%s826_s22 + $0x48] sm:$0xff]   ;;  %v733_v8 = vld [vmem:[%s826_s22 + $0x50] sm:$0xff]   ;;  %p645_p7 = scmp.ne.s32.totalorder %s768_s9, 2 }
  0x19   : > { %680 = vmatprep.subr.bf16.mxu1 %v779_v2  ;;  %v728_v3 = vld [vmem:[%s826_s22] sm:$0xff]   ;;  %649 = vmatprep.subr.bf16.mxu0 %v727_v1  ;;  %v731_v6 = vld [vmem:[%s826_s22 + $0x8] sm:$0xff]   ;;  %v734_v9 = vld [vmem:[%s826_s22 + $0x10] sm:$0xff]  }
  0x1a   : > { %v729_v4 = vld [vmem:[%s826_s22 + $0x80] sm:$0xff]   ;;  %696 = vmatprep.mubr.msk.bf16.mxu1 %vm780_vm0, %v779_v2  ;;  %650 = vmatpush3.bf16.msra.mxu0 %v728_v3  ;;  %v732_v7 = vld [vmem:[%s826_s22 + $0x88] sm:$0xff]   ;;  %v735_v10 = vld [vmem:[%s826_s22 + $0x90] sm:$0xff]  }
  0x1b   : > { %681 = vmatpush3.bf16.msra.mxu1 %v729_v4  ;;  %651 = vmatprep.subr.bf16.mxu0 %v730_v5  ;;  %v736_v11 = vld [vmem:[%s826_s22 + $0x58] sm:$0xff]   ;;  %v739_v14 = vld [vmem:[%s826_s22 + $0x60] sm:$0xff]   ;;  %v742_v17 = vld [vmem:[%s826_s22 + $0x68] sm:$0xff]  }
  0x1c   : > { %682 = vmatprep.subr.bf16.mxu1 %v779_v2  ;;  %v737_v12 = vld [vmem:[%s826_s22 + $0x18] sm:$0xff]   ;;  %v740_v15 = vld [vmem:[%s826_s22 + $0x20] sm:$0xff]   ;;  %v743_v18 = vld [vmem:[%s826_s22 + $0x28] sm:$0xff]  }
  0x1d   : > { %v738_v13 = vld [vmem:[%s826_s22 + $0x98] sm:$0xff]   ;;  %v741_v16 = vld [vmem:[%s826_s22 + $0xa0] sm:$0xff]   ;;  %v744_v19 = vld [vmem:[%s826_s22 + $0xa8] sm:$0xff]  }
  0x1e   : > { %652 = vmatpush3.bf16.msra.mxu0 %v731_v6  ;;  %v745_v20 = vld [vmem:[%s826_s22 + $0x70] sm:$0xff]   ;;  %v748_v23 = vld [vmem:[%s826_s22 + $0x78] sm:$0xff]   ;;  %v225_v24 = vld [vmem:[%s821_s18] sm:$0xff] }
  0x1f   : > { %683 = vmatpush3.bf16.msra.mxu1 %v732_v7  ;;  %653 = vmatprep.subr.bf16.mxu0 %v733_v8  ;;  %v746_v21 = vld [vmem:[%s826_s22 + $0x30] sm:$0xff]   ;;  %v619_v25 = vcombine.high %v225_v24, %v225_v24  ;;  %v749_v26 = vld [vmem:[%s826_s22 + $0x38] sm:$0xff]   ;;  %v618_v28 = vcombine.low %v225_v24, %v225_v24  ;;  %v753_v29 = vld [vmem:[%s821_s18 + $0x8] ss:$0 sps:$4 sm:$0xff]  }
  0x20   : > { %684 = vmatprep.subr.bf16.mxu1 %v779_v2  ;;  %v747_v22 = vld [vmem:[%s826_s22 + $0xb0] sm:$0xff]   ;;  %v750_v27 = vld [vmem:[%s826_s22 + $0xb8] sm:$0xff]   ;;  %v224_v36 = vld [vmem:[#allocation2] sm:$0xff] }
  0x21   : > { %462 = vmatprep.mubr.bf16.mxu0 %v619_v25 }
  0x22   : > { %654 = vmatpush3.bf16.msra.mxu0 %v734_v9 }
  0x23   : > { %685 = vmatpush3.bf16.msra.mxu1 %v735_v10  ;;  %655 = vmatprep.subr.bf16.mxu0 %v736_v11 }
  0x24   : > { %686 = vmatprep.subr.bf16.mxu1 %v779_v2 }
  0x26   : > { %656 = vmatpush3.bf16.msra.mxu0 %v737_v12 }
  0x27   : > { %687 = vmatpush3.bf16.msra.mxu1 %v738_v13  ;;  %657 = vmatprep.subr.bf16.mxu0 %v739_v14 }
  0x28   : > { %688 = vmatprep.subr.bf16.mxu1 %v779_v2 }
  0x2a   : > { %658 = vmatpush3.bf16.msra.mxu0 %v740_v15 }
  0x2b   : > { %689 = vmatpush3.bf16.msra.mxu1 %v741_v16  ;;  %659 = vmatprep.subr.bf16.mxu0 %v742_v17 }
  0x2c   : > { %690 = vmatprep.subr.bf16.mxu1 %v779_v2 }
  0x2e   : > { %660 = vmatpush3.bf16.msra.mxu0 %v743_v18 }
  0x2f   : > { %691 = vmatpush3.bf16.msra.mxu1 %v744_v19  ;;  %661 = vmatprep.subr.bf16.mxu0 %v745_v20 }
  0x30   : > { %692 = vmatprep.subr.bf16.mxu1 %v779_v2 }
  0x32   : > { %662 = vmatpush3.bf16.msra.mxu0 %v746_v21 }
  0x33   : > { %693 = vmatpush3.bf16.msra.mxu1 %v747_v22  ;;  %663 = vmatprep.subr.bf16.mxu0 %v748_v23 }
  0x34   : > { %694 = vmatprep.subr.bf16.mxu1 %v779_v2 }
  0x36   : > { %664 = vmatpush3.bf16.msra.mxu0 %v749_v26 }
  0x37   : > { %695 = vmatpush3.bf16.msra.mxu1 %v750_v27 }
  0x39   : > { %463 = vmatmul.mubr.bf16.vlgmr.msra.gmra.mrb[0].mxu0 %v618_v28 }
  0x3a   : > { %697 = vmatmul.mubr.bf16.vlgmr.msra.gmra.mrb[0].mxu1 %v753_v29 }
 0x10c   : > { %v665_v30 = vpop.f32.mrb[0].mxu0 }
 0x10d   : > { %v504_v31 = vpop.f32.mrb[0].mxu1  ;;  %v666_v32 = vpop.f32.mrb[1].mxu0 }
 0x10e   : > { %v667_v33 = vadd.f32 %v666_v32, %v665_v30  ;;  %v698_v34 = vpop.f32.mrb[1].mxu1  ;;  %v668_v35 = vpop.f32.mrb[2].mxu0  ;;  %515 = sbr.rel (%p645_p7) target bundleno = 285 (0x11d), region = 36 }
 0x10f   : > { %v507_v37 = vpop.f32.mrb[2].mxu1  ;;  %v669_v38 = vpop.f32.mrb[3].mxu0 }
 0x110   : > { %v505_v39 = vadd.f32 %v667_v33, %v504_v31  ;;  %v699_v40 = vpop.f32.mrb[3].mxu1 }
 0x112   : > { %v510_v41 = vadd.f32 %v505_v39, %v224_v36 }
 0x114   : > { %511 = vst [vmem:[#allocation2] sm:$0xff] %v510_v41 }
 0x11b   : > { %v516_v42 = vld [vmem:[#allocation2] sm:$0xff] }
 0x11c   : > { %517 = vst [vmem:[%s870_s2] sm:$0xff] %v516_v42 }
 0x11d PF: > { %s12_s11 = sadd.s32 1, %s776_s11   ;;  %s871_s9 = smov %s772_s10 }
 0x11e   : > { %p9_p8 = scmp.ge.s32.totalorder %s12_s11, 5   ;;  %s872_s10 = smov %s874_s12 }
 0x120   :  { %11 = sbr.rel (!%p9_p8) target bundleno = 2 (0x2), region = 69 }

// kernel: generator_forward.104
= control target key start
LH: loop header
LB: loop body
LE: loop exit
PB: predicated region body
PF: predicated region fallthrough
CT: control target
= control target key end

     0   :  { %v36_v2 = vlaneseq  ;;  %s127_s2 = inlined_call_operand.vmem [shape: f32[1,128], index: 2, kind: input, shape index: {}]   ;;  %s128_s0 = inlined_call_operand.vmem [shape: f32[8,128], index: 0, kind: input, shape index: {}]   ;;  %s129_s1 = inlined_call_operand.vmem [shape: f32[1,128], index: 1, kind: input, shape index: {}]   ;;  %s130_s3 = inlined_call_operand.vmem [shape: f32[1,128], index: 3, kind: input, shape index: {}]   ;;  %s131_s4 = inlined_call_operand.vmem [shape: f32[1,128], index: 4, kind: input, shape index: {}]   ;;  %s132_s5 = inlined_call_operand.vmem [shape: f32[8,128], index: 5, kind: input, shape index: {}]   ;;  %s133_s6 = inlined_call_operand.vmem [shape: f32[8,128], index: 6, kind: output, shape index: {}]  }
   0x1   :  { %v32_v0 = vld [vmem:[%s127_s2] sm:$0x1] }
   0x2   :  { %v33_v1 = vadd.f32 1e-05, %v32_v0  ;;  %v37_v3 = vshrl.u32 %v36_v2, 7  ;;  %v23_v4 = vld [vmem:[%s128_s0] sm:$0xff] }
   0x3   :  { %v66_v5 = vld [vmem:[%s129_s1] ss:$0 sm:$0xff] }
   0x4   :  { %69 = vrsqrt.f32 %v33_v1  ;;  %v38_v6 = vsub.s32 0, %v37_v3  ;;  %v31_v7 = vsub.f32 %v23_v4, %v66_v5  ;;  %v67_v10 = vld [vmem:[%s130_s3] ss:$0 sm:$0xff] }
   0x5   :  { %v68_v12 = vld [vmem:[%s131_s4] ss:$0 sm:$0xff] }
   0x6   :  { %v58_v14 = vld [vmem:[%s132_s5] sm:$0xff] }
   0xe   :  { %v70_v8 = vpop.eup %69 }
   0xf   :  { %v39_v9 = vrot.slane %v70_v8, %v38_v6 }
  0x11   :  { %v41_v11 = vmul.f32 %v39_v9, %v31_v7 }
  0x13   :  { %v49_v13 = vmul.f32 %v67_v10, %v41_v11 }
  0x15   :  { %v57_v15 = vadd.f32 %v68_v12, %v49_v13 }
  0x17   :  { %v59_v16 = vadd.f32 %v58_v14, %v57_v15 }
  0x19   :  { %v60_v17 = vmax.f32 %v59_v16, 0.0 }
  0x1b   :  { %61 = vst [vmem:[%s133_s6] sm:$0xff] %v60_v17 }

// kernel: generator_forward.121
= control target key start
LH: loop header
LB: loop body
LE: loop exit
PB: predicated region body
PF: predicated region fallthrough
CT: control target
= control target key end

     0   :  { %s3067_s9 = smov 0   ;;  %s3069_s10 = smov 0   ;;  %s3935_s0 = inlined_call_operand.vmem [shape: bf16[512,1152], index: 0, kind: input, shape index: {}]   ;;  %s3936_s1 = inlined_call_operand.vmem [shape: bf16[1152,128], index: 1, kind: input, shape index: {}]   ;;  %s3937_s2 = inlined_call_operand.vmem [shape: f32[512,128], index: 2, kind: output, shape index: {}]  }
   0x1   :  { %s3071_s11 = smov 0   ;;  %s3073_s12 = smov 0  }
   0x2   :  { %s3075_s13 = smov 0  }
   0x3 LB: > { %s24_s14 = sadd.s32 1, %s3044_s12  ;;  %p47_p1 = scmp.ne.s32.totalorder %s3036_s10, %s3032_s9  ;;  %s3048_s13 = sphi %s3075_s13, %s12_s13   ;;  %s3044_s12 = sphi %s3073_s12, %s3941_s12   ;;  %s3040_s11 = sphi %s3071_s11, %s3940_s11   ;;  %s3036_s10 = sphi %s3069_s10, %s3939_s10   ;;  %s3032_s9 = sphi %s3067_s9, %s3938_s9  }
   0x4   : > { %p25_p0 = scmp.ge.s32.totalorder %s24_s14, 3  ;;  %p48_p2 = scmp.eq.s32.totalorder %s3048_s13, 0 }
   0x5   : > { %s40_s16 = sadd.s32 1, %s3036_s10  ;;  %p2403_p5 = scmp.ge.s32.totalorder %s3048_s13, 3 }
   0x6   : > { %s3943_s14 = smov (%p25_p0, %s24_s14), 0  ;;  %p49_p3 = por %p48_p2, %p47_p1 }
   0x7   : > { %s36_s15 = ssub.s32 %s3044_s12, %s3943_s14  ;;  %129 = sbr.rel (%p2403_p5) target bundleno = 93 (0x5d), region = 16 }
   0x8   : > { %p38_p4 = scmp.eq.s32.totalorder %s36_s15, 0 }
   0xa   : > { %s3102_s17 = scalar_select %p38_p4, %s3036_s10, %s40_s16  }
   0xe   : > { %132 = sbr.rel (!%p49_p3) target bundleno = 93 (0x5d), region = 20  ;;  %s134_s18 = sand.u32 (%p49_p3), 1, %s3036_s10  }
   0xf   : > { %s2661_s19 = smul.u32 (%p49_p3), 12, %s3044_s12 }
  0x10   : > { %s2814_s20 = smul.u32 (%p49_p3), 768, %s134_s18 }
  0x11   : > { %s3110_s23 = scalar_lea.vmem (%p49_p3), %s3935_s0, %s2661_s19 }
  0x12   : > { %v157_v0 = vld [vmem:[%s3110_s23] sm:$0xff] (%p49_p3)  ;;  %v161_v2 = vld [vmem:[%s3110_s23 + $0x48] sm:$0xff] (%p49_p3)  ;;  %s3115_s24 = scalar_lea.vmem (%p49_p3), [#allocation3], %s2814_s20  ;;  %v165_v4 = vld [vmem:[%s3110_s23 + $0x90] sm:$0xff] (%p49_p3) }
  0x13   : > { %v159_v1 = vld [vmem:[%s3110_s23 + $0x24] sm:$0xff] (%p49_p3)  ;;  %158 = vst [vmem:[%s3115_s24] sm:$0xff] (%p49_p3), %v157_v0  ;;  %162 = vst [vmem:[%s3115_s24 + $0x18] sm:$0xff] (%p49_p3), %v161_v2  ;;  %v163_v3 = vld [vmem:[%s3110_s23 + $0x6c] sm:$0xff] (%p49_p3) }
  0x14   : > { %160 = vst [vmem:[%s3115_s24 + $0xc] sm:$0xff] (%p49_p3), %v159_v1  ;;  %v167_v5 = vld [vmem:[%s3110_s23 + $0xb4] sm:$0xff] (%p49_p3)  ;;  %164 = vst [vmem:[%s3115_s24 + $0x24] sm:$0xff] (%p49_p3), %v163_v3  ;;  %v171_v7 = vld [vmem:[%s3110_s23 + $0xfc] sm:$0xff] (%p49_p3) }
  0x15   : > { %166 = vst [vmem:[%s3115_s24 + $0x30] sm:$0xff] %v165_v4  ;;  %168 = vst [vmem:[%s3115_s24 + $0x3c] sm:$0xff] %v167_v5  ;;  %v169_v6 = vld [vmem:[%s3110_s23 + $0xd8] sm:$0xff]  ;;  %v173_v8 = vld [vmem:[%s3110_s23 + $0x120] sm:$0xff] }
  0x16   : > { %170 = vst [vmem:[%s3115_s24 + $0x48] sm:$0xff] %v169_v6  ;;  %172 = vst [vmem:[%s3115_s24 + $0x54] sm:$0xff] %v171_v7  ;;  %v175_v9 = vld [vmem:[%s3110_s23 + $0x144] sm:$0xff]  ;;  %v179_v11 = vld [vmem:[%s3110_s23 + $0x18c] sm:$0xff] }
  0x17   : > { %174 = vst [vmem:[%s3115_s24 + $0x60] sm:$0xff] %v173_v8  ;;  %v177_v10 = vld [vmem:[%s3110_s23 + $0x168] sm:$0xff]  ;;  %176 = vst [vmem:[%s3115_s24 + $0x6c] sm:$0xff] %v175_v9  ;;  %v181_v12 = vld [vmem:[%s3110_s23 + $0x1b0] sm:$0xff] }
  0x18   : > { %178 = vst [vmem:[%s3115_s24 + $0x78] sm:$0xff] %v177_v10  ;;  %180 = vst [vmem:[%s3115_s24 + $0x84] sm:$0xff] %v179_v11  ;;  %v183_v13 = vld [vmem:[%s3110_s23 + $0x1d4] sm:$0xff]  ;;  %v187_v15 = vld [vmem:[%s3110_s23 + $0x21c] sm:$0xff] }
  0x19   : > { %v185_v14 = vld [vmem:[%s3110_s23 + $0x1f8] sm:$0xff]  ;;  %182 = vst [vmem:[%s3115_s24 + $0x90] sm:$0xff] %v181_v12  ;;  %184 = vst [vmem:[%s3115_s24 + $0x9c] sm:$0xff] %v183_v13  ;;  %v189_v16 = vld [vmem:[%s3110_s23 + $0x240] sm:$0xff] }
  0x1a   : > { %186 = vst [vmem:[%s3115_s24 + $0xa8] sm:$0xff] %v185_v14  ;;  %v191_v17 = vld [vmem:[%s3110_s23 + $0x264] sm:$0xff]  ;;  %188 = vst [vmem:[%s3115_s24 + $0xb4] sm:$0xff] %v187_v15  ;;  %v195_v19 = vld [vmem:[%s3110_s23 + $0x2ac] sm:$0xff] }
  0x1b   : > { %190 = vst [vmem:[%s3115_s24 + $0xc0] sm:$0xff] %v189_v16  ;;  %192 = vst [vmem:[%s3115_s24 + $0xcc] sm:$0xff] %v191_v17  ;;  %v193_v18 = vld [vmem:[%s3110_s23 + $0x288] sm:$0xff]  ;;  %v197_v20 = vld [vmem:[%s3110_s23 + $0x2d0] sm:$0xff] }
  0x1c   : > { %194 = vst [vmem:[%s3115_s24 + $0xd8] sm:$0xff] %v193_v18  ;;  %196 = vst [vmem:[%s3115_s24 + $0xe4] sm:$0xff] %v195_v19  ;;  %v199_v21 = vld [vmem:[%s3110_s23 + $0x2f4] sm:$0xff]  ;;  %v203_v23 = vld [vmem:[%s3110_s23 + $0x33c] sm:$0xff] }
  0x1d   : > { %198 = vst [vmem:[%s3115_s24 + $0xf0] sm:$0xff] %v197_v20  ;;  %v201_v22 = vld [vmem:[%s3110_s23 + $0x318] sm:$0xff]  ;;  %200 = vst [vmem:[%s3115_s24 + $0xfc] sm:$0xff] %v199_v21  ;;  %v205_v24 = vld [vmem:[%s3110_s23 + $0x360] sm:$0xff] }
  0x1e   : > { %202 = vst [vmem:[%s3115_s24 + $0x108] sm:$0xff] %v201_v22  ;;  %204 = vst [vmem:[%s3115_s24 + $0x114] sm:$0xff] %v203_v23  ;;  %v207_v25 = vld [vmem:[%s3110_s23 + $0x384] sm:$0xff]  ;;  %v211_v27 = vld [vmem:[%s3110_s23 + $0x3cc] sm:$0xff] }
  0x1f   : > { %v209_v26 = vld [vmem:[%s3110_s23 + $0x3a8] sm:$0xff]  ;;  %206 = vst [vmem:[%s3115_s24 + $0x120] sm:$0xff] %v205_v24  ;;  %208 = vst [vmem:[%s3115_s24 + $0x12c] sm:$0xff] %v207_v25  ;;  %v213_v28 = vld [vmem:[%s3110_s23 + $0x3f0] sm:$0xff] }
  0x20   : > { %210 = vst [vmem:[%s3115_s24 + $0x138] sm:$0xff] %v209_v26  ;;  %v215_v29 = vld [vmem:[%s3110_s23 + $0x414] sm:$0xff]  ;;  %212 = vst [vmem:[%s3115_s24 + $0x144] sm:$0xff] %v211_v27  ;;  %v219_v31 = vld [vmem:[%s3110_s23 + $0x45c] sm:$0xff] }
  0x21   : > { %214 = vst [vmem:[%s3115_s24 + $0x150] sm:$0xff] %v213_v28  ;;  %216 = vst [vmem:[%s3115_s24 + $0x15c] sm:$0xff] %v215_v29  ;;  %v217_v30 = vld [vmem:[%s3110_s23 + $0x438] sm:$0xff]  ;;  %v221_v32 = vld [vmem:[%s3110_s23 + $0x480] sm:$0xff] }
  0x22   : > { %218 = vst [vmem:[%s3115_s24 + $0x168] sm:$0xff] %v217_v30  ;;  %220 = vst [vmem:[%s3115_s24 + $0x174] sm:$0xff] %v219_v31  ;;  %v223_v33 = vld [vmem:[%s3110_s23 + $0x4a4] sm:$0xff]  ;;  %v227_v35 = vld [vmem:[%s3110_s23 + $0x4ec] sm:$0xff] }
  0x23   : > { %222 = vst [vmem:[%s3115_s24 + $0x180] sm:$0xff] %v221_v32  ;;  %v225_v34 = vld [vmem:[%s3110_s23 + $0x4c8] sm:$0xff]  ;;  %224 = vst [vmem:[%s3115_s24 + $0x18c] sm:$0xff] %v223_v33  ;;  %v229_v36 = vld [vmem:[%s3110_s23 + $0x510] sm:$0xff] }
  0x24   : > { %226 = vst [vmem:[%s3115_s24 + $0x198] sm:$0xff] %v225_v34  ;;  %228 = vst [vmem:[%s3115_s24 + $0x1a4] sm:$0xff] %v227_v35  ;;  %v231_v37 = vld [vmem:[%s3110_s23 + $0x534] sm:$0xff]  ;;  %v235_v39 = vld [vmem:[%s3110_s23 + $0x57c] sm:$0xff] }
  0x25   : > { %v233_v38 = vld [vmem:[%s3110_s23 + $0x558] sm:$0xff]  ;;  %230 = vst [vmem:[%s3115_s24 + $0x1b0] sm:$0xff] %v229_v36  ;;  %232 = vst [vmem:[%s3115_s24 + $0x1bc] sm:$0xff] %v231_v37  ;;  %v237_v40 = vld [vmem:[%s3110_s23 + $0x5a0] sm:$0xff] }
  0x26   : > { %234 = vst [vmem:[%s3115_s24 + $0x1c8] sm:$0xff] %v233_v38  ;;  %v239_v41 = vld [vmem:[%s3110_s23 + $0x5c4] sm:$0xff]  ;;  %236 = vst [vmem:[%s3115_s24 + $0x1d4] sm:$0xff] %v235_v39  ;;  %v243_v43 = vld [vmem:[%s3110_s23 + $0x60c] sm:$0xff] }
  0x27   : > { %238 = vst [vmem:[%s3115_s24 + $0x1e0] sm:$0xff] %v237_v40  ;;  %240 = vst [vmem:[%s3115_s24 + $0x1ec] sm:$0xff] %v239_v41  ;;  %v241_v42 = vld [vmem:[%s3110_s23 + $0x5e8] sm:$0xff]  ;;  %v245_v44 = vld [vmem:[%s3110_s23 + $0x630] sm:$0xff] }
  0x28   : > { %242 = vst [vmem:[%s3115_s24 + $0x1f8] sm:$0xff] %v241_v42  ;;  %244 = vst [vmem:[%s3115_s24 + $0x204] sm:$0xff] %v243_v43  ;;  %v247_v45 = vld [vmem:[%s3110_s23 + $0x654] sm:$0xff]  ;;  %v251_v47 = vld [vmem:[%s3110_s23 + $0x69c] sm:$0xff] }
  0x29   : > { %246 = vst [vmem:[%s3115_s24 + $0x210] sm:$0xff] %v245_v44  ;;  %v249_v46 = vld [vmem:[%s3110_s23 + $0x678] sm:$0xff]  ;;  %248 = vst [vmem:[%s3115_s24 + $0x21c] sm:$0xff] %v247_v45  ;;  %v253_v48 = vld [vmem:[%s3110_s23 + $0x6c0] sm:$0xff] }
  0x2a   : > { %250 = vst [vmem:[%s3115_s24 + $0x228] sm:$0xff] %v249_v46  ;;  %252 = vst [vmem:[%s3115_s24 + $0x234] sm:$0xff] %v251_v47  ;;  %v255_v49 = vld [vmem:[%s3110_s23 + $0x6e4] sm:$0xff]  ;;  %v259_v51 = vld [vmem:[%s3110_s23 + $0x72c] sm:$0xff] }
  0x2b   : > { %v257_v50 = vld [vmem:[%s3110_s23 + $0x708] sm:$0xff]  ;;  %254 = vst [vmem:[%s3115_s24 + $0x240] sm:$0xff] %v253_v48  ;;  %256 = vst [vmem:[%s3115_s24 + $0x24c] sm:$0xff] %v255_v49  ;;  %v261_v52 = vld [vmem:[%s3110_s23 + $0x750] sm:$0xff] }
  0x2c   : > { %258 = vst [vmem:[%s3115_s24 + $0x258] sm:$0xff] %v257_v50  ;;  %v263_v53 = vld [vmem:[%s3110_s23 + $0x774] sm:$0xff]  ;;  %260 = vst [vmem:[%s3115_s24 + $0x264] sm:$0xff] %v259_v51  ;;  %v267_v55 = vld [vmem:[%s3110_s23 + $0x7bc] sm:$0xff] }
  0x2d   : > { %262 = vst [vmem:[%s3115_s24 + $0x270] sm:$0xff] %v261_v52  ;;  %264 = vst [vmem:[%s3115_s24 + $0x27c] sm:$0xff] %v263_v53  ;;  %v265_v54 = vld [vmem:[%s3110_s23 + $0x798] sm:$0xff]  ;;  %v269_v56 = vld [vmem:[%s3110_s23 + $0x7e0] sm:$0xff] }
  0x2e   : > { %266 = vst [vmem:[%s3115_s24 + $0x288] sm:$0xff] %v265_v54  ;;  %268 = vst [vmem:[%s3115_s24 + $0x294] sm:$0xff] %v267_v55  ;;  %v271_v57 = vld [vmem:[%s3110_s23 + $0x804] sm:$0xff]  ;;  %v275_v59 = vld [vmem:[%s3110_s23 + $0x84c] sm:$0xff] }
  0x2f   : > { %270 = vst [vmem:[%s3115_s24 + $0x2a0] sm:$0xff] %v269_v56  ;;  %v273_v58 = vld [vmem:[%s3110_s23 + $0x828] sm:$0xff]  ;;  %272 = vst [vmem:[%s3115_s24 + $0x2ac] sm:$0xff] %v271_v57  ;;  %v277_v60 = vld [vmem:[%s3110_s23 + $0x870] sm:$0xff] }
  0x30   : > { %274 = vst [vmem:[%s3115_s24 + $0x2b8] sm:$0xff] %v273_v58  ;;  %276 = vst [vmem:[%s3115_s24 + $0x2c4] sm:$0xff] %v275_v59  ;;  %v279_v61 = vld [vmem:[%s3110_s23 + $0x894] sm:$0xff]  ;;  %v283_v63 = vld [vmem:[%s3110_s23 + $0x8dc] sm:$0xff] }
  0x31   : > { %v281_v62 = vld [vmem:[%s3110_s23 + $0x8b8] sm:$0xff]  ;;  %278 = vst [vmem:[%s3115_s24 + $0x2d0] sm:$0xff] %v277_v60  ;;  %280 = vst [vmem:[%s3115_s24 + $0x2dc] sm:$0xff] %v279_v61  ;;  %v2405_v0 = vld [vmem:[%s3110_s23 + $0x8] sm:$0xf] }
  0x32   : > { %282 = vst [vmem:[%s3115_s24 + $0x2e8] sm:$0xff] %v281_v62  ;;  %v2407_v1 = vld [vmem:[%s3110_s23 + $0x2c] sm:$0xf]  ;;  %284 = vst [vmem:[%s3115_s24 + $0x2f4] sm:$0xff] %v283_v63  ;;  %v2409_v2 = vld [vmem:[%s3110_s23 + $0x50] sm:$0xf] }
  0x33   : > { %2406 = vst [vmem:[%s3115_s24 + $0x8] sm:$0xf] %v2405_v0  ;;  %2408 = vst [vmem:[%s3115_s24 + $0x14] sm:$0xf] %v2407_v1  ;;  %v2411_v3 = vld [vmem:[%s3110_s23 + $0x74] sm:$0xf] }
  0x34   : > { %v2413_v4 = vld [vmem:[%s3110_s23 + $0x98] sm:$0xf]  ;;  %2410 = vst [vmem:[%s3115_s24 + $0x20] sm:$0xf] %v2409_v2  ;;  %2412 = vst [vmem:[%s3115_s24 + $0x2c] sm:$0xf] %v2411_v3 }
  0x35   : > { %2414 = vst [vmem:[%s3115_s24 + $0x38] sm:$0xf] %v2413_v4  ;;  %v2415_v5 = vld [vmem:[%s3110_s23 + $0xbc] sm:$0xf]  ;;  %v2417_v6 = vld [vmem:[%s3110_s23 + $0xe0] sm:$0xf] }
  0x36   : > { %v2419_v7 = vld [vmem:[%s3110_s23 + $0x104] sm:$0xf]  ;;  %2416 = vst [vmem:[%s3115_s24 + $0x44] sm:$0xf] %v2415_v5  ;;  %2418 = vst [vmem:[%s3115_s24 + $0x50] sm:$0xf] %v2417_v6 }
  0x37   : > { %2420 = vst [vmem:[%s3115_s24 + $0x5c] sm:$0xf] %v2419_v7  ;;  %v2421_v8 = vld [vmem:[%s3110_s23 + $0x128] sm:$0xf]  ;;  %v2423_v9 = vld [vmem:[%s3110_s23 + $0x14c] sm:$0xf] }
  0x38   : > { %v2425_v10 = vld [vmem:[%s3110_s23 + $0x170] sm:$0xf]  ;;  %2422 = vst [vmem:[%s3115_s24 + $0x68] sm:$0xf] %v2421_v8  ;;  %2424 = vst [vmem:[%s3115_s24 + $0x74] sm:$0xf] %v2423_v9 }
  0x39   : > { %2426 = vst [vmem:[%s3115_s24 + $0x80] sm:$0xf] %v2425_v10  ;;  %v2427_v11 = vld [vmem:[%s3110_s23 + $0x194] sm:$0xf]  ;;  %v2429_v12 = vld [vmem:[%s3110_s23 + $0x1b8] sm:$0xf] }
  0x3a   : > { %v2431_v13 = vld [vmem:[%s3110_s23 + $0x1dc] sm:$0xf]  ;;  %2428 = vst [vmem:[%s3115_s24 + $0x8c] sm:$0xf] %v2427_v11  ;;  %2430 = vst [vmem:[%s3115_s24 + $0x98] sm:$0xf] %v2429_v12 }
  0x3b   : > { %2432 = vst [vmem:[%s3115_s24 + $0xa4] sm:$0xf] %v2431_v13  ;;  %v2433_v14 = vld [vmem:[%s3110_s23 + $0x200] sm:$0xf]  ;;  %v2435_v15 = vld [vmem:[%s3110_s23 + $0x224] sm:$0xf] }
  0x3c   : > { %v2437_v16 = vld [vmem:[%s3110_s23 + $0x248] sm:$0xf]  ;;  %2434 = vst [vmem:[%s3115_s24 + $0xb0] sm:$0xf] %v2433_v14  ;;  %2436 = vst [vmem:[%s3115_s24 + $0xbc] sm:$0xf] %v2435_v15 }
  0x3d   : > { %2438 = vst [vmem:[%s3115_s24 + $0xc8] sm:$0xf] %v2437_v16  ;;  %v2439_v17 = vld [vmem:[%s3110_s23 + $0x26c] sm:$0xf]  ;;  %v2441_v18 = vld [vmem:[%s3110_s23 + $0x290] sm:$0xf] }
  0x3e   : > { %v2443_v19 = vld [vmem:[%s3110_s23 + $0x2b4] sm:$0xf]  ;;  %2440 = vst [vmem:[%s3115_s24 + $0xd4] sm:$0xf] %v2439_v17  ;;  %2442 = vst [vmem:[%s3115_s24 + $0xe0] sm:$0xf] %v2441_v18 }
  0x3f   : > { %2444 = vst [vmem:[%s3115_s24 + $0xec] sm:$0xf] %v2443_v19  ;;  %v2445_v20 = vld [vmem:[%s3110_s23 + $0x2d8] sm:$0xf]  ;;  %v2447_v21 = vld [vmem:[%s3110_s23 + $0x2fc] sm:$0xf] }
  0x40   : > { %v2449_v22 = vld [vmem:[%s3110_s23 + $0x320] sm:$0xf]  ;;  %2446 = vst [vmem:[%s3115_s24 + $0xf8] sm:$0xf] %v2445_v20  ;;  %2448 = vst [vmem:[%s3115_s24 + $0x104] sm:$0xf] %v2447_v21 }
  0x41   : > { %2450 = vst [vmem:[%s3115_s24 + $0x110] sm:$0xf] %v2449_v22  ;;  %v2451_v23 = vld [vmem:[%s3110_s23 + $0x344] sm:$0xf]  ;;  %v2453_v24 = vld [vmem:[%s3110_s23 + $0x368] sm:$0xf] }
  0x42   : > { %v2455_v25 = vld [vmem:[%s3110_s23 + $0x38c] sm:$0xf]  ;;  %2452 = vst [vmem:[%s3115_s24 + $0x11c] sm:$0xf] %v2451_v23  ;;  %2454 = vst [vmem:[%s3115_s24 + $0x128] sm:$0xf] %v2453_v24 }
  0x43   : > { %2456 = vst [vmem:[%s3115_s24 + $0x134] sm:$0xf] %v2455_v25  ;;  %v2457_v26 = vld [vmem:[%s3110_s23 + $0x3b0] sm:$0xf]  ;;  %v2459_v27 = vld [vmem:[%s3110_s23 + $0x3d4] sm:$0xf] }
  0x44   : > { %v2461_v28 = vld [vmem:[%s3110_s23 + $0x3f8] sm:$0xf]  ;;  %2458 = vst [vmem:[%s3115_s24 + $0x140] sm:$0xf] %v2457_v26  ;;  %2460 = vst [vmem:[%s3115_s24 + $0x14c] sm:$0xf] %v2459_v27 }
  0x45   : > { %2462 = vst [vmem:[%s3115_s24 + $0x158] sm:$0xf] %v2461_v28  ;;  %v2463_v29 = vld [vmem:[%s3110_s23 + $0x41c] sm:$0xf]  ;;  %v2465_v30 = vld [vmem:[%s3110_s23 + $0x440] sm:$0xf] }
  0x46   : > { %v2467_v31 = vld [vmem:[%s3110_s23 + $0x464] sm:$0xf]  ;;  %2464 = vst [vmem:[%s3115_s24 + $0x164] sm:$0xf] %v2463_v29  ;;  %2466 = vst [vmem:[%s3115_s24 + $0x170] sm:$0xf] %v2465_v30 }
  0x47   : > { %2468 = vst [vmem:[%s3115_s24 + $0x17c] sm:$0xf] %v2467_v31  ;;  %v2469_v32 = vld [vmem:[%s3110_s23 + $0x488] sm:$0xf]  ;;  %v2471_v33 = vld [vmem:[%s3110_s23 + $0x4ac] sm:$0xf] }
  0x48   : > { %v2473_v34 = vld [vmem:[%s3110_s23 + $0x4d0] sm:$0xf]  ;;  %2470 = vst [vmem:[%s3115_s24 + $0x188] sm:$0xf] %v2469_v32  ;;  %2472 = vst [vmem:[%s3115_s24 + $0x194] sm:$0xf] %v2471_v33 }
  0x49   : > { %2474 = vst [vmem:[%s3115_s24 + $0x1a0] sm:$0xf] %v2473_v34  ;;  %v2475_v35 = vld [vmem:[%s3110_s23 + $0x4f4] sm:$0xf]  ;;  %v2477_v36 = vld [vmem:[%s3110_s23 + $0x518] sm:$0xf] }
  0x4a   : > { %v2479_v37 = vld [vmem:[%s3110_s23 + $0x53c] sm:$0xf]  ;;  %2476 = vst [vmem:[%s3115_s24 + $0x1ac] sm:$0xf] %v2475_v35  ;;  %2478 = vst [vmem:[%s3115_s24 + $0x1b8] sm:$0xf] %v2477_v36 }
  0x4b   : > { %2480 = vst [vmem:[%s3115_s24 + $0x1c4] sm:$0xf] %v2479_v37  ;;  %v2481_v38 = vld [vmem:[%s3110_s23 + $0x560] sm:$0xf]  ;;  %v2483_v39 = vld [vmem:[%s3110_s23 + $0x584] sm:$0xf] }
  0x4c   : > { %v2485_v40 = vld [vmem:[%s3110_s23 + $0x5a8] sm:$0xf]  ;;  %2482 = vst [vmem:[%s3115_s24 + $0x1d0] sm:$0xf] %v2481_v38  ;;  %2484 = vst [vmem:[%s3115_s24 + $0x1dc] sm:$0xf] %v2483_v39 }
  0x4d   : > { %2486 = vst [vmem:[%s3115_s24 + $0x1e8] sm:$0xf] %v2485_v40  ;;  %v2487_v41 = vld [vmem:[%s3110_s23 + $0x5cc] sm:$0xf]  ;;  %v2489_v42 = vld [vmem:[%s3110_s23 + $0x5f0] sm:$0xf] }
  0x4e   : > { %v2491_v43 = vld [vmem:[%s3110_s23 + $0x614] sm:$0xf]  ;;  %2488 = vst [vmem:[%s3115_s24 + $0x1f4] sm:$0xf] %v2487_v41  ;;  %2490 = vst [vmem:[%s3115_s24 + $0x200] sm:$0xf] %v2489_v42 }
  0x4f   : > { %2492 = vst [vmem:[%s3115_s24 + $0x20c] sm:$0xf] %v2491_v43  ;;  %v2493_v44 = vld [vmem:[%s3110_s23 + $0x638] sm:$0xf]  ;;  %v2495_v45 = vld [vmem:[%s3110_s23 + $0x65c] sm:$0xf] }
  0x50   : > { %v2497_v46 = vld [vmem:[%s3110_s23 + $0x680] sm:$0xf]  ;;  %2494 = vst [vmem:[%s3115_s24 + $0x218] sm:$0xf] %v2493_v44  ;;  %2496 = vst [vmem:[%s3115_s24 + $0x224] sm:$0xf] %v2495_v45 }
  0x51   : > { %2498 = vst [vmem:[%s3115_s24 + $0x230] sm:$0xf] %v2497_v46  ;;  %v2499_v47 = vld [vmem:[%s3110_s23 + $0x6a4] sm:$0xf]  ;;  %v2501_v48 = vld [vmem:[%s3110_s23 + $0x6c8] sm:$0xf] }
  0x52   : > { %v2503_v49 = vld [vmem:[%s3110_s23 + $0x6ec] sm:$0xf]  ;;  %2500 = vst [vmem:[%s3115_s24 + $0x23c] sm:$0xf] %v2499_v47  ;;  %2502 = vst [vmem:[%s3115_s24 + $0x248] sm:$0xf] %v2501_v48 }
  0x53   : > { %2504 = vst [vmem:[%s3115_s24 + $0x254] sm:$0xf] %v2503_v49  ;;  %v2505_v50 = vld [vmem:[%s3110_s23 + $0x710] sm:$0xf]  ;;  %v2507_v51 = vld [vmem:[%s3110_s23 + $0x734] sm:$0xf] }
  0x54   : > { %v2509_v52 = vld [vmem:[%s3110_s23 + $0x758] sm:$0xf]  ;;  %2506 = vst [vmem:[%s3115_s24 + $0x260] sm:$0xf] %v2505_v50  ;;  %2508 = vst [vmem:[%s3115_s24 + $0x26c] sm:$0xf] %v2507_v51 }
  0x55   : > { %2510 = vst [vmem:[%s3115_s24 + $0x278] sm:$0xf] %v2509_v52  ;;  %v2511_v53 = vld [vmem:[%s3110_s23 + $0x77c] sm:$0xf]  ;;  %v2513_v54 = vld [vmem:[%s3110_s23 + $0x7a0] sm:$0xf] }
  0x56   : > { %v2515_v55 = vld [vmem:[%s3110_s23 + $0x7c4] sm:$0xf]  ;;  %2512 = vst [vmem:[%s3115_s24 + $0x284] sm:$0xf] %v2511_v53  ;;  %2514 = vst [vmem:[%s3115_s24 + $0x290] sm:$0xf] %v2513_v54 }
  0x57   : > { %2516 = vst [vmem:[%s3115_s24 + $0x29c] sm:$0xf] %v2515_v55  ;;  %v2517_v56 = vld [vmem:[%s3110_s23 + $0x7e8] sm:$0xf]  ;;  %v2519_v57 = vld [vmem:[%s3110_s23 + $0x80c] sm:$0xf] }
  0x58   : > { %v2521_v58 = vld [vmem:[%s3110_s23 + $0x830] sm:$0xf]  ;;  %2518 = vst [vmem:[%s3115_s24 + $0x2a8] sm:$0xf] %v2517_v56  ;;  %2520 = vst [vmem:[%s3115_s24 + $0x2b4] sm:$0xf] %v2519_v57 }
  0x59   : > { %2522 = vst [vmem:[%s3115_s24 + $0x2c0] sm:$0xf] %v2521_v58  ;;  %v2523_v59 = vld [vmem:[%s3110_s23 + $0x854] sm:$0xf]  ;;  %v2525_v60 = vld [vmem:[%s3110_s23 + $0x878] sm:$0xf] }
  0x5a   : > { %v2527_v61 = vld [vmem:[%s3110_s23 + $0x89c] sm:$0xf]  ;;  %2524 = vst [vmem:[%s3115_s24 + $0x2cc] sm:$0xf] %v2523_v59  ;;  %2526 = vst [vmem:[%s3115_s24 + $0x2d8] sm:$0xf] %v2525_v60 }
  0x5b   : > { %2528 = vst [vmem:[%s3115_s24 + $0x2e4] sm:$0xf] %v2527_v61  ;;  %v2529_v62 = vld [vmem:[%s3110_s23 + $0x8c0] sm:$0xf]  ;;  %v2531_v63 = vld [vmem:[%s3110_s23 + $0x8e4] sm:$0xf] }
  0x5c   : > { %2530 = vst [vmem:[%s3115_s24 + $0x2f0] sm:$0xf] %v2529_v62  ;;  %2532 = vst [vmem:[%s3115_s24 + $0x2fc] sm:$0xf] %v2531_v63 }
  0x5d PF: > { %p2533_p6 = scmp.ge.s32.totalorder %s3048_s13, 1  ;;  %p436_p7 = scmp.lt.s32.totalorder %s3048_s13, 4 }
  0x5f   : > { %p437_p8 = pnand %p2533_p6, %p436_p7 }
  0x60   : > { %s443_s25 = sand.u32 (!%p437_p8), 1, %s3032_s9   ;;  %s477_s26 = smul.u32 (!%p437_p8), 48, %s3040_s11 }
  0x61   : > { %440 = sbr.rel (%p437_p8) target bundleno = 629 (0x275), region = 50  ;;  %p2535_p10 = scmp.ne.s32.totalorder (!%p437_p8), %s3040_s11, 0 }
  0x62   : > { %s2815_s27 = smul.u32 (!%p437_p8), 768, %s443_s25  ;;  %p478_p9 = scmp.lt.s32.totalorder (!%p437_p8), %s477_s26, 143 }
  0x64   : > { %s3379_s4 = scalar_lea.vmem (!%p437_p8), [#allocation3], %s2815_s27 }
  0x68   : > { %s3945_s26 = smov (!%p478_p9, %s477_s26), 143  ;;  %499 = sbr.rel (%p2535_p10) target bundleno = 138 (0x8a), region = 58 }
  0x69   : > { %s2534_s28 = sshll.u32 %s3945_s26, 2  ;;  %v3050_v0 = vmov (!%p2535_p10), 0.0  }
  0x6a   : > { %s3377_s3 = scalar_lea.vmem %s3936_s1, %s2534_s28  ;;  %500 = vst [vmem:[#allocation2] sm:$0xff] (!%p2535_p10), %v3050_v0  ;;  %501 = vst [vmem:[#allocation2 + $0x8] sm:$0xff] (!%p2535_p10), %v3050_v0 }
  0x6b   : > { %502 = vst [vmem:[#allocation2 + $0x10] sm:$0xff] (!%p2535_p10), %v3050_v0  ;;  %503 = vst [vmem:[#allocation2 + $0x18] sm:$0xff] (!%p2535_p10), %v3050_v0 }
  0x6c   : > { %504 = vst [vmem:[#allocation2 + $0x20] sm:$0xff] (!%p2535_p10), %v3050_v0  ;;  %505 = vst [vmem:[#allocation2 + $0x28] sm:$0xff] (!%p2535_p10), %v3050_v0 }
  0x6d   : > { %506 = vst [vmem:[#allocation2 + $0x30] sm:$0xff] (!%p2535_p10), %v3050_v0  ;;  %507 = vst [vmem:[#allocation2 + $0x38] sm:$0xff] (!%p2535_p10), %v3050_v0 }
  0x6e   : > { %508 = vst [vmem:[#allocation2 + $0x40] sm:$0xff] (!%p2535_p10), %v3050_v0  ;;  %509 = vst [vmem:[#allocation2 + $0x48] sm:$0xff] (!%p2535_p10), %v3050_v0 }
  0x6f   : > { %510 = vst [vmem:[#allocation2 + $0x50] sm:$0xff] %v3050_v0  ;;  %511 = vst [vmem:[#allocation2 + $0x58] sm:$0xff] %v3050_v0 }
  0x70   : > { %512 = vst [vmem:[#allocation2 + $0x60] sm:$0xff] %v3050_v0  ;;  %513 = vst [vmem:[#allocation2 + $0x68] sm:$0xff] %v3050_v0 }
  0x71   : > { %514 = vst [vmem:[#allocation2 + $0x70] sm:$0xff] %v3050_v0  ;;  %515 = vst [vmem:[#allocation2 + $0x78] sm:$0xff] %v3050_v0 }
  0x72   : > { %516 = vst [vmem:[#allocation2 + $0x80] sm:$0xff] %v3050_v0  ;;  %517 = vst [vmem:[#allocation2 + $0x88] sm:$0xff] %v3050_v0 }
  0x73   : > { %518 = vst [vmem:[#allocation2 + $0x90] sm:$0xff] %v3050_v0  ;;  %519 = vst [vmem:[#allocation2 + $0x98] sm:$0xff] %v3050_v0 }
  0x74   : > { %520 = vst [vmem:[#allocation2 + $0xa0] sm:$0xff] %v3050_v0  ;;  %521 = vst [vmem:[#allocation2 + $0xa8] sm:$0xff] %v3050_v0 }
  0x75   : > { %522 = vst [vmem:[#allocation2 + $0xb0] sm:$0xff] %v3050_v0  ;;  %523 = vst [vmem:[#allocation2 + $0xb8] sm:$0xff] %v3050_v0 }
  0x76   : > { %524 = vst [vmem:[#allocation2 + $0xc0] sm:$0xff] %v3050_v0  ;;  %525 = vst [vmem:[#allocation2 + $0xc8] sm:$0xff] %v3050_v0 }
  0x77   : > { %526 = vst [vmem:[#allocation2 + $0xd0] sm:$0xff] %v3050_v0  ;;  %527 = vst [vmem:[#allocation2 + $0xd8] sm:$0xff] %v3050_v0 }
  0x78   : > { %528 = vst [vmem:[#allocation2 + $0xe0] sm:$0xff] %v3050_v0  ;;  %529 = vst [vmem:[#allocation2 + $0xe8] sm:$0xff] %v3050_v0 }
  0x79   : > { %530 = vst [vmem:[#allocation2 + $0xf0] sm:$0xff] %v3050_v0  ;;  %531 = vst [vmem:[#allocation2 + $0xf8] sm:$0xff] %v3050_v0 }
  0x7a   : > { %532 = vst [vmem:[#allocation2 + $0x100] sm:$0xff] %v3050_v0  ;;  %533 = vst [vmem:[#allocation2 + $0x108] sm:$0xff] %v3050_v0 }
  0x7b   : > { %534 = vst [vmem:[#allocation2 + $0x110] sm:$0xff] %v3050_v0  ;;  %535 = vst [vmem:[#allocation2 + $0x118] sm:$0xff] %v3050_v0 }
  0x7c   : > { %536 = vst [vmem:[#allocation2 + $0x120] sm:$0xff] %v3050_v0  ;;  %537 = vst [vmem:[#allocation2 + $0x128] sm:$0xff] %v3050_v0 }
  0x7d   : > { %538 = vst [vmem:[#allocation2 + $0x130] sm:$0xff] %v3050_v0  ;;  %539 = vst [vmem:[#allocation2 + $0x138] sm:$0xff] %v3050_v0 }
  0x7e   : > { %540 = vst [vmem:[#allocation2 + $0x140] sm:$0xff] %v3050_v0  ;;  %541 = vst [vmem:[#allocation2 + $0x148] sm:$0xff] %v3050_v0 }
  0x7f   : > { %542 = vst [vmem:[#allocation2 + $0x150] sm:$0xff] %v3050_v0  ;;  %543 = vst [vmem:[#allocation2 + $0x158] sm:$0xff] %v3050_v0 }
  0x80   : > { %544 = vst [vmem:[#allocation2 + $0x160] sm:$0xff] %v3050_v0  ;;  %545 = vst [vmem:[#allocation2 + $0x168] sm:$0xff] %v3050_v0 }
  0x81   : > { %546 = vst [vmem:[#allocation2 + $0x170] sm:$0xff] %v3050_v0  ;;  %547 = vst [vmem:[#allocation2 + $0x178] sm:$0xff] %v3050_v0 }
  0x82   : > { %548 = vst [vmem:[#allocation2 + $0x180] sm:$0xff] %v3050_v0  ;;  %549 = vst [vmem:[#allocation2 + $0x188] sm:$0xff] %v3050_v0 }
  0x83   : > { %550 = vst [vmem:[#allocation2 + $0x190] sm:$0xff] %v3050_v0  ;;  %551 = vst [vmem:[#allocation2 + $0x198] sm:$0xff] %v3050_v0 }
  0x84   : > { %552 = vst [vmem:[#allocation2 + $0x1a0] sm:$0xff] %v3050_v0  ;;  %553 = vst [vmem:[#allocation2 + $0x1a8] sm:$0xff] %v3050_v0 }
  0x85   : > { %554 = vst [vmem:[#allocation2 + $0x1b0] sm:$0xff] %v3050_v0  ;;  %555 = vst [vmem:[#allocation2 + $0x1b8] sm:$0xff] %v3050_v0 }
  0x86   : > { %556 = vst [vmem:[#allocation2 + $0x1c0] sm:$0xff] %v3050_v0  ;;  %557 = vst [vmem:[#allocation2 + $0x1c8] sm:$0xff] %v3050_v0 }
  0x87   : > { %558 = vst [vmem:[#allocation2 + $0x1d0] sm:$0xff] %v3050_v0  ;;  %559 = vst [vmem:[#allocation2 + $0x1d8] sm:$0xff] %v3050_v0 }
  0x88   : > { %560 = vst [vmem:[#allocation2 + $0x1e0] sm:$0xff] %v3050_v0  ;;  %561 = vst [vmem:[#allocation2 + $0x1e8] sm:$0xff] %v3050_v0 }
  0x89   : > { %562 = vst [vmem:[#allocation2 + $0x1f0] sm:$0xff] %v3050_v0  ;;  %563 = vst [vmem:[#allocation2 + $0x1f8] sm:$0xff] %v3050_v0 }
  0x8a PF: > { %v2858_v1 = vld [vmem:[%s3377_s3] sm:$0xff]   ;;  %v3051_v2 = vmov 0   ;;  %v2859_v3 = vld [vmem:[%s3377_s3 + $0x8] sm:$0xff]   ;;  %v2860_v4 = vld [vmem:[%s3377_s3 + $0x10] sm:$0xff]   ;;  %p2656_p11 = scmp.ne.s32.totalorder %s3040_s11, 2 }
  0x8b   : > { %1460 = vmatprep.subr.bf16.mxu0 %v3051_v2  ;;  %2782 = vmatprep.subr.bf16.mxu1 %v3051_v2  ;;  %v2861_v5 = vld [vmem:[%s3377_s3 + $0x18] sm:$0xff]   ;;  %v2862_v6 = vld [vmem:[%s3377_s3 + $0x20] sm:$0xff]   ;;  %v2863_v8 = vld [vmem:[%s3377_s3 + $0x28] sm:$0xff]  }
  0x8c   : > { %1461 = vmatpush1.bf16.msra.mxu0 %v2858_v1  ;;  %2798 = vmatpush1.bf16.msra.mxu1 %v2858_v1  ;;  %v2876_v7 = vld [vmem:[%s3379_s4 + $0x4] ss:$12 sps:$4 sm:$0xff]   ;;  %v2865_v11 = vld [vmem:[%s3377_s3 + $0x38] sm:$0xff]   ;;  %v2867_v13 = vld [vmem:[%s3377_s3 + $0x48] sm:$0xff]  }
  0x8d   : > { %1462 = vmatprep.subr.bf16.mxu0 %v3051_v2  ;;  %2783 = vmatprep.subr.bf16.mxu1 %v3051_v2  ;;  %v2879_v9 = vld [vmem:[%s3379_s4 + $0x244] ss:$12 sps:$4 sm:$0xff]   ;;  %v2869_v15 = vld [vmem:[%s3377_s3 + $0x58] sm:$0xff]   ;;  %v2871_v17 = vld [vmem:[%s3377_s3 + $0x68] sm:$0xff]  }
  0x8e   : > { %1492 = vmatprep.mubr.bf16.mxu0 %v2876_v7  ;;  %1684 = vmatprep.mubr.bf16.mxu1 %v2879_v9  ;;  %v2864_v10 = vld [vmem:[%s3377_s3 + $0x30] sm:$0xff]   ;;  %v2866_v12 = vld [vmem:[%s3377_s3 + $0x40] sm:$0xff]   ;;  %v2873_v19 = vld [vmem:[%s3377_s3 + $0x78] sm:$0xff]  }
  0x8f   : > { %v2868_v14 = vld [vmem:[%s3377_s3 + $0x50] sm:$0xff]   ;;  %v2870_v16 = vld [vmem:[%s3377_s3 + $0x60] sm:$0xff]   ;;  %v2881_v23 = vld [vmem:[%s3379_s4 + $0x1c] ss:$12 sps:$4 sm:$0xff]  }
  0x90   : > { %1463 = vmatpush1.bf16.msra.mxu0 %v2859_v3  ;;  %2799 = vmatpush1.bf16.msra.mxu1 %v2859_v3  ;;  %v2872_v18 = vld [vmem:[%s3377_s3 + $0x70] sm:$0xff]   ;;  %v2880_v20 = vld [vmem:[%s3377_s3 + $0x80] sm:$0xff]   ;;  %v2883_v24 = vld [vmem:[%s3379_s4 + $0x25c] ss:$12 sps:$4 sm:$0xff]  }
  0x91   : > { %1464 = vmatprep.subr.bf16.mxu0 %v3051_v2  ;;  %2784 = vmatprep.subr.bf16.mxu1 %v3051_v2  ;;  %v2874_v21 = vld [vmem:[%s3379_s4] ss:$12 sps:$4 sm:$0xff]   ;;  %v2894_v26 = vld [vmem:[%s3377_s3 + $0x90] sm:$0xff]   ;;  %v2885_v27 = vld [vmem:[%s3379_s4 + $0x18] ss:$12 sps:$4 sm:$0xff]  }
  0x92   : > { %v2877_v22 = vld [vmem:[%s3379_s4 + $0x240] ss:$12 sps:$4 sm:$0xff]   ;;  %v2886_v28 = vld [vmem:[%s3379_s4 + $0x258] ss:$12 sps:$4 sm:$0xff]   ;;  %v2892_v32 = vld [vmem:[%s3379_s4 + $0x30] ss:$12 sps:$4 sm:$0xff]  }
  0x93   : > { %v2887_v25 = vld [vmem:[%s3377_s3 + $0x88] sm:$0xff]   ;;  %v2888_v29 = vld [vmem:[%s3379_s4 + $0x34] ss:$12 sps:$4 sm:$0xff]   ;;  %v2901_v31 = vld [vmem:[%s3377_s3 + $0x98] sm:$0xff]  }
  0x94   : > { %1465 = vmatpush1.bf16.msra.mxu0 %v2860_v4  ;;  %2800 = vmatpush1.bf16.msra.mxu1 %v2860_v4  ;;  %v2890_v30 = vld [vmem:[%s3379_s4 + $0x274] ss:$12 sps:$4 sm:$0xff]   ;;  %v2893_v34 = vld [vmem:[%s3379_s4 + $0x270] ss:$12 sps:$4 sm:$0xff]   ;;  %v2895_v35 = vld [vmem:[%s3379_s4 + $0x4c] ss:$12 sps:$4 sm:$0xff]  }
  0x95   : > { %1466 = vmatprep.subr.bf16.mxu0 %v3051_v2  ;;  %2785 = vmatprep.subr.bf16.mxu1 %v3051_v2  ;;  %v2908_v33 = vld [vmem:[%s3377_s3 + $0xa0] sm:$0xff]   ;;  %v2897_v36 = vld [vmem:[%s3379_s4 + $0x28c] ss:$12 sps:$4 sm:$0xff]   ;;  %v2899_v38 = vld [vmem:[%s3379_s4 + $0x48] ss:$12 sps:$4 sm:$0xff]  }
  0x96   : > { %v2915_v37 = vld [vmem:[%s3377_s3 + $0xa8] sm:$0xff]   ;;  %v2902_v40 = vld [vmem:[%s3379_s4 + $0x64] ss:$12 sps:$4 sm:$0xff]   ;;  %v2929_v43 = vld [vmem:[%s3377_s3 + $0xb8] sm:$0xff]  }
  0x97   : > { %v2900_v39 = vld [vmem:[%s3379_s4 + $0x288] ss:$12 sps:$4 sm:$0xff]   ;;  %v2904_v41 = vld [vmem:[%s3379_s4 + $0x2a4] ss:$12 sps:$4 sm:$0xff]   ;;  %v2906_v44 = vld [vmem:[%s3379_s4 + $0x60] ss:$12 sps:$4 sm:$0xff]  }
  0x98   : > { %1467 = vmatpush1.bf16.msra.mxu0 %v2861_v5  ;;  %2801 = vmatpush1.bf16.msra.mxu1 %v2861_v5  ;;  %v2922_v42 = vld [vmem:[%s3377_s3 + $0xb0] sm:$0xff]   ;;  %v2907_v45 = vld [vmem:[%s3379_s4 + $0x2a0] ss:$12 sps:$4 sm:$0xff]   ;;  %v2909_v46 = vld [vmem:[%s3379_s4 + $0x7c] ss:$12 sps:$4 sm:$0xff]  }
  0x99   : > { %1468 = vmatprep.subr.bf16.mxu0 %v3051_v2  ;;  %2786 = vmatprep.subr.bf16.mxu1 %v3051_v2  ;;  %v2911_v47 = vld [vmem:[%s3379_s4 + $0x2bc] ss:$12 sps:$4 sm:$0xff]   ;;  %v2913_v48 = vld [vmem:[%s3379_s4 + $0x78] ss:$12 sps:$4 sm:$0xff]   ;;  %v2916_v50 = vld [vmem:[%s3379_s4 + $0x94] ss:$12 sps:$4 sm:$0xff]  }
  0x9a   : > { %v2914_v49 = vld [vmem:[%s3379_s4 + $0x2b8] ss:$12 sps:$4 sm:$0xff]   ;;  %v2918_v51 = vld [vmem:[%s3379_s4 + $0x2d4] ss:$12 sps:$4 sm:$0xff]   ;;  %v2920_v52 = vld [vmem:[%s3379_s4 + $0x90] ss:$12 sps:$4 sm:$0xff]  }
  0x9b   : > { %v2921_v53 = vld [vmem:[%s3379_s4 + $0x2d0] ss:$12 sps:$4 sm:$0xff]   ;;  %v2923_v54 = vld [vmem:[%s3379_s4 + $0xac] ss:$12 sps:$4 sm:$0xff]   ;;  %v2927_v56 = vld [vmem:[%s3379_s4 + $0xa8] ss:$12 sps:$4 sm:$0xff]  }
  0x9c   : > { %1469 = vmatpush1.bf16.msra.mxu0 %v2862_v6  ;;  %2802 = vmatpush1.bf16.msra.mxu1 %v2862_v6  ;;  %v2925_v55 = vld [vmem:[%s3379_s4 + $0x2ec] ss:$12 sps:$4 sm:$0xff]   ;;  %v2928_v57 = vld [vmem:[%s3379_s4 + $0x2e8] ss:$12 sps:$4 sm:$0xff]   ;;  %v2930_v58 = vld [vmem:[%s3379_s4 + $0xc4] ss:$12 sps:$4 sm:$0xff]  }
  0x9d   : > { %1470 = vmatprep.subr.bf16.mxu0 %v3051_v2  ;;  %2787 = vmatprep.subr.bf16.mxu1 %v3051_v2  ;;  %v2932_v59 = vld [vmem:[%s3379_s4 + $0x8] ss:$12 sps:$4 sm:$0xff]   ;;  %v2933_v60 = vld [vmem:[%s3379_s4 + $0xc0] ss:$12 sps:$4 sm:$0xff]   ;;  %v2937_v63 = vld [vmem:[%s3379_s4 + $0x38] ss:$12 sps:$4 sm:$0xff]  }
  0x9e   : > { %v2934_v61 = vld [vmem:[%s3379_s4 + $0x20] ss:$12 sps:$4 sm:$0xff]   ;;  %v2935_v62 = vld [vmem:[%s3379_s4 + $0xdc] ss:$12 sps:$4 sm:$0xff]   ;;  %v2938_v0 = vld [vmem:[%s3379_s4 + $0xd8] ss:$12 sps:$4 sm:$0xff]  }
  0x9f   : > { %v2939_v1 = vld [vmem:[%s3379_s4 + $0x50] ss:$12 sps:$4 sm:$0xff]   ;;  %v2942_v3 = vld [vmem:[%s3379_s4 + $0x68] ss:$12 sps:$4 sm:$0xff]   ;;  %v2944_v5 = vld [vmem:[%s3379_s4 + $0x80] ss:$12 sps:$4 sm:$0xff]  }
  0xa0   : > { %1471 = vmatpush1.bf16.msra.mxu0 %v2863_v8  ;;  %2803 = vmatpush1.bf16.msra.mxu1 %v2863_v8  ;;  %v2943_v4 = vld [vmem:[%s3379_s4 + $0xf0] ss:$12 sps:$4 sm:$0xff]   ;;  %v2945_v6 = vld [vmem:[%s3379_s4 + $0x10c] ss:$12 sps:$4 sm:$0xff]   ;;  %v2948_v8 = vld [vmem:[%s3379_s4 + $0x108] ss:$12 sps:$4 sm:$0xff]  }
  0xa1   : > { %1472 = vmatprep.subr.bf16.mxu0 %v3051_v2  ;;  %2788 = vmatprep.subr.bf16.mxu1 %v3051_v2  ;;  %v2947_v7 = vld [vmem:[%s3379_s4 + $0x98] ss:$12 sps:$4 sm:$0xff]   ;;  %v2949_v9 = vld [vmem:[%s3379_s4 + $0xb0] ss:$12 sps:$4 sm:$0xff]  }
  0xa4   : > { %1473 = vmatpush1.bf16.msra.mxu0 %v2864_v10  ;;  %2804 = vmatpush1.bf16.msra.mxu1 %v2864_v10  ;;  %v2950_v10 = vld [vmem:[%s3379_s4 + $0x124] ss:$12 sps:$4 sm:$0xff]  }
  0xa5   : > { %1474 = vmatprep.subr.bf16.mxu0 %v3051_v2  ;;  %2789 = vmatprep.subr.bf16.mxu1 %v3051_v2 }
  0xa8   : > { %1475 = vmatpush1.bf16.msra.mxu0 %v2865_v11  ;;  %2805 = vmatpush1.bf16.msra.mxu1 %v2865_v11  ;;  %v2952_v11 = vld [vmem:[%s3379_s4 + $0xc8] ss:$12 sps:$4 sm:$0xff]  }
  0xa9   : > { %1476 = vmatprep.subr.bf16.mxu0 %v3051_v2  ;;  %2790 = vmatprep.subr.bf16.mxu1 %v3051_v2 }
  0xac   : > { %1477 = vmatpush1.bf16.msra.mxu0 %v2866_v12  ;;  %2806 = vmatpush1.bf16.msra.mxu1 %v2866_v12  ;;  %v2953_v12 = vld [vmem:[%s3379_s4 + $0x120] ss:$12 sps:$4 sm:$0xff]  }
  0xad   : > { %1478 = vmatprep.subr.bf16.mxu0 %v3051_v2  ;;  %2791 = vmatprep.subr.bf16.mxu1 %v3051_v2 }
  0xb0   : > { %1479 = vmatpush1.bf16.msra.mxu0 %v2867_v13  ;;  %2807 = vmatpush1.bf16.msra.mxu1 %v2867_v13  ;;  %v2954_v13 = vld [vmem:[%s3379_s4 + $0xe0] ss:$12 sps:$4 sm:$0xff]  }
  0xb1   : > { %1480 = vmatprep.subr.bf16.mxu0 %v3051_v2  ;;  %2792 = vmatprep.subr.bf16.mxu1 %v3051_v2 }
  0xb4   : > { %1481 = vmatpush1.bf16.msra.mxu0 %v2868_v14  ;;  %2808 = vmatpush1.bf16.msra.mxu1 %v2868_v14  ;;  %v2955_v14 = vld [vmem:[%s3379_s4 + $0x13c] ss:$12 sps:$4 sm:$0xff]  }
  0xb5   : > { %1482 = vmatprep.subr.bf16.mxu0 %v3051_v2  ;;  %2793 = vmatprep.subr.bf16.mxu1 %v3051_v2 }
  0xb8   : > { %1483 = vmatpush1.bf16.msra.mxu0 %v2869_v15  ;;  %2809 = vmatpush1.bf16.msra.mxu1 %v2869_v15  ;;  %v2957_v15 = vld [vmem:[%s3379_s4 + $0xf8] ss:$12 sps:$4 sm:$0xff]  }
  0xb9   : > { %1484 = vmatprep.subr.bf16.mxu0 %v3051_v2  ;;  %2794 = vmatprep.subr.bf16.mxu1 %v3051_v2 }
  0xbc   : > { %1485 = vmatpush1.bf16.msra.mxu0 %v2870_v16  ;;  %2810 = vmatpush1.bf16.msra.mxu1 %v2870_v16  ;;  %v2958_v16 = vld [vmem:[%s3379_s4 + $0x138] ss:$12 sps:$4 sm:$0xff]  }
  0xbd   : > { %1486 = vmatprep.subr.bf16.mxu0 %v3051_v2  ;;  %2795 = vmatprep.subr.bf16.mxu1 %v3051_v2 }
  0xc0   : > { %1487 = vmatpush1.bf16.msra.mxu0 %v2871_v17  ;;  %2811 = vmatpush1.bf16.msra.mxu1 %v2871_v17  ;;  %v2959_v17 = vld [vmem:[%s3379_s4 + $0x110] ss:$12 sps:$4 sm:$0xff]  }
  0xc1   : > { %1488 = vmatprep.subr.bf16.mxu0 %v3051_v2  ;;  %2796 = vmatprep.subr.bf16.mxu1 %v3051_v2 }
  0xc4   : > { %1489 = vmatpush1.bf16.msra.mxu0 %v2872_v18  ;;  %2812 = vmatpush1.bf16.msra.mxu1 %v2872_v18  ;;  %v2960_v18 = vld [vmem:[%s3379_s4 + $0x154] ss:$12 sps:$4 sm:$0xff]  }
  0xc5   : > { %1490 = vmatprep.subr.bf16.mxu0 %v3051_v2  ;;  %2797 = vmatprep.subr.bf16.mxu1 %v3051_v2  ;;  %v2940_v2 = vld [vmem:[%s3379_s4 + $0xf4] ss:$12 sps:$4 sm:$0xff]  }
  0xc8   : > { %1491 = vmatpush1.bf16.msra.mxu0 %v2873_v19  ;;  %2813 = vmatpush1.bf16.msra.mxu1 %v2873_v19  ;;  %v2962_v19 = vld [vmem:[%s3379_s4 + $0x128] ss:$12 sps:$4 sm:$0xff]  }
  0xc9   : > { %2702 = vmatprep.subr.bf16.mxu1 %v2880_v20 }
  0xcb   : > { %1493 = vmatmul.mubr.bf16.vlgmr.msra.gmra.mrb[0].mxu0 %v2874_v21  ;;  %1685 = vmatmul.mubr.bf16.vlgmr.msra.gmra.mrb[0].mxu1 %v2877_v22  ;;  %v2964_v21 = vld [vmem:[%s3379_s4 + $0x140] ss:$12 sps:$4 sm:$0xff]  }
  0xcc   : > { %2703 = vmatpush3.bf16.msra.mxu1 %v2880_v20  ;;  %1500 = vmatprep.mubr.bf16.mxu0 %v2881_v23  ;;  %v2963_v20 = vld [vmem:[%s3379_s4 + $0x150] ss:$12 sps:$4 sm:$0xff]   ;;  %v2965_v22 = vld [vmem:[%s3379_s4 + $0x16c] ss:$12 sps:$4 sm:$0xff]  }
  0xcd   : > { %1692 = vmatprep.mubr.bf16.mxu1 %v2883_v24  ;;  %2704 = vmatprep.subr.bf16.mxu1 %v2887_v25  ;;  %v2967_v23 = vld [vmem:[%s3379_s4 + $0x158] ss:$12 sps:$4 sm:$0xff]   ;;  %v2968_v24 = vld [vmem:[%s3379_s4 + $0x168] ss:$12 sps:$4 sm:$0xff]  }
  0xd0   : > { %2705 = vmatpush3.bf16.msra.mxu1 %v2887_v25  ;;  %v2969_v25 = vld [vmem:[%s3379_s4 + $0x170] ss:$12 sps:$4 sm:$0xff]  }
  0xd1   : > { %2706 = vmatprep.subr.bf16.mxu1 %v2894_v26 }
  0xd3   : > { %1501 = vmatmul.mubr.bf16.gmra.mrb[4].mxu0 %v2885_v27  ;;  %1693 = vmatmul.mubr.bf16.gmra.mrb[4].mxu1 %v2886_v28  ;;  %v2972_v27 = vld [vmem:[%s3379_s4 + $0x188] ss:$12 sps:$4 sm:$0xff]   ;;  %v2973_v28 = vld [vmem:[%s3379_s4 + $0x180] ss:$12 sps:$4 sm:$0xff]  }
  0xd4   : > { %1508 = vmatprep.mubr.bf16.mxu0 %v2888_v29  ;;  %1700 = vmatprep.mubr.bf16.mxu1 %v2890_v30  ;;  %v2974_v29 = vld [vmem:[%s3379_s4 + $0x1a0] ss:$12 sps:$4 sm:$0xff]   ;;  %v2975_v30 = vld [vmem:[%s3379_s4 + $0x19c] ss:$12 sps:$4 sm:$0xff]  }
  0xd5   : > { %2707 = vmatpush3.bf16.msra.mxu1 %v2894_v26  ;;  %v2970_v26 = vld [vmem:[%s3379_s4 + $0x184] ss:$12 sps:$4 sm:$0xff]  }
  0xd6   : > { %2708 = vmatprep.subr.bf16.mxu1 %v2901_v31 }
  0xd9   : > { %2709 = vmatpush3.bf16.msra.mxu1 %v2901_v31  ;;  %v2977_v31 = vld [vmem:[%s3379_s4 + $0x1b8] ss:$12 sps:$4 sm:$0xff]  }
  0xda   : > { %2710 = vmatprep.subr.bf16.mxu1 %v2908_v33 }
  0xdb   : > { %1509 = vmatmul.mubr.bf16.gmra.mrb[8].mxu0 %v2892_v32  ;;  %1701 = vmatmul.mubr.bf16.gmra.mrb[8].mxu1 %v2893_v34  ;;  %v2978_v32 = vld [vmem:[%s3379_s4 + $0x198] ss:$12 sps:$4 sm:$0xff]   ;;  %v2980_v34 = vld [vmem:[%s3379_s4 + $0x1b4] ss:$12 sps:$4 sm:$0xff]  }
  0xdc   : > { %1516 = vmatprep.mubr.bf16.mxu0 %v2895_v35  ;;  %1708 = vmatprep.mubr.bf16.mxu1 %v2897_v36  ;;  %v2982_v35 = vld [vmem:[%s3379_s4 + $0x1e8] ss:$12 sps:$4 sm:$0xff]   ;;  %v2983_v36 = vld [vmem:[%s3379_s4 + $0x1b0] ss:$12 sps:$4 sm:$0xff]  }
  0xdd   : > { %2711 = vmatpush3.bf16.msra.mxu1 %v2908_v33  ;;  %v2979_v33 = vld [vmem:[%s3379_s4 + $0x1d0] ss:$12 sps:$4 sm:$0xff]  }
  0xde   : > { %2712 = vmatprep.subr.bf16.mxu1 %v2915_v37 }
  0xe1   : > { %2713 = vmatpush3.bf16.msra.mxu1 %v2915_v37  ;;  %v2984_v37 = vld [vmem:[%s3379_s4 + $0x200] ss:$12 sps:$4 sm:$0xff]  }
  0xe2   : > { %2714 = vmatprep.subr.bf16.mxu1 %v2922_v42 }
  0xe3   : > { %1517 = vmatmul.mubr.bf16.gmra.mrb[12].mxu0 %v2899_v38  ;;  %1709 = vmatmul.mubr.bf16.gmra.mrb[12].mxu1 %v2900_v39  ;;  %v2985_v38 = vld [vmem:[%s3379_s4 + $0x1cc] ss:$12 sps:$4 sm:$0xff]  }
  0xe4   : > { %1524 = vmatprep.mubr.bf16.mxu0 %v2902_v40  ;;  %1716 = vmatprep.mubr.bf16.mxu1 %v2904_v41  ;;  %v2987_v39 = vld [vmem:[%s3379_s4 + $0x218] ss:$12 sps:$4 sm:$0xff]   ;;  %v2988_v40 = vld [vmem:[%s3379_s4 + $0x1c8] ss:$12 sps:$4 sm:$0xff]   ;;  %v2989_v41 = vld [vmem:[%s3379_s4 + $0x230] ss:$12 sps:$4 sm:$0xff]  }
  0xe5   : > { %2715 = vmatpush3.bf16.msra.mxu1 %v2922_v42  ;;  %v2990_v42 = vld [vmem:[%s3379_s4 + $0x1e4] ss:$12 sps:$4 sm:$0xff]  }
  0xe6   : > { %2716 = vmatprep.subr.bf16.mxu1 %v2929_v43 }
  0xe9   : > { %2717 = vmatpush3.bf16.msra.mxu1 %v2929_v43  ;;  %v2992_v43 = vld [vmem:[%s3379_s4 + $0x248] ss:$12 sps:$4 sm:$0xff]  }
  0xeb   : > { %1525 = vmatmul.mubr.bf16.gmra.mrb[16].mxu0 %v2906_v44  ;;  %1717 = vmatmul.mubr.bf16.gmra.mrb[16].mxu1 %v2907_v45  ;;  %v2993_v44 = vld [vmem:[%s3379_s4 + $0x1e0] ss:$12 sps:$4 sm:$0xff]  }
  0xec   : > { %1532 = vmatprep.mubr.bf16.mxu0 %v2909_v46  ;;  %1724 = vmatprep.mubr.bf16.mxu1 %v2911_v47  ;;  %v2994_v45 = vld [vmem:[%s3379_s4 + $0x260] ss:$12 sps:$4 sm:$0xff]   ;;  %v2995_v46 = vld [vmem:[%s3379_s4 + $0x1fc] ss:$12 sps:$4 sm:$0xff]   ;;  %v2997_v47 = vld [vmem:[%s3379_s4 + $0x278] ss:$12 sps:$4 sm:$0xff]  }
  0xf3   : > { %1533 = vmatmul.mubr.bf16.gmra.mrb[20].mxu0 %v2913_v48  ;;  %1725 = vmatmul.mubr.bf16.gmra.mrb[20].mxu1 %v2914_v49  ;;  %v2998_v48 = vld [vmem:[%s3379_s4 + $0x1f8] ss:$12 sps:$4 sm:$0xff]   ;;  %v2999_v49 = vld [vmem:[%s3379_s4 + $0x290] ss:$12 sps:$4 sm:$0xff]  }
  0xf4   : > { %1540 = vmatprep.mubr.bf16.mxu0 %v2916_v50  ;;  %1732 = vmatprep.mubr.bf16.mxu1 %v2918_v51  ;;  %v3000_v50 = vld [vmem:[%s3379_s4 + $0x214] ss:$12 sps:$4 sm:$0xff]  }
  0xf5   : > { %v3002_v51 = vld [vmem:[%s3379_s4 + $0x2a8] ss:$12 sps:$4 sm:$0xff]  }
  0xfb   : > { %1541 = vmatmul.mubr.bf16.gmra.mrb[24].mxu0 %v2920_v52  ;;  %1733 = vmatmul.mubr.bf16.gmra.mrb[24].mxu1 %v2921_v53  ;;  %v3003_v52 = vld [vmem:[%s3379_s4 + $0x210] ss:$12 sps:$4 sm:$0xff]   ;;  %v3004_v53 = vld [vmem:[%s3379_s4 + $0x2c0] ss:$12 sps:$4 sm:$0xff]  }
  0xfc   : > { %1548 = vmatprep.mubr.bf16.mxu0 %v2923_v54  ;;  %1740 = vmatprep.mubr.bf16.mxu1 %v2925_v55  ;;  %v3005_v54 = vld [vmem:[%s3379_s4 + $0x22c] ss:$12 sps:$4 sm:$0xff]  }
  0xfd   : > { %v3007_v55 = vld [vmem:[%s3379_s4 + $0x2d8] ss:$12 sps:$4 sm:$0xff]  }
 0x103   : > { %1549 = vmatmul.mubr.bf16.gmra.mrb[28].mxu0 %v2927_v56  ;;  %1741 = vmatmul.mubr.bf16.gmra.mrb[28].mxu1 %v2928_v57  ;;  %v3008_v56 = vld [vmem:[%s3379_s4 + $0x228] ss:$12 sps:$4 sm:$0xff]   ;;  %v3009_v57 = vld [vmem:[%s3379_s4 + $0x2f0] ss:$12 sps:$4 sm:$0xff]  }
 0x104   : > { %1556 = vmatprep.mubr.bf16.mxu0 %v2930_v58  ;;  %2718 = vmatprep.mubr.bf16.mxu1 %v2932_v59 }
 0x10b   : > { %1557 = vmatmul.mubr.bf16.gmra.mrb[32].mxu0 %v2933_v60  ;;  %2719 = vmatmul.mubr.bf16.vlgmr.msra.gmra.mrb[32].mxu1 %v2934_v61 }
 0x10c   : > { %1564 = vmatprep.mubr.bf16.mxu0 %v2935_v62  ;;  %2722 = vmatprep.mubr.bf16.mxu1 %v2937_v63 }
 0x113   : > { %1565 = vmatmul.mubr.bf16.gmra.mrb[36].mxu0 %v2938_v0  ;;  %2723 = vmatmul.mubr.bf16.gmra.mrb[36].mxu1 %v2939_v1 }
 0x114   : > { %1572 = vmatprep.mubr.bf16.mxu0 %v2940_v2  ;;  %2726 = vmatprep.mubr.bf16.mxu1 %v2942_v3 }
 0x11b   : > { %1573 = vmatmul.mubr.bf16.gmra.mrb[40].mxu0 %v2943_v4  ;;  %2727 = vmatmul.mubr.bf16.gmra.mrb[40].mxu1 %v2944_v5 }
 0x11c   : > { %1580 = vmatprep.mubr.bf16.mxu0 %v2945_v6  ;;  %2730 = vmatprep.mubr.bf16.mxu1 %v2947_v7 }
 0x123   : > { %1581 = vmatmul.mubr.bf16.gmra.mrb[44].mxu0 %v2948_v8  ;;  %2731 = vmatmul.mubr.bf16.gmra.mrb[44].mxu1 %v2949_v9 }
 0x124   : > { %1588 = vmatprep.mubr.bf16.mxu0 %v2950_v10  ;;  %2734 = vmatprep.mubr.bf16.mxu1 %v2952_v11 }
 0x12b   : > { %1589 = vmatmul.mubr.bf16.gmra.mrb[48].mxu0 %v2953_v12  ;;  %2735 = vmatmul.mubr.bf16.gmra.mrb[48].mxu1 %v2954_v13 }
 0x12c   : > { %1596 = vmatprep.mubr.bf16.mxu0 %v2955_v14  ;;  %2738 = vmatprep.mubr.bf16.mxu1 %v2957_v15 }
 0x133   : > { %1597 = vmatmul.mubr.bf16.gmra.mrb[52].mxu0 %v2958_v16  ;;  %2739 = vmatmul.mubr.bf16.gmra.mrb[52].mxu1 %v2959_v17 }
 0x134   : > { %1604 = vmatprep.mubr.bf16.mxu0 %v2960_v18  ;;  %2742 = vmatprep.mubr.bf16.mxu1 %v2962_v19 }
 0x13b   : > { %1605 = vmatmul.mubr.bf16.gmra.mrb[56].mxu0 %v2963_v20  ;;  %2743 = vmatmul.mubr.bf16.gmra.mrb[56].mxu1 %v2964_v21 }
 0x13c   : > { %1612 = vmatprep.mubr.bf16.mxu0 %v2965_v22  ;;  %2746 = vmatprep.mubr.bf16.mxu1 %v2967_v23 }
 0x143   : > { %1613 = vmatmul.mubr.bf16.gmra.mrb[60].mxu0 %v2968_v24  ;;  %2747 = vmatmul.mubr.bf16.gmra.mrb[60].mxu1 %v2969_v25 }
 0x144   : > { %1620 = vmatprep.mubr.bf16.mxu0 %v2970_v26  ;;  %2750 = vmatprep.mubr.bf16.mxu1 %v2972_v27 }
 0x14b   : > { %1621 = vmatmul.mubr.bf16.gmra.mrb[64].mxu0 %v2973_v28  ;;  %2751 = vmatmul.mubr.bf16.gmra.mrb[64].mxu1 %v2974_v29 }
 0x14c   : > { %1628 = vmatprep.mubr.bf16.mxu0 %v2975_v30  ;;  %2754 = vmatprep.mubr.bf16.mxu1 %v2977_v31 }
 0x153   : > { %1629 = vmatmul.mubr.bf16.gmra.mrb[68].mxu0 %v2978_v32  ;;  %2755 = vmatmul.mubr.bf16.gmra.mrb[68].mxu1 %v2979_v33 }
 0x154   : > { %1636 = vmatprep.mubr.bf16.mxu0 %v2980_v34  ;;  %2758 = vmatprep.mubr.bf16.mxu1 %v2982_v35 }
 0x15b   : > { %1637 = vmatmul.mubr.bf16.gmra.mrb[72].mxu0 %v2983_v36  ;;  %2759 = vmatmul.mubr.bf16.gmra.mrb[72].mxu1 %v2984_v37 }
 0x15c   : > { %1644 = vmatprep.mubr.bf16.mxu0 %v2985_v38  ;;  %2762 = vmatprep.mubr.bf16.mxu1 %v2987_v39 }
 0x163   : > { %1645 = vmatmul.mubr.bf16.gmra.mrb[76].mxu0 %v2988_v40  ;;  %2763 = vmatmul.mubr.bf16.gmra.mrb[76].mxu1 %v2989_v41 }
 0x164   : > { %1652 = vmatprep.mubr.bf16.mxu0 %v2990_v42  ;;  %2766 = vmatprep.mubr.bf16.mxu1 %v2992_v43 }
 0x16b   : > { %1653 = vmatmul.mubr.bf16.gmra.mrb[80].mxu0 %v2993_v44  ;;  %2767 = vmatmul.mubr.bf16.gmra.mrb[80].mxu1 %v2994_v45 }
 0x16c   : > { %1660 = vmatprep.mubr.bf16.mxu0 %v2995_v46  ;;  %2770 = vmatprep.mubr.bf16.mxu1 %v2997_v47 }
 0x173   : > { %1661 = vmatmul.mubr.bf16.gmra.mrb[84].mxu0 %v2998_v48  ;;  %2771 = vmatmul.mubr.bf16.gmra.mrb[84].mxu1 %v2999_v49 }
 0x174   : > { %1668 = vmatprep.mubr.bf16.mxu0 %v3000_v50  ;;  %2774 = vmatprep.mubr.bf16.mxu1 %v3002_v51 }
 0x17b   : > { %1669 = vmatmul.mubr.bf16.gmra.mrb[88].mxu0 %v3003_v52  ;;  %2775 = vmatmul.mubr.bf16.gmra.mrb[88].mxu1 %v3004_v53 }
 0x17c   : > { %1676 = vmatprep.mubr.bf16.mxu0 %v3005_v54  ;;  %2778 = vmatprep.mubr.bf16.mxu1 %v3007_v55 }
 0x183   : > { %1677 = vmatmul.mubr.bf16.gmra.mrb[92].mxu0 %v3008_v56  ;;  %2779 = vmatmul.mubr.bf16.gmra.mrb[92].mxu1 %v3009_v57 }
 0x19e   : > { %v3598_v58 = vpop.f32.mrb[0].mxu0  ;;  %v3600_v59 = vpop.f32.mrb[0].mxu1 }
 0x19f   : > { %v1496_v60 = vpop.f32.mrb[1].mxu0  ;;  %v1688_v61 = vpop.f32.mrb[1].mxu1 }
 0x1a0   : > { %v3602_v62 = vpop.f32.mrb[2].mxu0  ;;  %v3604_v63 = vpop.f32.mrb[2].mxu1  ;;  %v566_v61 = vld [vmem:[#allocation2 + $0x10] sm:$0xff] }
 0x1a1   : > { %v1499_v0 = vpop.f32.mrb[3].mxu0  ;;  %v1691_v1 = vpop.f32.mrb[3].mxu1 }
 0x1a6   : > { %v1502_v2 = vpop.f32.mrb[4].mxu0  ;;  %v3606_v3 = vpop.f32.mrb[4].mxu1 }
 0x1a7   : > { %v1504_v4 = vpop.f32.mrb[5].mxu0  ;;  %v1696_v5 = vpop.f32.mrb[5].mxu1 }
 0x1a8   : > { %v3608_v6 = vpop.f32.mrb[6].mxu0  ;;  %v3610_v7 = vpop.f32.mrb[6].mxu1  ;;  %v564_v5 = vld [vmem:[#allocation2] sm:$0xff] }
 0x1a9   : > { %v1507_v8 = vpop.f32.mrb[7].mxu0  ;;  %v1699_v9 = vpop.f32.mrb[7].mxu1 }
 0x1ae   : > { %v3612_v10 = vpop.f32.mrb[8].mxu0  ;;  %v3614_v11 = vpop.f32.mrb[8].mxu1 }
 0x1af   : > { %v1512_v12 = vpop.f32.mrb[9].mxu0  ;;  %v1704_v13 = vpop.f32.mrb[9].mxu1 }
 0x1b0   : > { %v3616_v14 = vpop.f32.mrb[10].mxu0  ;;  %v3618_v15 = vpop.f32.mrb[10].mxu1  ;;  %v567_v13 = vld [vmem:[#allocation2 + $0x18] sm:$0xff] }
 0x1b1   : > { %v1515_v16 = vpop.f32.mrb[11].mxu0  ;;  %v1707_v17 = vpop.f32.mrb[11].mxu1 }
 0x1b6   : > { %v3620_v18 = vpop.f32.mrb[12].mxu0  ;;  %v3622_v19 = vpop.f32.mrb[12].mxu1 }
 0x1b7   : > { %v1520_v20 = vpop.f32.mrb[13].mxu0  ;;  %v1712_v21 = vpop.f32.mrb[13].mxu1 }
 0x1b8   : > { %v3624_v22 = vpop.f32.mrb[14].mxu0  ;;  %v3626_v23 = vpop.f32.mrb[14].mxu1 }
 0x1b9   : > { %v1523_v24 = vpop.f32.mrb[15].mxu0  ;;  %v1715_v25 = vpop.f32.mrb[15].mxu1 }
 0x1ba   : > { %v565_v24 = vld [vmem:[#allocation2 + $0x8] sm:$0xff] }
 0x1be   : > { %v3628_v26 = vpop.f32.mrb[16].mxu0  ;;  %v3630_v27 = vpop.f32.mrb[16].mxu1 }
 0x1bf   : > { %v1528_v28 = vpop.f32.mrb[17].mxu0  ;;  %v1720_v29 = vpop.f32.mrb[17].mxu1 }
 0x1c0   : > { %v3632_v30 = vpop.f32.mrb[18].mxu0  ;;  %v3634_v31 = vpop.f32.mrb[18].mxu1 }
 0x1c1   : > { %v1531_v32 = vpop.f32.mrb[19].mxu0  ;;  %v1723_v33 = vpop.f32.mrb[19].mxu1 }
 0x1c2   : > { %v570_v33 = vld [vmem:[#allocation2 + $0x30] sm:$0xff] }
 0x1c6   : > { %v3636_v34 = vpop.f32.mrb[20].mxu0  ;;  %v3638_v35 = vpop.f32.mrb[20].mxu1 }
 0x1c7   : > { %v1536_v36 = vpop.f32.mrb[21].mxu0  ;;  %v1728_v37 = vpop.f32.mrb[21].mxu1 }
 0x1c8   : > { %v3640_v38 = vpop.f32.mrb[22].mxu0  ;;  %v3642_v39 = vpop.f32.mrb[22].mxu1 }
 0x1c9   : > { %v1539_v40 = vpop.f32.mrb[23].mxu0  ;;  %v1731_v41 = vpop.f32.mrb[23].mxu1 }
 0x1ce   : > { %v3644_v42 = vpop.f32.mrb[24].mxu0  ;;  %v3646_v43 = vpop.f32.mrb[24].mxu1 }
 0x1cf   : > { %v1544_v44 = vpop.f32.mrb[25].mxu0  ;;  %v1736_v45 = vpop.f32.mrb[25].mxu1 }
 0x1d0   : > { %v3648_v46 = vpop.f32.mrb[26].mxu0  ;;  %v3650_v47 = vpop.f32.mrb[26].mxu1 }
 0x1d1   : > { %v1547_v48 = vpop.f32.mrb[27].mxu0  ;;  %v1739_v49 = vpop.f32.mrb[27].mxu1 }
 0x1d6   : > { %v3652_v50 = vpop.f32.mrb[28].mxu0  ;;  %v3654_v51 = vpop.f32.mrb[28].mxu1 }
 0x1d7   : > { %v1552_v52 = vpop.f32.mrb[29].mxu0  ;;  %v1744_v53 = vpop.f32.mrb[29].mxu1 }
 0x1d8   : > { %v3656_v54 = vpop.f32.mrb[30].mxu0  ;;  %v3658_v55 = vpop.f32.mrb[30].mxu1 }
 0x1d9   : > { %v1555_v56 = vpop.f32.mrb[31].mxu0  ;;  %v1747_v57 = vpop.f32.mrb[31].mxu1 }
 0x1da   : > { %v569_v56 = vld [vmem:[#allocation2 + $0x28] sm:$0xff] }
 0x1de   : > { %v3660_v60 = vpop.f32.mrb[32].mxu0  ;;  %v2720_v0 = vpop.f32.mrb[32].mxu1 }
 0x1df   : > { %v1792_v1 = vadd.f32 %v2720_v0, %v1502_v2  ;;  %v1560_v4 = vpop.f32.mrb[33].mxu0  ;;  %v1783_v8 = vpop.f32.mrb[33].mxu1 }
 0x1e0   : > { %v1784_v9 = vadd.f32 %v1783_v8, %v3598_v58  ;;  %v3663_v12 = vpop.f32.mrb[34].mxu0  ;;  %v2721_v16 = vpop.f32.mrb[34].mxu1  ;;  %v574_v4 = vld [vmem:[#allocation2 + $0x50] sm:$0xff] }
 0x1e1   : > { %v2040_v17 = vadd.f32 %v1792_v1, %v566_v61  ;;  %v1795_v20 = vadd.f32 %v2721_v16, %v3608_v6  ;;  %v1563_v21 = vpop.f32.mrb[35].mxu0  ;;  %v1786_v25 = vpop.f32.mrb[35].mxu1  ;;  %v568_v6 = vld [vmem:[#allocation2 + $0x20] sm:$0xff] }
 0x1e2   : > { %v2038_v28 = vadd.f32 %v1784_v9, %v564_v5  ;;  %v1787_v29 = vadd.f32 %v1786_v25, %v3602_v62  ;;  %v571_v62 = vld [vmem:[#allocation2 + $0x38] sm:$0xff] }
 0x1e3   : > { %2104 = vst [vmem:[#allocation2 + $0x10] sm:$0xff] %v2040_v17  ;;  %v2041_v2 = vadd.f32 %v1795_v20, %v567_v13 }
 0x1e4   : > { %2102 = vst [vmem:[#allocation2] sm:$0xff] %v2038_v28  ;;  %v2039_v32 = vadd.f32 %v1787_v29, %v565_v24  ;;  %v573_v28 = vld [vmem:[#allocation2 + $0x48] sm:$0xff] }
 0x1e5   : > { %2105 = vst [vmem:[#allocation2 + $0x18] sm:$0xff] %v2041_v2 }
 0x1e6   : > { %2103 = vst [vmem:[#allocation2 + $0x8] sm:$0xff] %v2039_v32  ;;  %v3667_v58 = vpop.f32.mrb[36].mxu0  ;;  %v2724_v36 = vpop.f32.mrb[36].mxu1 }
 0x1e7   : > { %v1808_v37 = vadd.f32 %v2724_v36, %v3620_v18  ;;  %v1568_v40 = vpop.f32.mrb[37].mxu0  ;;  %v1799_v41 = vpop.f32.mrb[37].mxu1  ;;  %v578_v36 = vld [vmem:[#allocation2 + $0x70] sm:$0xff] }
 0x1e8   : > { %v1800_v44 = vadd.f32 %v1799_v41, %v3612_v10  ;;  %v3671_v45 = vpop.f32.mrb[38].mxu0  ;;  %v2725_v48 = vpop.f32.mrb[38].mxu1  ;;  %v576_v41 = vld [vmem:[#allocation2 + $0x60] sm:$0xff] }
 0x1e9   : > { %v2044_v49 = vadd.f32 %v1808_v37, %v570_v33  ;;  %v1811_v52 = vadd.f32 %v2725_v48, %v3624_v22  ;;  %v1571_v53 = vpop.f32.mrb[39].mxu0  ;;  %v1802_v57 = vpop.f32.mrb[39].mxu1  ;;  %v572_v22 = vld [vmem:[#allocation2 + $0x40] sm:$0xff]  ;;  %v579_v48 = vld [vmem:[#allocation2 + $0x78] sm:$0xff] }
 0x1ea   : > { %v2042_v61 = vadd.f32 %v1800_v44, %v568_v6  ;;  %v1803_v0 = vadd.f32 %v1802_v57, %v3616_v14  ;;  %v575_v14 = vld [vmem:[#allocation2 + $0x58] sm:$0xff] }
 0x1eb   : > { %2108 = vst [vmem:[#allocation2 + $0x30] sm:$0xff] %v2044_v49  ;;  %v2045_v18 = vadd.f32 %v1811_v52, %v571_v62 }
 0x1ec   : > { %2106 = vst [vmem:[#allocation2 + $0x20] sm:$0xff] %v2042_v61  ;;  %v2043_v1 = vadd.f32 %v1803_v0, %v569_v56  ;;  %v577_v56 = vld [vmem:[#allocation2 + $0x68] sm:$0xff] }
 0x1ed   : > { %2109 = vst [vmem:[#allocation2 + $0x38] sm:$0xff] %v2045_v18 }
 0x1ee   : > { %2107 = vst [vmem:[#allocation2 + $0x28] sm:$0xff] %v2043_v1  ;;  %v3675_v10 = vpop.f32.mrb[40].mxu0  ;;  %v2728_v5 = vpop.f32.mrb[40].mxu1 }
 0x1ef   : > { %v1824_v8 = vadd.f32 %v2728_v5, %v3636_v34  ;;  %v1576_v9 = vpop.f32.mrb[41].mxu0  ;;  %v1815_v13 = vpop.f32.mrb[41].mxu1 }
 0x1f0   : > { %v1816_v16 = vadd.f32 %v1815_v13, %v3628_v26  ;;  %v3679_v17 = vpop.f32.mrb[42].mxu0  ;;  %v2729_v20 = vpop.f32.mrb[42].mxu1  ;;  %v580_v9 = vld [vmem:[#allocation2 + $0x80] sm:$0xff] }
 0x1f1   : > { %v2048_v21 = vadd.f32 %v1824_v8, %v574_v4  ;;  %v1827_v24 = vadd.f32 %v2729_v20, %v3640_v38  ;;  %v1579_v25 = vpop.f32.mrb[43].mxu0  ;;  %v1818_v29 = vpop.f32.mrb[43].mxu1 }
 0x1f2   : > { %v2046_v2 = vadd.f32 %v1816_v16, %v572_v22  ;;  %v1819_v32 = vadd.f32 %v1818_v29, %v3632_v30  ;;  %v583_v16 = vld [vmem:[#allocation2 + $0x98] sm:$0xff] }
 0x1f3   : > { %2112 = vst [vmem:[#allocation2 + $0x50] sm:$0xff] %v2048_v21  ;;  %v2049_v34 = vadd.f32 %v1827_v24, %v575_v14  ;;  %v581_v24 = vld [vmem:[#allocation2 + $0x88] sm:$0xff] }
 0x1f4   : > { %2110 = vst [vmem:[#allocation2 + $0x40] sm:$0xff] %v2046_v2  ;;  %v2047_v33 = vadd.f32 %v1819_v32, %v573_v28 }
 0x1f5   : > { %2113 = vst [vmem:[#allocation2 + $0x58] sm:$0xff] %v2049_v34 }
 0x1f6   : > { %2111 = vst [vmem:[#allocation2 + $0x48] sm:$0xff] %v2047_v33  ;;  %v1582_v26 = vpop.f32.mrb[44].mxu0  ;;  %v2732_v37 = vpop.f32.mrb[44].mxu1 }
 0x1f7   : > { %v1840_v40 = vadd.f32 %v2732_v37, %v3652_v50  ;;  %v1584_v6 = vpop.f32.mrb[45].mxu0  ;;  %v1831_v38 = vpop.f32.mrb[45].mxu1  ;;  %v584_v37 = vld [vmem:[#allocation2 + $0xa0] sm:$0xff] }
 0x1f8   : > { %v1832_v44 = vadd.f32 %v1831_v38, %v3644_v42  ;;  %v1585_v62 = vpop.f32.mrb[46].mxu0  ;;  %v2733_v49 = vpop.f32.mrb[46].mxu1  ;;  %v582_v42 = vld [vmem:[#allocation2 + $0x90] sm:$0xff] }
 0x1f9   : > { %v2052_v30 = vadd.f32 %v1840_v40, %v578_v36  ;;  %v1843_v52 = vadd.f32 %v2733_v49, %v3656_v54  ;;  %v1587_v53 = vpop.f32.mrb[47].mxu0  ;;  %v1834_v57 = vpop.f32.mrb[47].mxu1  ;;  %v585_v49 = vld [vmem:[#allocation2 + $0xa8] sm:$0xff] }
 0x1fa   : > { %v2050_v61 = vadd.f32 %v1832_v44, %v576_v41  ;;  %v1835_v0 = vadd.f32 %v1834_v57, %v3648_v46  ;;  %v587_v41 = vld [vmem:[#allocation2 + $0xb8] sm:$0xff] }
 0x1fb   : > { %2116 = vst [vmem:[#allocation2 + $0x70] sm:$0xff] %v2052_v30  ;;  %v2053_v18 = vadd.f32 %v1843_v52, %v579_v48 }
 0x1fc   : > { %2114 = vst [vmem:[#allocation2 + $0x60] sm:$0xff] %v2050_v61  ;;  %v2051_v50 = vadd.f32 %v1835_v0, %v577_v56  ;;  %v590_v61 = vld [vmem:[#allocation2 + $0xd0] sm:$0xff] }
 0x1fd   : > { %2117 = vst [vmem:[#allocation2 + $0x78] sm:$0xff] %v2053_v18 }
 0x1fe   : > { %2115 = vst [vmem:[#allocation2 + $0x68] sm:$0xff] %v2051_v50  ;;  %v1590_v1 = vpop.f32.mrb[48].mxu0  ;;  %v2736_v4 = vpop.f32.mrb[48].mxu1  ;;  %v588_v50 = vld [vmem:[#allocation2 + $0xc0] sm:$0xff] }
 0x1ff   : > { %v1856_v5 = vadd.f32 %v2736_v4, %v3667_v58  ;;  %v1592_v8 = vpop.f32.mrb[49].mxu0  ;;  %v1847_v54 = vpop.f32.mrb[49].mxu1 }
 0x200   : > { %v1848_v22 = vadd.f32 %v1847_v54, %v3660_v60  ;;  %v1593_v13 = vpop.f32.mrb[50].mxu0  ;;  %v2737_v14 = vpop.f32.mrb[50].mxu1  ;;  %v586_v60 = vld [vmem:[#allocation2 + $0xb0] sm:$0xff] }
 0x201   : > { %v2056_v46 = vadd.f32 %v1856_v5, %v582_v42  ;;  %v1859_v20 = vadd.f32 %v2737_v14, %v3671_v45  ;;  %v1595_v21 = vpop.f32.mrb[51].mxu0  ;;  %v1850_v25 = vpop.f32.mrb[51].mxu1  ;;  %v591_v5 = vld [vmem:[#allocation2 + $0xd8] sm:$0xff] }
 0x202   : > { %v2054_v28 = vadd.f32 %v1848_v22, %v580_v9  ;;  %v1851_v29 = vadd.f32 %v1850_v25, %v3663_v12  ;;  %v589_v22 = vld [vmem:[#allocation2 + $0xc8] sm:$0xff]  ;;  %v594_v25 = vld [vmem:[#allocation2 + $0xf0] sm:$0xff] }
 0x203   : > { %2120 = vst [vmem:[#allocation2 + $0x90] sm:$0xff] %v2056_v46  ;;  %v2057_v2 = vadd.f32 %v1859_v20, %v583_v16 }
 0x204   : > { %2118 = vst [vmem:[#allocation2 + $0x80] sm:$0xff] %v2054_v28  ;;  %v2055_v58 = vadd.f32 %v1851_v29, %v581_v24 }
 0x205   : > { %2121 = vst [vmem:[#allocation2 + $0x98] sm:$0xff] %v2057_v2  ;;  %v592_v2 = vld [vmem:[#allocation2 + $0xe0] sm:$0xff] }
 0x206   : > { %2119 = vst [vmem:[#allocation2 + $0x88] sm:$0xff] %v2055_v58  ;;  %v1598_v32 = vpop.f32.mrb[52].mxu0  ;;  %v2740_v34 = vpop.f32.mrb[52].mxu1 }
 0x207   : > { %v1872_v33 = vadd.f32 %v2740_v34, %v1582_v26  ;;  %v1600_v36 = vpop.f32.mrb[53].mxu0  ;;  %v1863_v40 = vpop.f32.mrb[53].mxu1  ;;  %v595_v34 = vld [vmem:[#allocation2 + $0xf8] sm:$0xff] }
 0x208   : > { %v1864_v45 = vadd.f32 %v1863_v40, %v3675_v10  ;;  %v1601_v6 = vpop.f32.mrb[54].mxu0  ;;  %v2741_v38 = vpop.f32.mrb[54].mxu1  ;;  %v593_v40 = vld [vmem:[#allocation2 + $0xe8] sm:$0xff] }
 0x209   : > { %v2060_v44 = vadd.f32 %v1872_v33, %v586_v60  ;;  %v1875_v12 = vadd.f32 %v2741_v38, %v1585_v62  ;;  %v1603_v48 = vpop.f32.mrb[55].mxu0  ;;  %v1866_v30 = vpop.f32.mrb[55].mxu1 }
 0x20a   : > { %v2058_v52 = vadd.f32 %v1864_v45, %v584_v37  ;;  %v1867_v53 = vadd.f32 %v1866_v30, %v3679_v17  ;;  %v596_v30 = vld [vmem:[#allocation2 + $0x100] sm:$0xff] }
 0x20b   : > { %2124 = vst [vmem:[#allocation2 + $0xb0] sm:$0xff] %v2060_v44  ;;  %v2061_v56 = vadd.f32 %v1875_v12, %v587_v41 }
 0x20c   : > { %2122 = vst [vmem:[#allocation2 + $0xa0] sm:$0xff] %v2058_v52  ;;  %v2059_v26 = vadd.f32 %v1867_v53, %v585_v49 }
 0x20d   : > { %2125 = vst [vmem:[#allocation2 + $0xb8] sm:$0xff] %v2061_v56 }
 0x20e   : > { %2123 = vst [vmem:[#allocation2 + $0xa8] sm:$0xff] %v2059_v26  ;;  %v1606_v57 = vpop.f32.mrb[56].mxu0  ;;  %v2744_v10 = vpop.f32.mrb[56].mxu1 }
 0x20f   : > { %v1888_v0 = vadd.f32 %v2744_v10, %v1598_v32  ;;  %v1608_v18 = vpop.f32.mrb[57].mxu0  ;;  %v1879_v42 = vpop.f32.mrb[57].mxu1 }
 0x210   : > { %v1880_v62 = vadd.f32 %v1879_v42, %v1590_v1  ;;  %v1609_v4 = vpop.f32.mrb[58].mxu0  ;;  %v2745_v8 = vpop.f32.mrb[58].mxu1  ;;  %v598_v42 = vld [vmem:[#allocation2 + $0x110] sm:$0xff] }
 0x211   : > { %v2064_v9 = vadd.f32 %v1888_v0, %v590_v61  ;;  %v1891_v54 = vadd.f32 %v2745_v8, %v1601_v6  ;;  %v1611_v17 = vpop.f32.mrb[59].mxu0  ;;  %v1882_v16 = vpop.f32.mrb[59].mxu1  ;;  %v597_v61 = vld [vmem:[#allocation2 + $0x108] sm:$0xff] }
 0x212   : > { %v2062_v14 = vadd.f32 %v1880_v62, %v588_v50  ;;  %v1883_v46 = vadd.f32 %v1882_v16, %v1593_v13 }
 0x213   : > { %2128 = vst [vmem:[#allocation2 + $0xd0] sm:$0xff] %v2064_v9  ;;  %v2065_v20 = vadd.f32 %v1891_v54, %v591_v5  ;;  %v599_v54 = vld [vmem:[#allocation2 + $0x118] sm:$0xff] }
 0x214   : > { %2126 = vst [vmem:[#allocation2 + $0xc0] sm:$0xff] %v2062_v14  ;;  %v2063_v21 = vadd.f32 %v1883_v46, %v589_v22 }
 0x215   : > { %2129 = vst [vmem:[#allocation2 + $0xd8] sm:$0xff] %v2065_v20 }
 0x216   : > { %2127 = vst [vmem:[#allocation2 + $0xc8] sm:$0xff] %v2063_v21  ;;  %v1614_v24 = vpop.f32.mrb[60].mxu0  ;;  %v2748_v28 = vpop.f32.mrb[60].mxu1 }
 0x217   : > { %v1904_v1 = vadd.f32 %v2748_v28, %v1614_v24  ;;  %v1616_v29 = vpop.f32.mrb[61].mxu0  ;;  %v1895_v58 = vpop.f32.mrb[61].mxu1  ;;  %v600_v24 = vld [vmem:[#allocation2 + $0x120] sm:$0xff] }
 0x218   : > { %v1896_v32 = vadd.f32 %v1895_v58, %v1606_v57  ;;  %v1617_v60 = vpop.f32.mrb[62].mxu0  ;;  %v2749_v33 = vpop.f32.mrb[62].mxu1  ;;  %v601_v58 = vld [vmem:[#allocation2 + $0x128] sm:$0xff] }
 0x219   : > { %v2068_v36 = vadd.f32 %v1904_v1, %v594_v25  ;;  %v1907_v37 = vadd.f32 %v2749_v33, %v1617_v60  ;;  %v1619_v13 = vpop.f32.mrb[63].mxu0  ;;  %v1898_v45 = vpop.f32.mrb[63].mxu1 }
 0x21a   : > { %v2066_v6 = vadd.f32 %v1896_v32, %v592_v2  ;;  %v1899_v41 = vadd.f32 %v1898_v45, %v1609_v4 }
 0x21b   : > { %2132 = vst [vmem:[#allocation2 + $0xf0] sm:$0xff] %v2068_v36  ;;  %v2069_v38 = vadd.f32 %v1907_v37, %v595_v34 }
 0x21c   : > { %2130 = vst [vmem:[#allocation2 + $0xe0] sm:$0xff] %v2066_v6  ;;  %v2067_v44 = vadd.f32 %v1899_v41, %v593_v40  ;;  %v602_v40 = vld [vmem:[#allocation2 + $0x130] sm:$0xff] }
 0x21d   : > { %2133 = vst [vmem:[#allocation2 + $0xf8] sm:$0xff] %v2069_v38 }
 0x21e   : > { %2131 = vst [vmem:[#allocation2 + $0xe8] sm:$0xff] %v2067_v44  ;;  %v1622_v12 = vpop.f32.mrb[64].mxu0  ;;  %v2752_v48 = vpop.f32.mrb[64].mxu1 }
 0x21f   : > { %v1624_v49 = vpop.f32.mrb[65].mxu0  ;;  %v1911_v52 = vpop.f32.mrb[65].mxu1 }
 0x220   : > { %v1912_v53 = vadd.f32 %v1911_v52, %v1622_v12  ;;  %v1625_v56 = vpop.f32.mrb[66].mxu0  ;;  %v2753_v26 = vpop.f32.mrb[66].mxu1  ;;  %v603_v12 = vld [vmem:[#allocation2 + $0x138] sm:$0xff] }
 0x221   : > { %v1627_v57 = vpop.f32.mrb[67].mxu0  ;;  %v1914_v10 = vpop.f32.mrb[67].mxu1 }
 0x222   : > { %v2070_v0 = vadd.f32 %v1912_v53, %v596_v30  ;;  %v1915_v18 = vadd.f32 %v1914_v10, %v1625_v56  ;;  %v604_v57 = vld [vmem:[#allocation2 + $0x140] sm:$0xff]  ;;  %v614_v10 = vld [vmem:[#allocation2 + $0x190] sm:$0xff] }
 0x224   : > { %2134 = vst [vmem:[#allocation2 + $0x100] sm:$0xff] %v2070_v0  ;;  %v2071_v50 = vadd.f32 %v1915_v18, %v597_v61 }
 0x226   : > { %2135 = vst [vmem:[#allocation2 + $0x108] sm:$0xff] %v2071_v50  ;;  %v1630_v62 = vpop.f32.mrb[68].mxu0  ;;  %v2756_v4 = vpop.f32.mrb[68].mxu1 }
 0x227   : > { %v1920_v5 = vadd.f32 %v2752_v48, %v1630_v62  ;;  %v1632_v8 = vpop.f32.mrb[69].mxu0  ;;  %v1927_v9 = vpop.f32.mrb[69].mxu1  ;;  %v612_v62 = vld [vmem:[#allocation2 + $0x180] sm:$0xff] }
 0x228   : > { %v1633_v17 = vpop.f32.mrb[70].mxu0  ;;  %v2757_v22 = vpop.f32.mrb[70].mxu1  ;;  %v605_v8 = vld [vmem:[#allocation2 + $0x148] sm:$0xff] }
 0x229   : > { %v2072_v16 = vadd.f32 %v1920_v5, %v598_v42  ;;  %v1923_v14 = vadd.f32 %v2753_v26, %v1633_v17  ;;  %v1635_v46 = vpop.f32.mrb[71].mxu0  ;;  %v1930_v20 = vpop.f32.mrb[71].mxu1 }
 0x22b   : > { %2136 = vst [vmem:[#allocation2 + $0x110] sm:$0xff] %v2072_v16  ;;  %v2073_v21 = vadd.f32 %v1923_v14, %v599_v54  ;;  %v615_v54 = vld [vmem:[#allocation2 + $0x198] sm:$0xff] }
 0x22d   : > { %2137 = vst [vmem:[#allocation2 + $0x118] sm:$0xff] %v2073_v21  ;;  %v613_v21 = vld [vmem:[#allocation2 + $0x188] sm:$0xff] }
 0x22e   : > { %v1638_v25 = vpop.f32.mrb[72].mxu0  ;;  %v3693_v28 = vpop.f32.mrb[72].mxu1 }
 0x22f   : > { %v1928_v1 = vadd.f32 %v1927_v9, %v1638_v25  ;;  %v1640_v29 = vpop.f32.mrb[73].mxu0  ;;  %v1943_v2 = vpop.f32.mrb[73].mxu1 }
 0x230   : > { %v1641_v32 = vpop.f32.mrb[74].mxu0  ;;  %v3695_v60 = vpop.f32.mrb[74].mxu1 }
 0x231   : > { %v2074_v34 = vadd.f32 %v1928_v1, %v600_v24  ;;  %v1931_v33 = vadd.f32 %v1930_v20, %v1641_v32  ;;  %v1643_v36 = vpop.f32.mrb[75].mxu0  ;;  %v1946_v37 = vpop.f32.mrb[75].mxu1  ;;  %v618_v32 = vld [vmem:[#allocation2 + $0x1b0] sm:$0xff] }
 0x233   : > { %2138 = vst [vmem:[#allocation2 + $0x120] sm:$0xff] %v2074_v34  ;;  %v2075_v13 = vadd.f32 %v1931_v33, %v601_v58 }
 0x235   : > { %2139 = vst [vmem:[#allocation2 + $0x128] sm:$0xff] %v2075_v13 }
 0x236   : > { %v1646_v45 = vpop.f32.mrb[76].mxu0  ;;  %v3697_v6 = vpop.f32.mrb[76].mxu1 }
 0x237   : > { %v1936_v41 = vadd.f32 %v2756_v4, %v1646_v45  ;;  %v1648_v38 = vpop.f32.mrb[77].mxu0  ;;  %v3699_v44 = vpop.f32.mrb[77].mxu1 }
 0x238   : > { %v1649_v48 = vpop.f32.mrb[78].mxu0  ;;  %v3701_v49 = vpop.f32.mrb[78].mxu1 }
 0x239   : > { %v2076_v30 = vadd.f32 %v1936_v41, %v602_v40  ;;  %v1939_v52 = vadd.f32 %v2757_v22, %v1649_v48  ;;  %v1651_v53 = vpop.f32.mrb[79].mxu0  ;;  %v3703_v56 = vpop.f32.mrb[79].mxu1  ;;  %v607_v40 = vld [vmem:[#allocation2 + $0x158] sm:$0xff] }
 0x23a   : > { %v619_v41 = vld [vmem:[#allocation2 + $0x1b8] sm:$0xff] }
 0x23b   : > { %2140 = vst [vmem:[#allocation2 + $0x130] sm:$0xff] %v2076_v30  ;;  %v2077_v26 = vadd.f32 %v1939_v52, %v603_v12 }
 0x23d   : > { %2141 = vst [vmem:[#allocation2 + $0x138] sm:$0xff] %v2077_v26  ;;  %v617_v26 = vld [vmem:[#allocation2 + $0x1a8] sm:$0xff] }
 0x23e   : > { %v1654_v61 = vpop.f32.mrb[80].mxu0  ;;  %v2768_v0 = vpop.f32.mrb[80].mxu1 }
 0x23f   : > { %v1944_v18 = vadd.f32 %v1943_v2, %v1654_v61  ;;  %v1984_v50 = vadd.f32 %v2768_v0, %v3606_v3  ;;  %v1656_v42 = vpop.f32.mrb[81].mxu0  ;;  %v1975_v4 = vpop.f32.mrb[81].mxu1  ;;  %v606_v2 = vld [vmem:[#allocation2 + $0x150] sm:$0xff]  ;;  %v608_v0 = vld [vmem:[#allocation2 + $0x160] sm:$0xff] }
 0x240   : > { %v1976_v5 = vadd.f32 %v1975_v4, %v3600_v59  ;;  %v1657_v9 = vpop.f32.mrb[82].mxu0  ;;  %v2769_v17 = vpop.f32.mrb[82].mxu1  ;;  %v620_v4 = vld [vmem:[#allocation2 + $0x1c0] sm:$0xff] }
 0x241   : > { %v2078_v22 = vadd.f32 %v1944_v18, %v604_v57  ;;  %v2088_v16 = vadd.f32 %v1984_v50, %v614_v10  ;;  %v1947_v14 = vadd.f32 %v1946_v37, %v1657_v9  ;;  %v1987_v46 = vadd.f32 %v2769_v17, %v3610_v7  ;;  %v1659_v20 = vpop.f32.mrb[83].mxu0  ;;  %v1978_v24 = vpop.f32.mrb[83].mxu1  ;;  %v616_v37 = vld [vmem:[#allocation2 + $0x1a0] sm:$0xff] }
 0x242   : > { %v2086_v25 = vadd.f32 %v1976_v5, %v612_v62  ;;  %v1979_v3 = vadd.f32 %v1978_v24, %v3604_v63 }
 0x243   : > { %2142 = vst [vmem:[#allocation2 + $0x140] sm:$0xff] %v2078_v22  ;;  %2152 = vst [vmem:[#allocation2 + $0x190] sm:$0xff] %v2088_v16  ;;  %v2079_v1 = vadd.f32 %v1947_v14, %v605_v8  ;;  %v2089_v29 = vadd.f32 %v1987_v46, %v615_v54  ;;  %v609_v8 = vld [vmem:[#allocation2 + $0x168] sm:$0xff]  ;;  %v623_v54 = vld [vmem:[#allocation2 + $0x1d8] sm:$0xff] }
 0x244   : > { %2150 = vst [vmem:[#allocation2 + $0x180] sm:$0xff] %v2086_v25  ;;  %v2087_v59 = vadd.f32 %v1979_v3, %v613_v21  ;;  %v621_v21 = vld [vmem:[#allocation2 + $0x1c8] sm:$0xff] }
 0x245   : > { %2143 = vst [vmem:[#allocation2 + $0x148] sm:$0xff] %v2079_v1  ;;  %2153 = vst [vmem:[#allocation2 + $0x198] sm:$0xff] %v2089_v29  ;;  %v610_v1 = vld [vmem:[#allocation2 + $0x170] sm:$0xff] }
 0x246   : > { %2151 = vst [vmem:[#allocation2 + $0x188] sm:$0xff] %v2087_v59  ;;  %v1662_v58 = vpop.f32.mrb[84].mxu0  ;;  %v2772_v34 = vpop.f32.mrb[84].mxu1 }
 0x247   : > { %v1952_v7 = vadd.f32 %v3693_v28, %v1662_v58  ;;  %v2000_v33 = vadd.f32 %v2772_v34, %v3622_v19  ;;  %v1664_v36 = vpop.f32.mrb[85].mxu0  ;;  %v1991_v63 = vpop.f32.mrb[85].mxu1 }
 0x248   : > { %v1992_v13 = vadd.f32 %v1991_v63, %v3614_v11  ;;  %v1665_v45 = vpop.f32.mrb[86].mxu0  ;;  %v2773_v38 = vpop.f32.mrb[86].mxu1  ;;  %v627_v36 = vld [vmem:[#allocation2 + $0x1f8] sm:$0xff] }
 0x249   : > { %v2080_v12 = vadd.f32 %v1952_v7, %v606_v2  ;;  %v2092_v48 = vadd.f32 %v2000_v33, %v618_v32  ;;  %v1955_v30 = vadd.f32 %v3695_v60, %v1665_v45  ;;  %v2003_v52 = vadd.f32 %v2773_v38, %v3626_v23  ;;  %v1667_v53 = vpop.f32.mrb[87].mxu0  ;;  %v1994_v28 = vpop.f32.mrb[87].mxu1  ;;  %v622_v60 = vld [vmem:[#allocation2 + $0x1d0] sm:$0xff]  ;;  %v624_v32 = vld [vmem:[#allocation2 + $0x1e0] sm:$0xff]  ;;  %v611_v7 = vld [vmem:[#allocation2 + $0x178] sm:$0xff] }
 0x24a   : > { %v2090_v57 = vadd.f32 %v1992_v13, %v616_v37  ;;  %v1995_v19 = vadd.f32 %v1994_v28, %v3618_v15  ;;  %v625_v38 = vld [vmem:[#allocation2 + $0x1e8] sm:$0xff]  ;;  %v2174_v53 = vld [vmem:[#allocation2 + $0x20] sm:$0xff] (!%p2656_p11)  ;;  %v2176_v28 = vld [vmem:[#allocation2 + $0x30] sm:$0xff] (!%p2656_p11) }
 0x24b   : > { %2144 = vst [vmem:[#allocation2 + $0x150] sm:$0xff] %v2080_v12  ;;  %2156 = vst [vmem:[#allocation2 + $0x1b0] sm:$0xff] %v2092_v48  ;;  %v2081_v61 = vadd.f32 %v1955_v30, %v607_v40  ;;  %v2093_v11 = vadd.f32 %v2003_v52, %v619_v41  ;;  %v2172_v52 = vld [vmem:[#allocation2 + $0x10] sm:$0xff] (!%p2656_p11) }
 0x24c   : > { %2154 = vst [vmem:[#allocation2 + $0x1a0] sm:$0xff] %v2090_v57  ;;  %v2091_v10 = vadd.f32 %v1995_v19, %v617_v26  ;;  %2236 = vst [vmem:[%s3937_s2 + $0x10] sm:$0xff] (!%p2656_p11), %v2172_v52  ;;  %v2175_v26 = vld [vmem:[#allocation2 + $0x28] sm:$0xff] (!%p2656_p11)  ;;  %v2177_v57 = vld [vmem:[#allocation2 + $0x38] sm:$0xff] (!%p2656_p11) }
 0x24d   : > { %2145 = vst [vmem:[#allocation2 + $0x158] sm:$0xff] %v2081_v61  ;;  %2157 = vst [vmem:[#allocation2 + $0x1b8] sm:$0xff] %v2093_v11  ;;  %v2178_v19 = vld [vmem:[#allocation2 + $0x40] sm:$0xff] (!%p2656_p11)  ;;  %v2179_v61 = vld [vmem:[#allocation2 + $0x48] sm:$0xff] (!%p2656_p11) }
 0x24e   : > { %2155 = vst [vmem:[#allocation2 + $0x1a8] sm:$0xff] %v2091_v10  ;;  %v1670_v18 = vpop.f32.mrb[88].mxu0  ;;  %v2776_v50 = vpop.f32.mrb[88].mxu1  ;;  %2238 = vst [vmem:[%s3937_s2 + $0x20] sm:$0xff] (!%p2656_p11), %v2174_v53  ;;  %v2180_v11 = vld [vmem:[#allocation2 + $0x50] sm:$0xff] (!%p2656_p11)  ;;  %v2181_v10 = vld [vmem:[#allocation2 + $0x58] sm:$0xff] (!%p2656_p11) }
 0x24f   : > { %v1960_v23 = vadd.f32 %v3699_v44, %v1670_v18  ;;  %v2016_v42 = vadd.f32 %v2776_v50, %v3638_v35  ;;  %v1672_v62 = vpop.f32.mrb[89].mxu0  ;;  %v2007_v15 = vpop.f32.mrb[89].mxu1  ;;  %2239 = vst [vmem:[%s3937_s2 + $0x28] sm:$0xff] (!%p2656_p11), %v2175_v26  ;;  %2240 = vst [vmem:[%s3937_s2 + $0x30] sm:$0xff] (!%p2656_p11), %v2176_v28  ;;  %v2183_v18 = vld [vmem:[#allocation2 + $0x68] sm:$0xff] (!%p2656_p11)  ;;  %v2185_v50 = vld [vmem:[#allocation2 + $0x78] sm:$0xff] (!%p2656_p11) }
 0x250   : > { %v2008_v5 = vadd.f32 %v2007_v15, %v3630_v27  ;;  %v1673_v9 = vpop.f32.mrb[90].mxu0  ;;  %v2777_v17 = vpop.f32.mrb[90].mxu1  ;;  %2241 = vst [vmem:[%s3937_s2 + $0x38] sm:$0xff] (!%p2656_p11), %v2177_v57  ;;  %2242 = vst [vmem:[%s3937_s2 + $0x40] sm:$0xff] (!%p2656_p11), %v2178_v19  ;;  %v2188_v62 = vld [vmem:[#allocation2 + $0x90] sm:$0xff] (!%p2656_p11)  ;;  %v2190_v15 = vld [vmem:[#allocation2 + $0xa0] sm:$0xff] (!%p2656_p11) }
 0x251   : > { %v2082_v22 = vadd.f32 %v1960_v23, %v608_v0  ;;  %v2096_v16 = vadd.f32 %v2016_v42, %v622_v60  ;;  %v1963_v14 = vadd.f32 %v3703_v56, %v1673_v9  ;;  %v2019_v46 = vadd.f32 %v2777_v17, %v3642_v39  ;;  %v1675_v20 = vpop.f32.mrb[91].mxu0  ;;  %v2010_v44 = vpop.f32.mrb[91].mxu1  ;;  %v626_v56 = vld [vmem:[#allocation2 + $0x1f0] sm:$0xff]  ;;  %2243 = vst [vmem:[%s3937_s2 + $0x48] sm:$0xff] (!%p2656_p11), %v2179_v61  ;;  %v2182_v0 = vld [vmem:[#allocation2 + $0x60] sm:$0xff] (!%p2656_p11)  ;;  %v2187_v42 = vld [vmem:[#allocation2 + $0x88] sm:$0xff] (!%p2656_p11) }
 0x252   : > { %v2094_v24 = vadd.f32 %v2008_v5, %v620_v4  ;;  %v2011_v35 = vadd.f32 %v2010_v44, %v3634_v31  ;;  %2244 = vst [vmem:[%s3937_s2 + $0x50] sm:$0xff] (!%p2656_p11), %v2180_v11  ;;  %2245 = vst [vmem:[%s3937_s2 + $0x58] sm:$0xff] (!%p2656_p11), %v2181_v10  ;;  %v2184_v60 = vld [vmem:[#allocation2 + $0x70] sm:$0xff] (!%p2656_p11)  ;;  %v2186_v23 = vld [vmem:[#allocation2 + $0x80] sm:$0xff] (!%p2656_p11) }
 0x253   : > { %2146 = vst [vmem:[#allocation2 + $0x160] sm:$0xff] %v2082_v22  ;;  %2160 = vst [vmem:[#allocation2 + $0x1d0] sm:$0xff] %v2096_v16  ;;  %v2083_v25 = vadd.f32 %v1963_v14, %v609_v8  ;;  %v2097_v27 = vadd.f32 %v2019_v46, %v623_v54  ;;  %v2189_v4 = vld [vmem:[#allocation2 + $0x98] sm:$0xff] (!%p2656_p11)  ;;  %v2191_v5 = vld [vmem:[#allocation2 + $0xa8] sm:$0xff] (!%p2656_p11) }
 0x254   : > { %2158 = vst [vmem:[#allocation2 + $0x1c0] sm:$0xff] %v2094_v24  ;;  %v2095_v3 = vadd.f32 %v2011_v35, %v621_v21  ;;  %2246 = vst [vmem:[%s3937_s2 + $0x60] sm:$0xff] (!%p2656_p11), %v2182_v0  ;;  %v2192_v8 = vld [vmem:[#allocation2 + $0xb0] sm:$0xff] (!%p2656_p11)  ;;  %v2193_v9 = vld [vmem:[#allocation2 + $0xb8] sm:$0xff] (!%p2656_p11) }
 0x255   : > { %2147 = vst [vmem:[#allocation2 + $0x168] sm:$0xff] %v2083_v25  ;;  %2161 = vst [vmem:[#allocation2 + $0x1d8] sm:$0xff] %v2097_v27  ;;  %v2194_v54 = vld [vmem:[#allocation2 + $0xc0] sm:$0xff] (!%p2656_p11)  ;;  %v2195_v17 = vld [vmem:[#allocation2 + $0xc8] sm:$0xff] (!%p2656_p11) }
 0x256   : > { %2159 = vst [vmem:[#allocation2 + $0x1c8] sm:$0xff] %v2095_v3  ;;  %v1678_v29 = vpop.f32.mrb[92].mxu0  ;;  %v2780_v59 = vpop.f32.mrb[92].mxu1  ;;  %2247 = vst [vmem:[%s3937_s2 + $0x68] sm:$0xff] (!%p2656_p11), %v2183_v18  ;;  %v2196_v22 = vld [vmem:[#allocation2 + $0xd0] sm:$0xff] (!%p2656_p11)  ;;  %v2197_v16 = vld [vmem:[#allocation2 + $0xd8] sm:$0xff] (!%p2656_p11) }
 0x257   : > { %v1968_v39 = vadd.f32 %v3697_v6, %v1678_v29  ;;  %v2032_v2 = vadd.f32 %v2780_v59, %v3654_v51  ;;  %v1680_v58 = vpop.f32.mrb[93].mxu0  ;;  %v2023_v31 = vpop.f32.mrb[93].mxu1  ;;  %2248 = vst [vmem:[%s3937_s2 + $0x70] sm:$0xff] (!%p2656_p11), %v2184_v60  ;;  %2249 = vst [vmem:[%s3937_s2 + $0x78] sm:$0xff] (!%p2656_p11), %v2185_v50  ;;  %v2198_v14 = vld [vmem:[#allocation2 + $0xe0] sm:$0xff] (!%p2656_p11)  ;;  %v2199_v46 = vld [vmem:[#allocation2 + $0xe8] sm:$0xff] (!%p2656_p11) }
 0x258   : > { %v2024_v34 = vadd.f32 %v2023_v31, %v3646_v43  ;;  %v1681_v33 = vpop.f32.mrb[94].mxu0  ;;  %v2781_v37 = vpop.f32.mrb[94].mxu1  ;;  %2169 = sbr.rel (%p2656_p11) target bundleno = 629 (0x275), region = 62  ;;  %2250 = vst [vmem:[%s3937_s2 + $0x80] sm:$0xff] (!%p2656_p11), %v2186_v23  ;;  %2251 = vst [vmem:[%s3937_s2 + $0x88] sm:$0xff] (!%p2656_p11), %v2187_v42  ;;  %v2200_v20 = vld [vmem:[#allocation2 + $0xf0] sm:$0xff] (!%p2656_p11) }
 0x259   : > { %v2084_v63 = vadd.f32 %v1968_v39, %v610_v1  ;;  %v2100_v13 = vadd.f32 %v2032_v2, %v626_v56  ;;  %v1971_v40 = vadd.f32 %v3701_v49, %v1681_v33  ;;  %v2035_v45 = vadd.f32 %v2781_v37, %v3658_v55  ;;  %v1683_v41 = vpop.f32.mrb[95].mxu0  ;;  %v2026_v6 = vpop.f32.mrb[95].mxu1  ;;  %v2170_v49 = vld [vmem:[#allocation2] sm:$0xff] (!%p2656_p11)  ;;  %v2171_v55 = vld [vmem:[#allocation2 + $0x8] sm:$0xff] (!%p2656_p11)  ;;  %2252 = vst [vmem:[%s3937_s2 + $0x90] sm:$0xff] (!%p2656_p11), %v2188_v62  ;;  %v2201_v21 = vld [vmem:[#allocation2 + $0xf8] sm:$0xff] (!%p2656_p11) }
 0x25a   : > { %v2098_v12 = vadd.f32 %v2024_v34, %v624_v32  ;;  %v2027_v51 = vadd.f32 %v2026_v6, %v3650_v47  ;;  %2234 = vst [vmem:[%s3937_s2] sm:$0xff] (!%p2656_p11), %v2170_v49  ;;  %2235 = vst [vmem:[%s3937_s2 + $0x8] sm:$0xff] (!%p2656_p11), %v2171_v55  ;;  %v2173_v47 = vld [vmem:[#allocation2 + $0x18] sm:$0xff] (!%p2656_p11)  ;;  %v2202_v44 = vld [vmem:[#allocation2 + $0x100] sm:$0xff] (!%p2656_p11) }
 0x25b   : > { %2148 = vst [vmem:[#allocation2 + $0x170] sm:$0xff] %v2084_v63  ;;  %2164 = vst [vmem:[#allocation2 + $0x1f0] sm:$0xff] %v2100_v13  ;;  %v2085_v48 = vadd.f32 %v1971_v40, %v611_v7  ;;  %v2101_v43 = vadd.f32 %v2035_v45, %v627_v36  ;;  %v2203_v24 = vld [vmem:[#allocation2 + $0x108] sm:$0xff] (!%p2656_p11)  ;;  %v2204_v35 = vld [vmem:[#allocation2 + $0x110] sm:$0xff] (!%p2656_p11) }
 0x25c   : > { %2162 = vst [vmem:[#allocation2 + $0x1e0] sm:$0xff] %v2098_v12  ;;  %v2099_v30 = vadd.f32 %v2027_v51, %v625_v38  ;;  %2237 = vst [vmem:[%s3937_s2 + $0x18] sm:$0xff] (!%p2656_p11), %v2173_v47  ;;  %v2205_v25 = vld [vmem:[#allocation2 + $0x118] sm:$0xff] (!%p2656_p11)  ;;  %v2206_v27 = vld [vmem:[#allocation2 + $0x120] sm:$0xff] (!%p2656_p11) }
 0x25d   : > { %2149 = vst [vmem:[#allocation2 + $0x178] sm:$0xff] %v2085_v48  ;;  %2165 = vst [vmem:[#allocation2 + $0x1f8] sm:$0xff] %v2101_v43  ;;  %v2207_v3 = vld [vmem:[#allocation2 + $0x128] sm:$0xff] (!%p2656_p11)  ;;  %v2208_v1 = vld [vmem:[#allocation2 + $0x130] sm:$0xff] (!%p2656_p11) }
 0x25e   : > { %2163 = vst [vmem:[#allocation2 + $0x1e8] sm:$0xff] %v2099_v30  ;;  %2253 = vst [vmem:[%s3937_s2 + $0x98] sm:$0xff] (!%p2656_p11), %v2189_v4  ;;  %v2209_v29 = vld [vmem:[#allocation2 + $0x138] sm:$0xff] (!%p2656_p11)  ;;  %v2210_v56 = vld [vmem:[#allocation2 + $0x140] sm:$0xff] (!%p2656_p11) }
 0x25f   : > { %2254 = vst [vmem:[%s3937_s2 + $0xa0] sm:$0xff] %v2190_v15  ;;  %2255 = vst [vmem:[%s3937_s2 + $0xa8] sm:$0xff] %v2191_v5  ;;  %v2211_v59 = vld [vmem:[#allocation2 + $0x148] sm:$0xff]  ;;  %v2212_v39 = vld [vmem:[#allocation2 + $0x150] sm:$0xff] }
 0x260   : > { %2256 = vst [vmem:[%s3937_s2 + $0xb0] sm:$0xff] %v2192_v8  ;;  %2257 = vst [vmem:[%s3937_s2 + $0xb8] sm:$0xff] %v2193_v9  ;;  %v2213_v2 = vld [vmem:[#allocation2 + $0x158] sm:$0xff]  ;;  %v2214_v58 = vld [vmem:[#allocation2 + $0x160] sm:$0xff] }
 0x261   : > { %2258 = vst [vmem:[%s3937_s2 + $0xc0] sm:$0xff] %v2194_v54  ;;  %2259 = vst [vmem:[%s3937_s2 + $0xc8] sm:$0xff] %v2195_v17  ;;  %v2215_v32 = vld [vmem:[#allocation2 + $0x168] sm:$0xff]  ;;  %v2218_v7 = vld [vmem:[#allocation2 + $0x180] sm:$0xff] }
 0x262   : > { %2260 = vst [vmem:[%s3937_s2 + $0xd0] sm:$0xff] %v2196_v22  ;;  %2261 = vst [vmem:[%s3937_s2 + $0xd8] sm:$0xff] %v2197_v16  ;;  %v2216_v31 = vld [vmem:[#allocation2 + $0x170] sm:$0xff]  ;;  %v2219_v33 = vld [vmem:[#allocation2 + $0x188] sm:$0xff] }
 0x263   : > { %2262 = vst [vmem:[%s3937_s2 + $0xe0] sm:$0xff] %v2198_v14  ;;  %2263 = vst [vmem:[%s3937_s2 + $0xe8] sm:$0xff] %v2199_v46  ;;  %v2220_v36 = vld [vmem:[#allocation2 + $0x190] sm:$0xff]  ;;  %v2221_v37 = vld [vmem:[#allocation2 + $0x198] sm:$0xff] }
 0x264   : > { %2264 = vst [vmem:[%s3937_s2 + $0xf0] sm:$0xff] %v2200_v20  ;;  %2265 = vst [vmem:[%s3937_s2 + $0xf8] sm:$0xff] %v2201_v21  ;;  %v2217_v34 = vld [vmem:[#allocation2 + $0x178] sm:$0xff]  ;;  %v2222_v63 = vld [vmem:[#allocation2 + $0x1a0] sm:$0xff] }
 0x265   : > { %2266 = vst [vmem:[%s3937_s2 + $0x100] sm:$0xff] %v2202_v44  ;;  %2267 = vst [vmem:[%s3937_s2 + $0x108] sm:$0xff] %v2203_v24  ;;  %v2223_v13 = vld [vmem:[#allocation2 + $0x1a8] sm:$0xff]  ;;  %v2224_v40 = vld [vmem:[#allocation2 + $0x1b0] sm:$0xff] }
 0x266   : > { %2268 = vst [vmem:[%s3937_s2 + $0x110] sm:$0xff] %v2204_v35  ;;  %2269 = vst [vmem:[%s3937_s2 + $0x118] sm:$0xff] %v2205_v25  ;;  %v2225_v45 = vld [vmem:[#allocation2 + $0x1b8] sm:$0xff]  ;;  %v2226_v41 = vld [vmem:[#allocation2 + $0x1c0] sm:$0xff] }
 0x267   : > { %2270 = vst [vmem:[%s3937_s2 + $0x120] sm:$0xff] %v2206_v27  ;;  %2271 = vst [vmem:[%s3937_s2 + $0x128] sm:$0xff] %v2207_v3  ;;  %v2227_v38 = vld [vmem:[#allocation2 + $0x1c8] sm:$0xff]  ;;  %v2228_v6 = vld [vmem:[#allocation2 + $0x1d0] sm:$0xff] }
 0x268   : > { %2272 = vst [vmem:[%s3937_s2 + $0x130] sm:$0xff] %v2208_v1  ;;  %2273 = vst [vmem:[%s3937_s2 + $0x138] sm:$0xff] %v2209_v29  ;;  %v2229_v12 = vld [vmem:[#allocation2 + $0x1d8] sm:$0xff]  ;;  %v2230_v51 = vld [vmem:[#allocation2 + $0x1e0] sm:$0xff] }
 0x269   : > { %2274 = vst [vmem:[%s3937_s2 + $0x140] sm:$0xff] %v2210_v56  ;;  %2275 = vst [vmem:[%s3937_s2 + $0x148] sm:$0xff] %v2211_v59  ;;  %v2231_v48 = vld [vmem:[#allocation2 + $0x1e8] sm:$0xff]  ;;  %v2232_v43 = vld [vmem:[#allocation2 + $0x1f0] sm:$0xff] }
 0x26a   : > { %2276 = vst [vmem:[%s3937_s2 + $0x150] sm:$0xff] %v2212_v39  ;;  %2277 = vst [vmem:[%s3937_s2 + $0x158] sm:$0xff] %v2213_v2  ;;  %v2233_v30 = vld [vmem:[#allocation2 + $0x1f8] sm:$0xff] }
 0x26b   : > { %2278 = vst [vmem:[%s3937_s2 + $0x160] sm:$0xff] %v2214_v58  ;;  %2279 = vst [vmem:[%s3937_s2 + $0x168] sm:$0xff] %v2215_v32 }
 0x26c   : > { %2280 = vst [vmem:[%s3937_s2 + $0x170] sm:$0xff] %v2216_v31  ;;  %2281 = vst [vmem:[%s3937_s2 + $0x178] sm:$0xff] %v2217_v34 }
 0x26d   : > { %2282 = vst [vmem:[%s3937_s2 + $0x180] sm:$0xff] %v2218_v7  ;;  %2283 = vst [vmem:[%s3937_s2 + $0x188] sm:$0xff] %v2219_v33 }
 0x26e   : > { %2284 = vst [vmem:[%s3937_s2 + $0x190] sm:$0xff] %v2220_v36  ;;  %2285 = vst [vmem:[%s3937_s2 + $0x198] sm:$0xff] %v2221_v37 }
 0x26f   : > { %2286 = vst [vmem:[%s3937_s2 + $0x1a0] sm:$0xff] %v2222_v63  ;;  %2287 = vst [vmem:[%s3937_s2 + $0x1a8] sm:$0xff] %v2223_v13 }
 0x270   : > { %2288 = vst [vmem:[%s3937_s2 + $0x1b0] sm:$0xff] %v2224_v40  ;;  %2289 = vst [vmem:[%s3937_s2 + $0x1b8] sm:$0xff] %v2225_v45 }
 0x271   : > { %2290 = vst [vmem:[%s3937_s2 + $0x1c0] sm:$0xff] %v2226_v41  ;;  %2291 = vst [vmem:[%s3937_s2 + $0x1c8] sm:$0xff] %v2227_v38 }
 0x272   : > { %2292 = vst [vmem:[%s3937_s2 + $0x1d0] sm:$0xff] %v2228_v6  ;;  %2293 = vst [vmem:[%s3937_s2 + $0x1d8] sm:$0xff] %v2229_v12 }
 0x273   : > { %2294 = vst [vmem:[%s3937_s2 + $0x1e0] sm:$0xff] %v2230_v51  ;;  %2295 = vst [vmem:[%s3937_s2 + $0x1e8] sm:$0xff] %v2231_v48 }
 0x274   : > { %2296 = vst [vmem:[%s3937_s2 + $0x1f0] sm:$0xff] %v2232_v43  ;;  %2297 = vst [vmem:[%s3937_s2 + $0x1f8] sm:$0xff] %v2233_v30 }
 0x275 PF: > { %s12_s13 = sadd.s32 1, %s3048_s13   ;;  %s3938_s9 = smov %s3036_s10 }
 0x276   : > { %p9_p12 = scmp.ge.s32.totalorder %s12_s13, 5   ;;  %s3939_s10 = smov %s3102_s17 }
 0x277   : > { %s3940_s11 = smov %s3044_s12  ;;  %s3941_s12 = smov %s3943_s14 }
 0x278   :  { %11 = sbr.rel (!%p9_p12) target bundleno = 3 (0x3), region = 106 }

// kernel: generator_forward.137
= control target key start
LH: loop header
LB: loop body
LE: loop exit
PB: predicated region body
PF: predicated region fallthrough
CT: control target
= control target key end

     0   :  { %s2063_s12 = smov 0   ;;  %s2065_s13 = smov 0   ;;  %s2631_s0 = inlined_call_operand.vmem [shape: bf16[512,6272], index: 0, kind: input, shape index: {}]   ;;  %s2632_s1 = inlined_call_operand.vmem [shape: bf16[6272,128], index: 1, kind: input, shape index: {}]   ;;  %s2633_s2 = inlined_call_operand.vmem [shape: f32[1,128], index: 2, kind: input, shape index: {}]   ;;  %s2634_s3 = inlined_call_operand.vmem [shape: f32[512,128], index: 3, kind: output, shape index: {}]  }
   0x1   :  { %s2067_s14 = smov 0   ;;  %s2069_s15 = smov 0  }
   0x2   :  { %s2071_s16 = smov 0  }
   0x3 LB: > { %s25_s17 = sadd.s32 1, %s2036_s15  ;;  %p48_p1 = scmp.ne.s32.totalorder %s2028_s13, %s2024_s12  ;;  %s2040_s16 = sphi %s2071_s16, %s13_s16   ;;  %s2036_s15 = sphi %s2069_s15, %s2638_s15   ;;  %s2032_s14 = sphi %s2067_s14, %s2637_s14   ;;  %s2028_s13 = sphi %s2065_s13, %s2636_s13   ;;  %s2024_s12 = sphi %s2063_s12, %s2635_s12  }
   0x4   : > { %p26_p0 = scmp.ge.s32.totalorder %s25_s17, 49  ;;  %p49_p2 = scmp.eq.s32.totalorder %s2040_s16, 0 }
   0x5   : > { %s41_s19 = sadd.s32 1, %s2028_s13  ;;  %p1731_p5 = scmp.ge.s32.totalorder %s2040_s16, 49 }
   0x6   : > { %s2640_s17 = smov (%p26_p0, %s25_s17), 0  ;;  %p50_p3 = por %p49_p2, %p48_p1 }
   0x7   : > { %s37_s18 = ssub.s32 %s2036_s15, %s2640_s17  ;;  %162 = sbr.rel (%p1731_p5) target bundleno = 60 (0x3c), region = 20 }
   0x8   : > { %p39_p4 = scmp.eq.s32.totalorder %s37_s18, 0 }
   0xa   : > { %s2098_s20 = scalar_select %p39_p4, %s2028_s13, %s41_s19  }
   0xe   : > { %165 = sbr.rel (!%p50_p3) target bundleno = 60 (0x3c), region = 24  ;;  %s167_s21 = sand.u32 (%p50_p3), 1, %s2028_s13  }
   0xf   : > { %s1733_s22 = sshll.u32 (%p50_p3), %s2036_s15, 2  ;;  %s1732_s23 = sshll.u32 (%p50_p3), %s167_s21, 8 }
  0x10   : > { %s2106_s26 = scalar_lea.vmem (%p50_p3), %s2631_s0, %s1733_s22  ;;  %s2110_s27 = scalar_lea.vmem (%p50_p3), [#allocation3], %s1732_s23 }
  0x11   : > { %v190_v0 = vld [vmem:[%s2106_s26] sm:$0xf] (%p50_p3)  ;;  %v192_v1 = vld [vmem:[%s2106_s26 + $0xc4] sm:$0xf] (%p50_p3)  ;;  %v194_v2 = vld [vmem:[%s2106_s26 + $0x188] sm:$0xf] (%p50_p3) }
  0x12   : > { %191 = vst [vmem:[%s2110_s27] sm:$0xf] (%p50_p3), %v190_v0  ;;  %193 = vst [vmem:[%s2110_s27 + $0x4] sm:$0xf] (%p50_p3), %v192_v1  ;;  %v196_v3 = vld [vmem:[%s2106_s26 + $0x24c] sm:$0xf] (%p50_p3) }
  0x13   : > { %v198_v4 = vld [vmem:[%s2106_s26 + $0x310] sm:$0xf] (%p50_p3)  ;;  %195 = vst [vmem:[%s2110_s27 + $0x8] sm:$0xf] (%p50_p3), %v194_v2  ;;  %197 = vst [vmem:[%s2110_s27 + $0xc] sm:$0xf] (%p50_p3), %v196_v3 }
  0x14   : > { %199 = vst [vmem:[%s2110_s27 + $0x10] sm:$0xf] (%p50_p3), %v198_v4  ;;  %v200_v5 = vld [vmem:[%s2106_s26 + $0x3d4] sm:$0xf] (%p50_p3)  ;;  %v202_v6 = vld [vmem:[%s2106_s26 + $0x498] sm:$0xf] (%p50_p3) }
  0x15   : > { %v204_v7 = vld [vmem:[%s2106_s26 + $0x55c] sm:$0xf]  ;;  %201 = vst [vmem:[%s2110_s27 + $0x14] sm:$0xf] %v200_v5  ;;  %203 = vst [vmem:[%s2110_s27 + $0x18] sm:$0xf] %v202_v6 }
  0x16   : > { %205 = vst [vmem:[%s2110_s27 + $0x1c] sm:$0xf] %v204_v7  ;;  %v206_v8 = vld [vmem:[%s2106_s26 + $0x620] sm:$0xf]  ;;  %v208_v9 = vld [vmem:[%s2106_s26 + $0x6e4] sm:$0xf] }
  0x17   : > { %v210_v10 = vld [vmem:[%s2106_s26 + $0x7a8] sm:$0xf]  ;;  %207 = vst [vmem:[%s2110_s27 + $0x20] sm:$0xf] %v206_v8  ;;  %209 = vst [vmem:[%s2110_s27 + $0x24] sm:$0xf] %v208_v9 }
  0x18   : > { %211 = vst [vmem:[%s2110_s27 + $0x28] sm:$0xf] %v210_v10  ;;  %v212_v11 = vld [vmem:[%s2106_s26 + $0x86c] sm:$0xf]  ;;  %v214_v12 = vld [vmem:[%s2106_s26 + $0x930] sm:$0xf] }
  0x19   : > { %v216_v13 = vld [vmem:[%s2106_s26 + $0x9f4] sm:$0xf]  ;;  %213 = vst [vmem:[%s2110_s27 + $0x2c] sm:$0xf] %v212_v11  ;;  %215 = vst [vmem:[%s2110_s27 + $0x30] sm:$0xf] %v214_v12 }
  0x1a   : > { %217 = vst [vmem:[%s2110_s27 + $0x34] sm:$0xf] %v216_v13  ;;  %v218_v14 = vld [vmem:[%s2106_s26 + $0xab8] sm:$0xf]  ;;  %v220_v15 = vld [vmem:[%s2106_s26 + $0xb7c] sm:$0xf] }
  0x1b   : > { %v222_v16 = vld [vmem:[%s2106_s26 + $0xc40] sm:$0xf]  ;;  %219 = vst [vmem:[%s2110_s27 + $0x38] sm:$0xf] %v218_v14  ;;  %221 = vst [vmem:[%s2110_s27 + $0x3c] sm:$0xf] %v220_v15 }
  0x1c   : > { %223 = vst [vmem:[%s2110_s27 + $0x40] sm:$0xf] %v222_v16  ;;  %v224_v17 = vld [vmem:[%s2106_s26 + $0xd04] sm:$0xf]  ;;  %v226_v18 = vld [vmem:[%s2106_s26 + $0xdc8] sm:$0xf] }
  0x1d   : > { %v228_v19 = vld [vmem:[%s2106_s26 + $0xe8c] sm:$0xf]  ;;  %225 = vst [vmem:[%s2110_s27 + $0x44] sm:$0xf] %v224_v17  ;;  %227 = vst [vmem:[%s2110_s27 + $0x48] sm:$0xf] %v226_v18 }
  0x1e   : > { %229 = vst [vmem:[%s2110_s27 + $0x4c] sm:$0xf] %v228_v19  ;;  %v230_v20 = vld [vmem:[%s2106_s26 + $0xf50] sm:$0xf]  ;;  %v232_v21 = vld [vmem:[%s2106_s26 + $0x1014] sm:$0xf] }
  0x1f   : > { %v234_v22 = vld [vmem:[%s2106_s26 + $0x10d8] sm:$0xf]  ;;  %231 = vst [vmem:[%s2110_s27 + $0x50] sm:$0xf] %v230_v20  ;;  %233 = vst [vmem:[%s2110_s27 + $0x54] sm:$0xf] %v232_v21 }
  0x20   : > { %235 = vst [vmem:[%s2110_s27 + $0x58] sm:$0xf] %v234_v22  ;;  %v236_v23 = vld [vmem:[%s2106_s26 + $0x119c] sm:$0xf]  ;;  %v238_v24 = vld [vmem:[%s2106_s26 + $0x1260] sm:$0xf] }
  0x21   : > { %v240_v25 = vld [vmem:[%s2106_s26 + $0x1324] sm:$0xf]  ;;  %237 = vst [vmem:[%s2110_s27 + $0x5c] sm:$0xf] %v236_v23  ;;  %239 = vst [vmem:[%s2110_s27 + $0x60] sm:$0xf] %v238_v24 }
  0x22   : > { %241 = vst [vmem:[%s2110_s27 + $0x64] sm:$0xf] %v240_v25  ;;  %v242_v26 = vld [vmem:[%s2106_s26 + $0x13e8] sm:$0xf]  ;;  %v244_v27 = vld [vmem:[%s2106_s26 + $0x14ac] sm:$0xf] }
  0x23   : > { %v246_v28 = vld [vmem:[%s2106_s26 + $0x1570] sm:$0xf]  ;;  %243 = vst [vmem:[%s2110_s27 + $0x68] sm:$0xf] %v242_v26  ;;  %245 = vst [vmem:[%s2110_s27 + $0x6c] sm:$0xf] %v244_v27 }
  0x24   : > { %247 = vst [vmem:[%s2110_s27 + $0x70] sm:$0xf] %v246_v28  ;;  %v248_v29 = vld [vmem:[%s2106_s26 + $0x1634] sm:$0xf]  ;;  %v250_v30 = vld [vmem:[%s2106_s26 + $0x16f8] sm:$0xf] }
  0x25   : > { %v252_v31 = vld [vmem:[%s2106_s26 + $0x17bc] sm:$0xf]  ;;  %249 = vst [vmem:[%s2110_s27 + $0x74] sm:$0xf] %v248_v29  ;;  %251 = vst [vmem:[%s2110_s27 + $0x78] sm:$0xf] %v250_v30 }
  0x26   : > { %253 = vst [vmem:[%s2110_s27 + $0x7c] sm:$0xf] %v252_v31  ;;  %v254_v32 = vld [vmem:[%s2106_s26 + $0x1880] sm:$0xf]  ;;  %v256_v33 = vld [vmem:[%s2106_s26 + $0x1944] sm:$0xf] }
  0x27   : > { %v258_v34 = vld [vmem:[%s2106_s26 + $0x1a08] sm:$0xf]  ;;  %255 = vst [vmem:[%s2110_s27 + $0x80] sm:$0xf] %v254_v32  ;;  %257 = vst [vmem:[%s2110_s27 + $0x84] sm:$0xf] %v256_v33 }
  0x28   : > { %259 = vst [vmem:[%s2110_s27 + $0x88] sm:$0xf] %v258_v34  ;;  %v260_v35 = vld [vmem:[%s2106_s26 + $0x1acc] sm:$0xf]  ;;  %v262_v36 = vld [vmem:[%s2106_s26 + $0x1b90] sm:$0xf] }
  0x29   : > { %v264_v37 = vld [vmem:[%s2106_s26 + $0x1c54] sm:$0xf]  ;;  %261 = vst [vmem:[%s2110_s27 + $0x8c] sm:$0xf] %v260_v35  ;;  %263 = vst [vmem:[%s2110_s27 + $0x90] sm:$0xf] %v262_v36 }
  0x2a   : > { %265 = vst [vmem:[%s2110_s27 + $0x94] sm:$0xf] %v264_v37  ;;  %v266_v38 = vld [vmem:[%s2106_s26 + $0x1d18] sm:$0xf]  ;;  %v268_v39 = vld [vmem:[%s2106_s26 + $0x1ddc] sm:$0xf] }
  0x2b   : > { %v270_v40 = vld [vmem:[%s2106_s26 + $0x1ea0] sm:$0xf]  ;;  %267 = vst [vmem:[%s2110_s27 + $0x98] sm:$0xf] %v266_v38  ;;  %269 = vst [vmem:[%s2110_s27 + $0x9c] sm:$0xf] %v268_v39 }
  0x2c   : > { %271 = vst [vmem:[%s2110_s27 + $0xa0] sm:$0xf] %v270_v40  ;;  %v272_v41 = vld [vmem:[%s2106_s26 + $0x1f64] sm:$0xf]  ;;  %v274_v42 = vld [vmem:[%s2106_s26 + $0x2028] sm:$0xf] }
  0x2d   : > { %v276_v43 = vld [vmem:[%s2106_s26 + $0x20ec] sm:$0xf]  ;;  %273 = vst [vmem:[%s2110_s27 + $0xa4] sm:$0xf] %v272_v41  ;;  %275 = vst [vmem:[%s2110_s27 + $0xa8] sm:$0xf] %v274_v42 }
  0x2e   : > { %277 = vst [vmem:[%s2110_s27 + $0xac] sm:$0xf] %v276_v43  ;;  %v278_v44 = vld [vmem:[%s2106_s26 + $0x21b0] sm:$0xf]  ;;  %v280_v45 = vld [vmem:[%s2106_s26 + $0x2274] sm:$0xf] }
  0x2f   : > { %v282_v46 = vld [vmem:[%s2106_s26 + $0x2338] sm:$0xf]  ;;  %279 = vst [vmem:[%s2110_s27 + $0xb0] sm:$0xf] %v278_v44  ;;  %281 = vst [vmem:[%s2110_s27 + $0xb4] sm:$0xf] %v280_v45 }
  0x30   : > { %283 = vst [vmem:[%s2110_s27 + $0xb8] sm:$0xf] %v282_v46  ;;  %v284_v47 = vld [vmem:[%s2106_s26 + $0x23fc] sm:$0xf]  ;;  %v286_v48 = vld [vmem:[%s2106_s26 + $0x24c0] sm:$0xf] }
  0x31   : > { %v288_v49 = vld [vmem:[%s2106_s26 + $0x2584] sm:$0xf]  ;;  %285 = vst [vmem:[%s2110_s27 + $0xbc] sm:$0xf] %v284_v47  ;;  %287 = vst [vmem:[%s2110_s27 + $0xc0] sm:$0xf] %v286_v48 }
  0x32   : > { %289 = vst [vmem:[%s2110_s27 + $0xc4] sm:$0xf] %v288_v49  ;;  %v290_v50 = vld [vmem:[%s2106_s26 + $0x2648] sm:$0xf]  ;;  %v292_v51 = vld [vmem:[%s2106_s26 + $0x270c] sm:$0xf] }
  0x33   : > { %v294_v52 = vld [vmem:[%s2106_s26 + $0x27d0] sm:$0xf]  ;;  %291 = vst [vmem:[%s2110_s27 + $0xc8] sm:$0xf] %v290_v50  ;;  %293 = vst [vmem:[%s2110_s27 + $0xcc] sm:$0xf] %v292_v51 }
  0x34   : > { %295 = vst [vmem:[%s2110_s27 + $0xd0] sm:$0xf] %v294_v52  ;;  %v296_v53 = vld [vmem:[%s2106_s26 + $0x2894] sm:$0xf]  ;;  %v298_v54 = vld [vmem:[%s2106_s26 + $0x2958] sm:$0xf] }
  0x35   : > { %v300_v55 = vld [vmem:[%s2106_s26 + $0x2a1c] sm:$0xf]  ;;  %297 = vst [vmem:[%s2110_s27 + $0xd4] sm:$0xf] %v296_v53  ;;  %299 = vst [vmem:[%s2110_s27 + $0xd8] sm:$0xf] %v298_v54 }
  0x36   : > { %301 = vst [vmem:[%s2110_s27 + $0xdc] sm:$0xf] %v300_v55  ;;  %v302_v56 = vld [vmem:[%s2106_s26 + $0x2ae0] sm:$0xf]  ;;  %v304_v57 = vld [vmem:[%s2106_s26 + $0x2ba4] sm:$0xf] }
  0x37   : > { %v306_v58 = vld [vmem:[%s2106_s26 + $0x2c68] sm:$0xf]  ;;  %303 = vst [vmem:[%s2110_s27 + $0xe0] sm:$0xf] %v302_v56  ;;  %305 = vst [vmem:[%s2110_s27 + $0xe4] sm:$0xf] %v304_v57 }
  0x38   : > { %307 = vst [vmem:[%s2110_s27 + $0xe8] sm:$0xf] %v306_v58  ;;  %v308_v59 = vld [vmem:[%s2106_s26 + $0x2d2c] sm:$0xf]  ;;  %v310_v60 = vld [vmem:[%s2106_s26 + $0x2df0] sm:$0xf] }
  0x39   : > { %v312_v61 = vld [vmem:[%s2106_s26 + $0x2eb4] sm:$0xf]  ;;  %309 = vst [vmem:[%s2110_s27 + $0xec] sm:$0xf] %v308_v59  ;;  %311 = vst [vmem:[%s2110_s27 + $0xf0] sm:$0xf] %v310_v60 }
  0x3a   : > { %313 = vst [vmem:[%s2110_s27 + $0xf4] sm:$0xf] %v312_v61  ;;  %v314_v62 = vld [vmem:[%s2106_s26 + $0x2f78] sm:$0xf]  ;;  %v316_v63 = vld [vmem:[%s2106_s26 + $0x303c] sm:$0xf] }
  0x3b   : > { %315 = vst [vmem:[%s2110_s27 + $0xf8] sm:$0xf] %v314_v62  ;;  %317 = vst [vmem:[%s2110_s27 + $0xfc] sm:$0xf] %v316_v63 }
  0x3c PF: > { %p1734_p6 = scmp.ge.s32.totalorder %s2040_s16, 1  ;;  %p479_p7 = scmp.lt.s32.totalorder %s2040_s16, 50 }
  0x3e   : > { %p480_p8 = pnand %p1734_p6, %p479_p7 }
  0x3f   : > { %s486_s28 = sand.u32 (!%p480_p8), 1, %s2024_s12   ;;  %s1736_s29 = sshll.u32 (!%p480_p8), %s2032_s14, 4 }
  0x40   : > { %483 = sbr.rel (%p480_p8) target bundleno = 437 (0x1b5), region = 69  ;;  %s1735_s30 = sshll.u32 (!%p480_p8), %s486_s28, 8 }
  0x41   : > { %p525_p9 = scmp.lt.s32.totalorder (!%p480_p8), %s1736_s29, 783  ;;  %s2247_s8 = scalar_lea.vmem (!%p480_p8), [#allocation3], %s1735_s30 }
  0x42   : > { %p1738_p10 = scmp.ne.s32.totalorder (!%p480_p8), %s2032_s14, 0 }
  0x47   : > { %s2642_s29 = smov (!%p525_p9, %s1736_s29), 783  ;;  %549 = sbr.rel (%p1738_p10) target bundleno = 105 (0x69), region = 77 }
  0x48   : > { %s1737_s4 = sshll.u32 %s2642_s29, 2  ;;  %v2042_v0 = vmov (!%p1738_p10), 0.0  }
  0x49   : > { %s2245_s7 = scalar_lea.vmem %s2632_s1, %s1737_s4  ;;  %550 = vst [vmem:[#allocation2] sm:$0xff] (!%p1738_p10), %v2042_v0  ;;  %551 = vst [vmem:[#allocation2 + $0x8] sm:$0xff] (!%p1738_p10), %v2042_v0 }
  0x4a   : > { %552 = vst [vmem:[#allocation2 + $0x10] sm:$0xff] (!%p1738_p10), %v2042_v0  ;;  %553 = vst [vmem:[#allocation2 + $0x18] sm:$0xff] (!%p1738_p10), %v2042_v0 }
  0x4b   : > { %554 = vst [vmem:[#allocation2 + $0x20] sm:$0xff] (!%p1738_p10), %v2042_v0  ;;  %555 = vst [vmem:[#allocation2 + $0x28] sm:$0xff] (!%p1738_p10), %v2042_v0 }
  0x4c   : > { %556 = vst [vmem:[#allocation2 + $0x30] sm:$0xff] (!%p1738_p10), %v2042_v0  ;;  %557 = vst [vmem:[#allocation2 + $0x38] sm:$0xff] (!%p1738_p10), %v2042_v0 }
  0x4d   : > { %558 = vst [vmem:[#allocation2 + $0x40] sm:$0xff] (!%p1738_p10), %v2042_v0  ;;  %559 = vst [vmem:[#allocation2 + $0x48] sm:$0xff] (!%p1738_p10), %v2042_v0 }
  0x4e   : > { %560 = vst [vmem:[#allocation2 + $0x50] sm:$0xff] %v2042_v0  ;;  %561 = vst [vmem:[#allocation2 + $0x58] sm:$0xff] %v2042_v0 }
  0x4f   : > { %562 = vst [vmem:[#allocation2 + $0x60] sm:$0xff] %v2042_v0  ;;  %563 = vst [vmem:[#allocation2 + $0x68] sm:$0xff] %v2042_v0 }
  0x50   : > { %564 = vst [vmem:[#allocation2 + $0x70] sm:$0xff] %v2042_v0  ;;  %565 = vst [vmem:[#allocation2 + $0x78] sm:$0xff] %v2042_v0 }
  0x51   : > { %566 = vst [vmem:[#allocation2 + $0x80] sm:$0xff] %v2042_v0  ;;  %567 = vst [vmem:[#allocation2 + $0x88] sm:$0xff] %v2042_v0 }
  0x52   : > { %568 = vst [vmem:[#allocation2 + $0x90] sm:$0xff] %v2042_v0  ;;  %569 = vst [vmem:[#allocation2 + $0x98] sm:$0xff] %v2042_v0 }
  0x53   : > { %570 = vst [vmem:[#allocation2 + $0xa0] sm:$0xff] %v2042_v0  ;;  %571 = vst [vmem:[#allocation2 + $0xa8] sm:$0xff] %v2042_v0 }
  0x54   : > { %572 = vst [vmem:[#allocation2 + $0xb0] sm:$0xff] %v2042_v0  ;;  %573 = vst [vmem:[#allocation2 + $0xb8] sm:$0xff] %v2042_v0 }
  0x55   : > { %574 = vst [vmem:[#allocation2 + $0xc0] sm:$0xff] %v2042_v0  ;;  %575 = vst [vmem:[#allocation2 + $0xc8] sm:$0xff] %v2042_v0 }
  0x56   : > { %576 = vst [vmem:[#allocation2 + $0xd0] sm:$0xff] %v2042_v0  ;;  %577 = vst [vmem:[#allocation2 + $0xd8] sm:$0xff] %v2042_v0 }
  0x57   : > { %578 = vst [vmem:[#allocation2 + $0xe0] sm:$0xff] %v2042_v0  ;;  %579 = vst [vmem:[#allocation2 + $0xe8] sm:$0xff] %v2042_v0 }
  0x58   : > { %580 = vst [vmem:[#allocation2 + $0xf0] sm:$0xff] %v2042_v0  ;;  %581 = vst [vmem:[#allocation2 + $0xf8] sm:$0xff] %v2042_v0 }
  0x59   : > { %582 = vst [vmem:[#allocation2 + $0x100] sm:$0xff] %v2042_v0  ;;  %583 = vst [vmem:[#allocation2 + $0x108] sm:$0xff] %v2042_v0 }
  0x5a   : > { %584 = vst [vmem:[#allocation2 + $0x110] sm:$0xff] %v2042_v0  ;;  %585 = vst [vmem:[#allocation2 + $0x118] sm:$0xff] %v2042_v0 }
  0x5b   : > { %586 = vst [vmem:[#allocation2 + $0x120] sm:$0xff] %v2042_v0  ;;  %587 = vst [vmem:[#allocation2 + $0x128] sm:$0xff] %v2042_v0 }
  0x5c   : > { %588 = vst [vmem:[#allocation2 + $0x130] sm:$0xff] %v2042_v0  ;;  %589 = vst [vmem:[#allocation2 + $0x138] sm:$0xff] %v2042_v0 }
  0x5d   : > { %590 = vst [vmem:[#allocation2 + $0x140] sm:$0xff] %v2042_v0  ;;  %591 = vst [vmem:[#allocation2 + $0x148] sm:$0xff] %v2042_v0 }
  0x5e   : > { %592 = vst [vmem:[#allocation2 + $0x150] sm:$0xff] %v2042_v0  ;;  %593 = vst [vmem:[#allocation2 + $0x158] sm:$0xff] %v2042_v0 }
  0x5f   : > { %594 = vst [vmem:[#allocation2 + $0x160] sm:$0xff] %v2042_v0  ;;  %595 = vst [vmem:[#allocation2 + $0x168] sm:$0xff] %v2042_v0 }
  0x60   : > { %596 = vst [vmem:[#allocation2 + $0x170] sm:$0xff] %v2042_v0  ;;  %597 = vst [vmem:[#allocation2 + $0x178] sm:$0xff] %v2042_v0 }
  0x61   : > { %598 = vst [vmem:[#allocation2 + $0x180] sm:$0xff] %v2042_v0  ;;  %599 = vst [vmem:[#allocation2 + $0x188] sm:$0xff] %v2042_v0 }
  0x62   : > { %600 = vst [vmem:[#allocation2 + $0x190] sm:$0xff] %v2042_v0  ;;  %601 = vst [vmem:[#allocation2 + $0x198] sm:$0xff] %v2042_v0 }
  0x63   : > { %602 = vst [vmem:[#allocation2 + $0x1a0] sm:$0xff] %v2042_v0  ;;  %603 = vst [vmem:[#allocation2 + $0x1a8] sm:$0xff] %v2042_v0 }
  0x64   : > { %604 = vst [vmem:[#allocation2 + $0x1b0] sm:$0xff] %v2042_v0  ;;  %605 = vst [vmem:[#allocation2 + $0x1b8] sm:$0xff] %v2042_v0 }
  0x65   : > { %606 = vst [vmem:[#allocation2 + $0x1c0] sm:$0xff] %v2042_v0  ;;  %607 = vst [vmem:[#allocation2 + $0x1c8] sm:$0xff] %v2042_v0 }
  0x66   : > { %608 = vst [vmem:[#allocation2 + $0x1d0] sm:$0xff] %v2042_v0  ;;  %609 = vst [vmem:[#allocation2 + $0x1d8] sm:$0xff] %v2042_v0 }
  0x67   : > { %610 = vst [vmem:[#allocation2 + $0x1e0] sm:$0xff] %v2042_v0  ;;  %611 = vst [vmem:[#allocation2 + $0x1e8] sm:$0xff] %v2042_v0 }
  0x68   : > { %612 = vst [vmem:[#allocation2 + $0x1f0] sm:$0xff] %v2042_v0  ;;  %613 = vst [vmem:[#allocation2 + $0x1f8] sm:$0xff] %v2042_v0 }
  0x69 PF: > { %v1962_v1 = vld [vmem:[%s2245_s7] sm:$0xff]   ;;  %v1963_v2 = vld [vmem:[%s2245_s7 + $0x8] sm:$0xff]   ;;  %v1964_v3 = vld [vmem:[%s2245_s7 + $0x10] sm:$0xff]   ;;  %p1779_p11 = scmp.ne.s32.totalorder %s2032_s14, 48 }
  0x6a   : > { %1825 = vmatprep.subr.bf16.mxu0 %v1962_v1  ;;  %1905 = vmatprep.subr.bf16.mxu1 %v1962_v1  ;;  %v1965_v4 = vld [vmem:[%s2245_s7 + $0x18] sm:$0xff]   ;;  %v1970_v5 = vld [vmem:[%s2247_s8] sm:$0xff]   ;;  %v1967_v8 = vld [vmem:[%s2245_s7 + $0x28] sm:$0xff]  }
  0x6b   : > { %1826 = vmatpush3.bf16.msra.mxu0 %v1962_v1  ;;  %1913 = vmatpush3.bf16.msra.mxu1 %v1962_v1  ;;  %v1971_v6 = vld [vmem:[%s2247_s8 + $0x80] sm:$0xff]   ;;  %v1968_v9 = vld [vmem:[%s2245_s7 + $0x30] sm:$0xff]   ;;  %v1969_v10 = vld [vmem:[%s2245_s7 + $0x38] sm:$0xff]  }
  0x6c   : > { %1827 = vmatprep.subr.bf16.mxu0 %v1963_v2  ;;  %1906 = vmatprep.subr.bf16.mxu1 %v1963_v2  ;;  %v1966_v7 = vld [vmem:[%s2245_s7 + $0x20] sm:$0xff]   ;;  %v1972_v11 = vld [vmem:[%s2247_s8 + $0x8] sm:$0xff]   ;;  %v1974_v13 = vld [vmem:[%s2247_s8 + $0x10] sm:$0xff]  }
  0x6d   : > { %1841 = vmatprep.mubr.bf16.mxu0 %v1970_v5  ;;  %1873 = vmatprep.mubr.bf16.mxu1 %v1971_v6  ;;  %v1973_v12 = vld [vmem:[%s2247_s8 + $0x88] sm:$0xff]   ;;  %v1975_v14 = vld [vmem:[%s2247_s8 + $0x90] sm:$0xff]   ;;  %v1976_v15 = vld [vmem:[%s2247_s8 + $0x18] sm:$0xff]  }
  0x6e   : > { %v1977_v16 = vld [vmem:[%s2247_s8 + $0x98] sm:$0xff]   ;;  %v1978_v17 = vld [vmem:[%s2247_s8 + $0x20] sm:$0xff]   ;;  %v1980_v19 = vld [vmem:[%s2247_s8 + $0x28] sm:$0xff]  }
  0x6f   : > { %1828 = vmatpush3.bf16.msra.mxu0 %v1963_v2  ;;  %1914 = vmatpush3.bf16.msra.mxu1 %v1963_v2  ;;  %v1979_v18 = vld [vmem:[%s2247_s8 + $0xa0] sm:$0xff]   ;;  %v1981_v20 = vld [vmem:[%s2247_s8 + $0xa8] sm:$0xff]   ;;  %v1982_v21 = vld [vmem:[%s2247_s8 + $0x30] sm:$0xff]  }
  0x70   : > { %1829 = vmatprep.subr.bf16.mxu0 %v1964_v3  ;;  %1907 = vmatprep.subr.bf16.mxu1 %v1964_v3  ;;  %v1983_v22 = vld [vmem:[%s2247_s8 + $0xb0] sm:$0xff]   ;;  %v1984_v23 = vld [vmem:[%s2247_s8 + $0x38] sm:$0xff]   ;;  %v1986_v25 = vld [vmem:[%s2247_s8 + $0x40] sm:$0xff]  }
  0x71   : > { %v1985_v24 = vld [vmem:[%s2247_s8 + $0xb8] sm:$0xff]   ;;  %v1987_v26 = vld [vmem:[%s2247_s8 + $0xc0] sm:$0xff]   ;;  %v1988_v27 = vld [vmem:[%s2247_s8 + $0x48] sm:$0xff]  }
  0x72   : > { %v1989_v28 = vld [vmem:[%s2247_s8 + $0xc8] sm:$0xff]   ;;  %v1990_v29 = vld [vmem:[%s2247_s8 + $0x50] sm:$0xff]   ;;  %v1992_v31 = vld [vmem:[%s2247_s8 + $0x58] sm:$0xff]  }
  0x73   : > { %1830 = vmatpush3.bf16.msra.mxu0 %v1964_v3  ;;  %1915 = vmatpush3.bf16.msra.mxu1 %v1964_v3  ;;  %v1991_v30 = vld [vmem:[%s2247_s8 + $0xd0] sm:$0xff]   ;;  %v1993_v32 = vld [vmem:[%s2247_s8 + $0xd8] sm:$0xff]   ;;  %v1994_v33 = vld [vmem:[%s2247_s8 + $0x60] sm:$0xff]  }
  0x74   : > { %1831 = vmatprep.subr.bf16.mxu0 %v1965_v4  ;;  %1908 = vmatprep.subr.bf16.mxu1 %v1965_v4  ;;  %v1995_v34 = vld [vmem:[%s2247_s8 + $0xe0] sm:$0xff]   ;;  %v1996_v35 = vld [vmem:[%s2247_s8 + $0x68] sm:$0xff]   ;;  %v1998_v37 = vld [vmem:[%s2247_s8 + $0x70] sm:$0xff]  }
  0x75   : > { %v1997_v36 = vld [vmem:[%s2247_s8 + $0xe8] sm:$0xff]   ;;  %v1999_v38 = vld [vmem:[%s2247_s8 + $0xf0] sm:$0xff]   ;;  %v2000_v39 = vld [vmem:[%s2247_s8 + $0x78] sm:$0xff]  }
  0x76   : > { %v2001_v40 = vld [vmem:[%s2247_s8 + $0xf8] sm:$0xff]   ;;  %v616_v41 = vld [vmem:[#allocation2 + $0x10] sm:$0xff]  ;;  %v614_v43 = vld [vmem:[#allocation2] sm:$0xff] }
  0x77   : > { %1832 = vmatpush3.bf16.msra.mxu0 %v1965_v4  ;;  %1916 = vmatpush3.bf16.msra.mxu1 %v1965_v4  ;;  %v648_v42 = vld [vmem:[#allocation2 + $0x110] sm:$0xff]  ;;  %v646_v44 = vld [vmem:[#allocation2 + $0x100] sm:$0xff]  ;;  %v617_v47 = vld [vmem:[#allocation2 + $0x18] sm:$0xff] }
  0x78   : > { %1833 = vmatprep.subr.bf16.mxu0 %v1966_v7  ;;  %1909 = vmatprep.subr.bf16.mxu1 %v1966_v7  ;;  %v649_v48 = vld [vmem:[#allocation2 + $0x118] sm:$0xff]  ;;  %v615_v53 = vld [vmem:[#allocation2 + $0x8] sm:$0xff]  ;;  %v620_v1 = vld [vmem:[#allocation2 + $0x30] sm:$0xff] }
  0x79   : > { %v647_v54 = vld [vmem:[#allocation2 + $0x108] sm:$0xff]  ;;  %v652_v2 = vld [vmem:[#allocation2 + $0x130] sm:$0xff]  ;;  %v618_v3 = vld [vmem:[#allocation2 + $0x20] sm:$0xff] }
  0x7a   : > { %v650_v4 = vld [vmem:[#allocation2 + $0x120] sm:$0xff] }
  0x7b   : > { %1834 = vmatpush3.bf16.msra.mxu0 %v1966_v7  ;;  %1917 = vmatpush3.bf16.msra.mxu1 %v1966_v7  ;;  %v621_v7 = vld [vmem:[#allocation2 + $0x38] sm:$0xff] }
  0x7c   : > { %1835 = vmatprep.subr.bf16.mxu0 %v1967_v8  ;;  %1910 = vmatprep.subr.bf16.mxu1 %v1967_v8 }
  0x7f   : > { %1836 = vmatpush3.bf16.msra.mxu0 %v1967_v8  ;;  %1918 = vmatpush3.bf16.msra.mxu1 %v1967_v8  ;;  %v653_v8 = vld [vmem:[#allocation2 + $0x138] sm:$0xff] }
  0x80   : > { %1837 = vmatprep.subr.bf16.mxu0 %v1968_v9  ;;  %1911 = vmatprep.subr.bf16.mxu1 %v1968_v9 }
  0x83   : > { %1838 = vmatpush3.bf16.msra.mxu0 %v1968_v9  ;;  %1919 = vmatpush3.bf16.msra.mxu1 %v1968_v9 }
  0x84   : > { %1839 = vmatprep.subr.bf16.mxu0 %v1969_v10  ;;  %1912 = vmatprep.subr.bf16.mxu1 %v1969_v10 }
  0x87   : > { %1840 = vmatpush3.bf16.msra.mxu0 %v1969_v10  ;;  %1920 = vmatpush3.bf16.msra.mxu1 %v1969_v10 }
  0x8a   : > { %1842 = vmatmul.mubr.bf16.vlgmr.msra.gmra.mrb[0].mxu0 %v1972_v11  ;;  %1874 = vmatmul.mubr.bf16.vlgmr.msra.gmra.mrb[0].mxu1 %v1973_v12 }
  0x8b   : > { %1845 = vmatprep.mubr.bf16.mxu0 %v1974_v13  ;;  %1877 = vmatprep.mubr.bf16.mxu1 %v1975_v14  ;;  %v619_v13 = vld [vmem:[#allocation2 + $0x28] sm:$0xff] }
  0x8c   : > { %v651_v14 = vld [vmem:[#allocation2 + $0x128] sm:$0xff] }
  0x92   : > { %1846 = vmatmul.mubr.bf16.gmra.mrb[4].mxu0 %v1976_v15  ;;  %1878 = vmatmul.mubr.bf16.gmra.mrb[4].mxu1 %v1977_v16 }
  0x93   : > { %1849 = vmatprep.mubr.bf16.mxu0 %v1978_v17  ;;  %1881 = vmatprep.mubr.bf16.mxu1 %v1979_v18 }
  0x9a   : > { %1850 = vmatmul.mubr.bf16.gmra.mrb[8].mxu0 %v1980_v19  ;;  %1882 = vmatmul.mubr.bf16.gmra.mrb[8].mxu1 %v1981_v20 }
  0x9b   : > { %1853 = vmatprep.mubr.bf16.mxu0 %v1982_v21  ;;  %1885 = vmatprep.mubr.bf16.mxu1 %v1983_v22 }
  0xa2   : > { %1854 = vmatmul.mubr.bf16.gmra.mrb[12].mxu0 %v1984_v23  ;;  %1886 = vmatmul.mubr.bf16.gmra.mrb[12].mxu1 %v1985_v24 }
  0xa3   : > { %1857 = vmatprep.mubr.bf16.mxu0 %v1986_v25  ;;  %1889 = vmatprep.mubr.bf16.mxu1 %v1987_v26  ;;  %v624_v25 = vld [vmem:[#allocation2 + $0x50] sm:$0xff] }
  0xa4   : > { %v656_v26 = vld [vmem:[#allocation2 + $0x150] sm:$0xff] }
  0xaa   : > { %1858 = vmatmul.mubr.bf16.gmra.mrb[16].mxu0 %v1988_v27  ;;  %1890 = vmatmul.mubr.bf16.gmra.mrb[16].mxu1 %v1989_v28  ;;  %v622_v27 = vld [vmem:[#allocation2 + $0x40] sm:$0xff] }
  0xab   : > { %1861 = vmatprep.mubr.bf16.mxu0 %v1990_v29  ;;  %1893 = vmatprep.mubr.bf16.mxu1 %v1991_v30  ;;  %v654_v28 = vld [vmem:[#allocation2 + $0x140] sm:$0xff] }
  0xb2   : > { %1862 = vmatmul.mubr.bf16.gmra.mrb[20].mxu0 %v1992_v31  ;;  %1894 = vmatmul.mubr.bf16.gmra.mrb[20].mxu1 %v1993_v32  ;;  %v625_v31 = vld [vmem:[#allocation2 + $0x58] sm:$0xff] }
  0xb3   : > { %1865 = vmatprep.mubr.bf16.mxu0 %v1994_v33  ;;  %1897 = vmatprep.mubr.bf16.mxu1 %v1995_v34  ;;  %v657_v32 = vld [vmem:[#allocation2 + $0x158] sm:$0xff] }
  0xba   : > { %1866 = vmatmul.mubr.bf16.gmra.mrb[24].mxu0 %v1996_v35  ;;  %1898 = vmatmul.mubr.bf16.gmra.mrb[24].mxu1 %v1997_v36 }
  0xbb   : > { %1869 = vmatprep.mubr.bf16.mxu0 %v1998_v37  ;;  %1901 = vmatprep.mubr.bf16.mxu1 %v1999_v38  ;;  %v623_v37 = vld [vmem:[#allocation2 + $0x48] sm:$0xff] }
  0xbc   : > { %v655_v38 = vld [vmem:[#allocation2 + $0x148] sm:$0xff] }
  0xc2   : > { %1870 = vmatmul.mubr.bf16.gmra.mrb[28].mxu0 %v2000_v39  ;;  %1902 = vmatmul.mubr.bf16.gmra.mrb[28].mxu1 %v2001_v40 }
 0x15d   : > { %v1843_v45 = vpop.f32.mrb[0].mxu0  ;;  %v1875_v46 = vpop.f32.mrb[0].mxu1 }
 0x15e   : > { %v1289_v49 = vadd.f32 %v1843_v45, %v616_v41  ;;  %v1321_v50 = vadd.f32 %v1875_v46, %v648_v42  ;;  %v1032_v51 = vpop.f32.mrb[1].mxu0  ;;  %v1160_v52 = vpop.f32.mrb[1].mxu1 }
 0x15f   : > { %v1287_v55 = vadd.f32 %v1032_v51, %v614_v43  ;;  %v1319_v56 = vadd.f32 %v1160_v52, %v646_v44  ;;  %v1844_v57 = vpop.f32.mrb[2].mxu0  ;;  %v1876_v58 = vpop.f32.mrb[2].mxu1  ;;  %v626_v51 = vld [vmem:[#allocation2 + $0x60] sm:$0xff] }
 0x160   : > { %1353 = vst [vmem:[#allocation2 + $0x10] sm:$0xff] %v1289_v49  ;;  %1385 = vst [vmem:[#allocation2 + $0x110] sm:$0xff] %v1321_v50  ;;  %v1290_v59 = vadd.f32 %v1844_v57, %v617_v47  ;;  %v1322_v60 = vadd.f32 %v1876_v58, %v649_v48  ;;  %v1035_v61 = vpop.f32.mrb[3].mxu0  ;;  %v1163_v62 = vpop.f32.mrb[3].mxu1  ;;  %v628_v49 = vld [vmem:[#allocation2 + $0x70] sm:$0xff]  ;;  %v658_v52 = vld [vmem:[#allocation2 + $0x160] sm:$0xff] }
 0x161   : > { %1351 = vst [vmem:[#allocation2] sm:$0xff] %v1287_v55  ;;  %1383 = vst [vmem:[#allocation2 + $0x100] sm:$0xff] %v1319_v56  ;;  %v1288_v63 = vadd.f32 %v1035_v61, %v615_v53  ;;  %v1320_v0 = vadd.f32 %v1163_v62, %v647_v54  ;;  %v660_v50 = vld [vmem:[#allocation2 + $0x170] sm:$0xff]  ;;  %v629_v55 = vld [vmem:[#allocation2 + $0x78] sm:$0xff] }
 0x162   : > { %1354 = vst [vmem:[#allocation2 + $0x18] sm:$0xff] %v1290_v59  ;;  %1386 = vst [vmem:[#allocation2 + $0x118] sm:$0xff] %v1322_v60  ;;  %v661_v56 = vld [vmem:[#allocation2 + $0x178] sm:$0xff]  ;;  %v627_v61 = vld [vmem:[#allocation2 + $0x68] sm:$0xff] }
 0x163   : > { %1352 = vst [vmem:[#allocation2 + $0x8] sm:$0xff] %v1288_v63  ;;  %1384 = vst [vmem:[#allocation2 + $0x108] sm:$0xff] %v1320_v0  ;;  %v659_v62 = vld [vmem:[#allocation2 + $0x168] sm:$0xff] }
 0x165   : > { %v1847_v5 = vpop.f32.mrb[4].mxu0  ;;  %v1879_v6 = vpop.f32.mrb[4].mxu1 }
 0x166   : > { %v1293_v9 = vadd.f32 %v1847_v5, %v620_v1  ;;  %v1325_v10 = vadd.f32 %v1879_v6, %v652_v2  ;;  %v1048_v11 = vpop.f32.mrb[5].mxu0  ;;  %v1176_v12 = vpop.f32.mrb[5].mxu1 }
 0x167   : > { %v1291_v15 = vadd.f32 %v1048_v11, %v618_v3  ;;  %v1323_v16 = vadd.f32 %v1176_v12, %v650_v4  ;;  %v1848_v17 = vpop.f32.mrb[6].mxu0  ;;  %v1880_v18 = vpop.f32.mrb[6].mxu1  ;;  %v630_v11 = vld [vmem:[#allocation2 + $0x80] sm:$0xff] }
 0x168   : > { %1357 = vst [vmem:[#allocation2 + $0x30] sm:$0xff] %v1293_v9  ;;  %1389 = vst [vmem:[#allocation2 + $0x130] sm:$0xff] %v1325_v10  ;;  %v1294_v19 = vadd.f32 %v1848_v17, %v621_v7  ;;  %v1326_v20 = vadd.f32 %v1880_v18, %v653_v8  ;;  %v1051_v21 = vpop.f32.mrb[7].mxu0  ;;  %v1179_v22 = vpop.f32.mrb[7].mxu1  ;;  %v632_v9 = vld [vmem:[#allocation2 + $0x90] sm:$0xff]  ;;  %v662_v12 = vld [vmem:[#allocation2 + $0x180] sm:$0xff] }
 0x169   : > { %1355 = vst [vmem:[#allocation2 + $0x20] sm:$0xff] %v1291_v15  ;;  %1387 = vst [vmem:[#allocation2 + $0x120] sm:$0xff] %v1323_v16  ;;  %v1292_v23 = vadd.f32 %v1051_v21, %v619_v13  ;;  %v1324_v24 = vadd.f32 %v1179_v22, %v651_v14  ;;  %v664_v10 = vld [vmem:[#allocation2 + $0x190] sm:$0xff]  ;;  %v633_v15 = vld [vmem:[#allocation2 + $0x98] sm:$0xff] }
 0x16a   : > { %1358 = vst [vmem:[#allocation2 + $0x38] sm:$0xff] %v1294_v19  ;;  %1390 = vst [vmem:[#allocation2 + $0x138] sm:$0xff] %v1326_v20  ;;  %v665_v16 = vld [vmem:[#allocation2 + $0x198] sm:$0xff]  ;;  %v631_v21 = vld [vmem:[#allocation2 + $0x88] sm:$0xff] }
 0x16b   : > { %1356 = vst [vmem:[#allocation2 + $0x28] sm:$0xff] %v1292_v23  ;;  %1388 = vst [vmem:[#allocation2 + $0x128] sm:$0xff] %v1324_v24  ;;  %v663_v22 = vld [vmem:[#allocation2 + $0x188] sm:$0xff] }
 0x16d   : > { %v1851_v29 = vpop.f32.mrb[8].mxu0  ;;  %v1883_v30 = vpop.f32.mrb[8].mxu1 }
 0x16e   : > { %v1297_v33 = vadd.f32 %v1851_v29, %v624_v25  ;;  %v1329_v34 = vadd.f32 %v1883_v30, %v656_v26  ;;  %v1064_v35 = vpop.f32.mrb[9].mxu0  ;;  %v1192_v36 = vpop.f32.mrb[9].mxu1 }
 0x16f   : > { %v1295_v39 = vadd.f32 %v1064_v35, %v622_v27  ;;  %v1327_v40 = vadd.f32 %v1192_v36, %v654_v28  ;;  %v1852_v41 = vpop.f32.mrb[10].mxu0  ;;  %v1884_v42 = vpop.f32.mrb[10].mxu1  ;;  %v634_v35 = vld [vmem:[#allocation2 + $0xa0] sm:$0xff] }
 0x170   : > { %1361 = vst [vmem:[#allocation2 + $0x50] sm:$0xff] %v1297_v33  ;;  %1393 = vst [vmem:[#allocation2 + $0x150] sm:$0xff] %v1329_v34  ;;  %v1298_v43 = vadd.f32 %v1852_v41, %v625_v31  ;;  %v1330_v44 = vadd.f32 %v1884_v42, %v657_v32  ;;  %v1067_v45 = vpop.f32.mrb[11].mxu0  ;;  %v1195_v46 = vpop.f32.mrb[11].mxu1  ;;  %v636_v33 = vld [vmem:[#allocation2 + $0xb0] sm:$0xff]  ;;  %v666_v36 = vld [vmem:[#allocation2 + $0x1a0] sm:$0xff] }
 0x171   : > { %1359 = vst [vmem:[#allocation2 + $0x40] sm:$0xff] %v1295_v39  ;;  %1391 = vst [vmem:[#allocation2 + $0x140] sm:$0xff] %v1327_v40  ;;  %v1296_v47 = vadd.f32 %v1067_v45, %v623_v37  ;;  %v1328_v48 = vadd.f32 %v1195_v46, %v655_v38  ;;  %v668_v34 = vld [vmem:[#allocation2 + $0x1b0] sm:$0xff]  ;;  %v637_v39 = vld [vmem:[#allocation2 + $0xb8] sm:$0xff] }
 0x172   : > { %1362 = vst [vmem:[#allocation2 + $0x58] sm:$0xff] %v1298_v43  ;;  %1394 = vst [vmem:[#allocation2 + $0x158] sm:$0xff] %v1330_v44  ;;  %v669_v40 = vld [vmem:[#allocation2 + $0x1b8] sm:$0xff]  ;;  %v635_v45 = vld [vmem:[#allocation2 + $0xa8] sm:$0xff] }
 0x173   : > { %1360 = vst [vmem:[#allocation2 + $0x48] sm:$0xff] %v1296_v47  ;;  %1392 = vst [vmem:[#allocation2 + $0x148] sm:$0xff] %v1328_v48  ;;  %v667_v46 = vld [vmem:[#allocation2 + $0x1a8] sm:$0xff] }
 0x175   : > { %v1855_v53 = vpop.f32.mrb[12].mxu0  ;;  %v1887_v54 = vpop.f32.mrb[12].mxu1 }
 0x176   : > { %v1301_v57 = vadd.f32 %v1855_v53, %v628_v49  ;;  %v1333_v58 = vadd.f32 %v1887_v54, %v660_v50  ;;  %v1080_v59 = vpop.f32.mrb[13].mxu0  ;;  %v1208_v60 = vpop.f32.mrb[13].mxu1 }
 0x177   : > { %v1299_v63 = vadd.f32 %v1080_v59, %v626_v51  ;;  %v1331_v0 = vadd.f32 %v1208_v60, %v658_v52  ;;  %v1856_v1 = vpop.f32.mrb[14].mxu0  ;;  %v1888_v2 = vpop.f32.mrb[14].mxu1  ;;  %v638_v59 = vld [vmem:[#allocation2 + $0xc0] sm:$0xff] }
 0x178   : > { %1365 = vst [vmem:[#allocation2 + $0x70] sm:$0xff] %v1301_v57  ;;  %1397 = vst [vmem:[#allocation2 + $0x170] sm:$0xff] %v1333_v58  ;;  %v1302_v3 = vadd.f32 %v1856_v1, %v629_v55  ;;  %v1334_v4 = vadd.f32 %v1888_v2, %v661_v56  ;;  %v1083_v5 = vpop.f32.mrb[15].mxu0  ;;  %v1211_v6 = vpop.f32.mrb[15].mxu1  ;;  %v640_v57 = vld [vmem:[#allocation2 + $0xd0] sm:$0xff]  ;;  %v670_v60 = vld [vmem:[#allocation2 + $0x1c0] sm:$0xff] }
 0x179   : > { %1363 = vst [vmem:[#allocation2 + $0x60] sm:$0xff] %v1299_v63  ;;  %1395 = vst [vmem:[#allocation2 + $0x160] sm:$0xff] %v1331_v0  ;;  %v1300_v7 = vadd.f32 %v1083_v5, %v627_v61  ;;  %v1332_v8 = vadd.f32 %v1211_v6, %v659_v62  ;;  %v672_v58 = vld [vmem:[#allocation2 + $0x1d0] sm:$0xff]  ;;  %v641_v63 = vld [vmem:[#allocation2 + $0xd8] sm:$0xff] }
 0x17a   : > { %1366 = vst [vmem:[#allocation2 + $0x78] sm:$0xff] %v1302_v3  ;;  %1398 = vst [vmem:[#allocation2 + $0x178] sm:$0xff] %v1334_v4  ;;  %v673_v0 = vld [vmem:[#allocation2 + $0x1d8] sm:$0xff]  ;;  %v639_v5 = vld [vmem:[#allocation2 + $0xc8] sm:$0xff] }
 0x17b   : > { %1364 = vst [vmem:[#allocation2 + $0x68] sm:$0xff] %v1300_v7  ;;  %1396 = vst [vmem:[#allocation2 + $0x168] sm:$0xff] %v1332_v8  ;;  %v671_v6 = vld [vmem:[#allocation2 + $0x1c8] sm:$0xff] }
 0x17d   : > { %v1859_v13 = vpop.f32.mrb[16].mxu0  ;;  %v1891_v14 = vpop.f32.mrb[16].mxu1 }
 0x17e   : > { %v1305_v17 = vadd.f32 %v1859_v13, %v632_v9  ;;  %v1337_v18 = vadd.f32 %v1891_v14, %v664_v10  ;;  %v1096_v19 = vpop.f32.mrb[17].mxu0  ;;  %v1224_v20 = vpop.f32.mrb[17].mxu1 }
 0x17f   : > { %v1303_v23 = vadd.f32 %v1096_v19, %v630_v11  ;;  %v1335_v24 = vadd.f32 %v1224_v20, %v662_v12  ;;  %v1860_v25 = vpop.f32.mrb[18].mxu0  ;;  %v1892_v26 = vpop.f32.mrb[18].mxu1  ;;  %v642_v19 = vld [vmem:[#allocation2 + $0xe0] sm:$0xff] }
 0x180   : > { %1369 = vst [vmem:[#allocation2 + $0x90] sm:$0xff] %v1305_v17  ;;  %1401 = vst [vmem:[#allocation2 + $0x190] sm:$0xff] %v1337_v18  ;;  %v1306_v27 = vadd.f32 %v1860_v25, %v633_v15  ;;  %v1338_v28 = vadd.f32 %v1892_v26, %v665_v16  ;;  %v1099_v29 = vpop.f32.mrb[19].mxu0  ;;  %v1227_v30 = vpop.f32.mrb[19].mxu1  ;;  %v644_v17 = vld [vmem:[#allocation2 + $0xf0] sm:$0xff]  ;;  %v674_v20 = vld [vmem:[#allocation2 + $0x1e0] sm:$0xff] }
 0x181   : > { %1367 = vst [vmem:[#allocation2 + $0x80] sm:$0xff] %v1303_v23  ;;  %1399 = vst [vmem:[#allocation2 + $0x180] sm:$0xff] %v1335_v24  ;;  %v1304_v31 = vadd.f32 %v1099_v29, %v631_v21  ;;  %v1336_v32 = vadd.f32 %v1227_v30, %v663_v22  ;;  %v676_v18 = vld [vmem:[#allocation2 + $0x1f0] sm:$0xff]  ;;  %v645_v23 = vld [vmem:[#allocation2 + $0xf8] sm:$0xff] }
 0x182   : > { %1370 = vst [vmem:[#allocation2 + $0x98] sm:$0xff] %v1306_v27  ;;  %1402 = vst [vmem:[#allocation2 + $0x198] sm:$0xff] %v1338_v28  ;;  %v677_v24 = vld [vmem:[#allocation2 + $0x1f8] sm:$0xff]  ;;  %v643_v29 = vld [vmem:[#allocation2 + $0xe8] sm:$0xff] }
 0x183   : > { %1368 = vst [vmem:[#allocation2 + $0x88] sm:$0xff] %v1304_v31  ;;  %1400 = vst [vmem:[#allocation2 + $0x188] sm:$0xff] %v1336_v32  ;;  %v675_v30 = vld [vmem:[#allocation2 + $0x1e8] sm:$0xff] }
 0x185   : > { %v1863_v37 = vpop.f32.mrb[20].mxu0  ;;  %v1895_v38 = vpop.f32.mrb[20].mxu1 }
 0x186   : > { %v1309_v41 = vadd.f32 %v1863_v37, %v636_v33  ;;  %v1341_v42 = vadd.f32 %v1895_v38, %v668_v34  ;;  %v1112_v43 = vpop.f32.mrb[21].mxu0  ;;  %v1240_v44 = vpop.f32.mrb[21].mxu1 }
 0x187   : > { %v1307_v47 = vadd.f32 %v1112_v43, %v634_v35  ;;  %v1339_v48 = vadd.f32 %v1240_v44, %v666_v36  ;;  %v1864_v49 = vpop.f32.mrb[22].mxu0  ;;  %v1896_v50 = vpop.f32.mrb[22].mxu1  ;;  %v1420_v43 = vld [vmem:[#allocation2 + $0x8] sm:$0xff] (!%p1779_p11) }
 0x188   : > { %1373 = vst [vmem:[#allocation2 + $0xb0] sm:$0xff] %v1309_v41  ;;  %1405 = vst [vmem:[#allocation2 + $0x1b0] sm:$0xff] %v1341_v42  ;;  %v1310_v51 = vadd.f32 %v1864_v49, %v637_v39  ;;  %v1342_v52 = vadd.f32 %v1896_v50, %v669_v40  ;;  %v1115_v53 = vpop.f32.mrb[23].mxu0  ;;  %v1243_v54 = vpop.f32.mrb[23].mxu1  ;;  %v1419_v41 = vld [vmem:[#allocation2] sm:$0xff] (!%p1779_p11) }
 0x189   : > { %1371 = vst [vmem:[#allocation2 + $0xa0] sm:$0xff] %v1307_v47  ;;  %1403 = vst [vmem:[#allocation2 + $0x1a0] sm:$0xff] %v1339_v48  ;;  %v1308_v55 = vadd.f32 %v1115_v53, %v635_v45  ;;  %v1340_v56 = vadd.f32 %v1243_v54, %v667_v46  ;;  %v2358_v42 = vld [vmem:[%s2633_s2] ss:$0 sm:$0xff] (!%p1779_p11)  ;;  %v1421_v46 = vld [vmem:[#allocation2 + $0x10] sm:$0xff] (!%p1779_p11) }
 0x18a   : > { %1374 = vst [vmem:[#allocation2 + $0xb8] sm:$0xff] %v1310_v51  ;;  %1406 = vst [vmem:[#allocation2 + $0x1b8] sm:$0xff] %v1342_v52  ;;  %v1490_v44 = vadd.f32 (!%p1779_p11), %v2358_v42, %v1419_v41  ;;  %v1491_v45 = vadd.f32 (!%p1779_p11), %v2358_v42, %v1420_v43  ;;  %v1422_v47 = vld [vmem:[#allocation2 + $0x18] sm:$0xff] (!%p1779_p11)  ;;  %v1423_v48 = vld [vmem:[#allocation2 + $0x20] sm:$0xff] (!%p1779_p11)  ;;  %v1492_v49 = vadd.f32 (!%p1779_p11), %v2358_v42, %v1421_v46 }
 0x18b   : > { %1372 = vst [vmem:[#allocation2 + $0xa8] sm:$0xff] %v1308_v55  ;;  %1404 = vst [vmem:[#allocation2 + $0x1a8] sm:$0xff] %v1340_v56  ;;  %v1493_v50 = vadd.f32 (!%p1779_p11), %v2358_v42, %v1422_v47  ;;  %v1494_v51 = vadd.f32 (!%p1779_p11), %v2358_v42, %v1423_v48  ;;  %v1424_v52 = vld [vmem:[#allocation2 + $0x28] sm:$0xff] (!%p1779_p11)  ;;  %v1425_v53 = vld [vmem:[#allocation2 + $0x30] sm:$0xff] (!%p1779_p11) }
 0x18c   : > { %v1426_v54 = vld [vmem:[#allocation2 + $0x38] sm:$0xff] (!%p1779_p11)  ;;  %1554 = vst [vmem:[%s2634_s3] sm:$0xff] (!%p1779_p11), %v1490_v44  ;;  %1555 = vst [vmem:[%s2634_s3 + $0x8] sm:$0xff] (!%p1779_p11), %v1491_v45  ;;  %v1495_v55 = vadd.f32 (!%p1779_p11), %v2358_v42, %v1424_v52  ;;  %v1496_v56 = vadd.f32 (!%p1779_p11), %v2358_v42, %v1425_v53  ;;  %v1451_v43 = vld [vmem:[#allocation2 + $0x100] sm:$0xff] (!%p1779_p11) }
 0x18d   : > { %v1867_v61 = vpop.f32.mrb[24].mxu0  ;;  %v1899_v62 = vpop.f32.mrb[24].mxu1  ;;  %1556 = vst [vmem:[%s2634_s3 + $0x10] sm:$0xff] (!%p1779_p11), %v1492_v49  ;;  %1557 = vst [vmem:[%s2634_s3 + $0x18] sm:$0xff] (!%p1779_p11), %v1493_v50  ;;  %v1452_v44 = vld [vmem:[#allocation2 + $0x108] sm:$0xff] (!%p1779_p11)  ;;  %v1453_v45 = vld [vmem:[#allocation2 + $0x110] sm:$0xff] (!%p1779_p11)  ;;  %v1522_v46 = vadd.f32 (!%p1779_p11), %v2358_v42, %v1451_v43 }
 0x18e   : > { %v1313_v1 = vadd.f32 %v1867_v61, %v640_v57  ;;  %v1345_v2 = vadd.f32 %v1899_v62, %v672_v58  ;;  %v1128_v3 = vpop.f32.mrb[25].mxu0  ;;  %v1256_v4 = vpop.f32.mrb[25].mxu1  ;;  %v1497_v57 = vadd.f32 (!%p1779_p11), %v2358_v42, %v1426_v54  ;;  %v1427_v58 = vld [vmem:[#allocation2 + $0x40] sm:$0xff] (!%p1779_p11)  ;;  %1558 = vst [vmem:[%s2634_s3 + $0x20] sm:$0xff] (!%p1779_p11), %v1494_v51  ;;  %1559 = vst [vmem:[%s2634_s3 + $0x28] sm:$0xff] (!%p1779_p11), %v1495_v55  ;;  %v1454_v49 = vld [vmem:[#allocation2 + $0x118] sm:$0xff] (!%p1779_p11) }
 0x18f   : > { %v1311_v7 = vadd.f32 %v1128_v3, %v638_v59  ;;  %v1343_v8 = vadd.f32 %v1256_v4, %v670_v60  ;;  %v1868_v9 = vpop.f32.mrb[26].mxu0  ;;  %v1900_v10 = vpop.f32.mrb[26].mxu1  ;;  %v1428_v59 = vld [vmem:[#allocation2 + $0x48] sm:$0xff] (!%p1779_p11)  ;;  %v1429_v60 = vld [vmem:[#allocation2 + $0x50] sm:$0xff] (!%p1779_p11)  ;;  %v1498_v61 = vadd.f32 (!%p1779_p11), %v2358_v42, %v1427_v58  ;;  %1560 = vst [vmem:[%s2634_s3 + $0x30] sm:$0xff] (!%p1779_p11), %v1496_v56  ;;  %v1523_v47 = vadd.f32 (!%p1779_p11), %v2358_v42, %v1452_v44  ;;  %v1455_v50 = vld [vmem:[#allocation2 + $0x120] sm:$0xff] (!%p1779_p11) }
 0x190   : > { %1377 = vst [vmem:[#allocation2 + $0xd0] sm:$0xff] %v1313_v1  ;;  %1409 = vst [vmem:[#allocation2 + $0x1d0] sm:$0xff] %v1345_v2  ;;  %v1314_v11 = vadd.f32 %v1868_v9, %v641_v63  ;;  %v1346_v12 = vadd.f32 %v1900_v10, %v673_v0  ;;  %v1131_v13 = vpop.f32.mrb[27].mxu0  ;;  %v1259_v14 = vpop.f32.mrb[27].mxu1  ;;  %v1499_v62 = vadd.f32 (!%p1779_p11), %v2358_v42, %v1428_v59  ;;  %v1430_v0 = vld [vmem:[#allocation2 + $0x58] sm:$0xff] (!%p1779_p11)  ;;  %v1431_v1 = vld [vmem:[#allocation2 + $0x60] sm:$0xff] (!%p1779_p11) }
 0x191   : > { %1375 = vst [vmem:[#allocation2 + $0xc0] sm:$0xff] %v1311_v7  ;;  %1407 = vst [vmem:[#allocation2 + $0x1c0] sm:$0xff] %v1343_v8  ;;  %v1312_v15 = vadd.f32 %v1131_v13, %v639_v5  ;;  %v1344_v16 = vadd.f32 %v1259_v14, %v671_v6  ;;  %v1500_v63 = vadd.f32 (!%p1779_p11), %v2358_v42, %v1429_v60  ;;  %v1432_v2 = vld [vmem:[#allocation2 + $0x68] sm:$0xff] (!%p1779_p11)  ;;  %v1433_v6 = vld [vmem:[#allocation2 + $0x70] sm:$0xff] (!%p1779_p11) }
 0x192   : > { %1378 = vst [vmem:[#allocation2 + $0xd8] sm:$0xff] %v1314_v11  ;;  %1410 = vst [vmem:[#allocation2 + $0x1d8] sm:$0xff] %v1346_v12  ;;  %v1501_v3 = vadd.f32 (!%p1779_p11), %v2358_v42, %v1430_v0  ;;  %v1502_v4 = vadd.f32 (!%p1779_p11), %v2358_v42, %v1431_v1  ;;  %v1503_v5 = vadd.f32 (!%p1779_p11), %v2358_v42, %v1432_v2  ;;  %v1434_v7 = vld [vmem:[#allocation2 + $0x78] sm:$0xff] (!%p1779_p11)  ;;  %v1435_v8 = vld [vmem:[#allocation2 + $0x80] sm:$0xff] (!%p1779_p11) }
 0x193   : > { %1376 = vst [vmem:[#allocation2 + $0xc8] sm:$0xff] %v1312_v15  ;;  %1408 = vst [vmem:[#allocation2 + $0x1c8] sm:$0xff] %v1344_v16  ;;  %v1504_v9 = vadd.f32 (!%p1779_p11), %v2358_v42, %v1433_v6  ;;  %v1505_v10 = vadd.f32 (!%p1779_p11), %v2358_v42, %v1434_v7  ;;  %v1506_v11 = vadd.f32 (!%p1779_p11), %v2358_v42, %v1435_v8  ;;  %v1436_v12 = vld [vmem:[#allocation2 + $0x88] sm:$0xff] (!%p1779_p11)  ;;  %v1437_v13 = vld [vmem:[#allocation2 + $0x90] sm:$0xff] (!%p1779_p11) }
 0x194   : > { %1561 = vst [vmem:[%s2634_s3 + $0x38] sm:$0xff] (!%p1779_p11), %v1497_v57  ;;  %1562 = vst [vmem:[%s2634_s3 + $0x40] sm:$0xff] (!%p1779_p11), %v1498_v61  ;;  %v1438_v14 = vld [vmem:[#allocation2 + $0x98] sm:$0xff] (!%p1779_p11)  ;;  %v1507_v15 = vadd.f32 (!%p1779_p11), %v2358_v42, %v1436_v12  ;;  %v1508_v16 = vadd.f32 (!%p1779_p11), %v2358_v42, %v1437_v13  ;;  %v1524_v48 = vadd.f32 (!%p1779_p11), %v2358_v42, %v1453_v45  ;;  %v1456_v51 = vld [vmem:[#allocation2 + $0x128] sm:$0xff] (!%p1779_p11) }
 0x195   : > { %v1871_v21 = vpop.f32.mrb[28].mxu0  ;;  %v1903_v22 = vpop.f32.mrb[28].mxu1  ;;  %1418 = sbr.rel (%p1779_p11) target bundleno = 437 (0x1b5), region = 81  ;;  %1563 = vst [vmem:[%s2634_s3 + $0x48] sm:$0xff] (!%p1779_p11), %v1499_v62  ;;  %1564 = vst [vmem:[%s2634_s3 + $0x50] sm:$0xff] (!%p1779_p11), %v1500_v63  ;;  %v1525_v52 = vadd.f32 (!%p1779_p11), %v2358_v42, %v1454_v49  ;;  %v1526_v53 = vadd.f32 (!%p1779_p11), %v2358_v42, %v1455_v50  ;;  %v1527_v54 = vadd.f32 (!%p1779_p11), %v2358_v42, %v1456_v51  ;;  %v1457_v55 = vld [vmem:[#allocation2 + $0x130] sm:$0xff] (!%p1779_p11) }
 0x196   : > { %v1317_v25 = vadd.f32 %v1871_v21, %v644_v17  ;;  %v1349_v26 = vadd.f32 %v1903_v22, %v676_v18  ;;  %v1144_v27 = vpop.f32.mrb[29].mxu0  ;;  %v1272_v28 = vpop.f32.mrb[29].mxu1  ;;  %1565 = vst [vmem:[%s2634_s3 + $0x58] sm:$0xff] (!%p1779_p11), %v1501_v3  ;;  %1566 = vst [vmem:[%s2634_s3 + $0x60] sm:$0xff] (!%p1779_p11), %v1502_v4  ;;  %v1509_v17 = vadd.f32 (!%p1779_p11), %v2358_v42, %v1438_v14  ;;  %v1439_v18 = vld [vmem:[#allocation2 + $0xa0] sm:$0xff] (!%p1779_p11)  ;;  %v1458_v56 = vld [vmem:[#allocation2 + $0x138] sm:$0xff] (!%p1779_p11) }
 0x197   : > { %v1315_v31 = vadd.f32 %v1144_v27, %v642_v19  ;;  %v1347_v32 = vadd.f32 %v1272_v28, %v674_v20  ;;  %v1872_v33 = vpop.f32.mrb[30].mxu0  ;;  %v1904_v34 = vpop.f32.mrb[30].mxu1  ;;  %1567 = vst [vmem:[%s2634_s3 + $0x68] sm:$0xff] (!%p1779_p11), %v1503_v5  ;;  %v1440_v19 = vld [vmem:[#allocation2 + $0xa8] sm:$0xff] (!%p1779_p11)  ;;  %v1441_v20 = vld [vmem:[#allocation2 + $0xb0] sm:$0xff] (!%p1779_p11)  ;;  %1568 = vst [vmem:[%s2634_s3 + $0x70] sm:$0xff] (!%p1779_p11), %v1504_v9  ;;  %v1510_v21 = vadd.f32 (!%p1779_p11), %v2358_v42, %v1439_v18 }
 0x198   : > { %1381 = vst [vmem:[#allocation2 + $0xf0] sm:$0xff] %v1317_v25  ;;  %1413 = vst [vmem:[#allocation2 + $0x1f0] sm:$0xff] %v1349_v26  ;;  %v1318_v35 = vadd.f32 %v1872_v33, %v645_v23  ;;  %v1350_v36 = vadd.f32 %v1904_v34, %v677_v24  ;;  %v1147_v37 = vpop.f32.mrb[31].mxu0  ;;  %v1275_v38 = vpop.f32.mrb[31].mxu1  ;;  %v1511_v22 = vadd.f32 (!%p1779_p11), %v2358_v42, %v1440_v19  ;;  %v1442_v24 = vld [vmem:[#allocation2 + $0xb8] sm:$0xff] (!%p1779_p11)  ;;  %v1443_v25 = vld [vmem:[#allocation2 + $0xc0] sm:$0xff] (!%p1779_p11) }
 0x199   : > { %1379 = vst [vmem:[#allocation2 + $0xe0] sm:$0xff] %v1315_v31  ;;  %1411 = vst [vmem:[#allocation2 + $0x1e0] sm:$0xff] %v1347_v32  ;;  %v1316_v39 = vadd.f32 %v1147_v37, %v643_v29  ;;  %v1348_v40 = vadd.f32 %v1275_v38, %v675_v30  ;;  %v1512_v23 = vadd.f32 (!%p1779_p11), %v2358_v42, %v1441_v20  ;;  %v1445_v30 = vld [vmem:[#allocation2 + $0xd0] sm:$0xff] (!%p1779_p11)  ;;  %v1446_v31 = vld [vmem:[#allocation2 + $0xd8] sm:$0xff] (!%p1779_p11) }
 0x19a   : > { %1382 = vst [vmem:[#allocation2 + $0xf8] sm:$0xff] %v1318_v35  ;;  %1414 = vst [vmem:[#allocation2 + $0x1f8] sm:$0xff] %v1350_v36  ;;  %v1444_v26 = vld [vmem:[#allocation2 + $0xc8] sm:$0xff] (!%p1779_p11)  ;;  %v1513_v27 = vadd.f32 (!%p1779_p11), %v2358_v42, %v1442_v24  ;;  %v1514_v28 = vadd.f32 (!%p1779_p11), %v2358_v42, %v1443_v25  ;;  %v1516_v33 = vadd.f32 (!%p1779_p11), %v2358_v42, %v1445_v30  ;;  %v1459_v57 = vld [vmem:[#allocation2 + $0x140] sm:$0xff] (!%p1779_p11) }
 0x19b   : > { %1380 = vst [vmem:[#allocation2 + $0xe8] sm:$0xff] %v1316_v39  ;;  %1412 = vst [vmem:[#allocation2 + $0x1e8] sm:$0xff] %v1348_v40  ;;  %v1515_v29 = vadd.f32 (!%p1779_p11), %v2358_v42, %v1444_v26  ;;  %v1517_v34 = vadd.f32 (!%p1779_p11), %v2358_v42, %v1446_v31  ;;  %v1528_v58 = vadd.f32 (!%p1779_p11), %v2358_v42, %v1457_v55  ;;  %v1460_v61 = vld [vmem:[#allocation2 + $0x148] sm:$0xff] (!%p1779_p11)  ;;  %v1461_v62 = vld [vmem:[#allocation2 + $0x150] sm:$0xff] (!%p1779_p11) }
 0x19c   : > { %1569 = vst [vmem:[%s2634_s3 + $0x78] sm:$0xff] %v1505_v10  ;;  %1570 = vst [vmem:[%s2634_s3 + $0x80] sm:$0xff] %v1506_v11  ;;  %v1529_v59 = vadd.f32 %v2358_v42, %v1458_v56  ;;  %v1530_v60 = vadd.f32 %v2358_v42, %v1459_v57  ;;  %v1462_v63 = vld [vmem:[#allocation2 + $0x158] sm:$0xff]  ;;  %v1531_v0 = vadd.f32 %v2358_v42, %v1460_v61  ;;  %v1463_v3 = vld [vmem:[#allocation2 + $0x160] sm:$0xff] }
 0x19d   : > { %1571 = vst [vmem:[%s2634_s3 + $0x88] sm:$0xff] %v1507_v15  ;;  %1572 = vst [vmem:[%s2634_s3 + $0x90] sm:$0xff] %v1508_v16  ;;  %v1532_v1 = vadd.f32 %v2358_v42, %v1461_v62  ;;  %v1533_v2 = vadd.f32 %v2358_v42, %v1462_v63  ;;  %v1464_v4 = vld [vmem:[#allocation2 + $0x168] sm:$0xff]  ;;  %v1465_v5 = vld [vmem:[#allocation2 + $0x170] sm:$0xff]  ;;  %v1534_v6 = vadd.f32 %v2358_v42, %v1463_v3 }
 0x19e   : > { %1573 = vst [vmem:[%s2634_s3 + $0x98] sm:$0xff] %v1509_v17  ;;  %1574 = vst [vmem:[%s2634_s3 + $0xa0] sm:$0xff] %v1510_v21  ;;  %v1535_v7 = vadd.f32 %v2358_v42, %v1464_v4  ;;  %v1536_v8 = vadd.f32 %v2358_v42, %v1465_v5  ;;  %v1466_v9 = vld [vmem:[#allocation2 + $0x178] sm:$0xff]  ;;  %v1467_v10 = vld [vmem:[#allocation2 + $0x180] sm:$0xff] }
 0x19f   : > { %1575 = vst [vmem:[%s2634_s3 + $0xa8] sm:$0xff] %v1511_v22  ;;  %1576 = vst [vmem:[%s2634_s3 + $0xb0] sm:$0xff] %v1512_v23  ;;  %v1449_v37 = vld [vmem:[#allocation2 + $0xf0] sm:$0xff]  ;;  %v1468_v11 = vld [vmem:[#allocation2 + $0x188] sm:$0xff]  ;;  %v1537_v12 = vadd.f32 %v2358_v42, %v1466_v9  ;;  %v1538_v13 = vadd.f32 %v2358_v42, %v1467_v10 }
 0x1a0   : > { %v1447_v32 = vld [vmem:[#allocation2 + $0xe0] sm:$0xff]  ;;  %1577 = vst [vmem:[%s2634_s3 + $0xb8] sm:$0xff] %v1513_v27  ;;  %1578 = vst [vmem:[%s2634_s3 + $0xc0] sm:$0xff] %v1514_v28  ;;  %v1520_v40 = vadd.f32 %v2358_v42, %v1449_v37  ;;  %v1539_v14 = vadd.f32 %v2358_v42, %v1468_v11  ;;  %v1469_v15 = vld [vmem:[#allocation2 + $0x190] sm:$0xff] }
 0x1a1   : > { %v1518_v35 = vadd.f32 %v2358_v42, %v1447_v32  ;;  %v1450_v38 = vld [vmem:[#allocation2 + $0xf8] sm:$0xff]  ;;  %1579 = vst [vmem:[%s2634_s3 + $0xc8] sm:$0xff] %v1515_v29  ;;  %1580 = vst [vmem:[%s2634_s3 + $0xd0] sm:$0xff] %v1516_v33  ;;  %v1471_v17 = vld [vmem:[#allocation2 + $0x1a0] sm:$0xff]  ;;  %v1540_v18 = vadd.f32 %v2358_v42, %v1469_v15 }
 0x1a2   : > { %v1448_v36 = vld [vmem:[#allocation2 + $0xe8] sm:$0xff]  ;;  %v1521_v41 = vadd.f32 %v2358_v42, %v1450_v38  ;;  %1581 = vst [vmem:[%s2634_s3 + $0xd8] sm:$0xff] %v1517_v34  ;;  %1584 = vst [vmem:[%s2634_s3 + $0xf0] sm:$0xff] %v1520_v40  ;;  %v1470_v16 = vld [vmem:[#allocation2 + $0x198] sm:$0xff]  ;;  %v1542_v20 = vadd.f32 %v2358_v42, %v1471_v17 }
 0x1a3   : > { %v1519_v39 = vadd.f32 %v2358_v42, %v1448_v36  ;;  %1582 = vst [vmem:[%s2634_s3 + $0xe0] sm:$0xff] %v1518_v35  ;;  %1586 = vst [vmem:[%s2634_s3 + $0x100] sm:$0xff] %v1522_v46  ;;  %v1541_v19 = vadd.f32 %v2358_v42, %v1470_v16  ;;  %v1472_v21 = vld [vmem:[#allocation2 + $0x1a8] sm:$0xff]  ;;  %v1473_v22 = vld [vmem:[#allocation2 + $0x1b0] sm:$0xff] }
 0x1a4   : > { %1585 = vst [vmem:[%s2634_s3 + $0xf8] sm:$0xff] %v1521_v41  ;;  %1587 = vst [vmem:[%s2634_s3 + $0x108] sm:$0xff] %v1523_v47  ;;  %v1474_v23 = vld [vmem:[#allocation2 + $0x1b8] sm:$0xff]  ;;  %v1543_v24 = vadd.f32 %v2358_v42, %v1472_v21  ;;  %v1544_v25 = vadd.f32 %v2358_v42, %v1473_v22  ;;  %v1475_v27 = vld [vmem:[#allocation2 + $0x1c0] sm:$0xff] }
 0x1a5   : > { %1583 = vst [vmem:[%s2634_s3 + $0xe8] sm:$0xff] %v1519_v39  ;;  %1588 = vst [vmem:[%s2634_s3 + $0x110] sm:$0xff] %v1524_v48  ;;  %v1545_v26 = vadd.f32 %v2358_v42, %v1474_v23  ;;  %v1476_v28 = vld [vmem:[#allocation2 + $0x1c8] sm:$0xff]  ;;  %v1477_v29 = vld [vmem:[#allocation2 + $0x1d0] sm:$0xff]  ;;  %v1546_v30 = vadd.f32 %v2358_v42, %v1475_v27 }
 0x1a6   : > { %1589 = vst [vmem:[%s2634_s3 + $0x118] sm:$0xff] %v1525_v52  ;;  %1590 = vst [vmem:[%s2634_s3 + $0x120] sm:$0xff] %v1526_v53  ;;  %v1547_v31 = vadd.f32 %v2358_v42, %v1476_v28  ;;  %v1548_v32 = vadd.f32 %v2358_v42, %v1477_v29  ;;  %v1478_v33 = vld [vmem:[#allocation2 + $0x1d8] sm:$0xff]  ;;  %v1479_v34 = vld [vmem:[#allocation2 + $0x1e0] sm:$0xff] }
 0x1a7   : > { %1591 = vst [vmem:[%s2634_s3 + $0x128] sm:$0xff] %v1527_v54  ;;  %1592 = vst [vmem:[%s2634_s3 + $0x130] sm:$0xff] %v1528_v58  ;;  %v1480_v35 = vld [vmem:[#allocation2 + $0x1e8] sm:$0xff]  ;;  %v1549_v36 = vadd.f32 %v2358_v42, %v1478_v33  ;;  %v1550_v37 = vadd.f32 %v2358_v42, %v1479_v34  ;;  %v1481_v39 = vld [vmem:[#allocation2 + $0x1f0] sm:$0xff] }
 0x1a8   : > { %1593 = vst [vmem:[%s2634_s3 + $0x138] sm:$0xff] %v1529_v59  ;;  %1594 = vst [vmem:[%s2634_s3 + $0x140] sm:$0xff] %v1530_v60  ;;  %v1551_v38 = vadd.f32 %v2358_v42, %v1480_v35  ;;  %v1482_v40 = vld [vmem:[#allocation2 + $0x1f8] sm:$0xff]  ;;  %v1552_v41 = vadd.f32 %v2358_v42, %v1481_v39 }
 0x1a9   : > { %1595 = vst [vmem:[%s2634_s3 + $0x148] sm:$0xff] %v1531_v0  ;;  %1596 = vst [vmem:[%s2634_s3 + $0x150] sm:$0xff] %v1532_v1  ;;  %v1553_v43 = vadd.f32 %v2358_v42, %v1482_v40 }
 0x1aa   : > { %1597 = vst [vmem:[%s2634_s3 + $0x158] sm:$0xff] %v1533_v2  ;;  %1598 = vst [vmem:[%s2634_s3 + $0x160] sm:$0xff] %v1534_v6 }
 0x1ab   : > { %1599 = vst [vmem:[%s2634_s3 + $0x168] sm:$0xff] %v1535_v7  ;;  %1600 = vst [vmem:[%s2634_s3 + $0x170] sm:$0xff] %v1536_v8 }
 0x1ac   : > { %1601 = vst [vmem:[%s2634_s3 + $0x178] sm:$0xff] %v1537_v12  ;;  %1602 = vst [vmem:[%s2634_s3 + $0x180] sm:$0xff] %v1538_v13 }
 0x1ad   : > { %1603 = vst [vmem:[%s2634_s3 + $0x188] sm:$0xff] %v1539_v14  ;;  %1604 = vst [vmem:[%s2634_s3 + $0x190] sm:$0xff] %v1540_v18 }
 0x1ae   : > { %1605 = vst [vmem:[%s2634_s3 + $0x198] sm:$0xff] %v1541_v19  ;;  %1606 = vst [vmem:[%s2634_s3 + $0x1a0] sm:$0xff] %v1542_v20 }
 0x1af   : > { %1607 = vst [vmem:[%s2634_s3 + $0x1a8] sm:$0xff] %v1543_v24  ;;  %1608 = vst [vmem:[%s2634_s3 + $0x1b0] sm:$0xff] %v1544_v25 }
 0x1b0   : > { %1609 = vst [vmem:[%s2634_s3 + $0x1b8] sm:$0xff] %v1545_v26  ;;  %1610 = vst [vmem:[%s2634_s3 + $0x1c0] sm:$0xff] %v1546_v30 }
 0x1b1   : > { %1611 = vst [vmem:[%s2634_s3 + $0x1c8] sm:$0xff] %v1547_v31  ;;  %1612 = vst [vmem:[%s2634_s3 + $0x1d0] sm:$0xff] %v1548_v32 }
 0x1b2   : > { %1613 = vst [vmem:[%s2634_s3 + $0x1d8] sm:$0xff] %v1549_v36  ;;  %1614 = vst [vmem:[%s2634_s3 + $0x1e0] sm:$0xff] %v1550_v37 }
 0x1b3   : > { %1615 = vst [vmem:[%s2634_s3 + $0x1e8] sm:$0xff] %v1551_v38  ;;  %1616 = vst [vmem:[%s2634_s3 + $0x1f0] sm:$0xff] %v1552_v41 }
 0x1b4   : > { %1617 = vst [vmem:[%s2634_s3 + $0x1f8] sm:$0xff] %v1553_v43 }
 0x1b5 PF: > { %s13_s16 = sadd.s32 1, %s2040_s16   ;;  %s2635_s12 = smov %s2028_s13 }
 0x1b6   : > { %p10_p12 = scmp.ge.s32.totalorder %s13_s16, 51   ;;  %s2636_s13 = smov %s2098_s20 }
 0x1b7   : > { %s2637_s14 = smov %s2036_s15  ;;  %s2638_s15 = smov %s2640_s17 }
 0x1b8   :  { %12 = sbr.rel (!%p10_p12) target bundleno = 3 (0x3), region = 122 }

</bundles_post_ra>
